<compile_context>
chip_gen: v7x
topology: tpu7x:2x2x1
jax: 0.10.0
libtpu: 0.0.40
codegen_flags: <defaults>
</compile_context>

<pallas_src>
import functools
import math

import jax
import jax.numpy as jnp
from jax import lax
from jax.experimental import pallas as pl
from jax.experimental.pallas import tpu as pltpu

BN_EPS = 1e-5
LANE = 128


def _round_up(x, m):
    return ((x + m - 1) // m) * m


# ----------------------------------------------------------------------------
# Kernel A: conv-as-matmul tile (bf16 MXU, f32 acc) + per-tile BN partial stats
# ----------------------------------------------------------------------------
def conv_mm_stats_kernel(p_ref, w_ref, y_ref, s_ref):
    # p: (TM, Kc) bf16 patches, w: (Kc, Cpad) bf16, y: (TM, Cpad) f32,
    # s: (1, 2, Cpad) f32  -> rows [sum_over_tile ; sumsq_over_tile]
    y = jnp.dot(p_ref[...], w_ref[...], preferred_element_type=jnp.float32)
    y_ref[...] = y
    ssum = jnp.sum(y, axis=0, keepdims=True)
    ssq = jnp.sum(y * y, axis=0, keepdims=True)
    s_ref[0, :, :] = jnp.concatenate([ssum, ssq], axis=0)


# ----------------------------------------------------------------------------
# Kernel B: reduce partial stats -> batch mean/var, apply BN affine + ReLU
# ----------------------------------------------------------------------------
def bn_relu_kernel(y_ref, s_ref, g_ref, b_ref, o_ref, *, inv_m):
    st = s_ref[...]                      # (nt, 2, Cpad) partial sums
    s = st[0]
    for t in range(1, st.shape[0]):      # nt is small and static
        s = s + st[t]
    mean = s[0:1, :] * inv_m
    var = jnp.maximum(s[1:2, :] * inv_m - mean * mean, 0.0)   # biased, as torch
    scale = g_ref[...] * lax.rsqrt(var + BN_EPS)
    shift = b_ref[...] - mean * scale
    o_ref[...] = jnp.maximum(y_ref[...] * scale + shift, 0.0).astype(o_ref.dtype)


def conv_bn_relu(patches, w, gamma, beta, *, tile_m=512):
    """patches: (M, Kc) bf16, rows ordered (n, oh, ow).  Returns (M, Cpad) bf16."""
    m, kc = patches.shape
    kc_pad, c_pad = w.shape
    if kc_pad > kc:
        patches = jnp.pad(patches, ((0, 0), (0, kc_pad - kc)))
    tm = min(tile_m, _round_up(m, 8))
    m_pad = _round_up(m, tm)
    if m_pad > m:
        patches = jnp.pad(patches, ((0, m_pad - m), (0, 0)))
    nt = m_pad // tm

    y, stats = pl.pallas_call(
        conv_mm_stats_kernel,
        out_shape=(jax.ShapeDtypeStruct((m_pad, c_pad), jnp.float32),
                   jax.ShapeDtypeStruct((nt, 2, c_pad), jnp.float32)),
        grid=(nt,),
        in_specs=[pl.BlockSpec((tm, kc_pad), lambda i: (i, 0)),
                  pl.BlockSpec((kc_pad, c_pad), lambda i: (0, 0))],
        out_specs=(pl.BlockSpec((tm, c_pad), lambda i: (i, 0)),
                   pl.BlockSpec((1, 2, c_pad), lambda i: (i, 0, 0))),
        compiler_params=pltpu.CompilerParams(
            dimension_semantics=("parallel",)),
    )(patches, w)

    act = pl.pallas_call(
        functools.partial(bn_relu_kernel, inv_m=1.0 / float(m)),
        out_shape=jax.ShapeDtypeStruct((m_pad, c_pad), jnp.bfloat16),
        grid=(nt,),
        in_specs=[pl.BlockSpec((tm, c_pad), lambda i: (i, 0)),
                  pl.BlockSpec((nt, 2, c_pad), lambda i: (0, 0, 0)),
                  pl.BlockSpec((1, c_pad), lambda i: (0, 0)),
                  pl.BlockSpec((1, c_pad), lambda i: (0, 0))],
        out_specs=pl.BlockSpec((tm, c_pad), lambda i: (i, 0)),
        compiler_params=pltpu.CompilerParams(
            dimension_semantics=("parallel",)),
    )(y, stats, gamma, beta)
    return act[:m]


# ----------------------------------------------------------------------------
# Kernel C: fused dueling head
#   h  = relu(x @ [wv1 | wa1] + [bv1 | ba1])                    (N, 1024)
#   y  = h @ blockdiag(wv2, wa2) + [bv2 | ba2 | 0...]           (N, 128)
#   q  = v + a - mean(a)
# ----------------------------------------------------------------------------
def dueling_head_kernel(x_ref, w1_ref, b1_ref, w2_ref, b2_ref, o_ref, *,
                        num_actions):
    h = jnp.dot(x_ref[...], w1_ref[...],
                preferred_element_type=jnp.float32) + b1_ref[...]
    h = jnp.maximum(h, 0.0).astype(jnp.bfloat16)
    y = jnp.dot(h, w2_ref[...],
                preferred_element_type=jnp.float32) + b2_ref[...]
    v = y[:, 0:1]
    a = y[:, 1:1 + num_actions]
    o_ref[...] = v + a - jnp.sum(a, axis=1, keepdims=True) * (1.0 / num_actions)


def dueling_head(feat, w1c, b1c, w2c, b2c, num_actions, *, tile_n=256):
    n, f = feat.shape
    tb = min(tile_n, _round_up(n, 8))
    n_pad = _round_up(n, tb)
    if n_pad > n:
        feat = jnp.pad(feat, ((0, n_pad - n), (0, 0)))
    nt = n_pad // tb
    q = pl.pallas_call(
        functools.partial(dueling_head_kernel, num_actions=num_actions),
        out_shape=jax.ShapeDtypeStruct((n_pad, num_actions), jnp.float32),
        grid=(nt,),
        in_specs=[pl.BlockSpec((tb, f), lambda i: (i, 0)),
                  pl.BlockSpec(w1c.shape, lambda i: (0, 0)),
                  pl.BlockSpec(b1c.shape, lambda i: (0, 0)),
                  pl.BlockSpec(w2c.shape, lambda i: (0, 0)),
                  pl.BlockSpec(b2c.shape, lambda i: (0, 0))],
        out_specs=pl.BlockSpec((tb, num_actions), lambda i: (i, 0)),
        compiler_params=pltpu.CompilerParams(
            dimension_semantics=("parallel",)),
    )(feat, w1c, b1c, w2c, b2c)
    return q[:n]


# ----------------------------------------------------------------------------
# Plain-JAX glue: im2col on NHWC (data movement only, bf16)
# ----------------------------------------------------------------------------
def im2col_nhwc(x, k, s):
    n, h, w, c = x.shape
    oh = (h - k) // s + 1
    ow = (w - k) // s + 1
    taps = []
    for kh in range(k):
        for kw in range(k):
            taps.append(x[:, kh:kh + s * oh:s, kw:kw + s * ow:s, :])  # (N,OH,OW,C)
    p = jnp.stack(taps, axis=3)            # (N, OH, OW, K*K, C)
    return p.reshape(n * oh * ow, k * k * c), oh, ow


def conv_out_hw(h, w):
    h1, w1 = (h - 8) // 4 + 1, (w - 8) // 4 + 1
    h2, w2 = (h1 - 4) // 2 + 1, (w1 - 4) // 2 + 1
    h3, w3 = (h2 - 3) // 1 + 1, (w2 - 3) // 1 + 1
    return h3, w3


# ----------------------------------------------------------------------------
# Parameter construction (deterministic; mirrors torch default inits),
# packed into the padded / fused layouts the kernels consume.
# ----------------------------------------------------------------------------
def init_params(key, in_c, num_actions, feat_size):
    ks = jax.random.split(key, 11)

    def unif(k, shape, fan_in):
        bound = 1.0 / math.sqrt(fan_in)
        return jax.random.uniform(k, shape, jnp.float32, -bound, bound)

    def conv_w(k, cout, cin, ksz):
        w = unif(k, (cout, cin, ksz, ksz), cin * ksz * ksz)       # torch layout
        m = w.transpose(2, 3, 1, 0).reshape(ksz * ksz * cin, cout)  # (kh,kw,cin) rows
        m = jnp.pad(m, ((0, _round_up(m.shape[0], LANE) - m.shape[0]),
                        (0, _round_up(cout, LANE) - cout)))
        return m.astype(jnp.bfloat16)

    def bn_gb(cout):
        c_pad = _round_up(cout, LANE)
        g = jnp.zeros((1, c_pad), jnp.float32).at[:, :cout].set(1.0)
        return g, jnp.zeros((1, c_pad), jnp.float32)

    p = {}
    # Conv2d(in_c,32,8,s=4) / (32,64,4,s=2) / (64,64,3,s=1).  Conv biases are
    # intentionally omitted: a per-channel constant before training-mode
    # BatchNorm is exactly cancelled by the mean subtraction.
    p["w1"] = conv_w(ks[0], 32, in_c, 8); p["g1"], p["be1"] = bn_gb(32)
    p["w2"] = conv_w(ks[1], 64, 32, 4);   p["g2"], p["be2"] = bn_gb(64)
    p["w3"] = conv_w(ks[2], 64, 64, 3);   p["g3"], p["be3"] = bn_gb(64)

    # Heads (torch Linear W is (out, in); stored transposed).
    wv1 = unif(ks[3], (512, feat_size), feat_size).T
    bv1 = unif(ks[4], (1, 512), feat_size)
    wa1 = unif(ks[5], (512, feat_size), feat_size).T
    ba1 = unif(ks[6], (1, 512), feat_size)
    wv2 = unif(ks[7], (1, 512), 512).T             # (512, 1)
    bv2 = unif(ks[8], (1, 1), 512)
    wa2 = unif(ks[9], (num_actions, 512), 512).T   # (512, A)
    ba2 = unif(ks[10], (1, num_actions), 512)

    # Fused first layer: x @ [wv1 | wa1]
    p["w1c"] = jnp.concatenate([wv1, wa1], axis=1).astype(jnp.bfloat16)  # (F, 1024)
    p["b1c"] = jnp.concatenate([bv1, ba1], axis=1)                       # (1, 1024) f32
    # Fused second layer: block-diagonal [[wv2, 0], [0, wa2]], lane-padded to 128
    lanes = _round_up(1 + num_actions, LANE)
    w2blk = jnp.zeros((1024, lanes), jnp.float32)
    w2blk = w2blk.at[:512, 0:1].set(wv2)
    w2blk = w2blk.at[512:, 1:1 + num_actions].set(wa2)
    p["w2c"] = w2blk.astype(jnp.bfloat16)
    b2 = jnp.zeros((1, lanes), jnp.float32)
    b2 = b2.at[:, 0:1].set(bv2)
    b2 = b2.at[:, 1:1 + num_actions].set(ba2)
    p["b2c"] = b2
    return p


# ----------------------------------------------------------------------------
# Full forward pass (== QLearner.forward, BatchNorm in training mode)
# ----------------------------------------------------------------------------
def qlearner_forward(params, state, *, num_actions):
    n = state.shape[0]
    # single NCHW -> NHWC layout change up front; activations stay channels-last
    x = state.astype(jnp.bfloat16).transpose(0, 2, 3, 1)

    p, oh, ow = im2col_nhwc(x, 8, 4)
    x = conv_bn_relu(p, params["w1"], params["g1"], params["be1"])[:, :32]
    x = x.reshape(n, oh, ow, 32)

    p, oh, ow = im2col_nhwc(x, 4, 2)
    x = conv_bn_relu(p, params["w2"], params["g2"], params["be2"])[:, :64]
    x = x.reshape(n, oh, ow, 64)

    p, oh, ow = im2col_nhwc(x, 3, 1)
    x = conv_bn_relu(p, params["w3"], params["g3"], params["be3"])[:, :64]
    x = x.reshape(n, oh, ow, 64)

    # torch `.view(N, -1)` flattens NCHW order: one transpose before the heads
    feat = x.transpose(0, 3, 1, 2).reshape(n, -1)

    return dueling_head(feat, params["w1c"], params["b1c"],
                        params["w2c"], params["b2c"], num_actions)


if __name__ == "__main__":
    key = jax.random.PRNGKey(0)
    k_state, k_param = jax.random.split(key)

    # DQN-style observation: 4 stacked 84x84 frames, 6 actions, batch=2
    N, C, H, W = 2, 4, 84, 84
    NUM_ACTIONS = 6
    oh3, ow3 = conv_out_hw(H, W)
    feat_size = 64 * oh3 * ow3

    state = jax.random.normal(k_state, (N, C, H, W), jnp.float32)
    params = init_params(k_param, C, NUM_ACTIONS, feat_size)

    fwd = jax.jit(functools.partial(qlearner_forward, num_actions=NUM_ACTIONS))
    q_vals = jax.block_until_ready(fwd(params, state))

    assert q_vals.shape == (N, NUM_ACTIONS)
    assert q_vals.dtype == jnp.float32
    assert bool(jnp.all(jnp.isfinite(q_vals)))
    print("KERNEL_OK")
</pallas_src>

<mosaic_0001>
module attributes {stable_mosaic.version = 11 : i64} {
  func.func @conv_mm_stats_kernel(%arg0: i32, %arg1: memref<512x256xbf16, #tpu.memory_space<vmem>>, %arg2: memref<256x128xbf16, #tpu.memory_space<vmem>>, %arg3: memref<512x128xf32, #tpu.memory_space<vmem>>, %arg4: memref<1x2x128xf32, #tpu.memory_space<vmem>>) attributes {dimension_semantics = [#tpu.dimension_semantics<parallel>], iteration_bounds = array<i64: 2>, scalar_prefetch = 0 : i64, scratch_operands = 0 : i64, tpu.core_type = #tpu.core_type<tc>, window_params = [{transform_indices = @transform_0, window_bounds = array<i64: 512, 256>}, {pipeline_mode = #tpu.pipeline_mode<synchronous>, transform_indices = @transform_1, window_bounds = array<i64: 256, 128>}, {transform_indices = @transform_2, window_bounds = array<i64: 512, 128>}, {transform_indices = @transform_3, window_bounds = array<i64: 1, 2, 128>}]} {
    %c0 = arith.constant 0 : index
    %c0_0 = arith.constant 0 : index
    %0 = vector.load %arg1[%c0, %c0_0] : memref<512x256xbf16, #tpu.memory_space<vmem>>, vector<512x256xbf16>
    %c0_1 = arith.constant 0 : index
    %c0_2 = arith.constant 0 : index
    %1 = vector.load %arg2[%c0_1, %c0_2] : memref<256x128xbf16, #tpu.memory_space<vmem>>, vector<256x128xbf16>
    %cst = arith.constant dense<0.000000e+00> : vector<512x128xf32>
    %2 = tpu.matmul %0, %1, %cst {dimension_numbers = #tpu.dot_dimension_numbers<[1], [0], [0], [1], [0, 0, 1, 1], [], []>} : vector<512x256xbf16>, vector<256x128xbf16>, vector<512x128xf32> -> vector<512x128xf32>
    %c0_3 = arith.constant 0 : index
    %c0_4 = arith.constant 0 : index
    %3 = vector.load %arg3[%c0_3, %c0_4] : memref<512x128xf32, #tpu.memory_space<vmem>>, vector<512x128xf32>
    tpu.vector_store %arg3[%c0_3, %c0_4], %2 {strides = array<i32>} : memref<512x128xf32, #tpu.memory_space<vmem>>, vector<512x128xf32>,
    %cst_5 = arith.constant dense<0.000000e+00> : vector<128xf32>
    %4 = vector.multi_reduction <add>, %2, %cst_5 [0] : vector<512x128xf32> to vector<128xf32>
    %5 = vector.shape_cast %4 : vector<128xf32> to vector<1x128xf32>
    %6 = arith.mulf %2, %2 : vector<512x128xf32>
    %cst_6 = arith.constant dense<0.000000e+00> : vector<128xf32>
    %7 = vector.multi_reduction <add>, %6, %cst_6 [0] : vector<512x128xf32> to vector<128xf32>
    %8 = vector.shape_cast %7 : vector<128xf32> to vector<1x128xf32>
    %9 = tpu.concatenate %5, %8 in 0 : vector<1x128xf32>, vector<1x128xf32> -> vector<2x128xf32>
    %c0_7 = arith.constant 0 : index
    %c0_8 = arith.constant 0 : index
    %c0_9 = arith.constant 0 : index
    %10 = vector.load %arg4[%c0_7, %c0_8, %c0_9] : memref<1x2x128xf32, #tpu.memory_space<vmem>>, vector<1x2x128xf32>
    %11 = vector.shape_cast %10 : vector<1x2x128xf32> to vector<2x128xf32>
    %12 = vector.shape_cast %9 : vector<2x128xf32> to vector<1x2x128xf32>
    tpu.vector_store %arg4[%c0_7, %c0_8, %c0_9], %12 {strides = array<i32>} : memref<1x2x128xf32, #tpu.memory_space<vmem>>, vector<1x2x128xf32>,
    return
  }
  func.func @transform_0(%arg0: i32) -> (i32, i32) {
    %c0_i32 = arith.constant 0 : i32
    %c0_i32_0 = arith.constant 0 : i32
    return %arg0, %c0_i32 : i32, i32
  }
  func.func @transform_1(%arg0: i32) -> (i32, i32) {
    %c0_i32 = arith.constant 0 : i32
    %c0_i32_0 = arith.constant 0 : i32
    %c0_i32_1 = arith.constant 0 : i32
    return %c0_i32, %c0_i32_0 : i32, i32
  }
  func.func @transform_2(%arg0: i32) -> (i32, i32) {
    %c0_i32 = arith.constant 0 : i32
    %c0_i32_0 = arith.constant 0 : i32
    return %arg0, %c0_i32 : i32, i32
  }
  func.func @transform_3(%arg0: i32) -> (i32, i32, i32) {
    %c0_i32 = arith.constant 0 : i32
    %c0_i32_0 = arith.constant 0 : i32
    %c0_i32_1 = arith.constant 0 : i32
    return %arg0, %c0_i32, %c0_i32_0 : i32, i32, i32
  }
}

module attributes {stable_mosaic.version = 11 : i64} {
  func.func @bn_relu_kernel(%arg0: i32, %arg1: memref<512x128xf32, #tpu.memory_space<vmem>>, %arg2: memref<2x2x128xf32, #tpu.memory_space<vmem>>, %arg3: memref<1x128xf32, #tpu.memory_space<vmem>>, %arg4: memref<1x128xf32, #tpu.memory_space<vmem>>, %arg5: memref<512x128xbf16, #tpu.memory_space<vmem>>) attributes {dimension_semantics = [#tpu.dimension_semantics<parallel>], iteration_bounds = array<i64: 2>, scalar_prefetch = 0 : i64, scratch_operands = 0 : i64, tpu.core_type = #tpu.core_type<tc>, window_params = [{transform_indices = @transform_0, window_bounds = array<i64: 512, 128>}, {pipeline_mode = #tpu.pipeline_mode<synchronous>, transform_indices = @transform_1, window_bounds = array<i64: 2, 2, 128>}, {pipeline_mode = #tpu.pipeline_mode<synchronous>, transform_indices = @transform_2, window_bounds = array<i64: 1, 128>}, {pipeline_mode = #tpu.pipeline_mode<synchronous>, transform_indices = @transform_3, window_bounds = array<i64: 1, 128>}, {transform_indices = @transform_4, window_bounds = array<i64: 512, 128>}]} {
    %c0 = arith.constant 0 : index
    %c0_0 = arith.constant 0 : index
    %c0_1 = arith.constant 0 : index
    %0 = vector.load %arg2[%c0, %c0_0, %c0_1] : memref<2x2x128xf32, #tpu.memory_space<vmem>>, vector<2x2x128xf32>
    %1 = vector.extract_strided_slice %0 {offsets = [0, 0, 0], sizes = [1, 2, 128], strides = [1, 1, 1]} : vector<2x2x128xf32> to vector<1x2x128xf32>
    %2 = vector.shape_cast %1 : vector<1x2x128xf32> to vector<2x128xf32>
    %3 = vector.extract_strided_slice %0 {offsets = [1, 0, 0], sizes = [1, 2, 128], strides = [1, 1, 1]} : vector<2x2x128xf32> to vector<1x2x128xf32>
    %4 = vector.shape_cast %3 : vector<1x2x128xf32> to vector<2x128xf32>
    %5 = arith.addf %2, %4 : vector<2x128xf32>
    %6 = vector.extract_strided_slice %5 {offsets = [0, 0], sizes = [1, 128], strides = [1, 1]} : vector<2x128xf32> to vector<1x128xf32>
    %cst = arith.constant 1.250000e-03 : f32
    %7 = vector.broadcast %cst : f32 to vector<1x128xf32>
    %8 = arith.mulf %6, %7 : vector<1x128xf32>
    %9 = vector.extract_strided_slice %5 {offsets = [1, 0], sizes = [1, 128], strides = [1, 1]} : vector<2x128xf32> to vector<1x128xf32>
    %cst_2 = arith.constant 1.250000e-03 : f32
    %10 = vector.broadcast %cst_2 : f32 to vector<1x128xf32>
    %11 = arith.mulf %9, %10 : vector<1x128xf32>
    %12 = arith.mulf %8, %8 : vector<1x128xf32>
    %13 = arith.subf %11, %12 : vector<1x128xf32>
    %cst_3 = arith.constant 0.000000e+00 : f32
    %14 = vector.broadcast %cst_3 : f32 to vector<1x128xf32>
    %15 = arith.maximumf %13, %14 : vector<1x128xf32>
    %c0_4 = arith.constant 0 : index
    %c0_5 = arith.constant 0 : index
    %16 = vector.load %arg3[%c0_4, %c0_5] : memref<1x128xf32, #tpu.memory_space<vmem>>, vector<1x128xf32>
    %cst_6 = arith.constant 9.99999974E-6 : f32
    %17 = vector.broadcast %cst_6 : f32 to vector<1x128xf32>
    %18 = arith.addf %15, %17 : vector<1x128xf32>
    %19 = math.rsqrt %18 : vector<1x128xf32>
    %20 = arith.mulf %16, %19 : vector<1x128xf32>
    %c0_7 = arith.constant 0 : index
    %c0_8 = arith.constant 0 : index
    %21 = vector.load %arg4[%c0_7, %c0_8] : memref<1x128xf32, #tpu.memory_space<vmem>>, vector<1x128xf32>
    %22 = arith.mulf %8, %20 : vector<1x128xf32>
    %23 = arith.subf %21, %22 : vector<1x128xf32>
    %c0_9 = arith.constant 0 : index
    %c0_10 = arith.constant 0 : index
    %24 = vector.load %arg1[%c0_9, %c0_10] : memref<512x128xf32, #tpu.memory_space<vmem>>, vector<512x128xf32>
    %25 = vector.broadcast %20 : vector<1x128xf32> to vector<512x128xf32>
    %26 = arith.mulf %24, %25 : vector<512x128xf32>
    %27 = vector.broadcast %23 : vector<1x128xf32> to vector<512x128xf32>
    %28 = arith.addf %26, %27 : vector<512x128xf32>
    %cst_11 = arith.constant 0.000000e+00 : f32
    %29 = vector.broadcast %cst_11 : f32 to vector<512x128xf32>
    %30 = arith.maximumf %28, %29 : vector<512x128xf32>
    %31 = arith.truncf %30 : vector<512x128xf32> to vector<512x128xbf16>
    %c0_12 = arith.constant 0 : index
    %c0_13 = arith.constant 0 : index
    %32 = vector.load %arg5[%c0_12, %c0_13] : memref<512x128xbf16, #tpu.memory_space<vmem>>, vector<512x128xbf16>
    tpu.vector_store %arg5[%c0_12, %c0_13], %31 {strides = array<i32>} : memref<512x128xbf16, #tpu.memory_space<vmem>>, vector<512x128xbf16>,
    return
  }
  func.func @transform_0(%arg0: i32) -> (i32, i32) {
    %c0_i32 = arith.constant 0 : i32
    %c0_i32_0 = arith.constant 0 : i32
    return %arg0, %c0_i32 : i32, i32
  }
  func.func @transform_1(%arg0: i32) -> (i32, i32, i32) {
    %c0_i32 = arith.constant 0 : i32
    %c0_i32_0 = arith.constant 0 : i32
    %c0_i32_1 = arith.constant 0 : i32
    %c0_i32_2 = arith.constant 0 : i32
    return %c0_i32, %c0_i32_0, %c0_i32_1 : i32, i32, i32
  }
  func.func @transform_2(%arg0: i32) -> (i32, i32) {
    %c0_i32 = arith.constant 0 : i32
    %c0_i32_0 = arith.constant 0 : i32
    %c0_i32_1 = arith.constant 0 : i32
    return %c0_i32, %c0_i32_0 : i32, i32
  }
  func.func @transform_3(%arg0: i32) -> (i32, i32) {
    %c0_i32 = arith.constant 0 : i32
    %c0_i32_0 = arith.constant 0 : i32
    %c0_i32_1 = arith.constant 0 : i32
    return %c0_i32, %c0_i32_0 : i32, i32
  }
  func.func @transform_4(%arg0: i32) -> (i32, i32) {
    %c0_i32 = arith.constant 0 : i32
    %c0_i32_0 = arith.constant 0 : i32
    return %arg0, %c0_i32 : i32, i32
  }
}

module attributes {stable_mosaic.version = 11 : i64} {
  func.func @conv_mm_stats_kernel(%arg0: i32, %arg1: memref<168x512xbf16, #tpu.memory_space<vmem>>, %arg2: memref<512x128xbf16, #tpu.memory_space<vmem>>, %arg3: memref<168x128xf32, #tpu.memory_space<vmem>>, %arg4: memref<1x2x128xf32, #tpu.memory_space<vmem>>) attributes {dimension_semantics = [#tpu.dimension_semantics<parallel>], iteration_bounds = array<i64: 1>, scalar_prefetch = 0 : i64, scratch_operands = 0 : i64, tpu.core_type = #tpu.core_type<tc>, window_params = [{transform_indices = @transform_0, window_bounds = array<i64: 168, 512>}, {pipeline_mode = #tpu.pipeline_mode<synchronous>, transform_indices = @transform_1, window_bounds = array<i64: 512, 128>}, {transform_indices = @transform_2, window_bounds = array<i64: 168, 128>}, {transform_indices = @transform_3, window_bounds = array<i64: 1, 2, 128>}]} {
    %c0 = arith.constant 0 : index
    %c0_0 = arith.constant 0 : index
    %0 = vector.load %arg1[%c0, %c0_0] : memref<168x512xbf16, #tpu.memory_space<vmem>>, vector<168x512xbf16>
    %c0_1 = arith.constant 0 : index
    %c0_2 = arith.constant 0 : index
    %1 = vector.load %arg2[%c0_1, %c0_2] : memref<512x128xbf16, #tpu.memory_space<vmem>>, vector<512x128xbf16>
    %cst = arith.constant dense<0.000000e+00> : vector<168x128xf32>
    %2 = tpu.matmul %0, %1, %cst {dimension_numbers = #tpu.dot_dimension_numbers<[1], [0], [0], [1], [0, 0, 1, 1], [], []>} : vector<168x512xbf16>, vector<512x128xbf16>, vector<168x128xf32> -> vector<168x128xf32>
    %c0_3 = arith.constant 0 : index
    %c0_4 = arith.constant 0 : index
    %3 = vector.load %arg3[%c0_3, %c0_4] : memref<168x128xf32, #tpu.memory_space<vmem>>, vector<168x128xf32>
    tpu.vector_store %arg3[%c0_3, %c0_4], %2 {strides = array<i32>} : memref<168x128xf32, #tpu.memory_space<vmem>>, vector<168x128xf32>,
    %cst_5 = arith.constant dense<0.000000e+00> : vector<128xf32>
    %4 = vector.multi_reduction <add>, %2, %cst_5 [0] : vector<168x128xf32> to vector<128xf32>
    %5 = vector.shape_cast %4 : vector<128xf32> to vector<1x128xf32>
    %6 = arith.mulf %2, %2 : vector<168x128xf32>
    %cst_6 = arith.constant dense<0.000000e+00> : vector<128xf32>
    %7 = vector.multi_reduction <add>, %6, %cst_6 [0] : vector<168x128xf32> to vector<128xf32>
    %8 = vector.shape_cast %7 : vector<128xf32> to vector<1x128xf32>
    %9 = tpu.concatenate %5, %8 in 0 : vector<1x128xf32>, vector<1x128xf32> -> vector<2x128xf32>
    %c0_7 = arith.constant 0 : index
    %c0_8 = arith.constant 0 : index
    %c0_9 = arith.constant 0 : index
    %10 = vector.load %arg4[%c0_7, %c0_8, %c0_9] : memref<1x2x128xf32, #tpu.memory_space<vmem>>, vector<1x2x128xf32>
    %11 = vector.shape_cast %10 : vector<1x2x128xf32> to vector<2x128xf32>
    %12 = vector.shape_cast %9 : vector<2x128xf32> to vector<1x2x128xf32>
    tpu.vector_store %arg4[%c0_7, %c0_8, %c0_9], %12 {strides = array<i32>} : memref<1x2x128xf32, #tpu.memory_space<vmem>>, vector<1x2x128xf32>,
    return
  }
  func.func @transform_0(%arg0: i32) -> (i32, i32) {
    %c0_i32 = arith.constant 0 : i32
    %c0_i32_0 = arith.constant 0 : i32
    return %arg0, %c0_i32 : i32, i32
  }
  func.func @transform_1(%arg0: i32) -> (i32, i32) {
    %c0_i32 = arith.constant 0 : i32
    %c0_i32_0 = arith.constant 0 : i32
    %c0_i32_1 = arith.constant 0 : i32
    return %c0_i32, %c0_i32_0 : i32, i32
  }
  func.func @transform_2(%arg0: i32) -> (i32, i32) {
    %c0_i32 = arith.constant 0 : i32
    %c0_i32_0 = arith.constant 0 : i32
    return %arg0, %c0_i32 : i32, i32
  }
  func.func @transform_3(%arg0: i32) -> (i32, i32, i32) {
    %c0_i32 = arith.constant 0 : i32
    %c0_i32_0 = arith.constant 0 : i32
    %c0_i32_1 = arith.constant 0 : i32
    return %arg0, %c0_i32, %c0_i32_0 : i32, i32, i32
  }
}

module attributes {stable_mosaic.version = 11 : i64} {
  func.func @bn_relu_kernel(%arg0: i32, %arg1: memref<168x128xf32, #tpu.memory_space<vmem>>, %arg2: memref<1x2x128xf32, #tpu.memory_space<vmem>>, %arg3: memref<1x128xf32, #tpu.memory_space<vmem>>, %arg4: memref<1x128xf32, #tpu.memory_space<vmem>>, %arg5: memref<168x128xbf16, #tpu.memory_space<vmem>>) attributes {dimension_semantics = [#tpu.dimension_semantics<parallel>], iteration_bounds = array<i64: 1>, scalar_prefetch = 0 : i64, scratch_operands = 0 : i64, tpu.core_type = #tpu.core_type<tc>, window_params = [{transform_indices = @transform_0, window_bounds = array<i64: 168, 128>}, {pipeline_mode = #tpu.pipeline_mode<synchronous>, transform_indices = @transform_1, window_bounds = array<i64: 1, 2, 128>}, {pipeline_mode = #tpu.pipeline_mode<synchronous>, transform_indices = @transform_2, window_bounds = array<i64: 1, 128>}, {pipeline_mode = #tpu.pipeline_mode<synchronous>, transform_indices = @transform_3, window_bounds = array<i64: 1, 128>}, {transform_indices = @transform_4, window_bounds = array<i64: 168, 128>}]} {
    %c0 = arith.constant 0 : index
    %c0_0 = arith.constant 0 : index
    %c0_1 = arith.constant 0 : index
    %0 = vector.load %arg2[%c0, %c0_0, %c0_1] : memref<1x2x128xf32, #tpu.memory_space<vmem>>, vector<1x2x128xf32>
    %1 = vector.shape_cast %0 : vector<1x2x128xf32> to vector<2x128xf32>
    %2 = vector.extract_strided_slice %1 {offsets = [0, 0], sizes = [1, 128], strides = [1, 1]} : vector<2x128xf32> to vector<1x128xf32>
    %cst = arith.constant 0.00617283955 : f32
    %3 = vector.broadcast %cst : f32 to vector<1x128xf32>
    %4 = arith.mulf %2, %3 : vector<1x128xf32>
    %5 = vector.extract_strided_slice %1 {offsets = [1, 0], sizes = [1, 128], strides = [1, 1]} : vector<2x128xf32> to vector<1x128xf32>
    %cst_2 = arith.constant 0.00617283955 : f32
    %6 = vector.broadcast %cst_2 : f32 to vector<1x128xf32>
    %7 = arith.mulf %5, %6 : vector<1x128xf32>
    %8 = arith.mulf %4, %4 : vector<1x128xf32>
    %9 = arith.subf %7, %8 : vector<1x128xf32>
    %cst_3 = arith.constant 0.000000e+00 : f32
    %10 = vector.broadcast %cst_3 : f32 to vector<1x128xf32>
    %11 = arith.maximumf %9, %10 : vector<1x128xf32>
    %c0_4 = arith.constant 0 : index
    %c0_5 = arith.constant 0 : index
    %12 = vector.load %arg3[%c0_4, %c0_5] : memref<1x128xf32, #tpu.memory_space<vmem>>, vector<1x128xf32>
    %cst_6 = arith.constant 9.99999974E-6 : f32
    %13 = vector.broadcast %cst_6 : f32 to vector<1x128xf32>
    %14 = arith.addf %11, %13 : vector<1x128xf32>
    %15 = math.rsqrt %14 : vector<1x128xf32>
    %16 = arith.mulf %12, %15 : vector<1x128xf32>
    %c0_7 = arith.constant 0 : index
    %c0_8 = arith.constant 0 : index
    %17 = vector.load %arg4[%c0_7, %c0_8] : memref<1x128xf32, #tpu.memory_space<vmem>>, vector<1x128xf32>
    %18 = arith.mulf %4, %16 : vector<1x128xf32>
    %19 = arith.subf %17, %18 : vector<1x128xf32>
    %c0_9 = arith.constant 0 : index
    %c0_10 = arith.constant 0 : index
    %20 = vector.load %arg1[%c0_9, %c0_10] : memref<168x128xf32, #tpu.memory_space<vmem>>, vector<168x128xf32>
    %21 = vector.broadcast %16 : vector<1x128xf32> to vector<168x128xf32>
    %22 = arith.mulf %20, %21 : vector<168x128xf32>
    %23 = vector.broadcast %19 : vector<1x128xf32> to vector<168x128xf32>
    %24 = arith.addf %22, %23 : vector<168x128xf32>
    %cst_11 = arith.constant 0.000000e+00 : f32
    %25 = vector.broadcast %cst_11 : f32 to vector<168x128xf32>
    %26 = arith.maximumf %24, %25 : vector<168x128xf32>
    %27 = arith.truncf %26 : vector<168x128xf32> to vector<168x128xbf16>
    %c0_12 = arith.constant 0 : index
    %c0_13 = arith.constant 0 : index
    %28 = vector.load %arg5[%c0_12, %c0_13] : memref<168x128xbf16, #tpu.memory_space<vmem>>, vector<168x128xbf16>
    tpu.vector_store %arg5[%c0_12, %c0_13], %27 {strides = array<i32>} : memref<168x128xbf16, #tpu.memory_space<vmem>>, vector<168x128xbf16>,
    return
  }
  func.func @transform_0(%arg0: i32) -> (i32, i32) {
    %c0_i32 = arith.constant 0 : i32
    %c0_i32_0 = arith.constant 0 : i32
    return %arg0, %c0_i32 : i32, i32
  }
  func.func @transform_1(%arg0: i32) -> (i32, i32, i32) {
    %c0_i32 = arith.constant 0 : i32
    %c0_i32_0 = arith.constant 0 : i32
    %c0_i32_1 = arith.constant 0 : i32
    %c0_i32_2 = arith.constant 0 : i32
    return %c0_i32, %c0_i32_0, %c0_i32_1 : i32, i32, i32
  }
  func.func @transform_2(%arg0: i32) -> (i32, i32) {
    %c0_i32 = arith.constant 0 : i32
    %c0_i32_0 = arith.constant 0 : i32
    %c0_i32_1 = arith.constant 0 : i32
    return %c0_i32, %c0_i32_0 : i32, i32
  }
  func.func @transform_3(%arg0: i32) -> (i32, i32) {
    %c0_i32 = arith.constant 0 : i32
    %c0_i32_0 = arith.constant 0 : i32
    %c0_i32_1 = arith.constant 0 : i32
    return %c0_i32, %c0_i32_0 : i32, i32
  }
  func.func @transform_4(%arg0: i32) -> (i32, i32) {
    %c0_i32 = arith.constant 0 : i32
    %c0_i32_0 = arith.constant 0 : i32
    return %arg0, %c0_i32 : i32, i32
  }
}

module attributes {stable_mosaic.version = 11 : i64} {
  func.func @conv_mm_stats_kernel(%arg0: i32, %arg1: memref<104x640xbf16, #tpu.memory_space<vmem>>, %arg2: memref<640x128xbf16, #tpu.memory_space<vmem>>, %arg3: memref<104x128xf32, #tpu.memory_space<vmem>>, %arg4: memref<1x2x128xf32, #tpu.memory_space<vmem>>) attributes {dimension_semantics = [#tpu.dimension_semantics<parallel>], iteration_bounds = array<i64: 1>, scalar_prefetch = 0 : i64, scratch_operands = 0 : i64, tpu.core_type = #tpu.core_type<tc>, window_params = [{transform_indices = @transform_0, window_bounds = array<i64: 104, 640>}, {pipeline_mode = #tpu.pipeline_mode<synchronous>, transform_indices = @transform_1, window_bounds = array<i64: 640, 128>}, {transform_indices = @transform_2, window_bounds = array<i64: 104, 128>}, {transform_indices = @transform_3, window_bounds = array<i64: 1, 2, 128>}]} {
    %c0 = arith.constant 0 : index
    %c0_0 = arith.constant 0 : index
    %0 = vector.load %arg1[%c0, %c0_0] : memref<104x640xbf16, #tpu.memory_space<vmem>>, vector<104x640xbf16>
    %c0_1 = arith.constant 0 : index
    %c0_2 = arith.constant 0 : index
    %1 = vector.load %arg2[%c0_1, %c0_2] : memref<640x128xbf16, #tpu.memory_space<vmem>>, vector<640x128xbf16>
    %cst = arith.constant dense<0.000000e+00> : vector<104x128xf32>
    %2 = tpu.matmul %0, %1, %cst {dimension_numbers = #tpu.dot_dimension_numbers<[1], [0], [0], [1], [0, 0, 1, 1], [], []>} : vector<104x640xbf16>, vector<640x128xbf16>, vector<104x128xf32> -> vector<104x128xf32>
    %c0_3 = arith.constant 0 : index
    %c0_4 = arith.constant 0 : index
    %3 = vector.load %arg3[%c0_3, %c0_4] : memref<104x128xf32, #tpu.memory_space<vmem>>, vector<104x128xf32>
    tpu.vector_store %arg3[%c0_3, %c0_4], %2 {strides = array<i32>} : memref<104x128xf32, #tpu.memory_space<vmem>>, vector<104x128xf32>,
    %cst_5 = arith.constant dense<0.000000e+00> : vector<128xf32>
    %4 = vector.multi_reduction <add>, %2, %cst_5 [0] : vector<104x128xf32> to vector<128xf32>
    %5 = vector.shape_cast %4 : vector<128xf32> to vector<1x128xf32>
    %6 = arith.mulf %2, %2 : vector<104x128xf32>
    %cst_6 = arith.constant dense<0.000000e+00> : vector<128xf32>
    %7 = vector.multi_reduction <add>, %6, %cst_6 [0] : vector<104x128xf32> to vector<128xf32>
    %8 = vector.shape_cast %7 : vector<128xf32> to vector<1x128xf32>
    %9 = tpu.concatenate %5, %8 in 0 : vector<1x128xf32>, vector<1x128xf32> -> vector<2x128xf32>
    %c0_7 = arith.constant 0 : index
    %c0_8 = arith.constant 0 : index
    %c0_9 = arith.constant 0 : index
    %10 = vector.load %arg4[%c0_7, %c0_8, %c0_9] : memref<1x2x128xf32, #tpu.memory_space<vmem>>, vector<1x2x128xf32>
    %11 = vector.shape_cast %10 : vector<1x2x128xf32> to vector<2x128xf32>
    %12 = vector.shape_cast %9 : vector<2x128xf32> to vector<1x2x128xf32>
    tpu.vector_store %arg4[%c0_7, %c0_8, %c0_9], %12 {strides = array<i32>} : memref<1x2x128xf32, #tpu.memory_space<vmem>>, vector<1x2x128xf32>,
    return
  }
  func.func @transform_0(%arg0: i32) -> (i32, i32) {
    %c0_i32 = arith.constant 0 : i32
    %c0_i32_0 = arith.constant 0 : i32
    return %arg0, %c0_i32 : i32, i32
  }
  func.func @transform_1(%arg0: i32) -> (i32, i32) {
    %c0_i32 = arith.constant 0 : i32
    %c0_i32_0 = arith.constant 0 : i32
    %c0_i32_1 = arith.constant 0 : i32
    return %c0_i32, %c0_i32_0 : i32, i32
  }
  func.func @transform_2(%arg0: i32) -> (i32, i32) {
    %c0_i32 = arith.constant 0 : i32
    %c0_i32_0 = arith.constant 0 : i32
    return %arg0, %c0_i32 : i32, i32
  }
  func.func @transform_3(%arg0: i32) -> (i32, i32, i32) {
    %c0_i32 = arith.constant 0 : i32
    %c0_i32_0 = arith.constant 0 : i32
    %c0_i32_1 = arith.constant 0 : i32
    return %arg0, %c0_i32, %c0_i32_0 : i32, i32, i32
  }
}

module attributes {stable_mosaic.version = 11 : i64} {
  func.func @bn_relu_kernel(%arg0: i32, %arg1: memref<104x128xf32, #tpu.memory_space<vmem>>, %arg2: memref<1x2x128xf32, #tpu.memory_space<vmem>>, %arg3: memref<1x128xf32, #tpu.memory_space<vmem>>, %arg4: memref<1x128xf32, #tpu.memory_space<vmem>>, %arg5: memref<104x128xbf16, #tpu.memory_space<vmem>>) attributes {dimension_semantics = [#tpu.dimension_semantics<parallel>], iteration_bounds = array<i64: 1>, scalar_prefetch = 0 : i64, scratch_operands = 0 : i64, tpu.core_type = #tpu.core_type<tc>, window_params = [{transform_indices = @transform_0, window_bounds = array<i64: 104, 128>}, {pipeline_mode = #tpu.pipeline_mode<synchronous>, transform_indices = @transform_1, window_bounds = array<i64: 1, 2, 128>}, {pipeline_mode = #tpu.pipeline_mode<synchronous>, transform_indices = @transform_2, window_bounds = array<i64: 1, 128>}, {pipeline_mode = #tpu.pipeline_mode<synchronous>, transform_indices = @transform_3, window_bounds = array<i64: 1, 128>}, {transform_indices = @transform_4, window_bounds = array<i64: 104, 128>}]} {
    %c0 = arith.constant 0 : index
    %c0_0 = arith.constant 0 : index
    %c0_1 = arith.constant 0 : index
    %0 = vector.load %arg2[%c0, %c0_0, %c0_1] : memref<1x2x128xf32, #tpu.memory_space<vmem>>, vector<1x2x128xf32>
    %1 = vector.shape_cast %0 : vector<1x2x128xf32> to vector<2x128xf32>
    %2 = vector.extract_strided_slice %1 {offsets = [0, 0], sizes = [1, 128], strides = [1, 1]} : vector<2x128xf32> to vector<1x128xf32>
    %cst = arith.constant 0.0102040814 : f32
    %3 = vector.broadcast %cst : f32 to vector<1x128xf32>
    %4 = arith.mulf %2, %3 : vector<1x128xf32>
    %5 = vector.extract_strided_slice %1 {offsets = [1, 0], sizes = [1, 128], strides = [1, 1]} : vector<2x128xf32> to vector<1x128xf32>
    %cst_2 = arith.constant 0.0102040814 : f32
    %6 = vector.broadcast %cst_2 : f32 to vector<1x128xf32>
    %7 = arith.mulf %5, %6 : vector<1x128xf32>
    %8 = arith.mulf %4, %4 : vector<1x128xf32>
    %9 = arith.subf %7, %8 : vector<1x128xf32>
    %cst_3 = arith.constant 0.000000e+00 : f32
    %10 = vector.broadcast %cst_3 : f32 to vector<1x128xf32>
    %11 = arith.maximumf %9, %10 : vector<1x128xf32>
    %c0_4 = arith.constant 0 : index
    %c0_5 = arith.constant 0 : index
    %12 = vector.load %arg3[%c0_4, %c0_5] : memref<1x128xf32, #tpu.memory_space<vmem>>, vector<1x128xf32>
    %cst_6 = arith.constant 9.99999974E-6 : f32
    %13 = vector.broadcast %cst_6 : f32 to vector<1x128xf32>
    %14 = arith.addf %11, %13 : vector<1x128xf32>
    %15 = math.rsqrt %14 : vector<1x128xf32>
    %16 = arith.mulf %12, %15 : vector<1x128xf32>
    %c0_7 = arith.constant 0 : index
    %c0_8 = arith.constant 0 : index
    %17 = vector.load %arg4[%c0_7, %c0_8] : memref<1x128xf32, #tpu.memory_space<vmem>>, vector<1x128xf32>
    %18 = arith.mulf %4, %16 : vector<1x128xf32>
    %19 = arith.subf %17, %18 : vector<1x128xf32>
    %c0_9 = arith.constant 0 : index
    %c0_10 = arith.constant 0 : index
    %20 = vector.load %arg1[%c0_9, %c0_10] : memref<104x128xf32, #tpu.memory_space<vmem>>, vector<104x128xf32>
    %21 = vector.broadcast %16 : vector<1x128xf32> to vector<104x128xf32>
    %22 = arith.mulf %20, %21 : vector<104x128xf32>
    %23 = vector.broadcast %19 : vector<1x128xf32> to vector<104x128xf32>
    %24 = arith.addf %22, %23 : vector<104x128xf32>
    %cst_11 = arith.constant 0.000000e+00 : f32
    %25 = vector.broadcast %cst_11 : f32 to vector<104x128xf32>
    %26 = arith.maximumf %24, %25 : vector<104x128xf32>
    %27 = arith.truncf %26 : vector<104x128xf32> to vector<104x128xbf16>
    %c0_12 = arith.constant 0 : index
    %c0_13 = arith.constant 0 : index
    %28 = vector.load %arg5[%c0_12, %c0_13] : memref<104x128xbf16, #tpu.memory_space<vmem>>, vector<104x128xbf16>
    tpu.vector_store %arg5[%c0_12, %c0_13], %27 {strides = array<i32>} : memref<104x128xbf16, #tpu.memory_space<vmem>>, vector<104x128xbf16>,
    return
  }
  func.func @transform_0(%arg0: i32) -> (i32, i32) {
    %c0_i32 = arith.constant 0 : i32
    %c0_i32_0 = arith.constant 0 : i32
    return %arg0, %c0_i32 : i32, i32
  }
  func.func @transform_1(%arg0: i32) -> (i32, i32, i32) {
    %c0_i32 = arith.constant 0 : i32
    %c0_i32_0 = arith.constant 0 : i32
    %c0_i32_1 = arith.constant 0 : i32
    %c0_i32_2 = arith.constant 0 : i32
    return %c0_i32, %c0_i32_0, %c0_i32_1 : i32, i32, i32
  }
  func.func @transform_2(%arg0: i32) -> (i32, i32) {
    %c0_i32 = arith.constant 0 : i32
    %c0_i32_0 = arith.constant 0 : i32
    %c0_i32_1 = arith.constant 0 : i32
    return %c0_i32, %c0_i32_0 : i32, i32
  }
  func.func @transform_3(%arg0: i32) -> (i32, i32) {
    %c0_i32 = arith.constant 0 : i32
    %c0_i32_0 = arith.constant 0 : i32
    %c0_i32_1 = arith.constant 0 : i32
    return %c0_i32, %c0_i32_0 : i32, i32
  }
  func.func @transform_4(%arg0: i32) -> (i32, i32) {
    %c0_i32 = arith.constant 0 : i32
    %c0_i32_0 = arith.constant 0 : i32
    return %arg0, %c0_i32 : i32, i32
  }
}

module attributes {stable_mosaic.version = 11 : i64} {
  func.func @dueling_head_kernel(%arg0: i32, %arg1: memref<8x3136xbf16, #tpu.memory_space<vmem>>, %arg2: memref<3136x1024xbf16, #tpu.memory_space<vmem>>, %arg3: memref<1x1024xf32, #tpu.memory_space<vmem>>, %arg4: memref<1024x128xbf16, #tpu.memory_space<vmem>>, %arg5: memref<1x128xf32, #tpu.memory_space<vmem>>, %arg6: memref<8x6xf32, #tpu.memory_space<vmem>>) attributes {dimension_semantics = [#tpu.dimension_semantics<parallel>], iteration_bounds = array<i64: 1>, scalar_prefetch = 0 : i64, scratch_operands = 0 : i64, tpu.core_type = #tpu.core_type<tc>, window_params = [{transform_indices = @transform_0, window_bounds = array<i64: 8, 3136>}, {pipeline_mode = #tpu.pipeline_mode<synchronous>, transform_indices = @transform_1, window_bounds = array<i64: 3136, 1024>}, {pipeline_mode = #tpu.pipeline_mode<synchronous>, transform_indices = @transform_2, window_bounds = array<i64: 1, 1024>}, {pipeline_mode = #tpu.pipeline_mode<synchronous>, transform_indices = @transform_3, window_bounds = array<i64: 1024, 128>}, {pipeline_mode = #tpu.pipeline_mode<synchronous>, transform_indices = @transform_4, window_bounds = array<i64: 1, 128>}, {transform_indices = @transform_5, window_bounds = array<i64: 8, 6>}]} {
    %c0 = arith.constant 0 : index
    %c0_0 = arith.constant 0 : index
    %0 = vector.load %arg1[%c0, %c0_0] : memref<8x3136xbf16, #tpu.memory_space<vmem>>, vector<8x3136xbf16>
    %c0_1 = arith.constant 0 : index
    %c0_2 = arith.constant 0 : index
    %1 = vector.load %arg2[%c0_1, %c0_2] : memref<3136x1024xbf16, #tpu.memory_space<vmem>>, vector<3136x1024xbf16>
    %cst = arith.constant dense<0.000000e+00> : vector<8x1024xf32>
    %2 = tpu.matmul %0, %1, %cst {dimension_numbers = #tpu.dot_dimension_numbers<[1], [0], [0], [1], [0, 0, 1, 1], [], []>} : vector<8x3136xbf16>, vector<3136x1024xbf16>, vector<8x1024xf32> -> vector<8x1024xf32>
    %c0_3 = arith.constant 0 : index
    %c0_4 = arith.constant 0 : index
    %3 = vector.load %arg3[%c0_3, %c0_4] : memref<1x1024xf32, #tpu.memory_space<vmem>>, vector<1x1024xf32>
    %4 = vector.broadcast %3 : vector<1x1024xf32> to vector<8x1024xf32>
    %5 = arith.addf %2, %4 : vector<8x1024xf32>
    %cst_5 = arith.constant 0.000000e+00 : f32
    %6 = vector.broadcast %cst_5 : f32 to vector<8x1024xf32>
    %7 = arith.maximumf %5, %6 : vector<8x1024xf32>
    %8 = arith.truncf %7 : vector<8x1024xf32> to vector<8x1024xbf16>
    %c0_6 = arith.constant 0 : index
    %c0_7 = arith.constant 0 : index
    %9 = vector.load %arg4[%c0_6, %c0_7] : memref<1024x128xbf16, #tpu.memory_space<vmem>>, vector<1024x128xbf16>
    %cst_8 = arith.constant dense<0.000000e+00> : vector<8x128xf32>
    %10 = tpu.matmul %8, %9, %cst_8 {dimension_numbers = #tpu.dot_dimension_numbers<[1], [0], [0], [1], [0, 0, 1, 1], [], []>} : vector<8x1024xbf16>, vector<1024x128xbf16>, vector<8x128xf32> -> vector<8x128xf32>
    %c0_9 = arith.constant 0 : index
    %c0_10 = arith.constant 0 : index
    %11 = vector.load %arg5[%c0_9, %c0_10] : memref<1x128xf32, #tpu.memory_space<vmem>>, vector<1x128xf32>
    %12 = vector.broadcast %11 : vector<1x128xf32> to vector<8x128xf32>
    %13 = arith.addf %10, %12 : vector<8x128xf32>
    %14 = vector.extract_strided_slice %13 {offsets = [0, 0], sizes = [8, 1], strides = [1, 1]} : vector<8x128xf32> to vector<8x1xf32>
    %15 = vector.extract_strided_slice %13 {offsets = [0, 1], sizes = [8, 6], strides = [1, 1]} : vector<8x128xf32> to vector<8x6xf32>
    %16 = vector.broadcast %14 : vector<8x1xf32> to vector<8x6xf32>
    %17 = arith.addf %16, %15 : vector<8x6xf32>
    %cst_11 = arith.constant dense<0.000000e+00> : vector<8xf32>
    %18 = vector.multi_reduction <add>, %15, %cst_11 [1] : vector<8x6xf32> to vector<8xf32>
    %19 = vector.shape_cast %18 : vector<8xf32> to vector<8x1xf32>
    %cst_12 = arith.constant 0.166666672 : f32
    %20 = vector.broadcast %cst_12 : f32 to vector<8x1xf32>
    %21 = arith.mulf %19, %20 : vector<8x1xf32>
    %22 = vector.broadcast %21 : vector<8x1xf32> to vector<8x6xf32>
    %23 = arith.subf %17, %22 : vector<8x6xf32>
    %c0_13 = arith.constant 0 : index
    %c0_14 = arith.constant 0 : index
    %24 = vector.load %arg6[%c0_13, %c0_14] : memref<8x6xf32, #tpu.memory_space<vmem>>, vector<8x6xf32>
    tpu.vector_store %arg6[%c0_13, %c0_14], %23 {strides = array<i32>} : memref<8x6xf32, #tpu.memory_space<vmem>>, vector<8x6xf32>,
    return
  }
  func.func @transform_0(%arg0: i32) -> (i32, i32) {
    %c0_i32 = arith.constant 0 : i32
    %c0_i32_0 = arith.constant 0 : i32
    return %arg0, %c0_i32 : i32, i32
  }
  func.func @transform_1(%arg0: i32) -> (i32, i32) {
    %c0_i32 = arith.constant 0 : i32
    %c0_i32_0 = arith.constant 0 : i32
    %c0_i32_1 = arith.constant 0 : i32
    return %c0_i32, %c0_i32_0 : i32, i32
  }
  func.func @transform_2(%arg0: i32) -> (i32, i32) {
    %c0_i32 = arith.constant 0 : i32
    %c0_i32_0 = arith.constant 0 : i32
    %c0_i32_1 = arith.constant 0 : i32
    return %c0_i32, %c0_i32_0 : i32, i32
  }
  func.func @transform_3(%arg0: i32) -> (i32, i32) {
    %c0_i32 = arith.constant 0 : i32
    %c0_i32_0 = arith.constant 0 : i32
    %c0_i32_1 = arith.constant 0 : i32
    return %c0_i32, %c0_i32_0 : i32, i32
  }
  func.func @transform_4(%arg0: i32) -> (i32, i32) {
    %c0_i32 = arith.constant 0 : i32
    %c0_i32_0 = arith.constant 0 : i32
    %c0_i32_1 = arith.constant 0 : i32
    return %c0_i32, %c0_i32_0 : i32, i32
  }
  func.func @transform_5(%arg0: i32) -> (i32, i32) {
    %c0_i32 = arith.constant 0 : i32
    %c0_i32_0 = arith.constant 0 : i32
    return %arg0, %c0_i32 : i32, i32
  }
}

</mosaic_0001>

<bundles_post_ra>
// kernel: qlearner_forward.8
= control target key start
LH: loop header
LB: loop body
LE: loop exit
PB: predicated region body
PF: predicated region fallthrough
CT: control target
= control target key end

     0   :  { %s1254_s15 = smov 0   ;;  %s1519_s0 = inlined_call_operand.vmem [shape: f32[1024,128], index: 0, kind: input, shape index: {}]   ;;  %s1520_s1 = inlined_call_operand.vmem [shape: f32[2,2,128], index: 1, kind: input, shape index: {}]   ;;  %s1521_s2 = inlined_call_operand.vmem [shape: f32[1,128], index: 2, kind: input, shape index: {}]   ;;  %s1522_s3 = inlined_call_operand.vmem [shape: f32[1,128], index: 3, kind: input, shape index: {}]   ;;  %s1523_s4 = inlined_call_operand.vmem [shape: bf16[1024,128], index: 4, kind: output, shape index: {}]  }
   0x1 LB: > { %s879_s16 = sadd.s32 4294967295, %s1226_s15   ;;  %p883_p0 = scmp.ge.s32.totalorder %s1226_s15, 1  ;;  %s1226_s15 = sphi %s1254_s15, %s14_s15  }
   0x2   : > { %p163_p1 = scmp.lt.s32.totalorder %s1226_s15, 3 }
   0x4   : > { %p164_p2 = pnand %p883_p0, %p163_p1 }
   0x5   : > { %v201_v0 = vld [vmem:[%s1520_s1] sm:$0x3] (!%p164_p2)  ;;  %v202_v1 = vld [vmem:[%s1520_s1 + $0x2] sm:$0x3] (!%p164_p2)  ;;  %v1228_v9 = vmov (!%p164_p2), 1966171168   ;;  %v218_v11 = vlaneseq (!%p164_p2) }
   0x6   : > { %167 = sbr.rel (%p164_p2) target bundleno = 103 (0x67), region = 36  ;;  %v203_v2 = vadd.f32 (!%p164_p2), %v202_v1, %v201_v0  ;;  %v216_v10 = vunpack.c.l.s4 (!%p164_p2), %v1228_v9  ;;  %s884_s21 = sshll.u32 (!%p164_p2), %s879_s16, 6  ;;  %v211_v18 = vld [vmem:[%s1521_s2] sm:$0x1] (!%p164_p2) }
   0x7   : > { %p190_p3 = scmp.lt.s32.totalorder (!%p164_p2), %s884_s21, 127  ;;  %v219_v13 = vshrl.u32 (!%p164_p2), %v218_v11, 7  ;;  %v232_v22 = vld [vmem:[%s1522_s3] sm:$0x1] (!%p164_p2) }
   0x8   : > { %v204_v3 = vmul.f32 (!%p164_p2), 0.00125, %v203_v2  ;;  %v217_v12 = vunpack.c.0.s8 (!%p164_p2), %v216_v10 }
   0x9   : > { %v302_v20 = vsub.s32 (!%p164_p2), 0, %v219_v13 }
   0xa   : > { %v205_v4 = vmul.f32 (!%p164_p2), %v204_v3, %v204_v3  ;;  %v220_v14 = vsub.s32 (!%p164_p2), %v217_v12, %v219_v13 }
   0xc   : > { %v207_v5 = vrot.slane (!%p164_p2), %v205_v4, 7 }
   0xd   : > { %s1525_s21 = smov (!%p190_p3, %s884_s21), 127 }
   0xe   : > { %v209_v6 = vsub.f32 %v204_v3, %v207_v5  ;;  %s885_s22 = sshll.u32 %s1525_s21, 3  ;;  %s887_s30 = sshll.u32 %s1525_s21, 2 }
   0xf   : > { %s1274_s25 = scalar_lea.vmem %s1519_s0, %s885_s22  ;;  %s1326_s7 = scalar_lea.vmem %s1523_s4, %s887_s30 }
  0x10   : > { %v210_v7 = vmax.f32 %v209_v6, 0.0  ;;  %v235_v23 = vld [vmem:[%s1274_s25] sm:$0xff]  ;;  %v236_v24 = vld [vmem:[%s1274_s25 + $0x8] sm:$0xff]  ;;  %v237_v25 = vld [vmem:[%s1274_s25 + $0x10] sm:$0xff] }
  0x11   : > { %v238_v26 = vld [vmem:[%s1274_s25 + $0x18] sm:$0xff]  ;;  %v239_v27 = vld [vmem:[%s1274_s25 + $0x20] sm:$0xff]  ;;  %v240_v30 = vld [vmem:[%s1274_s25 + $0x28] sm:$0xff] }
  0x12   : > { %v212_v8 = vadd.f32 1e-05, %v210_v7  ;;  %v241_v31 = vld [vmem:[%s1274_s25 + $0x30] sm:$0xff]  ;;  %v242_v32 = vld [vmem:[%s1274_s25 + $0x38] sm:$0xff]  ;;  %v243_v33 = vld [vmem:[%s1274_s25 + $0x40] sm:$0xff] }
  0x13   : > { %v244_v34 = vld [vmem:[%s1274_s25 + $0x48] sm:$0xff]  ;;  %v245_v35 = vld [vmem:[%s1274_s25 + $0x50] sm:$0xff]  ;;  %v246_v40 = vld [vmem:[%s1274_s25 + $0x58] sm:$0xff] }
  0x14   : > { %1218 = vrsqrt.f32 %v212_v8  ;;  %v247_v41 = vld [vmem:[%s1274_s25 + $0x60] sm:$0xff]  ;;  %v248_v42 = vld [vmem:[%s1274_s25 + $0x68] sm:$0xff]  ;;  %v249_v11 = vld [vmem:[%s1274_s25 + $0x70] sm:$0xff] }
  0x15   : > { %v250_v12 = vld [vmem:[%s1274_s25 + $0x78] sm:$0xff] }
  0x1e   : > { %v1219_v15 = vpop.eup %1218 }
  0x1f   : > { %v221_v16 = vrot.slane %v1219_v15, %v220_v14 }
  0x21   : > { %v222_v17 = vcombine.high %v221_v16, %v221_v16 }
  0x23   : > { %v229_v19 = vrot.slane %v222_v17, %v220_v14  ;;  %v251_v17 = vld [vmem:[%s1274_s25 + $0x80] sm:$0xff] }
  0x25   : > { %v231_v21 = vmul.f32 %v229_v19, %v211_v18 }
  0x27   : > { %v233_v28 = vmul.f32 %v231_v21, %v204_v3  ;;  %v1287_v29 = vrot.slane %v231_v21, %v302_v20 }
  0x29   : > { %v234_v36 = vsub.f32 %v232_v22, %v233_v28  ;;  %v305_v37 = vmul.f32 %v1287_v29, %v235_v23  ;;  %v306_v38 = vmul.f32 %v1287_v29, %v236_v24  ;;  %v307_v39 = vmul.f32 %v1287_v29, %v237_v25  ;;  %v252_v22 = vld [vmem:[%s1274_s25 + $0x88] sm:$0xff]  ;;  %v254_v28 = vld [vmem:[%s1274_s25 + $0x98] sm:$0xff] }
  0x2a   : > { %v308_v43 = vmul.f32 %v1287_v29, %v238_v26  ;;  %v309_v44 = vmul.f32 %v1287_v29, %v239_v27  ;;  %v310_v45 = vmul.f32 %v1287_v29, %v240_v30  ;;  %v311_v46 = vmul.f32 %v1287_v29, %v241_v31  ;;  %v253_v27 = vld [vmem:[%s1274_s25 + $0x90] sm:$0xff] }
  0x2b   : > { %v1305_v47 = vrot.slane %v234_v36, %v302_v20  ;;  %v312_v48 = vmul.f32 %v1287_v29, %v242_v32  ;;  %v313_v49 = vmul.f32 %v1287_v29, %v243_v33  ;;  %v314_v50 = vmul.f32 %v1287_v29, %v244_v34  ;;  %v255_v34 = vld [vmem:[%s1274_s25 + $0xa0] sm:$0xff] }
  0x2c   : > { %v315_v51 = vmul.f32 %v1287_v29, %v245_v35  ;;  %v316_v52 = vmul.f32 %v1287_v29, %v246_v40  ;;  %v317_v53 = vmul.f32 %v1287_v29, %v247_v41  ;;  %v318_v54 = vmul.f32 %v1287_v29, %v248_v42 }
  0x2d   : > { %v375_v55 = vadd.f32 %v1305_v47, %v305_v37  ;;  %v376_v56 = vadd.f32 %v1305_v47, %v306_v38  ;;  %v377_v57 = vadd.f32 %v1305_v47, %v307_v39  ;;  %v378_v58 = vadd.f32 %v1305_v47, %v308_v43  ;;  %v256_v39 = vld [vmem:[%s1274_s25 + $0xa8] sm:$0xff] }
  0x2e   : > { %v379_v59 = vadd.f32 %v1305_v47, %v309_v44  ;;  %v380_v60 = vadd.f32 %v1305_v47, %v310_v45  ;;  %v381_v61 = vadd.f32 %v1305_v47, %v311_v46  ;;  %v382_v62 = vadd.f32 %v1305_v47, %v312_v48  ;;  %v257_v44 = vld [vmem:[%s1274_s25 + $0xb0] sm:$0xff] }
  0x2f   : > { %v439_v63 = vmax.f32 %v375_v55, 0.0  ;;  %v440_v0 = vmax.f32 %v376_v56, 0.0  ;;  %v441_v1 = vmax.f32 %v377_v57, 0.0  ;;  %v442_v2 = vmax.f32 %v378_v58, 0.0  ;;  %v259_v55 = vld [vmem:[%s1274_s25 + $0xc0] sm:$0xff] }
  0x30   : > { %v443_v3 = vmax.f32 %v379_v59, 0.0  ;;  %v444_v4 = vmax.f32 %v380_v60, 0.0  ;;  %v445_v5 = vmax.f32 %v381_v61, 0.0  ;;  %v446_v6 = vmax.f32 %v382_v62, 0.0  ;;  %v260_v60 = vld [vmem:[%s1274_s25 + $0xc8] sm:$0xff] }
  0x31   : > { %v1021_v7 = vpack.c.bf16 %v440_v0, %v439_v63  ;;  %v1026_v8 = vpack.c.bf16 %v442_v2, %v441_v1  ;;  %v383_v9 = vadd.f32 %v1305_v47, %v313_v49  ;;  %v384_v10 = vadd.f32 %v1305_v47, %v314_v50  ;;  %v258_v50 = vld [vmem:[%s1274_s25 + $0xb8] sm:$0xff]  ;;  %v261_v1 = vld [vmem:[%s1274_s25 + $0xd0] sm:$0xff] }
  0x32   : > { %v1031_v13 = vpack.c.bf16 %v444_v4, %v443_v3  ;;  %v1036_v14 = vpack.c.bf16 %v446_v6, %v445_v5  ;;  %v385_v15 = vadd.f32 %v1305_v47, %v315_v51  ;;  %v386_v16 = vadd.f32 %v1305_v47, %v316_v52  ;;  %v262_v2 = vld [vmem:[%s1274_s25 + $0xd8] sm:$0xff] }
  0x33   : > { %1022 = vst [vmem:[%s1326_s7] sm:$0xff] %v1021_v7   ;;  %1178 = vst [vmem:[%s1326_s7 + $0x8] sm:$0xff] %v1026_v8   ;;  %v447_v18 = vmax.f32 %v383_v9, 0.0  ;;  %v448_v19 = vmax.f32 %v384_v10, 0.0  ;;  %v387_v20 = vadd.f32 %v1305_v47, %v317_v53  ;;  %v388_v21 = vadd.f32 %v1305_v47, %v318_v54  ;;  %v263_v7 = vld [vmem:[%s1274_s25 + $0xe0] sm:$0xff] }
  0x34   : > { %1179 = vst [vmem:[%s1326_s7 + $0x10] sm:$0xff] %v1031_v13   ;;  %1180 = vst [vmem:[%s1326_s7 + $0x18] sm:$0xff] %v1036_v14   ;;  %v449_v23 = vmax.f32 %v385_v15, 0.0  ;;  %v450_v24 = vmax.f32 %v386_v16, 0.0  ;;  %v319_v25 = vmul.f32 %v1287_v29, %v249_v11  ;;  %v320_v26 = vmul.f32 %v1287_v29, %v250_v12  ;;  %v264_v12 = vld [vmem:[%s1274_s25 + $0xe8] sm:$0xff] }
  0x35   : > { %v1041_v30 = vpack.c.bf16 %v448_v19, %v447_v18  ;;  %v451_v31 = vmax.f32 %v387_v20, 0.0  ;;  %v452_v32 = vmax.f32 %v388_v21, 0.0  ;;  %v321_v33 = vmul.f32 %v1287_v29, %v251_v17  ;;  %v265_v17 = vld [vmem:[%s1274_s25 + $0xf0] sm:$0xff] }
  0x36   : > { %v1046_v35 = vpack.c.bf16 %v450_v24, %v449_v23  ;;  %v389_v36 = vadd.f32 %v1305_v47, %v319_v25  ;;  %v390_v37 = vadd.f32 %v1305_v47, %v320_v26  ;;  %v322_v38 = vmul.f32 %v1287_v29, %v252_v22  ;;  %v266_v22 = vld [vmem:[%s1274_s25 + $0xf8] sm:$0xff] }
  0x37   : > { %1181 = vst [vmem:[%s1326_s7 + $0x20] sm:$0xff] %v1041_v30   ;;  %v1051_v40 = vpack.c.bf16 %v452_v32, %v451_v31  ;;  %v391_v41 = vadd.f32 %v1305_v47, %v321_v33  ;;  %v323_v42 = vmul.f32 %v1287_v29, %v253_v27  ;;  %v324_v43 = vmul.f32 %v1287_v29, %v254_v28  ;;  %v267_v27 = vld [vmem:[%s1274_s25 + $0x100] sm:$0xff]  ;;  %v268_v33 = vld [vmem:[%s1274_s25 + $0x108] sm:$0xff] }
  0x38   : > { %1182 = vst [vmem:[%s1326_s7 + $0x28] sm:$0xff] %v1046_v35   ;;  %v453_v45 = vmax.f32 %v389_v36, 0.0  ;;  %v454_v46 = vmax.f32 %v390_v37, 0.0  ;;  %v392_v48 = vadd.f32 %v1305_v47, %v322_v38  ;;  %v325_v49 = vmul.f32 %v1287_v29, %v255_v34  ;;  %v269_v38 = vld [vmem:[%s1274_s25 + $0x110] sm:$0xff] }
  0x39   : > { %1183 = vst [vmem:[%s1326_s7 + $0x30] sm:$0xff] %v1051_v40   ;;  %v455_v51 = vmax.f32 %v391_v41, 0.0  ;;  %v393_v52 = vadd.f32 %v1305_v47, %v323_v42  ;;  %v394_v53 = vadd.f32 %v1305_v47, %v324_v43  ;;  %v326_v54 = vmul.f32 %v1287_v29, %v256_v39  ;;  %v270_v39 = vld [vmem:[%s1274_s25 + $0x118] sm:$0xff] }
  0x3a   : > { %v1056_v56 = vpack.c.bf16 %v454_v46, %v453_v45  ;;  %v456_v57 = vmax.f32 %v392_v48, 0.0  ;;  %v395_v58 = vadd.f32 %v1305_v47, %v325_v49  ;;  %v327_v59 = vmul.f32 %v1287_v29, %v257_v44  ;;  %v271_v44 = vld [vmem:[%s1274_s25 + $0x120] sm:$0xff] }
  0x3b   : > { %v457_v61 = vmax.f32 %v393_v52, 0.0  ;;  %v458_v62 = vmax.f32 %v394_v53, 0.0  ;;  %v396_v63 = vadd.f32 %v1305_v47, %v326_v54  ;;  %v328_v0 = vmul.f32 %v1287_v29, %v258_v50  ;;  %v272_v50 = vld [vmem:[%s1274_s25 + $0x128] sm:$0xff] }
  0x3c   : > { %1184 = vst [vmem:[%s1326_s7 + $0x38] sm:$0xff] %v1056_v56   ;;  %v1061_v3 = vpack.c.bf16 %v456_v57, %v455_v51  ;;  %v459_v4 = vmax.f32 %v395_v58, 0.0  ;;  %v397_v5 = vadd.f32 %v1305_v47, %v327_v59  ;;  %v329_v6 = vmul.f32 %v1287_v29, %v259_v55  ;;  %v273_v55 = vld [vmem:[%s1274_s25 + $0x130] sm:$0xff] }
  0x3d   : > { %v1066_v8 = vpack.c.bf16 %v458_v62, %v457_v61  ;;  %v460_v9 = vmax.f32 %v396_v63, 0.0  ;;  %v398_v10 = vadd.f32 %v1305_v47, %v328_v0  ;;  %v330_v11 = vmul.f32 %v1287_v29, %v260_v60  ;;  %v274_v60 = vld [vmem:[%s1274_s25 + $0x138] sm:$0xff] }
  0x3e   : > { %1185 = vst [vmem:[%s1326_s7 + $0x40] sm:$0xff] %v1061_v3   ;;  %v461_v13 = vmax.f32 %v397_v5, 0.0  ;;  %v399_v14 = vadd.f32 %v1305_v47, %v329_v6  ;;  %v331_v15 = vmul.f32 %v1287_v29, %v261_v1  ;;  %v332_v16 = vmul.f32 %v1287_v29, %v262_v2  ;;  %v275_v1 = vld [vmem:[%s1274_s25 + $0x140] sm:$0xff]  ;;  %v276_v6 = vld [vmem:[%s1274_s25 + $0x148] sm:$0xff] }
  0x3f   : > { %1186 = vst [vmem:[%s1326_s7 + $0x48] sm:$0xff] %v1066_v8   ;;  %v1071_v18 = vpack.c.bf16 %v460_v9, %v459_v4  ;;  %v462_v19 = vmax.f32 %v398_v10, 0.0  ;;  %v400_v20 = vadd.f32 %v1305_v47, %v330_v11  ;;  %v333_v21 = vmul.f32 %v1287_v29, %v263_v7  ;;  %v277_v11 = vld [vmem:[%s1274_s25 + $0x150] sm:$0xff] }
  0x40   : > { %v463_v23 = vmax.f32 %v399_v14, 0.0  ;;  %v401_v24 = vadd.f32 %v1305_v47, %v331_v15  ;;  %v402_v25 = vadd.f32 %v1305_v47, %v332_v16  ;;  %v334_v26 = vmul.f32 %v1287_v29, %v264_v12  ;;  %v278_v12 = vld [vmem:[%s1274_s25 + $0x158] sm:$0xff] }
  0x41   : > { %1187 = vst [vmem:[%s1326_s7 + $0x50] sm:$0xff] %v1071_v18   ;;  %v1076_v28 = vpack.c.bf16 %v462_v19, %v461_v13  ;;  %v464_v30 = vmax.f32 %v400_v20, 0.0  ;;  %v403_v31 = vadd.f32 %v1305_v47, %v333_v21  ;;  %v335_v32 = vmul.f32 %v1287_v29, %v265_v17  ;;  %v279_v17 = vld [vmem:[%s1274_s25 + $0x160] sm:$0xff] }
  0x42   : > { %v465_v34 = vmax.f32 %v401_v24, 0.0  ;;  %v466_v35 = vmax.f32 %v402_v25, 0.0  ;;  %v404_v36 = vadd.f32 %v1305_v47, %v334_v26  ;;  %v336_v37 = vmul.f32 %v1287_v29, %v266_v22  ;;  %v280_v22 = vld [vmem:[%s1274_s25 + $0x168] sm:$0xff] }
  0x43   : > { %1188 = vst [vmem:[%s1326_s7 + $0x58] sm:$0xff] %v1076_v28   ;;  %v1081_v40 = vpack.c.bf16 %v464_v30, %v463_v23  ;;  %v467_v41 = vmax.f32 %v403_v31, 0.0  ;;  %v405_v42 = vadd.f32 %v1305_v47, %v335_v32  ;;  %v337_v43 = vmul.f32 %v1287_v29, %v267_v27  ;;  %v281_v27 = vld [vmem:[%s1274_s25 + $0x170] sm:$0xff] }
  0x44   : > { %v1086_v45 = vpack.c.bf16 %v466_v35, %v465_v34  ;;  %v468_v46 = vmax.f32 %v404_v36, 0.0  ;;  %v406_v48 = vadd.f32 %v1305_v47, %v336_v37  ;;  %v338_v49 = vmul.f32 %v1287_v29, %v268_v33  ;;  %v282_v33 = vld [vmem:[%s1274_s25 + $0x178] sm:$0xff] }
  0x45   : > { %1189 = vst [vmem:[%s1326_s7 + $0x60] sm:$0xff] %v1081_v40   ;;  %v469_v51 = vmax.f32 %v405_v42, 0.0  ;;  %v407_v52 = vadd.f32 %v1305_v47, %v337_v43  ;;  %v339_v53 = vmul.f32 %v1287_v29, %v269_v38  ;;  %v340_v54 = vmul.f32 %v1287_v29, %v270_v39  ;;  %v283_v38 = vld [vmem:[%s1274_s25 + $0x180] sm:$0xff]  ;;  %v284_v43 = vld [vmem:[%s1274_s25 + $0x188] sm:$0xff] }
  0x46   : > { %1190 = vst [vmem:[%s1326_s7 + $0x68] sm:$0xff] %v1086_v45   ;;  %v1091_v56 = vpack.c.bf16 %v468_v46, %v467_v41  ;;  %v470_v57 = vmax.f32 %v406_v48, 0.0  ;;  %v408_v58 = vadd.f32 %v1305_v47, %v338_v49  ;;  %v341_v59 = vmul.f32 %v1287_v29, %v271_v44  ;;  %v285_v49 = vld [vmem:[%s1274_s25 + $0x190] sm:$0xff] }
  0x47   : > { %v471_v61 = vmax.f32 %v407_v52, 0.0  ;;  %v409_v62 = vadd.f32 %v1305_v47, %v339_v53  ;;  %v410_v63 = vadd.f32 %v1305_v47, %v340_v54  ;;  %v342_v0 = vmul.f32 %v1287_v29, %v272_v50  ;;  %v286_v50 = vld [vmem:[%s1274_s25 + $0x198] sm:$0xff] }
  0x48   : > { %1191 = vst [vmem:[%s1326_s7 + $0x70] sm:$0xff] %v1091_v56   ;;  %v1096_v2 = vpack.c.bf16 %v470_v57, %v469_v51  ;;  %v472_v3 = vmax.f32 %v408_v58, 0.0  ;;  %v411_v4 = vadd.f32 %v1305_v47, %v341_v59  ;;  %v343_v5 = vmul.f32 %v1287_v29, %v273_v55  ;;  %v287_v55 = vld [vmem:[%s1274_s25 + $0x1a0] sm:$0xff] }
  0x49   : > { %v473_v7 = vmax.f32 %v409_v62, 0.0  ;;  %v474_v8 = vmax.f32 %v410_v63, 0.0  ;;  %v412_v9 = vadd.f32 %v1305_v47, %v342_v0  ;;  %v344_v10 = vmul.f32 %v1287_v29, %v274_v60  ;;  %v288_v60 = vld [vmem:[%s1274_s25 + $0x1a8] sm:$0xff] }
  0x4a   : > { %1192 = vst [vmem:[%s1326_s7 + $0x78] sm:$0xff] %v1096_v2   ;;  %v1101_v13 = vpack.c.bf16 %v472_v3, %v471_v61  ;;  %v475_v14 = vmax.f32 %v411_v4, 0.0  ;;  %v413_v15 = vadd.f32 %v1305_v47, %v343_v5  ;;  %v345_v16 = vmul.f32 %v1287_v29, %v275_v1  ;;  %v289_v1 = vld [vmem:[%s1274_s25 + $0x1b0] sm:$0xff] }
  0x4b   : > { %v1106_v18 = vpack.c.bf16 %v474_v8, %v473_v7  ;;  %v476_v19 = vmax.f32 %v412_v9, 0.0  ;;  %v414_v20 = vadd.f32 %v1305_v47, %v344_v10  ;;  %v346_v21 = vmul.f32 %v1287_v29, %v276_v6  ;;  %v290_v6 = vld [vmem:[%s1274_s25 + $0x1b8] sm:$0xff] }
  0x4c   : > { %1193 = vst [vmem:[%s1326_s7 + $0x80] sm:$0xff] %v1101_v13   ;;  %v477_v23 = vmax.f32 %v413_v15, 0.0  ;;  %v415_v24 = vadd.f32 %v1305_v47, %v345_v16  ;;  %v347_v25 = vmul.f32 %v1287_v29, %v277_v11  ;;  %v348_v26 = vmul.f32 %v1287_v29, %v278_v12  ;;  %v291_v11 = vld [vmem:[%s1274_s25 + $0x1c0] sm:$0xff]  ;;  %v292_v16 = vld [vmem:[%s1274_s25 + $0x1c8] sm:$0xff] }
  0x4d   : > { %1194 = vst [vmem:[%s1326_s7 + $0x88] sm:$0xff] %v1106_v18   ;;  %v1111_v28 = vpack.c.bf16 %v476_v19, %v475_v14  ;;  %v478_v30 = vmax.f32 %v414_v20, 0.0  ;;  %v416_v31 = vadd.f32 %v1305_v47, %v346_v21  ;;  %v349_v32 = vmul.f32 %v1287_v29, %v279_v17  ;;  %v293_v21 = vld [vmem:[%s1274_s25 + $0x1d0] sm:$0xff] }
  0x4e   : > { %v479_v34 = vmax.f32 %v415_v24, 0.0  ;;  %v417_v35 = vadd.f32 %v1305_v47, %v347_v25  ;;  %v418_v36 = vadd.f32 %v1305_v47, %v348_v26  ;;  %v350_v37 = vmul.f32 %v1287_v29, %v280_v22  ;;  %v294_v22 = vld [vmem:[%s1274_s25 + $0x1d8] sm:$0xff] }
  0x4f   : > { %1195 = vst [vmem:[%s1326_s7 + $0x90] sm:$0xff] %v1111_v28   ;;  %v1116_v39 = vpack.c.bf16 %v478_v30, %v477_v23  ;;  %v480_v40 = vmax.f32 %v416_v31, 0.0  ;;  %v419_v41 = vadd.f32 %v1305_v47, %v349_v32  ;;  %v351_v42 = vmul.f32 %v1287_v29, %v281_v27  ;;  %v295_v27 = vld [vmem:[%s1274_s25 + $0x1e0] sm:$0xff] }
  0x50   : > { %v481_v44 = vmax.f32 %v417_v35, 0.0  ;;  %v482_v45 = vmax.f32 %v418_v36, 0.0  ;;  %v420_v46 = vadd.f32 %v1305_v47, %v350_v37  ;;  %v352_v48 = vmul.f32 %v1287_v29, %v282_v33  ;;  %v296_v33 = vld [vmem:[%s1274_s25 + $0x1e8] sm:$0xff] }
  0x51   : > { %1196 = vst [vmem:[%s1326_s7 + $0x98] sm:$0xff] %v1116_v39   ;;  %v1121_v51 = vpack.c.bf16 %v480_v40, %v479_v34  ;;  %v483_v52 = vmax.f32 %v419_v41, 0.0  ;;  %v421_v53 = vadd.f32 %v1305_v47, %v351_v42  ;;  %v353_v54 = vmul.f32 %v1287_v29, %v283_v38  ;;  %v297_v38 = vld [vmem:[%s1274_s25 + $0x1f0] sm:$0xff] }
  0x52   : > { %v1126_v56 = vpack.c.bf16 %v482_v45, %v481_v44  ;;  %v484_v57 = vmax.f32 %v420_v46, 0.0  ;;  %v422_v58 = vadd.f32 %v1305_v47, %v352_v48  ;;  %v354_v59 = vmul.f32 %v1287_v29, %v284_v43  ;;  %v298_v43 = vld [vmem:[%s1274_s25 + $0x1f8] sm:$0xff] }
  0x53   : > { %1197 = vst [vmem:[%s1326_s7 + $0xa0] sm:$0xff] %v1121_v51   ;;  %v485_v61 = vmax.f32 %v421_v53, 0.0  ;;  %v423_v62 = vadd.f32 %v1305_v47, %v353_v54  ;;  %v355_v63 = vmul.f32 %v1287_v29, %v285_v49  ;;  %v356_v0 = vmul.f32 %v1287_v29, %v286_v50 }
  0x54   : > { %1198 = vst [vmem:[%s1326_s7 + $0xa8] sm:$0xff] %v1126_v56   ;;  %v1131_v2 = vpack.c.bf16 %v484_v57, %v483_v52  ;;  %v486_v3 = vmax.f32 %v422_v58, 0.0  ;;  %v424_v4 = vadd.f32 %v1305_v47, %v354_v59  ;;  %v357_v5 = vmul.f32 %v1287_v29, %v287_v55 }
  0x55   : > { %v487_v7 = vmax.f32 %v423_v62, 0.0  ;;  %v425_v8 = vadd.f32 %v1305_v47, %v355_v63  ;;  %v426_v9 = vadd.f32 %v1305_v47, %v356_v0  ;;  %v358_v10 = vmul.f32 %v1287_v29, %v288_v60 }
  0x56   : > { %1199 = vst [vmem:[%s1326_s7 + $0xb0] sm:$0xff] %v1131_v2   ;;  %v1136_v12 = vpack.c.bf16 %v486_v3, %v485_v61  ;;  %v488_v13 = vmax.f32 %v424_v4, 0.0  ;;  %v427_v14 = vadd.f32 %v1305_v47, %v357_v5  ;;  %v359_v15 = vmul.f32 %v1287_v29, %v289_v1 }
  0x57   : > { %v489_v17 = vmax.f32 %v425_v8, 0.0  ;;  %v490_v18 = vmax.f32 %v426_v9, 0.0  ;;  %v428_v19 = vadd.f32 %v1305_v47, %v358_v10  ;;  %v360_v20 = vmul.f32 %v1287_v29, %v290_v6 }
  0x58   : > { %1200 = vst [vmem:[%s1326_s7 + $0xb8] sm:$0xff] %v1136_v12   ;;  %v1141_v23 = vpack.c.bf16 %v488_v13, %v487_v7  ;;  %v491_v24 = vmax.f32 %v427_v14, 0.0  ;;  %v429_v25 = vadd.f32 %v1305_v47, %v359_v15  ;;  %v361_v26 = vmul.f32 %v1287_v29, %v291_v11 }
  0x59   : > { %v1146_v28 = vpack.c.bf16 %v490_v18, %v489_v17  ;;  %v492_v30 = vmax.f32 %v428_v19, 0.0  ;;  %v430_v31 = vadd.f32 %v1305_v47, %v360_v20  ;;  %v362_v32 = vmul.f32 %v1287_v29, %v292_v16 }
  0x5a   : > { %1201 = vst [vmem:[%s1326_s7 + $0xc0] sm:$0xff] %v1141_v23   ;;  %v493_v34 = vmax.f32 %v429_v25, 0.0  ;;  %v431_v35 = vadd.f32 %v1305_v47, %v361_v26  ;;  %v363_v36 = vmul.f32 %v1287_v29, %v293_v21  ;;  %v364_v37 = vmul.f32 %v1287_v29, %v294_v22 }
  0x5b   : > { %1202 = vst [vmem:[%s1326_s7 + $0xc8] sm:$0xff] %v1146_v28   ;;  %v1151_v39 = vpack.c.bf16 %v492_v30, %v491_v24  ;;  %v494_v40 = vmax.f32 %v430_v31, 0.0  ;;  %v432_v41 = vadd.f32 %v1305_v47, %v362_v32  ;;  %v365_v42 = vmul.f32 %v1287_v29, %v295_v27 }
  0x5c   : > { %v495_v44 = vmax.f32 %v431_v35, 0.0  ;;  %v433_v45 = vadd.f32 %v1305_v47, %v363_v36  ;;  %v434_v46 = vadd.f32 %v1305_v47, %v364_v37  ;;  %v366_v48 = vmul.f32 %v1287_v29, %v296_v33 }
  0x5d   : > { %1203 = vst [vmem:[%s1326_s7 + $0xd0] sm:$0xff] %v1151_v39   ;;  %v1156_v49 = vpack.c.bf16 %v494_v40, %v493_v34  ;;  %v496_v50 = vmax.f32 %v432_v41, 0.0  ;;  %v435_v51 = vadd.f32 %v1305_v47, %v365_v42  ;;  %v367_v52 = vmul.f32 %v1287_v29, %v297_v38 }
  0x5e   : > { %v497_v53 = vmax.f32 %v433_v45, 0.0  ;;  %v498_v54 = vmax.f32 %v434_v46, 0.0  ;;  %v436_v55 = vadd.f32 %v1305_v47, %v366_v48  ;;  %v368_v56 = vmul.f32 %v1287_v29, %v298_v43 }
  0x5f   : > { %1204 = vst [vmem:[%s1326_s7 + $0xd8] sm:$0xff] %v1156_v49   ;;  %v1161_v57 = vpack.c.bf16 %v496_v50, %v495_v44  ;;  %v499_v58 = vmax.f32 %v435_v51, 0.0  ;;  %v437_v59 = vadd.f32 %v1305_v47, %v367_v52 }
  0x60   : > { %v1166_v60 = vpack.c.bf16 %v498_v54, %v497_v53  ;;  %v500_v61 = vmax.f32 %v436_v55, 0.0  ;;  %v438_v62 = vadd.f32 %v1305_v47, %v368_v56 }
  0x61   : > { %1205 = vst [vmem:[%s1326_s7 + $0xe0] sm:$0xff] %v1161_v57   ;;  %v501_v63 = vmax.f32 %v437_v59, 0.0 }
  0x62   : > { %1206 = vst [vmem:[%s1326_s7 + $0xe8] sm:$0xff] %v1166_v60   ;;  %v1171_v0 = vpack.c.bf16 %v500_v61, %v499_v58  ;;  %v502_v1 = vmax.f32 %v438_v62, 0.0 }
  0x64   : > { %1207 = vst [vmem:[%s1326_s7 + $0xf0] sm:$0xff] %v1171_v0   ;;  %v1176_v2 = vpack.c.bf16 %v502_v1, %v501_v63 }
  0x66   : > { %1208 = vst [vmem:[%s1326_s7 + $0xf8] sm:$0xff] %v1176_v2  }
  0x67 PF: > { %s14_s15 = sadd.s32 1, %s1226_s15  }
  0x68   : > { %p11_p4 = scmp.ge.s32.totalorder %s14_s15, 4  }
  0x6a   :  { %13 = sbr.rel (!%p11_p4) target bundleno = 1 (0x1), region = 66 }

// kernel: qlearner_forward.7
= control target key start
LH: loop header
LB: loop body
LE: loop exit
PB: predicated region body
PF: predicated region fallthrough
CT: control target
= control target key end

     0   :  { %s1622_s12 = smov 0   ;;  %s2058_s0 = inlined_call_operand.vmem [shape: bf16[1024,256], index: 0, kind: input, shape index: {}]   ;;  %s2059_s1 = inlined_call_operand.vmem [shape: bf16[256,128], index: 1, kind: input, shape index: {}]   ;;  %s2060_s2 = inlined_call_operand.vmem [shape: f32[1024,128], index: 2, kind: output, shape index: {0}]   ;;  %s2061_s3 = inlined_call_operand.vmem [shape: f32[2,2,128], index: 3, kind: output, shape index: {1}]  }
   0x1 LB: > { %s1628_s13 = sadd.s32 4294967295, %s1599_s12   ;;  %p1350_p0 = scmp.ge.s32.totalorder %s1599_s12, 1  ;;  %s1599_s12 = sphi %s1622_s12, %s14_s12  }
   0x2   : > { %p142_p1 = scmp.lt.s32.totalorder %s1599_s12, 3 }
   0x4   : > { %p143_p2 = pnand %p1350_p0, %p142_p1 }
   0x5   : > { %v1481_v0 = vld [vmem:[%s2059_s1] sm:$0xff] (!%p143_p2)   ;;  %v1601_v1 = vmov (!%p143_p2), 0   ;;  %s1351_s16 = sshll.u32 (!%p143_p2), %s1628_s13, 6  ;;  %v1482_v2 = vld [vmem:[%s2059_s1 + $0x8] sm:$0xff] (!%p143_p2)   ;;  %v1483_v3 = vld [vmem:[%s2059_s1 + $0x10] sm:$0xff] (!%p143_p2)   ;;  %p184_p4 = scmp.lt.s32.totalorder (!%p143_p2), %s1628_s13, 1 }
   0x6   : > { %146 = sbr.rel (%p143_p2) target bundleno = 486 (0x1e6), region = 28  ;;  %701 = vmatprep.subr.bf16.mxu0 (!%p143_p2), %v1601_v1  ;;  %1440 = vmatprep.subr.bf16.mxu1 (!%p143_p2), %v1601_v1  ;;  %p172_p3 = scmp.lt.s32.totalorder (!%p143_p2), %s1351_s16, 127  ;;  %v1484_v4 = vld [vmem:[%s2059_s1 + $0x18] sm:$0xff] (!%p143_p2)   ;;  %v1485_v5 = vld [vmem:[%s2059_s1 + $0x20] sm:$0xff] (!%p143_p2)   ;;  %v1486_v7 = vld [vmem:[%s2059_s1 + $0x28] sm:$0xff] (!%p143_p2)   ;;  %vm1256_vm0 = vcmask (!%p143_p2), 1040384  }
   0x7   : > { %702 = vmatpush1.bf16.msra.mxu0 (!%p143_p2), %v1481_v0  ;;  %1456 = vmatpush1.bf16.msra.mxu1 (!%p143_p2), %v1481_v0  ;;  %v1487_v8 = vld [vmem:[%s2059_s1 + $0x30] sm:$0xff] (!%p143_p2)   ;;  %v1488_v9 = vld [vmem:[%s2059_s1 + $0x38] sm:$0xff] (!%p143_p2)   ;;  %v1489_v11 = vld [vmem:[%s2059_s1 + $0x40] sm:$0xff] (!%p143_p2)  }
   0x8   : > { %703 = vmatprep.subr.bf16.mxu0 (!%p143_p2), %v1601_v1  ;;  %1441 = vmatprep.subr.bf16.mxu1 (!%p143_p2), %v1601_v1  ;;  %v1490_v12 = vld [vmem:[%s2059_s1 + $0x48] sm:$0xff] (!%p143_p2)   ;;  %v1491_v13 = vld [vmem:[%s2059_s1 + $0x50] sm:$0xff] (!%p143_p2)   ;;  %v1492_v14 = vld [vmem:[%s2059_s1 + $0x58] sm:$0xff] (!%p143_p2)  }
   0x9   : > { %v1493_v15 = vld [vmem:[%s2059_s1 + $0x60] sm:$0xff] (!%p143_p2)   ;;  %v1494_v16 = vld [vmem:[%s2059_s1 + $0x68] sm:$0xff] (!%p143_p2)   ;;  %v1495_v17 = vld [vmem:[%s2059_s1 + $0x70] sm:$0xff] (!%p143_p2)  }
   0xa   : > { %v1496_v18 = vld [vmem:[%s2059_s1 + $0x78] sm:$0xff] (!%p143_p2)  }
   0xb   : > { %704 = vmatpush1.bf16.msra.mxu0 (!%p143_p2), %v1482_v2  ;;  %1457 = vmatpush1.bf16.msra.mxu1 (!%p143_p2), %v1482_v2 }
   0xc   : > { %705 = vmatprep.subr.bf16.mxu0 (!%p143_p2), %v1601_v1  ;;  %1442 = vmatprep.subr.bf16.mxu1 (!%p143_p2), %v1601_v1 }
   0xd   : > { %s2063_s16 = smov (!%p172_p3, %s1351_s16), 127  ;;  %s2065_s13 = smov (!%p184_p4, %s1628_s13), 1 }
   0xe   : > { %s1439_s23 = sshll.u32 %s2063_s16, 3  ;;  %s1356_s16 = sshll.u32 %s2065_s13, 1 }
   0xf   : > { %706 = vmatpush1.bf16.msra.mxu0 %v1483_v3  ;;  %1458 = vmatpush1.bf16.msra.mxu1 %v1483_v3  ;;  %s1664_s28 = scalar_lea.vmem %s2058_s0, %s1439_s23  ;;  %s1792_s4 = scalar_lea.vmem %s2060_s2, %s1439_s23 }
  0x10   : > { %707 = vmatprep.subr.bf16.mxu0 %v1601_v1  ;;  %1443 = vmatprep.subr.bf16.mxu1 %v1601_v1  ;;  %v1499_v6 = vld [vmem:[%s1664_s28 + $0x4] ss:$8 sps:$4 sm:$0xff]   ;;  %v1497_v19 = vld [vmem:[%s1664_s28] ss:$8 sps:$4 sm:$0xff]   ;;  %v1500_v21 = vld [vmem:[%s1664_s28 + $0x14] ss:$8 sps:$4 sm:$0xff]   ;;  %s187_s5 = scalar_lea.vmem %s2061_s3, %s1356_s16 }
  0x11   : > { %733 = vmatprep.mubr.bf16.mxu0 %v1499_v6  ;;  %v1523_v10 = vld [vmem:[%s1664_s28 + $0x104] ss:$8 sps:$4 sm:$0xff]   ;;  %v1521_v20 = vld [vmem:[%s1664_s28 + $0x100] ss:$8 sps:$4 sm:$0xff]   ;;  %v1527_v22 = vld [vmem:[%s1664_s28 + $0x114] ss:$8 sps:$4 sm:$0xff]  }
  0x12   : > { %861 = vmatprep.mubr.bf16.mxu1 %v1523_v10  ;;  %v1502_v23 = vld [vmem:[%s1664_s28 + $0x10] ss:$8 sps:$4 sm:$0xff]   ;;  %v1503_v25 = vld [vmem:[%s1664_s28 + $0x24] ss:$8 sps:$4 sm:$0xff]   ;;  %v1505_v27 = vld [vmem:[%s1664_s28 + $0x20] ss:$8 sps:$4 sm:$0xff]  }
  0x13   : > { %708 = vmatpush1.bf16.msra.mxu0 %v1484_v4  ;;  %1459 = vmatpush1.bf16.msra.mxu1 %v1484_v4  ;;  %v1529_v24 = vld [vmem:[%s1664_s28 + $0x110] ss:$8 sps:$4 sm:$0xff]   ;;  %v1533_v26 = vld [vmem:[%s1664_s28 + $0x124] ss:$8 sps:$4 sm:$0xff]   ;;  %v1535_v28 = vld [vmem:[%s1664_s28 + $0x120] ss:$8 sps:$4 sm:$0xff]  }
  0x14   : > { %709 = vmatprep.subr.bf16.mxu0 %v1601_v1  ;;  %1444 = vmatprep.subr.bf16.mxu1 %v1601_v1  ;;  %v1506_v29 = vld [vmem:[%s1664_s28 + $0x34] ss:$8 sps:$4 sm:$0xff]   ;;  %v1508_v31 = vld [vmem:[%s1664_s28 + $0x30] ss:$8 sps:$4 sm:$0xff]   ;;  %v1509_v33 = vld [vmem:[%s1664_s28 + $0x44] ss:$8 sps:$4 sm:$0xff]  }
  0x15   : > { %v1539_v30 = vld [vmem:[%s1664_s28 + $0x134] ss:$8 sps:$4 sm:$0xff]   ;;  %v1541_v32 = vld [vmem:[%s1664_s28 + $0x130] ss:$8 sps:$4 sm:$0xff]   ;;  %v1545_v34 = vld [vmem:[%s1664_s28 + $0x144] ss:$8 sps:$4 sm:$0xff]  }
  0x16   : > { %v1511_v35 = vld [vmem:[%s1664_s28 + $0x40] ss:$8 sps:$4 sm:$0xff]   ;;  %v1512_v37 = vld [vmem:[%s1664_s28 + $0x54] ss:$8 sps:$4 sm:$0xff]   ;;  %v1514_v39 = vld [vmem:[%s1664_s28 + $0x50] ss:$8 sps:$4 sm:$0xff]  }
  0x17   : > { %710 = vmatpush1.bf16.msra.mxu0 %v1485_v5  ;;  %1460 = vmatpush1.bf16.msra.mxu1 %v1485_v5  ;;  %v1547_v36 = vld [vmem:[%s1664_s28 + $0x140] ss:$8 sps:$4 sm:$0xff]   ;;  %v1551_v38 = vld [vmem:[%s1664_s28 + $0x154] ss:$8 sps:$4 sm:$0xff]   ;;  %v1553_v40 = vld [vmem:[%s1664_s28 + $0x150] ss:$8 sps:$4 sm:$0xff]  }
  0x18   : > { %711 = vmatprep.subr.bf16.mxu0 %v1601_v1  ;;  %1445 = vmatprep.subr.bf16.mxu1 %v1601_v1  ;;  %v1515_v41 = vld [vmem:[%s1664_s28 + $0x64] ss:$8 sps:$4 sm:$0xff]   ;;  %v1517_v43 = vld [vmem:[%s1664_s28 + $0x60] ss:$8 sps:$4 sm:$0xff]   ;;  %v1518_v45 = vld [vmem:[%s1664_s28 + $0x74] ss:$8 sps:$4 sm:$0xff]  }
  0x19   : > { %v1557_v42 = vld [vmem:[%s1664_s28 + $0x164] ss:$8 sps:$4 sm:$0xff]   ;;  %v1559_v44 = vld [vmem:[%s1664_s28 + $0x160] ss:$8 sps:$4 sm:$0xff]   ;;  %v1563_v46 = vld [vmem:[%s1664_s28 + $0x174] ss:$8 sps:$4 sm:$0xff]  }
  0x1a   : > { %v1520_v47 = vld [vmem:[%s1664_s28 + $0x70] ss:$8 sps:$4 sm:$0xff]   ;;  %v1524_v49 = vld [vmem:[%s1664_s28 + $0x84] ss:$8 sps:$4 sm:$0xff]   ;;  %v1526_v51 = vld [vmem:[%s1664_s28 + $0x80] ss:$8 sps:$4 sm:$0xff]  }
  0x1b   : > { %712 = vmatpush1.bf16.msra.mxu0 %v1486_v7  ;;  %1461 = vmatpush1.bf16.msra.mxu1 %v1486_v7  ;;  %v1565_v48 = vld [vmem:[%s1664_s28 + $0x170] ss:$8 sps:$4 sm:$0xff]   ;;  %v1569_v50 = vld [vmem:[%s1664_s28 + $0x184] ss:$8 sps:$4 sm:$0xff]   ;;  %v1571_v52 = vld [vmem:[%s1664_s28 + $0x180] ss:$8 sps:$4 sm:$0xff]  }
  0x1c   : > { %713 = vmatprep.subr.bf16.mxu0 %v1601_v1  ;;  %1446 = vmatprep.subr.bf16.mxu1 %v1601_v1  ;;  %v1530_v53 = vld [vmem:[%s1664_s28 + $0x94] ss:$8 sps:$4 sm:$0xff]   ;;  %v1532_v55 = vld [vmem:[%s1664_s28 + $0x90] ss:$8 sps:$4 sm:$0xff]   ;;  %v1536_v57 = vld [vmem:[%s1664_s28 + $0xa4] ss:$8 sps:$4 sm:$0xff]  }
  0x1d   : > { %v1572_v54 = vld [vmem:[%s1664_s28 + $0x194] ss:$8 sps:$4 sm:$0xff]   ;;  %v1574_v56 = vld [vmem:[%s1664_s28 + $0x190] ss:$8 sps:$4 sm:$0xff]   ;;  %v1575_v58 = vld [vmem:[%s1664_s28 + $0x1a4] ss:$8 sps:$4 sm:$0xff]  }
  0x1e   : > { %v1538_v59 = vld [vmem:[%s1664_s28 + $0xa0] ss:$8 sps:$4 sm:$0xff]   ;;  %v1542_v61 = vld [vmem:[%s1664_s28 + $0xb4] ss:$8 sps:$4 sm:$0xff]   ;;  %v1544_v63 = vld [vmem:[%s1664_s28 + $0xb0] ss:$8 sps:$4 sm:$0xff]  }
  0x1f   : > { %714 = vmatpush1.bf16.msra.mxu0 %v1487_v8  ;;  %1462 = vmatpush1.bf16.msra.mxu1 %v1487_v8  ;;  %v1577_v60 = vld [vmem:[%s1664_s28 + $0x1a0] ss:$8 sps:$4 sm:$0xff]   ;;  %v1578_v62 = vld [vmem:[%s1664_s28 + $0x1b4] ss:$8 sps:$4 sm:$0xff]   ;;  %v1580_v0 = vld [vmem:[%s1664_s28 + $0x1b0] ss:$8 sps:$4 sm:$0xff]  }
  0x20   : > { %715 = vmatprep.subr.bf16.mxu0 %v1601_v1  ;;  %1447 = vmatprep.subr.bf16.mxu1 %v1601_v1  ;;  %v1581_v2 = vld [vmem:[%s1664_s28 + $0x1c4] ss:$8 sps:$4 sm:$0xff]   ;;  %v1550_v3 = vld [vmem:[%s1664_s28 + $0xc0] ss:$8 sps:$4 sm:$0xff]   ;;  %v1554_v5 = vld [vmem:[%s1664_s28 + $0xd4] ss:$8 sps:$4 sm:$0xff]  }
  0x21   : > { %v1583_v4 = vld [vmem:[%s1664_s28 + $0x1c0] ss:$8 sps:$4 sm:$0xff]   ;;  %v1584_v6 = vld [vmem:[%s1664_s28 + $0x1d4] ss:$8 sps:$4 sm:$0xff]   ;;  %v1556_v7 = vld [vmem:[%s1664_s28 + $0xd0] ss:$8 sps:$4 sm:$0xff]  }
  0x22   : > { %v1586_v8 = vld [vmem:[%s1664_s28 + $0x1d0] ss:$8 sps:$4 sm:$0xff]   ;;  %v1587_v10 = vld [vmem:[%s1664_s28 + $0x1e4] ss:$8 sps:$4 sm:$0xff]  }
  0x23   : > { %716 = vmatpush1.bf16.msra.mxu0 %v1488_v9  ;;  %1463 = vmatpush1.bf16.msra.mxu1 %v1488_v9  ;;  %v1560_v9 = vld [vmem:[%s1664_s28 + $0xe4] ss:$8 sps:$4 sm:$0xff]  }
  0x24   : > { %717 = vmatprep.subr.bf16.mxu0 %v1601_v1  ;;  %1448 = vmatprep.subr.bf16.mxu1 %v1601_v1 }
  0x27   : > { %718 = vmatpush1.bf16.msra.mxu0 %v1489_v11  ;;  %1464 = vmatpush1.bf16.msra.mxu1 %v1489_v11  ;;  %v1562_v11 = vld [vmem:[%s1664_s28 + $0xe0] ss:$8 sps:$4 sm:$0xff]  }
  0x28   : > { %719 = vmatprep.subr.bf16.mxu0 %v1601_v1  ;;  %1449 = vmatprep.subr.bf16.mxu1 %v1601_v1 }
  0x2b   : > { %720 = vmatpush1.bf16.msra.mxu0 %v1490_v12  ;;  %1465 = vmatpush1.bf16.msra.mxu1 %v1490_v12  ;;  %v1589_v12 = vld [vmem:[%s1664_s28 + $0x1e0] ss:$8 sps:$4 sm:$0xff]  }
  0x2c   : > { %721 = vmatprep.subr.bf16.mxu0 %v1601_v1  ;;  %1450 = vmatprep.subr.bf16.mxu1 %v1601_v1 }
  0x2f   : > { %722 = vmatpush1.bf16.msra.mxu0 %v1491_v13  ;;  %1466 = vmatpush1.bf16.msra.mxu1 %v1491_v13  ;;  %v1566_v13 = vld [vmem:[%s1664_s28 + $0xf4] ss:$8 sps:$4 sm:$0xff]  }
  0x30   : > { %723 = vmatprep.subr.bf16.mxu0 %v1601_v1  ;;  %1451 = vmatprep.subr.bf16.mxu1 %v1601_v1 }
  0x33   : > { %724 = vmatpush1.bf16.msra.mxu0 %v1492_v14  ;;  %1467 = vmatpush1.bf16.msra.mxu1 %v1492_v14  ;;  %v1590_v14 = vld [vmem:[%s1664_s28 + $0x1f4] ss:$8 sps:$4 sm:$0xff]  }
  0x34   : > { %725 = vmatprep.subr.bf16.mxu0 %v1601_v1  ;;  %1452 = vmatprep.subr.bf16.mxu1 %v1601_v1 }
  0x37   : > { %726 = vmatpush1.bf16.msra.mxu0 %v1493_v15  ;;  %1468 = vmatpush1.bf16.msra.mxu1 %v1493_v15  ;;  %v1568_v15 = vld [vmem:[%s1664_s28 + $0xf0] ss:$8 sps:$4 sm:$0xff]  }
  0x38   : > { %727 = vmatprep.subr.bf16.mxu0 %v1601_v1  ;;  %1453 = vmatprep.subr.bf16.mxu1 %v1601_v1 }
  0x3b   : > { %728 = vmatpush1.bf16.msra.mxu0 %v1494_v16  ;;  %1469 = vmatpush1.bf16.msra.mxu1 %v1494_v16  ;;  %v1592_v16 = vld [vmem:[%s1664_s28 + $0x1f0] ss:$8 sps:$4 sm:$0xff]  }
  0x3c   : > { %729 = vmatprep.subr.bf16.mxu0 %v1601_v1  ;;  %1454 = vmatprep.subr.bf16.mxu1 %v1601_v1 }
  0x3f   : > { %730 = vmatpush1.bf16.msra.mxu0 %v1495_v17  ;;  %1470 = vmatpush1.bf16.msra.mxu1 %v1495_v17 }
  0x40   : > { %731 = vmatprep.subr.bf16.mxu0 %v1601_v1  ;;  %1455 = vmatprep.subr.bf16.mxu1 %v1601_v1  ;;  %v1548_v1 = vld [vmem:[%s1664_s28 + $0xc4] ss:$8 sps:$4 sm:$0xff]  }
  0x43   : > { %732 = vmatpush1.bf16.msra.mxu0 %v1496_v18  ;;  %1471 = vmatpush1.bf16.msra.mxu1 %v1496_v18 }
  0x46   : > { %734 = vmatmul.mubr.bf16.vlgmr.msra.gmra.mrb[0].mxu0 %v1497_v19  ;;  %862 = vmatmul.mubr.bf16.vlgmr.msra.gmra.mrb[0].mxu1 %v1521_v20 }
  0x47   : > { %741 = vmatprep.mubr.bf16.mxu0 %v1500_v21  ;;  %869 = vmatprep.mubr.bf16.mxu1 %v1527_v22 }
  0x4e   : > { %742 = vmatmul.mubr.bf16.gmra.mrb[4].mxu0 %v1502_v23  ;;  %870 = vmatmul.mubr.bf16.gmra.mrb[4].mxu1 %v1529_v24 }
  0x4f   : > { %749 = vmatprep.mubr.bf16.mxu0 %v1503_v25  ;;  %877 = vmatprep.mubr.bf16.mxu1 %v1533_v26 }
  0x56   : > { %750 = vmatmul.mubr.bf16.gmra.mrb[8].mxu0 %v1505_v27  ;;  %878 = vmatmul.mubr.bf16.gmra.mrb[8].mxu1 %v1535_v28 }
  0x57   : > { %757 = vmatprep.mubr.bf16.mxu0 %v1506_v29  ;;  %885 = vmatprep.mubr.bf16.mxu1 %v1539_v30 }
  0x5e   : > { %758 = vmatmul.mubr.bf16.gmra.mrb[12].mxu0 %v1508_v31  ;;  %886 = vmatmul.mubr.bf16.gmra.mrb[12].mxu1 %v1541_v32 }
  0x5f   : > { %765 = vmatprep.mubr.bf16.mxu0 %v1509_v33  ;;  %893 = vmatprep.mubr.bf16.mxu1 %v1545_v34 }
  0x66   : > { %766 = vmatmul.mubr.bf16.gmra.mrb[16].mxu0 %v1511_v35  ;;  %894 = vmatmul.mubr.bf16.gmra.mrb[16].mxu1 %v1547_v36 }
  0x67   : > { %773 = vmatprep.mubr.bf16.mxu0 %v1512_v37  ;;  %901 = vmatprep.mubr.bf16.mxu1 %v1551_v38 }
  0x6e   : > { %774 = vmatmul.mubr.bf16.gmra.mrb[20].mxu0 %v1514_v39  ;;  %902 = vmatmul.mubr.bf16.gmra.mrb[20].mxu1 %v1553_v40 }
  0x6f   : > { %781 = vmatprep.mubr.bf16.mxu0 %v1515_v41  ;;  %909 = vmatprep.mubr.bf16.mxu1 %v1557_v42 }
  0x76   : > { %782 = vmatmul.mubr.bf16.gmra.mrb[24].mxu0 %v1517_v43  ;;  %910 = vmatmul.mubr.bf16.gmra.mrb[24].mxu1 %v1559_v44 }
  0x77   : > { %789 = vmatprep.mubr.bf16.mxu0 %v1518_v45  ;;  %917 = vmatprep.mubr.bf16.mxu1 %v1563_v46 }
  0x7e   : > { %790 = vmatmul.mubr.bf16.gmra.mrb[28].mxu0 %v1520_v47  ;;  %918 = vmatmul.mubr.bf16.gmra.mrb[28].mxu1 %v1565_v48 }
  0x7f   : > { %797 = vmatprep.mubr.bf16.mxu0 %v1524_v49  ;;  %925 = vmatprep.mubr.bf16.mxu1 %v1569_v50 }
  0x86   : > { %798 = vmatmul.mubr.bf16.gmra.mrb[32].mxu0 %v1526_v51  ;;  %926 = vmatmul.mubr.bf16.gmra.mrb[32].mxu1 %v1571_v52 }
  0x87   : > { %805 = vmatprep.mubr.bf16.mxu0 %v1530_v53  ;;  %933 = vmatprep.mubr.bf16.mxu1 %v1572_v54 }
  0x8e   : > { %806 = vmatmul.mubr.bf16.gmra.mrb[36].mxu0 %v1532_v55  ;;  %934 = vmatmul.mubr.bf16.gmra.mrb[36].mxu1 %v1574_v56 }
  0x8f   : > { %813 = vmatprep.mubr.bf16.mxu0 %v1536_v57  ;;  %941 = vmatprep.mubr.bf16.mxu1 %v1575_v58 }
  0x96   : > { %814 = vmatmul.mubr.bf16.gmra.mrb[40].mxu0 %v1538_v59  ;;  %942 = vmatmul.mubr.bf16.gmra.mrb[40].mxu1 %v1577_v60 }
  0x97   : > { %821 = vmatprep.mubr.bf16.mxu0 %v1542_v61  ;;  %949 = vmatprep.mubr.bf16.mxu1 %v1578_v62 }
  0x9e   : > { %822 = vmatmul.mubr.bf16.gmra.mrb[44].mxu0 %v1544_v63  ;;  %950 = vmatmul.mubr.bf16.gmra.mrb[44].mxu1 %v1580_v0 }
  0x9f   : > { %829 = vmatprep.mubr.bf16.mxu0 %v1548_v1  ;;  %957 = vmatprep.mubr.bf16.mxu1 %v1581_v2 }
  0xa6   : > { %830 = vmatmul.mubr.bf16.gmra.mrb[48].mxu0 %v1550_v3  ;;  %958 = vmatmul.mubr.bf16.gmra.mrb[48].mxu1 %v1583_v4 }
  0xa7   : > { %837 = vmatprep.mubr.bf16.mxu0 %v1554_v5  ;;  %965 = vmatprep.mubr.bf16.mxu1 %v1584_v6 }
  0xae   : > { %838 = vmatmul.mubr.bf16.gmra.mrb[52].mxu0 %v1556_v7  ;;  %966 = vmatmul.mubr.bf16.gmra.mrb[52].mxu1 %v1586_v8 }
  0xaf   : > { %845 = vmatprep.mubr.bf16.mxu0 %v1560_v9  ;;  %973 = vmatprep.mubr.bf16.mxu1 %v1587_v10 }
  0xb6   : > { %846 = vmatmul.mubr.bf16.gmra.mrb[56].mxu0 %v1562_v11  ;;  %974 = vmatmul.mubr.bf16.gmra.mrb[56].mxu1 %v1589_v12 }
  0xb7   : > { %853 = vmatprep.mubr.bf16.mxu0 %v1566_v13  ;;  %981 = vmatprep.mubr.bf16.mxu1 %v1590_v14 }
  0xbe   : > { %854 = vmatmul.mubr.bf16.gmra.mrb[60].mxu0 %v1568_v15  ;;  %982 = vmatmul.mubr.bf16.gmra.mrb[60].mxu1 %v1592_v16 }
 0x119   : > { %v735_v17 = vpop.f32.mrb[0].mxu0  ;;  %v1794_v18 = vpop.f32.mrb[0].mxu1 }
 0x11a   : > { %990 = vst [vmem:[%s1792_s4] sm:$0xff] %v735_v17  ;;  %v737_v19 = vpop.f32.mrb[1].mxu0  ;;  %1022 = vst [vmem:[%s1792_s4 + $0x100] sm:$0xff] %v1794_v18  ;;  %v865_v20 = vpop.f32.mrb[1].mxu1  ;;  %v1123_v23 = vmul.f32 %v735_v17, %v735_v17 }
 0x11b   : > { %v738_v21 = vpop.f32.mrb[2].mxu0  ;;  %v1799_v22 = vpop.f32.mrb[2].mxu1 }
 0x11c   : > { %991 = vst [vmem:[%s1792_s4 + $0x8] sm:$0xff] %v738_v21  ;;  %v1054_v24 = vadd.f32 %v738_v21, %v735_v17  ;;  %v1124_v25 = vmul.f32 %v738_v21, %v738_v21  ;;  %v740_v26 = vpop.f32.mrb[3].mxu0  ;;  %1023 = vst [vmem:[%s1792_s4 + $0x108] sm:$0xff] %v1799_v22  ;;  %v868_v27 = vpop.f32.mrb[3].mxu1 }
 0x11e   : > { %v1187_v28 = vadd.f32 %v1124_v25, %v1123_v23 }
 0x121   : > { %v743_v29 = vpop.f32.mrb[4].mxu0  ;;  %v1804_v30 = vpop.f32.mrb[4].mxu1 }
 0x122   : > { %992 = vst [vmem:[%s1792_s4 + $0x10] sm:$0xff] %v743_v29  ;;  %v1055_v31 = vadd.f32 %v1054_v24, %v743_v29  ;;  %v1125_v32 = vmul.f32 %v743_v29, %v743_v29  ;;  %v745_v33 = vpop.f32.mrb[5].mxu0  ;;  %1024 = vst [vmem:[%s1792_s4 + $0x110] sm:$0xff] %v1804_v30  ;;  %v873_v34 = vpop.f32.mrb[5].mxu1 }
 0x123   : > { %v746_v35 = vpop.f32.mrb[6].mxu0  ;;  %v1809_v36 = vpop.f32.mrb[6].mxu1 }
 0x124   : > { %v1188_v37 = vadd.f32 %v1187_v28, %v1125_v32  ;;  %993 = vst [vmem:[%s1792_s4 + $0x18] sm:$0xff] %v746_v35  ;;  %v1056_v38 = vadd.f32 %v1055_v31, %v746_v35  ;;  %v1126_v39 = vmul.f32 %v746_v35, %v746_v35  ;;  %v748_v40 = vpop.f32.mrb[7].mxu0  ;;  %1025 = vst [vmem:[%s1792_s4 + $0x118] sm:$0xff] %v1809_v36  ;;  %v876_v41 = vpop.f32.mrb[7].mxu1 }
 0x126   : > { %v1189_v42 = vadd.f32 %v1188_v37, %v1126_v39 }
 0x129   : > { %v751_v43 = vpop.f32.mrb[8].mxu0  ;;  %v1814_v44 = vpop.f32.mrb[8].mxu1 }
 0x12a   : > { %994 = vst [vmem:[%s1792_s4 + $0x20] sm:$0xff] %v751_v43  ;;  %v1057_v45 = vadd.f32 %v1056_v38, %v751_v43  ;;  %v1127_v46 = vmul.f32 %v751_v43, %v751_v43  ;;  %v753_v47 = vpop.f32.mrb[9].mxu0  ;;  %1026 = vst [vmem:[%s1792_s4 + $0x120] sm:$0xff] %v1814_v44  ;;  %v881_v48 = vpop.f32.mrb[9].mxu1 }
 0x12b   : > { %v754_v49 = vpop.f32.mrb[10].mxu0  ;;  %v1819_v50 = vpop.f32.mrb[10].mxu1 }
 0x12c   : > { %v1190_v51 = vadd.f32 %v1189_v42, %v1127_v46  ;;  %995 = vst [vmem:[%s1792_s4 + $0x28] sm:$0xff] %v754_v49  ;;  %v1058_v52 = vadd.f32 %v1057_v45, %v754_v49  ;;  %v1128_v53 = vmul.f32 %v754_v49, %v754_v49  ;;  %v756_v54 = vpop.f32.mrb[11].mxu0  ;;  %1027 = vst [vmem:[%s1792_s4 + $0x128] sm:$0xff] %v1819_v50  ;;  %v884_v55 = vpop.f32.mrb[11].mxu1 }
 0x12e   : > { %v1191_v56 = vadd.f32 %v1190_v51, %v1128_v53 }
 0x131   : > { %v759_v57 = vpop.f32.mrb[12].mxu0  ;;  %v1824_v58 = vpop.f32.mrb[12].mxu1 }
 0x132   : > { %996 = vst [vmem:[%s1792_s4 + $0x30] sm:$0xff] %v759_v57  ;;  %v1059_v59 = vadd.f32 %v1058_v52, %v759_v57  ;;  %v1129_v60 = vmul.f32 %v759_v57, %v759_v57  ;;  %v761_v61 = vpop.f32.mrb[13].mxu0  ;;  %1028 = vst [vmem:[%s1792_s4 + $0x130] sm:$0xff] %v1824_v58  ;;  %v889_v62 = vpop.f32.mrb[13].mxu1 }
 0x133   : > { %v762_v63 = vpop.f32.mrb[14].mxu0  ;;  %v1829_v0 = vpop.f32.mrb[14].mxu1 }
 0x134   : > { %v1192_v1 = vadd.f32 %v1191_v56, %v1129_v60  ;;  %997 = vst [vmem:[%s1792_s4 + $0x38] sm:$0xff] %v762_v63  ;;  %v1060_v2 = vadd.f32 %v1059_v59, %v762_v63  ;;  %v1130_v3 = vmul.f32 %v762_v63, %v762_v63  ;;  %v764_v4 = vpop.f32.mrb[15].mxu0  ;;  %1029 = vst [vmem:[%s1792_s4 + $0x138] sm:$0xff] %v1829_v0  ;;  %v892_v5 = vpop.f32.mrb[15].mxu1 }
 0x136   : > { %v1193_v6 = vadd.f32 %v1192_v1, %v1130_v3 }
 0x139   : > { %v767_v7 = vpop.f32.mrb[16].mxu0  ;;  %v1834_v8 = vpop.f32.mrb[16].mxu1 }
 0x13a   : > { %998 = vst [vmem:[%s1792_s4 + $0x40] sm:$0xff] %v767_v7  ;;  %v1061_v9 = vadd.f32 %v1060_v2, %v767_v7  ;;  %v1131_v10 = vmul.f32 %v767_v7, %v767_v7  ;;  %v769_v11 = vpop.f32.mrb[17].mxu0  ;;  %1030 = vst [vmem:[%s1792_s4 + $0x140] sm:$0xff] %v1834_v8  ;;  %v897_v12 = vpop.f32.mrb[17].mxu1 }
 0x13b   : > { %v770_v13 = vpop.f32.mrb[18].mxu0  ;;  %v1839_v14 = vpop.f32.mrb[18].mxu1 }
 0x13c   : > { %v1194_v15 = vadd.f32 %v1193_v6, %v1131_v10  ;;  %999 = vst [vmem:[%s1792_s4 + $0x48] sm:$0xff] %v770_v13  ;;  %v1062_v16 = vadd.f32 %v1061_v9, %v770_v13  ;;  %v1132_v17 = vmul.f32 %v770_v13, %v770_v13  ;;  %v772_v19 = vpop.f32.mrb[19].mxu0  ;;  %1031 = vst [vmem:[%s1792_s4 + $0x148] sm:$0xff] %v1839_v14  ;;  %v900_v20 = vpop.f32.mrb[19].mxu1 }
 0x13e   : > { %v1195_v21 = vadd.f32 %v1194_v15, %v1132_v17 }
 0x141   : > { %v775_v23 = vpop.f32.mrb[20].mxu0  ;;  %v1844_v24 = vpop.f32.mrb[20].mxu1 }
 0x142   : > { %1000 = vst [vmem:[%s1792_s4 + $0x50] sm:$0xff] %v775_v23  ;;  %v1063_v25 = vadd.f32 %v1062_v16, %v775_v23  ;;  %v1133_v26 = vmul.f32 %v775_v23, %v775_v23  ;;  %v777_v27 = vpop.f32.mrb[21].mxu0  ;;  %1032 = vst [vmem:[%s1792_s4 + $0x150] sm:$0xff] %v1844_v24  ;;  %v905_v28 = vpop.f32.mrb[21].mxu1 }
 0x143   : > { %v778_v29 = vpop.f32.mrb[22].mxu0  ;;  %v1849_v31 = vpop.f32.mrb[22].mxu1 }
 0x144   : > { %v1196_v32 = vadd.f32 %v1195_v21, %v1133_v26  ;;  %1001 = vst [vmem:[%s1792_s4 + $0x58] sm:$0xff] %v778_v29  ;;  %v1064_v33 = vadd.f32 %v1063_v25, %v778_v29  ;;  %v1134_v34 = vmul.f32 %v778_v29, %v778_v29  ;;  %v780_v35 = vpop.f32.mrb[23].mxu0  ;;  %1033 = vst [vmem:[%s1792_s4 + $0x158] sm:$0xff] %v1849_v31  ;;  %v908_v37 = vpop.f32.mrb[23].mxu1 }
 0x146   : > { %v1197_v38 = vadd.f32 %v1196_v32, %v1134_v34 }
 0x149   : > { %v783_v39 = vpop.f32.mrb[24].mxu0  ;;  %v1854_v40 = vpop.f32.mrb[24].mxu1 }
 0x14a   : > { %1002 = vst [vmem:[%s1792_s4 + $0x60] sm:$0xff] %v783_v39  ;;  %v1065_v41 = vadd.f32 %v1064_v33, %v783_v39  ;;  %v1135_v42 = vmul.f32 %v783_v39, %v783_v39  ;;  %v785_v43 = vpop.f32.mrb[25].mxu0  ;;  %1034 = vst [vmem:[%s1792_s4 + $0x160] sm:$0xff] %v1854_v40  ;;  %v913_v45 = vpop.f32.mrb[25].mxu1 }
 0x14b   : > { %v786_v46 = vpop.f32.mrb[26].mxu0  ;;  %v1859_v47 = vpop.f32.mrb[26].mxu1 }
 0x14c   : > { %v1198_v48 = vadd.f32 %v1197_v38, %v1135_v42  ;;  %1003 = vst [vmem:[%s1792_s4 + $0x68] sm:$0xff] %v786_v46  ;;  %v1066_v49 = vadd.f32 %v1065_v41, %v786_v46  ;;  %v1136_v51 = vmul.f32 %v786_v46, %v786_v46  ;;  %v788_v52 = vpop.f32.mrb[27].mxu0  ;;  %1035 = vst [vmem:[%s1792_s4 + $0x168] sm:$0xff] %v1859_v47  ;;  %v916_v53 = vpop.f32.mrb[27].mxu1 }
 0x14e   : > { %v1199_v54 = vadd.f32 %v1198_v48, %v1136_v51 }
 0x151   : > { %v791_v55 = vpop.f32.mrb[28].mxu0  ;;  %v1864_v56 = vpop.f32.mrb[28].mxu1 }
 0x152   : > { %1004 = vst [vmem:[%s1792_s4 + $0x70] sm:$0xff] %v791_v55  ;;  %v1067_v57 = vadd.f32 %v1066_v49, %v791_v55  ;;  %v1137_v59 = vmul.f32 %v791_v55, %v791_v55  ;;  %v793_v60 = vpop.f32.mrb[29].mxu0  ;;  %1036 = vst [vmem:[%s1792_s4 + $0x170] sm:$0xff] %v1864_v56  ;;  %v921_v61 = vpop.f32.mrb[29].mxu1 }
 0x153   : > { %v794_v62 = vpop.f32.mrb[30].mxu0  ;;  %v1869_v63 = vpop.f32.mrb[30].mxu1 }
 0x154   : > { %v1200_v1 = vadd.f32 %v1199_v54, %v1137_v59  ;;  %1005 = vst [vmem:[%s1792_s4 + $0x78] sm:$0xff] %v794_v62  ;;  %v1068_v2 = vadd.f32 %v1067_v57, %v794_v62  ;;  %v1138_v3 = vmul.f32 %v794_v62, %v794_v62  ;;  %v796_v4 = vpop.f32.mrb[31].mxu0  ;;  %1037 = vst [vmem:[%s1792_s4 + $0x178] sm:$0xff] %v1869_v63  ;;  %v924_v5 = vpop.f32.mrb[31].mxu1 }
 0x156   : > { %v1201_v6 = vadd.f32 %v1200_v1, %v1138_v3 }
 0x159   : > { %v799_v7 = vpop.f32.mrb[32].mxu0  ;;  %v1874_v9 = vpop.f32.mrb[32].mxu1 }
 0x15a   : > { %1006 = vst [vmem:[%s1792_s4 + $0x80] sm:$0xff] %v799_v7  ;;  %v1069_v10 = vadd.f32 %v1068_v2, %v799_v7  ;;  %v1139_v11 = vmul.f32 %v799_v7, %v799_v7  ;;  %v801_v12 = vpop.f32.mrb[33].mxu0  ;;  %1038 = vst [vmem:[%s1792_s4 + $0x180] sm:$0xff] %v1874_v9  ;;  %v929_v13 = vpop.f32.mrb[33].mxu1 }
 0x15b   : > { %v802_v15 = vpop.f32.mrb[34].mxu0  ;;  %v1879_v16 = vpop.f32.mrb[34].mxu1 }
 0x15c   : > { %v1202_v17 = vadd.f32 %v1201_v6, %v1139_v11  ;;  %1007 = vst [vmem:[%s1792_s4 + $0x88] sm:$0xff] %v802_v15  ;;  %v1070_v19 = vadd.f32 %v1069_v10, %v802_v15  ;;  %v1140_v20 = vmul.f32 %v802_v15, %v802_v15  ;;  %v804_v21 = vpop.f32.mrb[35].mxu0  ;;  %1039 = vst [vmem:[%s1792_s4 + $0x188] sm:$0xff] %v1879_v16  ;;  %v932_v23 = vpop.f32.mrb[35].mxu1 }
 0x15e   : > { %v1203_v25 = vadd.f32 %v1202_v17, %v1140_v20 }
 0x161   : > { %v807_v26 = vpop.f32.mrb[36].mxu0  ;;  %v1884_v27 = vpop.f32.mrb[36].mxu1 }
 0x162   : > { %1008 = vst [vmem:[%s1792_s4 + $0x90] sm:$0xff] %v807_v26  ;;  %v1071_v28 = vadd.f32 %v1070_v19, %v807_v26  ;;  %v1141_v29 = vmul.f32 %v807_v26, %v807_v26  ;;  %v809_v32 = vpop.f32.mrb[37].mxu0  ;;  %1040 = vst [vmem:[%s1792_s4 + $0x190] sm:$0xff] %v1884_v27  ;;  %v937_v33 = vpop.f32.mrb[37].mxu1 }
 0x163   : > { %v810_v34 = vpop.f32.mrb[38].mxu0  ;;  %v1889_v35 = vpop.f32.mrb[38].mxu1 }
 0x164   : > { %v1204_v37 = vadd.f32 %v1203_v25, %v1141_v29  ;;  %1009 = vst [vmem:[%s1792_s4 + $0x98] sm:$0xff] %v810_v34  ;;  %v1072_v38 = vadd.f32 %v1071_v28, %v810_v34  ;;  %v1142_v39 = vmul.f32 %v810_v34, %v810_v34  ;;  %v812_v41 = vpop.f32.mrb[39].mxu0  ;;  %1041 = vst [vmem:[%s1792_s4 + $0x198] sm:$0xff] %v1889_v35  ;;  %v940_v42 = vpop.f32.mrb[39].mxu1 }
 0x166   : > { %v1205_v43 = vadd.f32 %v1204_v37, %v1142_v39 }
 0x169   : > { %v815_v45 = vpop.f32.mrb[40].mxu0  ;;  %v1894_v46 = vpop.f32.mrb[40].mxu1 }
 0x16a   : > { %1010 = vst [vmem:[%s1792_s4 + $0xa0] sm:$0xff] %v815_v45  ;;  %v1073_v48 = vadd.f32 %v1072_v38, %v815_v45  ;;  %v1143_v49 = vmul.f32 %v815_v45, %v815_v45  ;;  %v817_v51 = vpop.f32.mrb[41].mxu0  ;;  %1042 = vst [vmem:[%s1792_s4 + $0x1a0] sm:$0xff] %v1894_v46  ;;  %v945_v52 = vpop.f32.mrb[41].mxu1 }
 0x16b   : > { %v818_v53 = vpop.f32.mrb[42].mxu0  ;;  %v1899_v54 = vpop.f32.mrb[42].mxu1 }
 0x16c   : > { %v1206_v55 = vadd.f32 %v1205_v43, %v1143_v49  ;;  %1011 = vst [vmem:[%s1792_s4 + $0xa8] sm:$0xff] %v818_v53  ;;  %v1074_v57 = vadd.f32 %v1073_v48, %v818_v53  ;;  %v1144_v59 = vmul.f32 %v818_v53, %v818_v53  ;;  %v820_v60 = vpop.f32.mrb[43].mxu0  ;;  %1043 = vst [vmem:[%s1792_s4 + $0x1a8] sm:$0xff] %v1899_v54  ;;  %v948_v61 = vpop.f32.mrb[43].mxu1 }
 0x16e   : > { %v1207_v62 = vadd.f32 %v1206_v55, %v1144_v59 }
 0x171   : > { %v823_v1 = vpop.f32.mrb[44].mxu0  ;;  %v1904_v2 = vpop.f32.mrb[44].mxu1 }
 0x172   : > { %1012 = vst [vmem:[%s1792_s4 + $0xb0] sm:$0xff] %v823_v1  ;;  %v1075_v3 = vadd.f32 %v1074_v57, %v823_v1  ;;  %v1145_v4 = vmul.f32 %v823_v1, %v823_v1  ;;  %v825_v5 = vpop.f32.mrb[45].mxu0  ;;  %1044 = vst [vmem:[%s1792_s4 + $0x1b0] sm:$0xff] %v1904_v2  ;;  %v953_v6 = vpop.f32.mrb[45].mxu1 }
 0x173   : > { %v826_v7 = vpop.f32.mrb[46].mxu0  ;;  %v1909_v10 = vpop.f32.mrb[46].mxu1 }
 0x174   : > { %v1208_v11 = vadd.f32 %v1207_v62, %v1145_v4  ;;  %1013 = vst [vmem:[%s1792_s4 + $0xb8] sm:$0xff] %v826_v7  ;;  %v1076_v12 = vadd.f32 %v1075_v3, %v826_v7  ;;  %v1146_v13 = vmul.f32 %v826_v7, %v826_v7  ;;  %v828_v15 = vpop.f32.mrb[47].mxu0  ;;  %1045 = vst [vmem:[%s1792_s4 + $0x1b8] sm:$0xff] %v1909_v10  ;;  %v956_v17 = vpop.f32.mrb[47].mxu1 }
 0x176   : > { %v1209_v19 = vadd.f32 %v1208_v11, %v1146_v13 }
 0x179   : > { %v831_v20 = vpop.f32.mrb[48].mxu0  ;;  %v1914_v21 = vpop.f32.mrb[48].mxu1 }
 0x17a   : > { %1014 = vst [vmem:[%s1792_s4 + $0xc0] sm:$0xff] %v831_v20  ;;  %v1077_v23 = vadd.f32 %v1076_v12, %v831_v20  ;;  %v1147_v25 = vmul.f32 %v831_v20, %v831_v20  ;;  %v833_v26 = vpop.f32.mrb[49].mxu0  ;;  %1046 = vst [vmem:[%s1792_s4 + $0x1c0] sm:$0xff] %v1914_v21  ;;  %v961_v28 = vpop.f32.mrb[49].mxu1 }
 0x17b   : > { %v834_v29 = vpop.f32.mrb[50].mxu0  ;;  %v1919_v32 = vpop.f32.mrb[50].mxu1 }
 0x17c   : > { %v1210_v33 = vadd.f32 %v1209_v19, %v1147_v25  ;;  %1015 = vst [vmem:[%s1792_s4 + $0xc8] sm:$0xff] %v834_v29  ;;  %v1078_v34 = vadd.f32 %v1077_v23, %v834_v29  ;;  %v1148_v37 = vmul.f32 %v834_v29, %v834_v29  ;;  %v836_v38 = vpop.f32.mrb[51].mxu0  ;;  %1047 = vst [vmem:[%s1792_s4 + $0x1c8] sm:$0xff] %v1919_v32  ;;  %v964_v39 = vpop.f32.mrb[51].mxu1 }
 0x17e   : > { %v1211_v41 = vadd.f32 %v1210_v33, %v1148_v37 }
 0x181   : > { %v839_v42 = vpop.f32.mrb[52].mxu0  ;;  %v1924_v43 = vpop.f32.mrb[52].mxu1 }
 0x182   : > { %1016 = vst [vmem:[%s1792_s4 + $0xd0] sm:$0xff] %v839_v42  ;;  %v1079_v45 = vadd.f32 %v1078_v34, %v839_v42  ;;  %v1149_v48 = vmul.f32 %v839_v42, %v839_v42  ;;  %v841_v49 = vpop.f32.mrb[53].mxu0  ;;  %1048 = vst [vmem:[%s1792_s4 + $0x1d0] sm:$0xff] %v1924_v43  ;;  %v969_v51 = vpop.f32.mrb[53].mxu1 }
 0x183   : > { %v842_v52 = vpop.f32.mrb[54].mxu0  ;;  %v1929_v53 = vpop.f32.mrb[54].mxu1  ;;  %v1155_v49 = vmul.f32 %v1794_v18, %v1794_v18 }
 0x184   : > { %v1212_v55 = vadd.f32 %v1211_v41, %v1149_v48  ;;  %1017 = vst [vmem:[%s1792_s4 + $0xd8] sm:$0xff] %v842_v52  ;;  %v1080_v57 = vadd.f32 %v1079_v45, %v842_v52  ;;  %v1150_v59 = vmul.f32 %v842_v52, %v842_v52  ;;  %v844_v60 = vpop.f32.mrb[55].mxu0  ;;  %1049 = vst [vmem:[%s1792_s4 + $0x1d8] sm:$0xff] %v1929_v53  ;;  %v972_v61 = vpop.f32.mrb[55].mxu1 }
 0x185   : > { %v1157_v60 = vmul.f32 %v1804_v30, %v1804_v30 }
 0x186   : > { %v1213_v62 = vadd.f32 %v1212_v55, %v1150_v59  ;;  %v1156_v55 = vmul.f32 %v1799_v22, %v1799_v22 }
 0x189   : > { %v847_v1 = vpop.f32.mrb[56].mxu0  ;;  %v1934_v3 = vpop.f32.mrb[56].mxu1 }
 0x18a   : > { %1018 = vst [vmem:[%s1792_s4 + $0xe0] sm:$0xff] %v847_v1  ;;  %v1081_v4 = vadd.f32 %v1080_v57, %v847_v1  ;;  %v1151_v5 = vmul.f32 %v847_v1, %v847_v1  ;;  %v849_v6 = vpop.f32.mrb[57].mxu0  ;;  %1050 = vst [vmem:[%s1792_s4 + $0x1e0] sm:$0xff] %v1934_v3  ;;  %v977_v7 = vpop.f32.mrb[57].mxu1  ;;  %v1158_v1 = vmul.f32 %v1809_v36, %v1809_v36 }
 0x18b   : > { %v850_v11 = vpop.f32.mrb[58].mxu0  ;;  %v1939_v12 = vpop.f32.mrb[58].mxu1 }
 0x18c   : > { %v1214_v13 = vadd.f32 %v1213_v62, %v1151_v5  ;;  %1019 = vst [vmem:[%s1792_s4 + $0xe8] sm:$0xff] %v850_v11  ;;  %v1082_v15 = vadd.f32 %v1081_v4, %v850_v11  ;;  %v1152_v17 = vmul.f32 %v850_v11, %v850_v11  ;;  %v852_v19 = vpop.f32.mrb[59].mxu0  ;;  %1051 = vst [vmem:[%s1792_s4 + $0x1e8] sm:$0xff] %v1939_v12  ;;  %v980_v20 = vpop.f32.mrb[59].mxu1 }
 0x18e   : > { %v1215_v23 = vadd.f32 %v1214_v13, %v1152_v17 }
 0x191   : > { %v855_v25 = vpop.f32.mrb[60].mxu0  ;;  %v1944_v26 = vpop.f32.mrb[60].mxu1 }
 0x192   : > { %1020 = vst [vmem:[%s1792_s4 + $0xf0] sm:$0xff] %v855_v25  ;;  %v1083_v28 = vadd.f32 %v1082_v15, %v855_v25  ;;  %v1153_v29 = vmul.f32 %v855_v25, %v855_v25  ;;  %v857_v33 = vpop.f32.mrb[61].mxu0  ;;  %1052 = vst [vmem:[%s1792_s4 + $0x1f0] sm:$0xff] %v1944_v26  ;;  %v985_v34 = vpop.f32.mrb[61].mxu1 }
 0x193   : > { %v858_v37 = vpop.f32.mrb[62].mxu0  ;;  %v1949_v38 = vpop.f32.mrb[62].mxu1 }
 0x194   : > { %v1216_v39 = vadd.f32 %v1215_v23, %v1153_v29  ;;  %1021 = vst [vmem:[%s1792_s4 + $0xf8] sm:$0xff] %v858_v37  ;;  %v1084_v41 = vadd.f32 %v1083_v28, %v858_v37  ;;  %v1154_v42 = vmul.f32 %v858_v37, %v858_v37  ;;  %v860_v45 = vpop.f32.mrb[63].mxu0  ;;  %1053 = vst [vmem:[%s1792_s4 + $0x1f8] sm:$0xff] %v1949_v38  ;;  %v988_v48 = vpop.f32.mrb[63].mxu1 }
 0x196   : > { %v1085_v51 = vadd.f32 %v1084_v41, %v1794_v18  ;;  %v1217_v52 = vadd.f32 %v1216_v39, %v1154_v42  ;;  %v1159_v18 = vmul.f32 %v1814_v44, %v1814_v44 }
 0x198   : > { %v1086_v57 = vadd.f32 %v1085_v51, %v1799_v22  ;;  %v1218_v59 = vadd.f32 %v1217_v52, %v1155_v49  ;;  %v1160_v22 = vmul.f32 %v1819_v50, %v1819_v50 }
 0x19a   : > { %v1087_v61 = vadd.f32 %v1086_v57, %v1804_v30  ;;  %v1219_v62 = vadd.f32 %v1218_v59, %v1156_v55  ;;  %v1161_v30 = vmul.f32 %v1824_v58, %v1824_v58  ;;  %v1171_v57 = vmul.f32 %v1874_v9, %v1874_v9 }
 0x19c   : > { %v1088_v4 = vadd.f32 %v1087_v61, %v1809_v36  ;;  %v1220_v5 = vadd.f32 %v1219_v62, %v1157_v60  ;;  %v1162_v36 = vmul.f32 %v1829_v0, %v1829_v0  ;;  %v1172_v61 = vmul.f32 %v1879_v16, %v1879_v16 }
 0x19e   : > { %v1089_v6 = vadd.f32 %v1088_v4, %v1814_v44  ;;  %v1221_v7 = vadd.f32 %v1220_v5, %v1158_v1  ;;  %v1163_v44 = vmul.f32 %v1834_v8, %v1834_v8  ;;  %v1173_v1 = vmul.f32 %v1884_v27, %v1884_v27 }
 0x19f   : > { %v1174_v5 = vmul.f32 %v1889_v35, %v1889_v35 }
 0x1a0   : > { %v1090_v11 = vadd.f32 %v1089_v6, %v1819_v50  ;;  %v1222_v13 = vadd.f32 %v1221_v7, %v1159_v18  ;;  %v1164_v50 = vmul.f32 %v1839_v14, %v1839_v14  ;;  %v1175_v6 = vmul.f32 %v1894_v46, %v1894_v46 }
 0x1a2   : > { %v1091_v15 = vadd.f32 %v1090_v11, %v1824_v58  ;;  %v1223_v17 = vadd.f32 %v1222_v13, %v1160_v22  ;;  %v1165_v58 = vmul.f32 %v1844_v24, %v1844_v24  ;;  %v1176_v22 = vmul.f32 %v1899_v54, %v1899_v54 }
 0x1a3   : > { %v1177_v13 = vmul.f32 %v1904_v2, %v1904_v2 }
 0x1a4   : > { %v1092_v19 = vadd.f32 %v1091_v15, %v1829_v0  ;;  %v1224_v20 = vadd.f32 %v1223_v17, %v1161_v30  ;;  %v1166_v0 = vmul.f32 %v1849_v31, %v1849_v31  ;;  %v1178_v15 = vmul.f32 %v1909_v10, %v1909_v10 }
 0x1a6   : > { %v1225_v23 = vadd.f32 %v1224_v20, %v1162_v36  ;;  %v1093_v25 = vadd.f32 %v1092_v19, %v1834_v8  ;;  %v1167_v8 = vmul.f32 %v1854_v40, %v1854_v40  ;;  %v1179_v36 = vmul.f32 %v1914_v21, %v1914_v21 }
 0x1a7   : > { %v1180_v20 = vmul.f32 %v1919_v32, %v1919_v32 }
 0x1a8   : > { %v1094_v28 = vadd.f32 %v1093_v25, %v1839_v14  ;;  %v1226_v29 = vadd.f32 %v1225_v23, %v1163_v44  ;;  %v1168_v14 = vmul.f32 %v1859_v47, %v1859_v47  ;;  %v1181_v23 = vmul.f32 %v1924_v43, %v1924_v43 }
 0x1aa   : > { %v1095_v33 = vadd.f32 %v1094_v28, %v1844_v24  ;;  %v1227_v34 = vadd.f32 %v1226_v29, %v1164_v50  ;;  %v1169_v24 = vmul.f32 %v1864_v56, %v1864_v56  ;;  %v1182_v50 = vmul.f32 %v1929_v53, %v1929_v53 }
 0x1ab   : > { %v1183_v29 = vmul.f32 %v1934_v3, %v1934_v3 }
 0x1ac   : > { %v1096_v37 = vadd.f32 %v1095_v33, %v1849_v31  ;;  %v1228_v39 = vadd.f32 %v1227_v34, %v1165_v58  ;;  %v1170_v31 = vmul.f32 %v1869_v63, %v1869_v63  ;;  %v1185_v33 = vmul.f32 %v1944_v26, %v1944_v26 }
 0x1ae   : > { %v1097_v41 = vadd.f32 %v1096_v37, %v1854_v40  ;;  %v1229_v42 = vadd.f32 %v1228_v39, %v1166_v0  ;;  %v1186_v39 = vmul.f32 %v1949_v38, %v1949_v38 }
 0x1b0   : > { %v1098_v45 = vadd.f32 %v1097_v41, %v1859_v47  ;;  %v1230_v48 = vadd.f32 %v1229_v42, %v1167_v8 }
 0x1b2   : > { %v1099_v49 = vadd.f32 %v1098_v45, %v1864_v56  ;;  %v1231_v51 = vadd.f32 %v1230_v48, %v1168_v14 }
 0x1b4   : > { %v1100_v52 = vadd.f32 %v1099_v49, %v1869_v63  ;;  %v1232_v55 = vadd.f32 %v1231_v51, %v1169_v24 }
 0x1b6   : > { %v1101_v40 = vadd.f32 %v1100_v52, %v1874_v9  ;;  %v1233_v59 = vadd.f32 %v1232_v55, %v1170_v31 }
 0x1b8   : > { %v1234_v47 = vadd.f32 %v1233_v59, %v1171_v57  ;;  %v1102_v60 = vadd.f32 %v1101_v40, %v1879_v16 }
 0x1ba   : > { %v1235_v56 = vadd.f32 %v1234_v47, %v1172_v61  ;;  %v1103_v62 = vadd.f32 %v1102_v60, %v1884_v27 }
 0x1bc   : > { %v1236_v63 = vadd.f32 %v1235_v56, %v1173_v1  ;;  %v1104_v4 = vadd.f32 %v1103_v62, %v1889_v35 }
 0x1be   : > { %v1237_v9 = vadd.f32 %v1236_v63, %v1174_v5  ;;  %v1105_v18 = vadd.f32 %v1104_v4, %v1894_v46 }
 0x1c0   : > { %v1238_v7 = vadd.f32 %v1237_v9, %v1175_v6  ;;  %v1106_v16 = vadd.f32 %v1105_v18, %v1899_v54 }
 0x1c2   : > { %v1239_v11 = vadd.f32 %v1238_v7, %v1176_v22  ;;  %v1107_v27 = vadd.f32 %v1106_v16, %v1904_v2 }
 0x1c4   : > { %v1240_v30 = vadd.f32 %v1239_v11, %v1177_v13  ;;  %v1108_v35 = vadd.f32 %v1107_v27, %v1909_v10 }
 0x1c6   : > { %v1241_v17 = vadd.f32 %v1240_v30, %v1178_v15  ;;  %v1109_v46 = vadd.f32 %v1108_v35, %v1914_v21 }
 0x1c8   : > { %v1242_v19 = vadd.f32 %v1241_v17, %v1179_v36  ;;  %v1110_v54 = vadd.f32 %v1109_v46, %v1919_v32 }
 0x1ca   : > { %v1243_v44 = vadd.f32 %v1242_v19, %v1180_v20  ;;  %v1111_v2 = vadd.f32 %v1110_v54, %v1924_v43  ;;  %v1184_v43 = vmul.f32 %v1939_v12, %v1939_v12 }
 0x1cc   : > { %v1244_v25 = vadd.f32 %v1243_v44, %v1181_v23  ;;  %v1112_v10 = vadd.f32 %v1111_v2, %v1929_v53 }
 0x1ce   : > { %v1245_v21 = vadd.f32 %v1244_v25, %v1182_v50  ;;  %v1113_v28 = vadd.f32 %v1112_v10, %v1934_v3 }
 0x1d0   : > { %v1246_v32 = vadd.f32 %v1245_v21, %v1183_v29  ;;  %v1114_v58 = vadd.f32 %v1113_v28, %v1939_v12 }
 0x1d2   : > { %v1247_v34 = vadd.f32 %v1246_v32, %v1184_v43  ;;  %v1115_v0 = vadd.f32 %v1114_v58, %v1944_v26 }
 0x1d4   : > { %v1248_v53 = vadd.f32 %v1247_v34, %v1185_v33  ;;  %v1116_v37 = vadd.f32 %v1115_v0, %v1949_v38 }
 0x1d6   : > { %v1117_v3 = vrot.slane %v1116_v37, 4  ;;  %v1249_v8 = vadd.f32 %v1248_v53, %v1186_v39 }
 0x1d8   : > { %v1118_v41 = vadd.f32 %v1117_v3, %v1116_v37  ;;  %v1250_v42 = vrot.slane %v1249_v8, 4 }
 0x1da   : > { %v1119_v14 = vrot.slane %v1118_v41, 2  ;;  %v1251_v45 = vadd.f32 %v1250_v42, %v1249_v8 }
 0x1dc   : > { %v1120_v12 = vadd.f32 %v1119_v14, %v1118_v41  ;;  %v1252_v48 = vrot.slane %v1251_v45, 2 }
 0x1de   : > { %v1121_v24 = vrot.slane %v1120_v12, 1  ;;  %v1253_v49 = vadd.f32 %v1252_v48, %v1251_v45 }
 0x1e0   : > { %v1254_v26 = vrot.slane %v1253_v49, 1  ;;  %v1122_v38 = vadd.f32 %v1121_v24, %v1120_v12 }
 0x1e2   : > { %v1255_v51 = vadd.f32 %v1254_v26, %v1253_v49 }
 0x1e4   : > { %v1257_v31 = vsel %vm1256_vm0, %v1122_v38, %v1255_v51 }
 0x1e5   : > { %1258 = vst [vmem:[%s187_s5] sm:$0x3] %v1257_v31 }
 0x1e6 PF: > { %s14_s12 = sadd.s32 1, %s1599_s12  }
 0x1e7   : > { %p11_p5 = scmp.ge.s32.totalorder %s14_s12, 4  }
 0x1e9   :  { %13 = sbr.rel (!%p11_p5) target bundleno = 1 (0x1), region = 70 }

// kernel: qlearner_forward.9
= control target key start
LH: loop header
LB: loop body
LE: loop exit
PB: predicated region body
PF: predicated region fallthrough
CT: control target
= control target key end

     0   :  { %vm860_vm0 = vcmask 1040384   ;;  %s1515_s1 = inlined_call_operand.vmem [shape: bf16[512,128], index: 1, kind: input, shape index: {}]   ;;  %s1516_s0 = inlined_call_operand.vmem [shape: bf16[168,512], index: 0, kind: input, shape index: {}]   ;;  %s1517_s2 = inlined_call_operand.vmem [shape: f32[168,128], index: 2, kind: output, shape index: {0}]   ;;  %s1518_s3 = inlined_call_operand.vmem [shape: f32[1,2,128], index: 3, kind: output, shape index: {1}]  }
   0x1   :  { %v1111_v0 = vld [vmem:[%s1515_s1 + $0x40] sm:$0xff]   ;;  %v1115_v4 = vld [vmem:[%s1515_s1 + $0x48] sm:$0xff]   ;;  %v1119_v8 = vld [vmem:[%s1515_s1 + $0x50] sm:$0xff]  }
   0x2   :  { %v1112_v1 = vld [vmem:[%s1515_s1 + $0xc0] sm:$0xff]   ;;  %947 = vmatprep.subr.bf16.mxu0 %v1111_v0  ;;  %v1116_v5 = vld [vmem:[%s1515_s1 + $0xc8] sm:$0xff]   ;;  %v1120_v9 = vld [vmem:[%s1515_s1 + $0xd0] sm:$0xff]  }
   0x3   :  { %v1113_v2 = vld [vmem:[%s1515_s1] sm:$0xff]   ;;  %1029 = vmatprep.subr.bf16.mxu1 %v1112_v1  ;;  %v1117_v6 = vld [vmem:[%s1515_s1 + $0x8] sm:$0xff]   ;;  %v1121_v10 = vld [vmem:[%s1515_s1 + $0x10] sm:$0xff]  }
   0x4   :  { %v1114_v3 = vld [vmem:[%s1515_s1 + $0x80] sm:$0xff]   ;;  %948 = vmatpush3.bf16.msra.mxu0 %v1113_v2  ;;  %v1118_v7 = vld [vmem:[%s1515_s1 + $0x88] sm:$0xff]   ;;  %v1122_v11 = vld [vmem:[%s1515_s1 + $0x90] sm:$0xff]  }
   0x5   :  { %1030 = vmatpush3.bf16.msra.mxu1 %v1114_v3  ;;  %949 = vmatprep.subr.bf16.mxu0 %v1115_v4  ;;  %v1123_v12 = vld [vmem:[%s1515_s1 + $0x58] sm:$0xff]   ;;  %v1127_v16 = vld [vmem:[%s1515_s1 + $0x60] sm:$0xff]   ;;  %v1131_v20 = vld [vmem:[%s1515_s1 + $0x68] sm:$0xff]  }
   0x6   :  { %1031 = vmatprep.subr.bf16.mxu1 %v1116_v5  ;;  %v1124_v13 = vld [vmem:[%s1515_s1 + $0xd8] sm:$0xff]   ;;  %v1128_v17 = vld [vmem:[%s1515_s1 + $0xe0] sm:$0xff]   ;;  %v1132_v21 = vld [vmem:[%s1515_s1 + $0xe8] sm:$0xff]  }
   0x7   :  { %v1125_v14 = vld [vmem:[%s1515_s1 + $0x18] sm:$0xff]   ;;  %v1129_v18 = vld [vmem:[%s1515_s1 + $0x20] sm:$0xff]   ;;  %v1133_v22 = vld [vmem:[%s1515_s1 + $0x28] sm:$0xff]  }
   0x8   :  { %950 = vmatpush3.bf16.msra.mxu0 %v1117_v6  ;;  %v1126_v15 = vld [vmem:[%s1515_s1 + $0x98] sm:$0xff]   ;;  %v1130_v19 = vld [vmem:[%s1515_s1 + $0xa0] sm:$0xff]   ;;  %v1134_v23 = vld [vmem:[%s1515_s1 + $0xa8] sm:$0xff]  }
   0x9   :  { %1032 = vmatpush3.bf16.msra.mxu1 %v1118_v7  ;;  %951 = vmatprep.subr.bf16.mxu0 %v1119_v8  ;;  %v1135_v24 = vld [vmem:[%s1515_s1 + $0x70] sm:$0xff]   ;;  %v1139_v28 = vld [vmem:[%s1515_s1 + $0x78] sm:$0xff]   ;;  %v54_v6 = vld [vmem:[%s1516_s0 + $0x140] sm:$0xff] }
   0xa   :  { %1033 = vmatprep.subr.bf16.mxu1 %v1120_v9  ;;  %v1136_v25 = vld [vmem:[%s1515_s1 + $0xf0] sm:$0xff]   ;;  %v1140_v29 = vld [vmem:[%s1515_s1 + $0xf8] sm:$0xff]   ;;  %v55_v7 = vld [vmem:[%s1516_s0 + $0x148] sm:$0xff] }
   0xb   :  { %v1137_v26 = vld [vmem:[%s1515_s1 + $0x30] sm:$0xff]   ;;  %v1141_v30 = vld [vmem:[%s1515_s1 + $0x38] sm:$0xff]  }
   0xc   :  { %952 = vmatpush3.bf16.msra.mxu0 %v1121_v10  ;;  %v1138_v27 = vld [vmem:[%s1515_s1 + $0xb0] sm:$0xff]   ;;  %v1142_v31 = vld [vmem:[%s1515_s1 + $0xb8] sm:$0xff]   ;;  %v912_v10 = vcombine.high %v54_v6, %v54_v6 }
   0xd   :  { %1034 = vmatpush3.bf16.msra.mxu1 %v1122_v11  ;;  %953 = vmatprep.subr.bf16.mxu0 %v1123_v12  ;;  %v1143_v32 = vld [vmem:[%s1516_s0] ss:$16 sps:$4 sm:$0xff]   ;;  %v1145_v33 = vld [vmem:[%s1516_s0 + $0x4] ss:$16 sps:$4 sm:$0xff]   ;;  %v1146_v34 = vld [vmem:[%s1516_s0 + $0x8] ss:$16 sps:$4 sm:$0xff]   ;;  %v914_v11 = vcombine.high %v55_v7, %v55_v7  ;;  %v911_v12 = vcombine.low %v54_v6, %v54_v6 }
   0xe   :  { %1035 = vmatprep.subr.bf16.mxu1 %v1124_v13  ;;  %v1148_v35 = vld [vmem:[%s1516_s0 + $0xc] ss:$16 sps:$4 sm:$0xff]   ;;  %558 = vmatprep.mubr.bf16.mxu0 %v1145_v33  ;;  %v1149_v36 = vld [vmem:[%s1516_s0 + $0x24] ss:$16 sps:$4 sm:$0xff]   ;;  %v1153_v38 = vld [vmem:[%s1516_s0 + $0x20] ss:$16 sps:$4 sm:$0xff]   ;;  %v913_v13 = vcombine.low %v55_v7, %v55_v7 }
   0xf   :  { %678 = vmatprep.mubr.bf16.mxu1 %v1148_v35  ;;  %v1151_v37 = vld [vmem:[%s1516_s0 + $0x2c] ss:$16 sps:$4 sm:$0xff]   ;;  %v1154_v39 = vld [vmem:[%s1516_s0 + $0x28] ss:$16 sps:$4 sm:$0xff]   ;;  %v1155_v40 = vld [vmem:[%s1516_s0 + $0x44] ss:$16 sps:$4 sm:$0xff]  }
  0x10   :  { %954 = vmatpush3.bf16.msra.mxu0 %v1125_v14  ;;  %v1157_v41 = vld [vmem:[%s1516_s0 + $0x4c] ss:$16 sps:$4 sm:$0xff]   ;;  %v1159_v42 = vld [vmem:[%s1516_s0 + $0x40] ss:$16 sps:$4 sm:$0xff]   ;;  %v1160_v43 = vld [vmem:[%s1516_s0 + $0x48] ss:$16 sps:$4 sm:$0xff]  }
  0x11   :  { %1036 = vmatpush3.bf16.msra.mxu1 %v1126_v15  ;;  %955 = vmatprep.subr.bf16.mxu0 %v1127_v16  ;;  %v1161_v44 = vld [vmem:[%s1516_s0 + $0x64] ss:$16 sps:$4 sm:$0xff]   ;;  %v1163_v45 = vld [vmem:[%s1516_s0 + $0x6c] ss:$16 sps:$4 sm:$0xff]   ;;  %v1165_v46 = vld [vmem:[%s1516_s0 + $0x60] ss:$16 sps:$4 sm:$0xff]  }
  0x12   :  { %1037 = vmatprep.subr.bf16.mxu1 %v1128_v17  ;;  %v1166_v47 = vld [vmem:[%s1516_s0 + $0x68] ss:$16 sps:$4 sm:$0xff]   ;;  %v1167_v48 = vld [vmem:[%s1516_s0 + $0x84] ss:$16 sps:$4 sm:$0xff]   ;;  %v1169_v49 = vld [vmem:[%s1516_s0 + $0x8c] ss:$16 sps:$4 sm:$0xff]  }
  0x13   :  { %v1171_v50 = vld [vmem:[%s1516_s0 + $0x80] ss:$16 sps:$4 sm:$0xff]   ;;  %v1172_v51 = vld [vmem:[%s1516_s0 + $0x88] ss:$16 sps:$4 sm:$0xff]   ;;  %v1173_v52 = vld [vmem:[%s1516_s0 + $0xa4] ss:$16 sps:$4 sm:$0xff]  }
  0x14   :  { %956 = vmatpush3.bf16.msra.mxu0 %v1129_v18  ;;  %v1175_v53 = vld [vmem:[%s1516_s0 + $0xac] ss:$16 sps:$4 sm:$0xff]   ;;  %v1177_v54 = vld [vmem:[%s1516_s0 + $0xa0] ss:$16 sps:$4 sm:$0xff]   ;;  %v1178_v55 = vld [vmem:[%s1516_s0 + $0xa8] ss:$16 sps:$4 sm:$0xff]  }
  0x15   :  { %1038 = vmatpush3.bf16.msra.mxu1 %v1130_v19  ;;  %957 = vmatprep.subr.bf16.mxu0 %v1131_v20  ;;  %v1179_v56 = vld [vmem:[%s1516_s0 + $0xc4] ss:$16 sps:$4 sm:$0xff]   ;;  %v1181_v57 = vld [vmem:[%s1516_s0 + $0xcc] ss:$16 sps:$4 sm:$0xff]   ;;  %v1183_v58 = vld [vmem:[%s1516_s0 + $0xc0] ss:$16 sps:$4 sm:$0xff]  }
  0x16   :  { %1039 = vmatprep.subr.bf16.mxu1 %v1132_v21  ;;  %v1184_v59 = vld [vmem:[%s1516_s0 + $0xc8] ss:$16 sps:$4 sm:$0xff]   ;;  %v1185_v60 = vld [vmem:[%s1516_s0 + $0xe4] ss:$16 sps:$4 sm:$0xff]   ;;  %v1187_v61 = vld [vmem:[%s1516_s0 + $0xec] ss:$16 sps:$4 sm:$0xff]  }
  0x17   :  { %v1189_v62 = vld [vmem:[%s1516_s0 + $0xe0] ss:$16 sps:$4 sm:$0xff]   ;;  %v1190_v63 = vld [vmem:[%s1516_s0 + $0xe8] ss:$16 sps:$4 sm:$0xff]   ;;  %v1191_v0 = vld [vmem:[%s1516_s0 + $0x104] ss:$16 sps:$4 sm:$0xff]  }
  0x18   :  { %958 = vmatpush3.bf16.msra.mxu0 %v1133_v22  ;;  %v1193_v1 = vld [vmem:[%s1516_s0 + $0x10c] ss:$16 sps:$4 sm:$0xff]   ;;  %v1195_v2 = vld [vmem:[%s1516_s0 + $0x100] ss:$16 sps:$4 sm:$0xff]   ;;  %v1196_v3 = vld [vmem:[%s1516_s0 + $0x108] ss:$16 sps:$4 sm:$0xff]  }
  0x19   :  { %1040 = vmatpush3.bf16.msra.mxu1 %v1134_v23  ;;  %959 = vmatprep.subr.bf16.mxu0 %v1135_v24  ;;  %v1197_v4 = vld [vmem:[%s1516_s0 + $0x124] ss:$16 sps:$4 sm:$0xff]   ;;  %v1199_v5 = vld [vmem:[%s1516_s0 + $0x12c] ss:$16 sps:$4 sm:$0xff]   ;;  %v1201_v8 = vld [vmem:[%s1516_s0 + $0x120] ss:$16 sps:$4 sm:$0xff]  }
  0x1a   :  { %1041 = vmatprep.subr.bf16.mxu1 %v1136_v25  ;;  %v1202_v9 = vld [vmem:[%s1516_s0 + $0x128] ss:$16 sps:$4 sm:$0xff]  }
  0x1c   :  { %960 = vmatpush3.bf16.msra.mxu0 %v1137_v26 }
  0x1d   :  { %1042 = vmatpush3.bf16.msra.mxu1 %v1138_v27  ;;  %961 = vmatprep.subr.bf16.mxu0 %v1139_v28 }
  0x1e   :  { %1043 = vmatprep.subr.bf16.mxu1 %v1140_v29 }
  0x20   :  { %962 = vmatpush3.bf16.msra.mxu0 %v1141_v30 }
  0x21   :  { %1044 = vmatpush3.bf16.msra.mxu1 %v1142_v31 }
  0x23   :  { %559 = vmatmul.mubr.bf16.vlgmr.msra.gmra.mrb[0].mxu0 %v1143_v32 }
  0x24   :  { %679 = vmatmul.mubr.bf16.vlgmr.msra.gmra.mrb[0].mxu1 %v1146_v34  ;;  %566 = vmatprep.mubr.bf16.mxu0 %v1149_v36 }
  0x25   :  { %686 = vmatprep.mubr.bf16.mxu1 %v1151_v37 }
  0x2b   :  { %567 = vmatmul.mubr.bf16.gmra.mrb[4].mxu0 %v1153_v38 }
  0x2c   :  { %687 = vmatmul.mubr.bf16.gmra.mrb[4].mxu1 %v1154_v39  ;;  %574 = vmatprep.mubr.bf16.mxu0 %v1155_v40 }
  0x2d   :  { %694 = vmatprep.mubr.bf16.mxu1 %v1157_v41 }
  0x33   :  { %575 = vmatmul.mubr.bf16.gmra.mrb[8].mxu0 %v1159_v42 }
  0x34   :  { %695 = vmatmul.mubr.bf16.gmra.mrb[8].mxu1 %v1160_v43  ;;  %582 = vmatprep.mubr.bf16.mxu0 %v1161_v44 }
  0x35   :  { %702 = vmatprep.mubr.bf16.mxu1 %v1163_v45 }
  0x3b   :  { %583 = vmatmul.mubr.bf16.gmra.mrb[12].mxu0 %v1165_v46 }
  0x3c   :  { %703 = vmatmul.mubr.bf16.gmra.mrb[12].mxu1 %v1166_v47  ;;  %590 = vmatprep.mubr.bf16.mxu0 %v1167_v48 }
  0x3d   :  { %710 = vmatprep.mubr.bf16.mxu1 %v1169_v49 }
  0x43   :  { %591 = vmatmul.mubr.bf16.gmra.mrb[16].mxu0 %v1171_v50 }
  0x44   :  { %711 = vmatmul.mubr.bf16.gmra.mrb[16].mxu1 %v1172_v51  ;;  %598 = vmatprep.mubr.bf16.mxu0 %v1173_v52 }
  0x45   :  { %718 = vmatprep.mubr.bf16.mxu1 %v1175_v53 }
  0x4b   :  { %599 = vmatmul.mubr.bf16.gmra.mrb[20].mxu0 %v1177_v54 }
  0x4c   :  { %719 = vmatmul.mubr.bf16.gmra.mrb[20].mxu1 %v1178_v55  ;;  %606 = vmatprep.mubr.bf16.mxu0 %v1179_v56 }
  0x4d   :  { %726 = vmatprep.mubr.bf16.mxu1 %v1181_v57 }
  0x53   :  { %607 = vmatmul.mubr.bf16.gmra.mrb[24].mxu0 %v1183_v58 }
  0x54   :  { %727 = vmatmul.mubr.bf16.gmra.mrb[24].mxu1 %v1184_v59  ;;  %614 = vmatprep.mubr.bf16.mxu0 %v1185_v60 }
  0x55   :  { %734 = vmatprep.mubr.bf16.mxu1 %v1187_v61 }
  0x5b   :  { %615 = vmatmul.mubr.bf16.gmra.mrb[28].mxu0 %v1189_v62 }
  0x5c   :  { %735 = vmatmul.mubr.bf16.gmra.mrb[28].mxu1 %v1190_v63  ;;  %622 = vmatprep.mubr.bf16.mxu0 %v1191_v0 }
  0x5d   :  { %742 = vmatprep.mubr.bf16.mxu1 %v1193_v1 }
  0x63   :  { %623 = vmatmul.mubr.bf16.gmra.mrb[32].mxu0 %v1195_v2 }
  0x64   :  { %743 = vmatmul.mubr.bf16.gmra.mrb[32].mxu1 %v1196_v3  ;;  %630 = vmatprep.mubr.bf16.mxu0 %v1197_v4 }
  0x65   :  { %750 = vmatprep.mubr.bf16.mxu1 %v1199_v5 }
  0x6b   :  { %631 = vmatmul.mubr.bf16.gmra.mrb[36].mxu0 %v1201_v8 }
  0x6c   :  { %751 = vmatmul.mubr.bf16.gmra.mrb[36].mxu1 %v1202_v9  ;;  %638 = vmatprep.mubr.bf16.mxu0 %v912_v10 }
  0x6d   :  { %758 = vmatprep.mubr.bf16.mxu1 %v914_v11 }
  0x73   :  { %639 = vmatmul.mubr.bf16.gmra.mrb[40].mxu0 %v911_v12 }
  0x74   :  { %759 = vmatmul.mubr.bf16.gmra.mrb[40].mxu1 %v913_v13 }
  0xf6   :  { %v963_v14 = vpop.f32.mrb[0].mxu0 }
  0xf7   :  { %v1045_v15 = vpop.f32.mrb[0].mxu1  ;;  %v964_v16 = vpop.f32.mrb[1].mxu0 }
  0xf8   :  { %v965_v17 = vadd.f32 %v964_v16, %v963_v14  ;;  %v1046_v18 = vpop.f32.mrb[1].mxu1  ;;  %v966_v19 = vpop.f32.mrb[2].mxu0 }
  0xf9   :  { %v1047_v20 = vadd.f32 %v1046_v18, %v1045_v15  ;;  %v1048_v21 = vpop.f32.mrb[2].mxu1  ;;  %v967_v22 = vpop.f32.mrb[3].mxu0 }
  0xfa   :  { %v968_v23 = vadd.f32 %v967_v22, %v966_v19  ;;  %v1049_v24 = vpop.f32.mrb[3].mxu1 }
  0xfb   :  { %v681_v25 = vadd.f32 %v1047_v20, %v965_v17  ;;  %v1050_v26 = vadd.f32 %v1049_v24, %v1048_v21 }
  0xfd   :  { %766 = vst [vmem:[%s1517_s2] sm:$0xff] %v681_v25  ;;  %v684_v27 = vadd.f32 %v1050_v26, %v968_v23  ;;  %v813_v29 = vmul.f32 %v681_v25, %v681_v25 }
  0xfe   :  { %v969_v28 = vpop.f32.mrb[4].mxu0 }
  0xff   :  { %767 = vst [vmem:[%s1517_s2 + $0x8] sm:$0xff] %v684_v27  ;;  %v787_v30 = vadd.f32 %v684_v27, %v681_v25  ;;  %v814_v31 = vmul.f32 %v684_v27, %v684_v27  ;;  %v1051_v32 = vpop.f32.mrb[4].mxu1  ;;  %v970_v33 = vpop.f32.mrb[5].mxu0 }
 0x100   :  { %v971_v34 = vadd.f32 %v970_v33, %v969_v28  ;;  %v1052_v35 = vpop.f32.mrb[5].mxu1  ;;  %v972_v36 = vpop.f32.mrb[6].mxu0 }
 0x101   :  { %v834_v37 = vadd.f32 %v814_v31, %v813_v29  ;;  %v1053_v38 = vadd.f32 %v1052_v35, %v1051_v32  ;;  %v1054_v39 = vpop.f32.mrb[6].mxu1  ;;  %v973_v40 = vpop.f32.mrb[7].mxu0 }
 0x102   :  { %v974_v41 = vadd.f32 %v973_v40, %v972_v36  ;;  %v1055_v42 = vpop.f32.mrb[7].mxu1 }
 0x103   :  { %v689_v43 = vadd.f32 %v1053_v38, %v971_v34  ;;  %v1056_v44 = vadd.f32 %v1055_v42, %v1054_v39 }
 0x105   :  { %768 = vst [vmem:[%s1517_s2 + $0x10] sm:$0xff] %v689_v43  ;;  %v788_v45 = vadd.f32 %v787_v30, %v689_v43  ;;  %v815_v46 = vmul.f32 %v689_v43, %v689_v43  ;;  %v692_v47 = vadd.f32 %v1056_v44, %v974_v41 }
 0x106   :  { %v975_v48 = vpop.f32.mrb[8].mxu0 }
 0x107   :  { %v835_v49 = vadd.f32 %v834_v37, %v815_v46  ;;  %769 = vst [vmem:[%s1517_s2 + $0x18] sm:$0xff] %v692_v47  ;;  %v789_v50 = vadd.f32 %v788_v45, %v692_v47  ;;  %v816_v51 = vmul.f32 %v692_v47, %v692_v47  ;;  %v1057_v52 = vpop.f32.mrb[8].mxu1  ;;  %v976_v53 = vpop.f32.mrb[9].mxu0 }
 0x108   :  { %v977_v54 = vadd.f32 %v976_v53, %v975_v48  ;;  %v1058_v55 = vpop.f32.mrb[9].mxu1  ;;  %v978_v56 = vpop.f32.mrb[10].mxu0 }
 0x109   :  { %v836_v57 = vadd.f32 %v835_v49, %v816_v51  ;;  %v1059_v58 = vadd.f32 %v1058_v55, %v1057_v52  ;;  %v1060_v59 = vpop.f32.mrb[10].mxu1  ;;  %v979_v60 = vpop.f32.mrb[11].mxu0 }
 0x10a   :  { %v980_v61 = vadd.f32 %v979_v60, %v978_v56  ;;  %v1061_v62 = vpop.f32.mrb[11].mxu1 }
 0x10b   :  { %v697_v63 = vadd.f32 %v1059_v58, %v977_v54  ;;  %v1062_v0 = vadd.f32 %v1061_v62, %v1060_v59 }
 0x10d   :  { %770 = vst [vmem:[%s1517_s2 + $0x20] sm:$0xff] %v697_v63  ;;  %v790_v1 = vadd.f32 %v789_v50, %v697_v63  ;;  %v817_v2 = vmul.f32 %v697_v63, %v697_v63  ;;  %v700_v3 = vadd.f32 %v1062_v0, %v980_v61 }
 0x10e   :  { %v981_v4 = vpop.f32.mrb[12].mxu0 }
 0x10f   :  { %v837_v5 = vadd.f32 %v836_v57, %v817_v2  ;;  %771 = vst [vmem:[%s1517_s2 + $0x28] sm:$0xff] %v700_v3  ;;  %v791_v6 = vadd.f32 %v790_v1, %v700_v3  ;;  %v818_v7 = vmul.f32 %v700_v3, %v700_v3  ;;  %v1063_v8 = vpop.f32.mrb[12].mxu1  ;;  %v982_v9 = vpop.f32.mrb[13].mxu0 }
 0x110   :  { %v983_v10 = vadd.f32 %v982_v9, %v981_v4  ;;  %v1064_v11 = vpop.f32.mrb[13].mxu1  ;;  %v984_v12 = vpop.f32.mrb[14].mxu0 }
 0x111   :  { %v838_v13 = vadd.f32 %v837_v5, %v818_v7  ;;  %v1065_v14 = vadd.f32 %v1064_v11, %v1063_v8  ;;  %v1066_v15 = vpop.f32.mrb[14].mxu1  ;;  %v985_v16 = vpop.f32.mrb[15].mxu0 }
 0x112   :  { %v986_v17 = vadd.f32 %v985_v16, %v984_v12  ;;  %v1067_v18 = vpop.f32.mrb[15].mxu1 }
 0x113   :  { %v705_v19 = vadd.f32 %v1065_v14, %v983_v10  ;;  %v1068_v20 = vadd.f32 %v1067_v18, %v1066_v15 }
 0x115   :  { %772 = vst [vmem:[%s1517_s2 + $0x30] sm:$0xff] %v705_v19  ;;  %v792_v21 = vadd.f32 %v791_v6, %v705_v19  ;;  %v819_v22 = vmul.f32 %v705_v19, %v705_v19  ;;  %v708_v23 = vadd.f32 %v1068_v20, %v986_v17 }
 0x116   :  { %v987_v24 = vpop.f32.mrb[16].mxu0 }
 0x117   :  { %v839_v25 = vadd.f32 %v838_v13, %v819_v22  ;;  %773 = vst [vmem:[%s1517_s2 + $0x38] sm:$0xff] %v708_v23  ;;  %v793_v26 = vadd.f32 %v792_v21, %v708_v23  ;;  %v820_v27 = vmul.f32 %v708_v23, %v708_v23  ;;  %v1069_v28 = vpop.f32.mrb[16].mxu1  ;;  %v988_v29 = vpop.f32.mrb[17].mxu0 }
 0x118   :  { %v989_v30 = vadd.f32 %v988_v29, %v987_v24  ;;  %v1070_v31 = vpop.f32.mrb[17].mxu1  ;;  %v990_v32 = vpop.f32.mrb[18].mxu0 }
 0x119   :  { %v840_v33 = vadd.f32 %v839_v25, %v820_v27  ;;  %v1071_v34 = vadd.f32 %v1070_v31, %v1069_v28  ;;  %v1072_v35 = vpop.f32.mrb[18].mxu1  ;;  %v991_v36 = vpop.f32.mrb[19].mxu0 }
 0x11a   :  { %v992_v37 = vadd.f32 %v991_v36, %v990_v32  ;;  %v1073_v38 = vpop.f32.mrb[19].mxu1 }
 0x11b   :  { %v713_v39 = vadd.f32 %v1071_v34, %v989_v30  ;;  %v1074_v40 = vadd.f32 %v1073_v38, %v1072_v35 }
 0x11d   :  { %774 = vst [vmem:[%s1517_s2 + $0x40] sm:$0xff] %v713_v39  ;;  %v794_v41 = vadd.f32 %v793_v26, %v713_v39  ;;  %v821_v42 = vmul.f32 %v713_v39, %v713_v39  ;;  %v716_v43 = vadd.f32 %v1074_v40, %v992_v37 }
 0x11e   :  { %v993_v44 = vpop.f32.mrb[20].mxu0 }
 0x11f   :  { %v841_v45 = vadd.f32 %v840_v33, %v821_v42  ;;  %775 = vst [vmem:[%s1517_s2 + $0x48] sm:$0xff] %v716_v43  ;;  %v795_v46 = vadd.f32 %v794_v41, %v716_v43  ;;  %v822_v47 = vmul.f32 %v716_v43, %v716_v43  ;;  %v1075_v48 = vpop.f32.mrb[20].mxu1  ;;  %v994_v49 = vpop.f32.mrb[21].mxu0 }
 0x120   :  { %v995_v50 = vadd.f32 %v994_v49, %v993_v44  ;;  %v1076_v51 = vpop.f32.mrb[21].mxu1  ;;  %v996_v52 = vpop.f32.mrb[22].mxu0 }
 0x121   :  { %v842_v53 = vadd.f32 %v841_v45, %v822_v47  ;;  %v1077_v54 = vadd.f32 %v1076_v51, %v1075_v48  ;;  %v1078_v55 = vpop.f32.mrb[22].mxu1  ;;  %v997_v56 = vpop.f32.mrb[23].mxu0 }
 0x122   :  { %v998_v57 = vadd.f32 %v997_v56, %v996_v52  ;;  %v1079_v58 = vpop.f32.mrb[23].mxu1 }
 0x123   :  { %v721_v59 = vadd.f32 %v1077_v54, %v995_v50  ;;  %v1080_v60 = vadd.f32 %v1079_v58, %v1078_v55 }
 0x125   :  { %776 = vst [vmem:[%s1517_s2 + $0x50] sm:$0xff] %v721_v59  ;;  %v796_v61 = vadd.f32 %v795_v46, %v721_v59  ;;  %v823_v62 = vmul.f32 %v721_v59, %v721_v59  ;;  %v724_v63 = vadd.f32 %v1080_v60, %v998_v57 }
 0x126   :  { %v999_v0 = vpop.f32.mrb[24].mxu0 }
 0x127   :  { %v843_v1 = vadd.f32 %v842_v53, %v823_v62  ;;  %777 = vst [vmem:[%s1517_s2 + $0x58] sm:$0xff] %v724_v63  ;;  %v797_v2 = vadd.f32 %v796_v61, %v724_v63  ;;  %v824_v3 = vmul.f32 %v724_v63, %v724_v63  ;;  %v1081_v4 = vpop.f32.mrb[24].mxu1  ;;  %v1000_v5 = vpop.f32.mrb[25].mxu0 }
 0x128   :  { %v1001_v6 = vadd.f32 %v1000_v5, %v999_v0  ;;  %v1082_v7 = vpop.f32.mrb[25].mxu1  ;;  %v1002_v8 = vpop.f32.mrb[26].mxu0 }
 0x129   :  { %v844_v9 = vadd.f32 %v843_v1, %v824_v3  ;;  %v1083_v10 = vadd.f32 %v1082_v7, %v1081_v4  ;;  %v1084_v11 = vpop.f32.mrb[26].mxu1  ;;  %v1003_v12 = vpop.f32.mrb[27].mxu0 }
 0x12a   :  { %v1004_v13 = vadd.f32 %v1003_v12, %v1002_v8  ;;  %v1085_v14 = vpop.f32.mrb[27].mxu1 }
 0x12b   :  { %v729_v15 = vadd.f32 %v1083_v10, %v1001_v6  ;;  %v1086_v16 = vadd.f32 %v1085_v14, %v1084_v11 }
 0x12d   :  { %778 = vst [vmem:[%s1517_s2 + $0x60] sm:$0xff] %v729_v15  ;;  %v798_v17 = vadd.f32 %v797_v2, %v729_v15  ;;  %v825_v18 = vmul.f32 %v729_v15, %v729_v15  ;;  %v732_v19 = vadd.f32 %v1086_v16, %v1004_v13 }
 0x12e   :  { %v1005_v20 = vpop.f32.mrb[28].mxu0 }
 0x12f   :  { %v845_v21 = vadd.f32 %v844_v9, %v825_v18  ;;  %779 = vst [vmem:[%s1517_s2 + $0x68] sm:$0xff] %v732_v19  ;;  %v799_v22 = vadd.f32 %v798_v17, %v732_v19  ;;  %v826_v23 = vmul.f32 %v732_v19, %v732_v19  ;;  %v1087_v24 = vpop.f32.mrb[28].mxu1  ;;  %v1006_v25 = vpop.f32.mrb[29].mxu0 }
 0x130   :  { %v1007_v26 = vadd.f32 %v1006_v25, %v1005_v20  ;;  %v1088_v27 = vpop.f32.mrb[29].mxu1  ;;  %v1008_v28 = vpop.f32.mrb[30].mxu0 }
 0x131   :  { %v846_v29 = vadd.f32 %v845_v21, %v826_v23  ;;  %v1089_v30 = vadd.f32 %v1088_v27, %v1087_v24  ;;  %v1090_v31 = vpop.f32.mrb[30].mxu1  ;;  %v1009_v32 = vpop.f32.mrb[31].mxu0 }
 0x132   :  { %v1010_v33 = vadd.f32 %v1009_v32, %v1008_v28  ;;  %v1091_v34 = vpop.f32.mrb[31].mxu1 }
 0x133   :  { %v737_v35 = vadd.f32 %v1089_v30, %v1007_v26  ;;  %v1092_v36 = vadd.f32 %v1091_v34, %v1090_v31 }
 0x135   :  { %780 = vst [vmem:[%s1517_s2 + $0x70] sm:$0xff] %v737_v35  ;;  %v800_v37 = vadd.f32 %v799_v22, %v737_v35  ;;  %v827_v38 = vmul.f32 %v737_v35, %v737_v35  ;;  %v740_v39 = vadd.f32 %v1092_v36, %v1010_v33 }
 0x136   :  { %v1011_v40 = vpop.f32.mrb[32].mxu0 }
 0x137   :  { %v847_v41 = vadd.f32 %v846_v29, %v827_v38  ;;  %781 = vst [vmem:[%s1517_s2 + $0x78] sm:$0xff] %v740_v39  ;;  %v801_v42 = vadd.f32 %v800_v37, %v740_v39  ;;  %v828_v43 = vmul.f32 %v740_v39, %v740_v39  ;;  %v1093_v44 = vpop.f32.mrb[32].mxu1  ;;  %v1012_v45 = vpop.f32.mrb[33].mxu0 }
 0x138   :  { %v1013_v46 = vadd.f32 %v1012_v45, %v1011_v40  ;;  %v1094_v47 = vpop.f32.mrb[33].mxu1  ;;  %v1014_v48 = vpop.f32.mrb[34].mxu0 }
 0x139   :  { %v848_v49 = vadd.f32 %v847_v41, %v828_v43  ;;  %v1095_v50 = vadd.f32 %v1094_v47, %v1093_v44  ;;  %v1096_v51 = vpop.f32.mrb[34].mxu1  ;;  %v1015_v52 = vpop.f32.mrb[35].mxu0 }
 0x13a   :  { %v1016_v53 = vadd.f32 %v1015_v52, %v1014_v48  ;;  %v1097_v54 = vpop.f32.mrb[35].mxu1 }
 0x13b   :  { %v745_v55 = vadd.f32 %v1095_v50, %v1013_v46  ;;  %v1098_v56 = vadd.f32 %v1097_v54, %v1096_v51 }
 0x13d   :  { %782 = vst [vmem:[%s1517_s2 + $0x80] sm:$0xff] %v745_v55  ;;  %v802_v57 = vadd.f32 %v801_v42, %v745_v55  ;;  %v829_v58 = vmul.f32 %v745_v55, %v745_v55  ;;  %v748_v59 = vadd.f32 %v1098_v56, %v1016_v53 }
 0x13e   :  { %v1017_v60 = vpop.f32.mrb[36].mxu0 }
 0x13f   :  { %v849_v61 = vadd.f32 %v848_v49, %v829_v58  ;;  %783 = vst [vmem:[%s1517_s2 + $0x88] sm:$0xff] %v748_v59  ;;  %v803_v62 = vadd.f32 %v802_v57, %v748_v59  ;;  %v830_v63 = vmul.f32 %v748_v59, %v748_v59  ;;  %v1099_v0 = vpop.f32.mrb[36].mxu1  ;;  %v1018_v1 = vpop.f32.mrb[37].mxu0 }
 0x140   :  { %v1019_v2 = vadd.f32 %v1018_v1, %v1017_v60  ;;  %v1100_v3 = vpop.f32.mrb[37].mxu1  ;;  %v1020_v4 = vpop.f32.mrb[38].mxu0 }
 0x141   :  { %v850_v5 = vadd.f32 %v849_v61, %v830_v63  ;;  %v1101_v6 = vadd.f32 %v1100_v3, %v1099_v0  ;;  %v1102_v7 = vpop.f32.mrb[38].mxu1  ;;  %v1021_v8 = vpop.f32.mrb[39].mxu0 }
 0x142   :  { %v1022_v9 = vadd.f32 %v1021_v8, %v1020_v4  ;;  %v1103_v10 = vpop.f32.mrb[39].mxu1 }
 0x143   :  { %v753_v11 = vadd.f32 %v1101_v6, %v1019_v2  ;;  %v1104_v12 = vadd.f32 %v1103_v10, %v1102_v7 }
 0x145   :  { %784 = vst [vmem:[%s1517_s2 + $0x90] sm:$0xff] %v753_v11  ;;  %v804_v13 = vadd.f32 %v803_v62, %v753_v11  ;;  %v831_v14 = vmul.f32 %v753_v11, %v753_v11  ;;  %v756_v15 = vadd.f32 %v1104_v12, %v1022_v9 }
 0x146   :  { %v1023_v16 = vpop.f32.mrb[40].mxu0 }
 0x147   :  { %v851_v17 = vadd.f32 %v850_v5, %v831_v14  ;;  %785 = vst [vmem:[%s1517_s2 + $0x98] sm:$0xff] %v756_v15  ;;  %v805_v18 = vadd.f32 %v804_v13, %v756_v15  ;;  %v832_v19 = vmul.f32 %v756_v15, %v756_v15  ;;  %v1105_v20 = vpop.f32.mrb[40].mxu1  ;;  %v1024_v21 = vpop.f32.mrb[41].mxu0 }
 0x148   :  { %v1025_v22 = vadd.f32 %v1024_v21, %v1023_v16  ;;  %v1106_v23 = vpop.f32.mrb[41].mxu1  ;;  %v1026_v24 = vpop.f32.mrb[42].mxu0 }
 0x149   :  { %v852_v25 = vadd.f32 %v851_v17, %v832_v19  ;;  %v1107_v26 = vadd.f32 %v1106_v23, %v1105_v20  ;;  %v1108_v27 = vpop.f32.mrb[42].mxu1  ;;  %v1027_v28 = vpop.f32.mrb[43].mxu0 }
 0x14a   :  { %v1109_v29 = vpop.f32.mrb[43].mxu1 }
 0x14b   :  { %v761_v30 = vadd.f32 %v1107_v26, %v1025_v22 }
 0x14d   :  { %786 = vst [vmem:[%s1517_s2 + $0xa0] sm:$0xff] %v761_v30  ;;  %v806_v31 = vadd.f32 %v805_v18, %v761_v30  ;;  %v833_v32 = vmul.f32 %v761_v30, %v761_v30 }
 0x14f   :  { %v807_v33 = vrot.slane %v806_v31, 4  ;;  %v853_v34 = vadd.f32 %v852_v25, %v833_v32 }
 0x151   :  { %v808_v35 = vadd.f32 %v807_v33, %v806_v31  ;;  %v854_v36 = vrot.slane %v853_v34, 4 }
 0x153   :  { %v809_v37 = vrot.slane %v808_v35, 2  ;;  %v855_v38 = vadd.f32 %v854_v36, %v853_v34 }
 0x155   :  { %v810_v39 = vadd.f32 %v809_v37, %v808_v35  ;;  %v856_v40 = vrot.slane %v855_v38, 2 }
 0x157   :  { %v811_v41 = vrot.slane %v810_v39, 1  ;;  %v857_v42 = vadd.f32 %v856_v40, %v855_v38 }
 0x159   :  { %v858_v43 = vrot.slane %v857_v42, 1  ;;  %v812_v44 = vadd.f32 %v811_v41, %v810_v39 }
 0x15b   :  { %v859_v45 = vadd.f32 %v858_v43, %v857_v42 }
 0x15d   :  { %v861_v46 = vsel %vm860_vm0, %v812_v44, %v859_v45 }
 0x15e   :  { %862 = vst [vmem:[%s1518_s3] sm:$0x3] %v861_v46 }

// kernel: qlearner_forward.10
= control target key start
LH: loop header
LB: loop body
LE: loop exit
PB: predicated region body
PF: predicated region fallthrough
CT: control target
= control target key end

     0   :  { %v359_v7 = vmov 1966171168   ;;  %v32_v9 = vlaneseq  ;;  %s536_s1 = inlined_call_operand.vmem [shape: f32[1,2,128], index: 1, kind: input, shape index: {}]   ;;  %s537_s2 = inlined_call_operand.vmem [shape: f32[1,128], index: 2, kind: input, shape index: {}]   ;;  %s538_s0 = inlined_call_operand.vmem [shape: f32[168,128], index: 0, kind: input, shape index: {}]   ;;  %s539_s3 = inlined_call_operand.vmem [shape: f32[1,128], index: 3, kind: input, shape index: {}]   ;;  %s540_s4 = inlined_call_operand.vmem [shape: bf16[168,128], index: 4, kind: output, shape index: {}]  }
   0x1   :  { %v17_v0 = vld [vmem:[%s536_s1] sm:$0x3]  ;;  %v30_v8 = vunpack.c.l.s4 %v359_v7  ;;  %v50_v22 = vld [vmem:[%s538_s0 + $0x8] sm:$0xff]  ;;  %v51_v23 = vld [vmem:[%s538_s0 + $0x10] sm:$0xff] }
   0x2   :  { %v18_v1 = vmul.f32 0.0061728396, %v17_v0  ;;  %v33_v11 = vshrl.u32 %v32_v9, 7  ;;  %v25_v16 = vld [vmem:[%s537_s2] sm:$0x1]  ;;  %v52_v24 = vld [vmem:[%s538_s0 + $0x18] sm:$0xff] }
   0x3   :  { %v31_v10 = vunpack.c.0.s8 %v30_v8  ;;  %v46_v20 = vld [vmem:[%s539_s3] sm:$0x1]  ;;  %v54_v28 = vld [vmem:[%s538_s0 + $0x28] sm:$0xff]  ;;  %v55_v29 = vld [vmem:[%s538_s0 + $0x30] sm:$0xff] }
   0x4   :  { %v19_v2 = vmul.f32 %v18_v1, %v18_v1  ;;  %v73_v18 = vsub.s32 0, %v33_v11  ;;  %v49_v21 = vld [vmem:[%s538_s0] sm:$0xff]  ;;  %v56_v30 = vld [vmem:[%s538_s0 + $0x38] sm:$0xff]  ;;  %v58_v32 = vld [vmem:[%s538_s0 + $0x48] sm:$0xff] }
   0x5   :  { %v34_v12 = vsub.s32 %v31_v10, %v33_v11  ;;  %v53_v25 = vld [vmem:[%s538_s0 + $0x20] sm:$0xff]  ;;  %v59_v33 = vld [vmem:[%s538_s0 + $0x50] sm:$0xff]  ;;  %v60_v38 = vld [vmem:[%s538_s0 + $0x58] sm:$0xff] }
   0x6   :  { %v21_v3 = vrot.slane %v19_v2, 7  ;;  %v57_v31 = vld [vmem:[%s538_s0 + $0x40] sm:$0xff]  ;;  %v62_v40 = vld [vmem:[%s538_s0 + $0x68] sm:$0xff]  ;;  %v63_v9 = vld [vmem:[%s538_s0 + $0x70] sm:$0xff] }
   0x7   :  { %v61_v39 = vld [vmem:[%s538_s0 + $0x60] sm:$0xff]  ;;  %v64_v10 = vld [vmem:[%s538_s0 + $0x78] sm:$0xff] }
   0x8   :  { %v23_v4 = vsub.f32 %v18_v1, %v21_v3 }
   0xa   :  { %v24_v5 = vmax.f32 %v23_v4, 0.0 }
   0xc   :  { %v26_v6 = vadd.f32 1e-05, %v24_v5 }
   0xe   :  { %357 = vrsqrt.f32 %v26_v6 }
  0x18   :  { %v358_v13 = vpop.eup %357 }
  0x19   :  { %v35_v14 = vrot.slane %v358_v13, %v34_v12 }
  0x1b   :  { %v36_v15 = vcombine.high %v35_v14, %v35_v14 }
  0x1d   :  { %v43_v17 = vrot.slane %v36_v15, %v34_v12  ;;  %v65_v15 = vld [vmem:[%s538_s0 + $0x80] sm:$0xff] }
  0x1f   :  { %v45_v19 = vmul.f32 %v43_v17, %v25_v16 }
  0x21   :  { %v47_v26 = vmul.f32 %v45_v19, %v18_v1  ;;  %v409_v27 = vrot.slane %v45_v19, %v73_v18 }
  0x23   :  { %v48_v34 = vsub.f32 %v46_v20, %v47_v26  ;;  %v76_v35 = vmul.f32 %v409_v27, %v49_v21  ;;  %v77_v36 = vmul.f32 %v409_v27, %v50_v22  ;;  %v78_v37 = vmul.f32 %v409_v27, %v51_v23  ;;  %v66_v20 = vld [vmem:[%s538_s0 + $0x88] sm:$0xff]  ;;  %v68_v26 = vld [vmem:[%s538_s0 + $0x98] sm:$0xff] }
  0x24   :  { %v79_v41 = vmul.f32 %v409_v27, %v52_v24  ;;  %v80_v42 = vmul.f32 %v409_v27, %v53_v25  ;;  %v81_v43 = vmul.f32 %v409_v27, %v54_v28  ;;  %v82_v44 = vmul.f32 %v409_v27, %v55_v29  ;;  %v67_v25 = vld [vmem:[%s538_s0 + $0x90] sm:$0xff] }
  0x25   :  { %v445_v45 = vrot.slane %v48_v34, %v73_v18  ;;  %v83_v46 = vmul.f32 %v409_v27, %v56_v30  ;;  %v84_v47 = vmul.f32 %v409_v27, %v57_v31  ;;  %v85_v48 = vmul.f32 %v409_v27, %v58_v32  ;;  %v69_v32 = vld [vmem:[%s538_s0 + $0xa0] sm:$0xff] }
  0x26   :  { %v86_v49 = vmul.f32 %v409_v27, %v59_v33  ;;  %v87_v50 = vmul.f32 %v409_v27, %v60_v38  ;;  %v88_v51 = vmul.f32 %v409_v27, %v61_v39  ;;  %v89_v52 = vmul.f32 %v409_v27, %v62_v40 }
  0x27   :  { %v103_v53 = vadd.f32 %v445_v45, %v76_v35  ;;  %v104_v54 = vadd.f32 %v445_v45, %v77_v36  ;;  %v105_v55 = vadd.f32 %v445_v45, %v78_v37  ;;  %v106_v56 = vadd.f32 %v445_v45, %v79_v41 }
  0x28   :  { %v107_v57 = vadd.f32 %v445_v45, %v80_v42  ;;  %v108_v58 = vadd.f32 %v445_v45, %v81_v43  ;;  %v109_v59 = vadd.f32 %v445_v45, %v82_v44  ;;  %v110_v60 = vadd.f32 %v445_v45, %v83_v46 }
  0x29   :  { %v124_v61 = vmax.f32 %v103_v53, 0.0  ;;  %v125_v62 = vmax.f32 %v104_v54, 0.0  ;;  %v126_v63 = vmax.f32 %v105_v55, 0.0  ;;  %v127_v0 = vmax.f32 %v106_v56, 0.0 }
  0x2a   :  { %v128_v1 = vmax.f32 %v107_v57, 0.0  ;;  %v129_v2 = vmax.f32 %v108_v58, 0.0  ;;  %v130_v3 = vmax.f32 %v109_v59, 0.0  ;;  %v131_v4 = vmax.f32 %v110_v60, 0.0 }
  0x2b   :  { %v300_v5 = vpack.c.bf16 %v125_v62, %v124_v61  ;;  %v305_v6 = vpack.c.bf16 %v127_v0, %v126_v63  ;;  %v111_v7 = vadd.f32 %v445_v45, %v84_v47  ;;  %v112_v8 = vadd.f32 %v445_v45, %v85_v48 }
  0x2c   :  { %v310_v11 = vpack.c.bf16 %v129_v2, %v128_v1  ;;  %v315_v12 = vpack.c.bf16 %v131_v4, %v130_v3  ;;  %v113_v13 = vadd.f32 %v445_v45, %v86_v49  ;;  %v114_v14 = vadd.f32 %v445_v45, %v87_v50 }
  0x2d   :  { %301 = vst [vmem:[%s540_s4] sm:$0xff] %v300_v5   ;;  %347 = vst [vmem:[%s540_s4 + $0x8] sm:$0xff] %v305_v6   ;;  %v132_v16 = vmax.f32 %v111_v7, 0.0  ;;  %v133_v17 = vmax.f32 %v112_v8, 0.0  ;;  %v115_v18 = vadd.f32 %v445_v45, %v88_v51  ;;  %v116_v19 = vadd.f32 %v445_v45, %v89_v52 }
  0x2e   :  { %348 = vst [vmem:[%s540_s4 + $0x10] sm:$0xff] %v310_v11   ;;  %349 = vst [vmem:[%s540_s4 + $0x18] sm:$0xff] %v315_v12   ;;  %v134_v21 = vmax.f32 %v113_v13, 0.0  ;;  %v135_v22 = vmax.f32 %v114_v14, 0.0  ;;  %v90_v23 = vmul.f32 %v409_v27, %v63_v9  ;;  %v91_v24 = vmul.f32 %v409_v27, %v64_v10 }
  0x2f   :  { %v320_v28 = vpack.c.bf16 %v133_v17, %v132_v16  ;;  %v136_v29 = vmax.f32 %v115_v18, 0.0  ;;  %v137_v30 = vmax.f32 %v116_v19, 0.0  ;;  %v92_v31 = vmul.f32 %v409_v27, %v65_v15 }
  0x30   :  { %v325_v33 = vpack.c.bf16 %v135_v22, %v134_v21  ;;  %v117_v34 = vadd.f32 %v445_v45, %v90_v23  ;;  %v118_v35 = vadd.f32 %v445_v45, %v91_v24  ;;  %v93_v36 = vmul.f32 %v409_v27, %v66_v20 }
  0x31   :  { %350 = vst [vmem:[%s540_s4 + $0x20] sm:$0xff] %v320_v28   ;;  %v330_v37 = vpack.c.bf16 %v137_v30, %v136_v29  ;;  %v119_v38 = vadd.f32 %v445_v45, %v92_v31  ;;  %v94_v39 = vmul.f32 %v409_v27, %v67_v25  ;;  %v95_v40 = vmul.f32 %v409_v27, %v68_v26 }
  0x32   :  { %351 = vst [vmem:[%s540_s4 + $0x28] sm:$0xff] %v325_v33   ;;  %v138_v41 = vmax.f32 %v117_v34, 0.0  ;;  %v139_v42 = vmax.f32 %v118_v35, 0.0  ;;  %v120_v43 = vadd.f32 %v445_v45, %v93_v36  ;;  %v96_v44 = vmul.f32 %v409_v27, %v69_v32 }
  0x33   :  { %352 = vst [vmem:[%s540_s4 + $0x30] sm:$0xff] %v330_v37   ;;  %v140_v46 = vmax.f32 %v119_v38, 0.0  ;;  %v121_v47 = vadd.f32 %v445_v45, %v94_v39  ;;  %v122_v48 = vadd.f32 %v445_v45, %v95_v40 }
  0x34   :  { %v335_v49 = vpack.c.bf16 %v139_v42, %v138_v41  ;;  %v141_v50 = vmax.f32 %v120_v43, 0.0  ;;  %v123_v51 = vadd.f32 %v445_v45, %v96_v44 }
  0x35   :  { %v142_v52 = vmax.f32 %v121_v47, 0.0  ;;  %v143_v53 = vmax.f32 %v122_v48, 0.0 }
  0x36   :  { %353 = vst [vmem:[%s540_s4 + $0x38] sm:$0xff] %v335_v49   ;;  %v340_v27 = vpack.c.bf16 %v141_v50, %v140_v46  ;;  %v144_v54 = vmax.f32 %v123_v51, 0.0 }
  0x37   :  { %v345_v55 = vpack.c.bf16 %v143_v53, %v142_v52 }
  0x38   :  { %354 = vst [vmem:[%s540_s4 + $0x40] sm:$0xff] %v340_v27   ;;  %v296_v56 = vpack.c.bf16 %v144_v54, %v144_v54 }
  0x39   :  { %355 = vst [vmem:[%s540_s4 + $0x48] sm:$0xff] %v345_v55  }
  0x3a   :  { %250 = vst [vmem:[%s540_s4 + $0x50] sm:$0xf] %v296_v56 }

// kernel: qlearner_forward.11
= control target key start
LH: loop header
LB: loop body
LE: loop exit
PB: predicated region body
PF: predicated region fallthrough
CT: control target
= control target key end

     0   :  { %v1239_v24 = vmov 0.0   ;;  %vm1240_vm0 = vmmov 0   ;;  %vm873_vm1 = vcmask 1040384   ;;  %s1568_s1 = inlined_call_operand.vmem [shape: bf16[640,128], index: 1, kind: input, shape index: {}]   ;;  %s1569_s0 = inlined_call_operand.vmem [shape: bf16[104,640], index: 0, kind: input, shape index: {}]   ;;  %s1570_s2 = inlined_call_operand.vmem [shape: f32[104,128], index: 2, kind: output, shape index: {0}]   ;;  %s1571_s3 = inlined_call_operand.vmem [shape: f32[1,2,128], index: 3, kind: output, shape index: {1}]  }
   0x1   :  { %v1152_v0 = vld [vmem:[%s1568_s1 + $0x40] sm:$0xff]   ;;  %v1154_v2 = vld [vmem:[%s1568_s1 + $0x48] sm:$0xff]   ;;  %v1156_v4 = vld [vmem:[%s1568_s1 + $0x50] sm:$0xff]  }
   0x2   :  { %v1153_v1 = vld [vmem:[%s1568_s1] sm:$0xff]   ;;  %1134 = vmatprep.subr.bf16.mxu1 %v1152_v0  ;;  %959 = vmatprep.subr.bf16.mxu0 %v1152_v0  ;;  %v1155_v3 = vld [vmem:[%s1568_s1 + $0x8] sm:$0xff]   ;;  %v1157_v5 = vld [vmem:[%s1568_s1 + $0x10] sm:$0xff]  }
   0x3   :  { %1142 = vmatpush3.bf16.msra.mxu1 %v1153_v1  ;;  %960 = vmatpush3.bf16.msra.mxu0 %v1153_v1  ;;  %v1158_v6 = vld [vmem:[%s1568_s1 + $0x58] sm:$0xff]   ;;  %v1160_v8 = vld [vmem:[%s1568_s1 + $0x60] sm:$0xff]   ;;  %v1162_v10 = vld [vmem:[%s1568_s1 + $0x68] sm:$0xff]  }
   0x4   :  { %1135 = vmatprep.subr.bf16.mxu1 %v1154_v2  ;;  %961 = vmatprep.subr.bf16.mxu0 %v1154_v2  ;;  %v1159_v7 = vld [vmem:[%s1568_s1 + $0x18] sm:$0xff]   ;;  %v1161_v9 = vld [vmem:[%s1568_s1 + $0x20] sm:$0xff]   ;;  %v1163_v12 = vld [vmem:[%s1568_s1 + $0x28] sm:$0xff]  }
   0x5   :  { %v1170_v11 = vld [vmem:[%s1569_s0 + $0xa4] ss:$20 sps:$4 sm:$0xff]   ;;  %v1164_v14 = vld [vmem:[%s1568_s1 + $0x70] sm:$0xff]   ;;  %v1177_v23 = vld [vmem:[%s1568_s1 + $0xc8] sm:$0xff]  }
   0x6   :  { %v1174_v13 = vld [vmem:[%s1569_s0 + $0x4] ss:$20 sps:$4 sm:$0xff]   ;;  %611 = vmatprep.mubr.bf16.mxu1 %v1170_v11  ;;  %v1165_v15 = vld [vmem:[%s1568_s1 + $0x30] sm:$0xff]   ;;  %v1181_v25 = vld [vmem:[%s1569_s0 + $0x2c] ss:$20 sps:$4 sm:$0xff]  }
   0x7   :  { %1143 = vmatpush3.bf16.msra.mxu1 %v1155_v3  ;;  %962 = vmatpush3.bf16.msra.mxu0 %v1155_v3  ;;  %v1166_v16 = vld [vmem:[%s1568_s1 + $0x78] sm:$0xff]   ;;  %v1171_v18 = vld [vmem:[%s1568_s1 + $0xc0] sm:$0xff]   ;;  %v1178_v27 = vld [vmem:[%s1568_s1 + $0x88] sm:$0xff]  }
   0x8   :  { %1136 = vmatprep.subr.bf16.mxu1 %v1156_v4  ;;  %963 = vmatprep.subr.bf16.mxu0 %v1156_v4  ;;  %v1167_v17 = vld [vmem:[%s1568_s1 + $0x38] sm:$0xff]   ;;  %v1168_v19 = vld [vmem:[%s1569_s0 + $0xa0] ss:$20 sps:$4 sm:$0xff]   ;;  %v1179_v28 = vld [vmem:[%s1568_s1 + $0x108] sm:$0xff]  }
   0x9   :  { %579 = vmatprep.mubr.bf16.mxu0 %v1174_v13  ;;  %v1172_v20 = vld [vmem:[%s1569_s0] ss:$20 sps:$4 sm:$0xff]   ;;  %v1184_v31 = vld [vmem:[%s1569_s0 + $0x28] ss:$20 sps:$4 sm:$0xff]   ;;  %v1196_v42 = vld [vmem:[%s1569_s0 + $0x50] ss:$20 sps:$4 sm:$0xff]  }
   0xa   :  { %v1175_v21 = vld [vmem:[%s1568_s1 + $0x80] sm:$0xff]   ;;  %v1180_v29 = vld [vmem:[%s1568_s1 + $0xd0] sm:$0xff]   ;;  %v1189_v32 = vld [vmem:[%s1569_s0 + $0xc8] ss:$20 sps:$4 sm:$0xff]  }
   0xb   :  { %1144 = vmatpush3.bf16.msra.mxu1 %v1157_v5  ;;  %964 = vmatpush3.bf16.msra.mxu0 %v1157_v5  ;;  %v1176_v22 = vld [vmem:[%s1568_s1 + $0x100] sm:$0xff]   ;;  %v1183_v30 = vld [vmem:[%s1568_s1 + $0x90] sm:$0xff]   ;;  %v1188_v35 = vld [vmem:[%s1568_s1 + $0xd8] sm:$0xff]  }
   0xc   :  { %1137 = vmatprep.subr.bf16.mxu1 %v1158_v6  ;;  %965 = vmatprep.subr.bf16.mxu0 %v1158_v6  ;;  %v1186_v26 = vld [vmem:[%s1569_s0 + $0xcc] ss:$20 sps:$4 sm:$0xff]   ;;  %v50_v33 = vld [vmem:[%s1569_s0 + $0xf0] sm:$0xff]  ;;  %v1190_v38 = vld [vmem:[%s1568_s1 + $0x98] sm:$0xff]  }
   0xd   :  { %v1185_v34 = vld [vmem:[%s1568_s1 + $0x110] sm:$0xff]   ;;  %v915_v37 = vcombine.high %v50_v33, %v50_v33  ;;  %v1191_v39 = vld [vmem:[%s1568_s1 + $0x118] sm:$0xff]   ;;  %v1192_v40 = vld [vmem:[%s1568_s1 + $0xe0] sm:$0xff]   ;;  %v914_v43 = vcombine.low %v50_v33, %v50_v33 }
   0xe   :  { %v1193_v36 = vld [vmem:[%s1569_s0 + $0x54] ss:$20 sps:$4 sm:$0xff]   ;;  %v1195_v41 = vld [vmem:[%s1568_s1 + $0xa0] sm:$0xff]   ;;  %v1204_v46 = vld [vmem:[%s1569_s0 + $0x7c] ss:$20 sps:$4 sm:$0xff]  }
   0xf   :  { %1145 = vmatpush3.bf16.msra.mxu1 %v1159_v7  ;;  %966 = vmatpush3.bf16.msra.mxu0 %v1159_v7  ;;  %v1197_v44 = vld [vmem:[%s1568_s1 + $0x120] sm:$0xff]   ;;  %v1199_v45 = vld [vmem:[%s1568_s1 + $0xe8] sm:$0xff]   ;;  %v1203_v50 = vld [vmem:[%s1568_s1 + $0xf0] sm:$0xff]  }
  0x10   :  { %1138 = vmatprep.subr.bf16.mxu1 %v1160_v8  ;;  %967 = vmatprep.subr.bf16.mxu0 %v1160_v8  ;;  %v1213_v47 = vld [vmem:[%s1569_s0 + $0xc] ss:$20 sps:$4 sm:$0xff]   ;;  %v1206_v51 = vld [vmem:[%s1568_s1 + $0xb0] sm:$0xff]   ;;  %v1209_v54 = vld [vmem:[%s1568_s1 + $0xf8] sm:$0xff]  }
  0x11   :  { %v1201_v48 = vld [vmem:[%s1568_s1 + $0xa8] sm:$0xff]   ;;  %v1208_v53 = vld [vmem:[%s1568_s1 + $0x130] sm:$0xff]   ;;  %v1210_v55 = vld [vmem:[%s1568_s1 + $0xb8] sm:$0xff]  }
  0x12   :  { %v1202_v49 = vld [vmem:[%s1568_s1 + $0x128] sm:$0xff]   ;;  %v1214_v56 = vld [vmem:[%s1568_s1 + $0x138] sm:$0xff]   ;;  %v1215_v58 = vld [vmem:[%s1569_s0 + $0x10] ss:$20 sps:$4 sm:$0xff]  }
  0x13   :  { %1146 = vmatpush3.bf16.msra.mxu1 %v1161_v9  ;;  %968 = vmatpush3.bf16.msra.mxu0 %v1161_v9  ;;  %v1207_v52 = vld [vmem:[%s1569_s0 + $0x78] ss:$20 sps:$4 sm:$0xff]   ;;  %v1211_v57 = vld [vmem:[%s1569_s0 + $0x8] ss:$20 sps:$4 sm:$0xff]   ;;  %v1218_v60 = vld [vmem:[%s1569_s0 + $0x30] ss:$20 sps:$4 sm:$0xff]  }
  0x14   :  { %1139 = vmatprep.subr.bf16.mxu1 %v1162_v10  ;;  %969 = vmatprep.subr.bf16.mxu0 %v1162_v10  ;;  %v1216_v59 = vld [vmem:[%s1569_s0 + $0x34] ss:$20 sps:$4 sm:$0xff]   ;;  %v1219_v61 = vld [vmem:[%s1569_s0 + $0x38] ss:$20 sps:$4 sm:$0xff]   ;;  %v1220_v62 = vld [vmem:[%s1569_s0 + $0x5c] ss:$20 sps:$4 sm:$0xff]  }
  0x15   :  { %v1222_v63 = vld [vmem:[%s1569_s0 + $0x58] ss:$20 sps:$4 sm:$0xff]   ;;  %v1223_v0 = vld [vmem:[%s1569_s0 + $0x60] ss:$20 sps:$4 sm:$0xff]   ;;  %v1227_v3 = vld [vmem:[%s1569_s0 + $0x88] ss:$20 sps:$4 sm:$0xff]  }
  0x16   :  { %v1224_v1 = vld [vmem:[%s1569_s0 + $0x84] ss:$20 sps:$4 sm:$0xff]   ;;  %v1226_v2 = vld [vmem:[%s1569_s0 + $0x80] ss:$20 sps:$4 sm:$0xff]   ;;  %v1230_v5 = vld [vmem:[%s1569_s0 + $0xa8] ss:$20 sps:$4 sm:$0xff]  }
  0x17   :  { %1147 = vmatpush3.bf16.msra.mxu1 %v1163_v12  ;;  %970 = vmatpush3.bf16.msra.mxu0 %v1163_v12  ;;  %v1228_v4 = vld [vmem:[%s1569_s0 + $0xac] ss:$20 sps:$4 sm:$0xff]   ;;  %v1231_v6 = vld [vmem:[%s1569_s0 + $0xb0] ss:$20 sps:$4 sm:$0xff]   ;;  %v1232_v7 = vld [vmem:[%s1569_s0 + $0xd4] ss:$20 sps:$4 sm:$0xff]  }
  0x18   :  { %1140 = vmatprep.subr.bf16.mxu1 %v1164_v14  ;;  %971 = vmatprep.subr.bf16.mxu0 %v1164_v14  ;;  %v51_v8 = vld [vmem:[%s1569_s0 + $0xf8] sm:$0xff]  ;;  %v1234_v9 = vld [vmem:[%s1569_s0 + $0xd0] ss:$20 sps:$4 sm:$0xff]   ;;  %v1238_v13 = vld [vmem:[%s1569_s0 + $0x100] ss:$0 sps:$4 sm:$0xff]  }
  0x19   :  { %v1235_v10 = vld [vmem:[%s1569_s0 + $0xd8] ss:$20 sps:$4 sm:$0xff]   ;;  %v917_v11 = vcombine.high %v51_v8, %v51_v8  ;;  %v916_v12 = vcombine.low %v51_v8, %v51_v8 }
  0x1b   :  { %1148 = vmatpush3.bf16.msra.mxu1 %v1165_v15  ;;  %972 = vmatpush3.bf16.msra.mxu0 %v1165_v15 }
  0x1c   :  { %1141 = vmatprep.subr.bf16.mxu1 %v1166_v16  ;;  %973 = vmatprep.subr.bf16.mxu0 %v1166_v16 }
  0x1f   :  { %1149 = vmatpush3.bf16.msra.mxu1 %v1167_v17  ;;  %974 = vmatpush3.bf16.msra.mxu0 %v1167_v17 }
  0x20   :  { %1017 = vmatprep.subr.bf16.mxu1 %v1171_v18  ;;  %1090 = vmatprep.subr.bf16.mxu0 %v1239_v24 }
  0x22   :  { %612 = vmatmul.mubr.bf16.vlgmr.msra.gmra.mrb[0].mxu1 %v1168_v19  ;;  %580 = vmatmul.mubr.bf16.vlgmr.msra.gmra.mrb[0].mxu0 %v1172_v20 }
  0x23   :  { %1018 = vmatpush3.bf16.msra.mxu1 %v1175_v21  ;;  %1091 = vmatpush3.bf16.msra.mxu0 %v1176_v22 }
  0x24   :  { %1019 = vmatprep.subr.bf16.mxu1 %v1177_v23  ;;  %1092 = vmatprep.subr.bf16.mxu0 %v1239_v24 }
  0x25   :  { %587 = vmatprep.mubr.bf16.mxu0 %v1181_v25  ;;  %619 = vmatprep.mubr.bf16.mxu1 %v1186_v26 }
  0x27   :  { %1020 = vmatpush3.bf16.msra.mxu1 %v1178_v27  ;;  %1093 = vmatpush3.bf16.msra.mxu0 %v1179_v28 }
  0x28   :  { %1021 = vmatprep.subr.bf16.mxu1 %v1180_v29  ;;  %1094 = vmatprep.subr.bf16.mxu0 %v1239_v24 }
  0x2a   :  { %588 = vmatmul.mubr.bf16.gmra.mrb[4].mxu0 %v1184_v31  ;;  %620 = vmatmul.mubr.bf16.gmra.mrb[4].mxu1 %v1189_v32 }
  0x2b   :  { %1022 = vmatpush3.bf16.msra.mxu1 %v1183_v30  ;;  %1095 = vmatpush3.bf16.msra.mxu0 %v1185_v34 }
  0x2c   :  { %1023 = vmatprep.subr.bf16.mxu1 %v1188_v35  ;;  %1096 = vmatprep.subr.bf16.mxu0 %v1239_v24 }
  0x2d   :  { %595 = vmatprep.mubr.bf16.mxu0 %v1193_v36  ;;  %627 = vmatprep.mubr.bf16.mxu1 %v915_v37 }
  0x2f   :  { %1024 = vmatpush3.bf16.msra.mxu1 %v1190_v38  ;;  %1097 = vmatpush3.bf16.msra.mxu0 %v1191_v39 }
  0x30   :  { %1025 = vmatprep.subr.bf16.mxu1 %v1192_v40  ;;  %1098 = vmatprep.subr.bf16.mxu0 %v1239_v24 }
  0x32   :  { %596 = vmatmul.mubr.bf16.gmra.mrb[8].mxu0 %v1196_v42  ;;  %628 = vmatmul.mubr.bf16.gmra.mrb[8].mxu1 %v914_v43 }
  0x33   :  { %1026 = vmatpush3.bf16.msra.mxu1 %v1195_v41  ;;  %1099 = vmatpush3.bf16.msra.mxu0 %v1197_v44 }
  0x34   :  { %1027 = vmatprep.subr.bf16.mxu1 %v1199_v45  ;;  %1100 = vmatprep.subr.bf16.mxu0 %v1239_v24 }
  0x35   :  { %603 = vmatprep.mubr.bf16.mxu0 %v1204_v46  ;;  %667 = vmatprep.mubr.bf16.mxu1 %v1213_v47 }
  0x37   :  { %1028 = vmatpush3.bf16.msra.mxu1 %v1201_v48  ;;  %1101 = vmatpush3.bf16.msra.mxu0 %v1202_v49 }
  0x38   :  { %1029 = vmatprep.subr.bf16.mxu1 %v1203_v50  ;;  %1102 = vmatprep.subr.bf16.mxu0 %v1239_v24 }
  0x3a   :  { %604 = vmatmul.mubr.bf16.gmra.mrb[12].mxu0 %v1207_v52 }
  0x3b   :  { %1030 = vmatpush3.bf16.msra.mxu1 %v1206_v51  ;;  %1103 = vmatpush3.bf16.msra.mxu0 %v1208_v53 }
  0x3c   :  { %1031 = vmatprep.subr.bf16.mxu1 %v1209_v54  ;;  %1104 = vmatprep.subr.bf16.mxu0 %v1239_v24 }
  0x3d   :  { %1106 = vmatprep.mubr.msk.bf16.mxu0 %vm1240_vm0, %v1239_v24 }
  0x3f   :  { %1032 = vmatpush3.bf16.msra.mxu1 %v1210_v55  ;;  %1105 = vmatpush3.bf16.msra.mxu0 %v1214_v56 }
  0x42   :  { %668 = vmatmul.mubr.bf16.vlgmr.msra.gmra.mrb[12].mxu1 %v1211_v57  ;;  %1107 = vmatmul.mubr.bf16.vlgmr.msra.gmra.mrb[16].mxu0 %v1215_v58 }
  0x43   :  { %675 = vmatprep.mubr.bf16.mxu1 %v1216_v59  ;;  %1110 = vmatprep.mubr.msk.bf16.mxu0 %vm1240_vm0, %v1239_v24 }
  0x4a   :  { %676 = vmatmul.mubr.bf16.gmra.mrb[16].mxu1 %v1218_v60  ;;  %1111 = vmatmul.mubr.bf16.gmra.mrb[20].mxu0 %v1219_v61 }
  0x4b   :  { %683 = vmatprep.mubr.bf16.mxu1 %v1220_v62  ;;  %1114 = vmatprep.mubr.msk.bf16.mxu0 %vm1240_vm0, %v1239_v24 }
  0x52   :  { %684 = vmatmul.mubr.bf16.gmra.mrb[20].mxu1 %v1222_v63  ;;  %1115 = vmatmul.mubr.bf16.gmra.mrb[24].mxu0 %v1223_v0 }
  0x53   :  { %691 = vmatprep.mubr.bf16.mxu1 %v1224_v1  ;;  %1118 = vmatprep.mubr.msk.bf16.mxu0 %vm1240_vm0, %v1239_v24 }
  0x5a   :  { %692 = vmatmul.mubr.bf16.gmra.mrb[24].mxu1 %v1226_v2  ;;  %1119 = vmatmul.mubr.bf16.gmra.mrb[28].mxu0 %v1227_v3 }
  0x5b   :  { %699 = vmatprep.mubr.bf16.mxu1 %v1228_v4  ;;  %1122 = vmatprep.mubr.msk.bf16.mxu0 %vm1240_vm0, %v1239_v24 }
  0x62   :  { %700 = vmatmul.mubr.bf16.gmra.mrb[28].mxu1 %v1230_v5  ;;  %1123 = vmatmul.mubr.bf16.gmra.mrb[32].mxu0 %v1231_v6 }
  0x63   :  { %707 = vmatprep.mubr.bf16.mxu1 %v1232_v7  ;;  %1126 = vmatprep.mubr.msk.bf16.mxu0 %vm1240_vm0, %v1239_v24 }
  0x6a   :  { %708 = vmatmul.mubr.bf16.gmra.mrb[32].mxu1 %v1234_v9  ;;  %1127 = vmatmul.mubr.bf16.gmra.mrb[36].mxu0 %v1235_v10 }
  0x6b   :  { %715 = vmatprep.mubr.bf16.mxu1 %v917_v11  ;;  %1130 = vmatprep.mubr.msk.bf16.mxu0 %vm1240_vm0, %v1239_v24 }
  0x72   :  { %716 = vmatmul.mubr.bf16.gmra.mrb[36].mxu1 %v916_v12  ;;  %1131 = vmatmul.mubr.bf16.gmra.mrb[40].mxu0 %v1238_v13 }
  0xf5   :  { %v999_v14 = vpop.f32.mrb[0].mxu1  ;;  %v975_v15 = vpop.f32.mrb[0].mxu0 }
  0xf6   :  { %v1000_v16 = vpop.f32.mrb[1].mxu1  ;;  %v976_v17 = vpop.f32.mrb[1].mxu0 }
  0xf7   :  { %v1502_v18 = vadd.f32 %v1000_v16, %v999_v14  ;;  %v1002_v19 = vpop.f32.mrb[2].mxu1  ;;  %v977_v20 = vadd.f32 %v976_v17, %v975_v15  ;;  %v978_v21 = vpop.f32.mrb[2].mxu0 }
  0xf8   :  { %v1003_v22 = vpop.f32.mrb[3].mxu1  ;;  %v979_v23 = vpop.f32.mrb[3].mxu0 }
  0xf9   :  { %v1504_v25 = vadd.f32 %v1003_v22, %v1002_v19  ;;  %v980_v24 = vadd.f32 %v979_v23, %v978_v21 }
  0xfd   :  { %v981_v26 = vpop.f32.mrb[4].mxu0  ;;  %v1005_v27 = vpop.f32.mrb[4].mxu1 }
  0xfe   :  { %v982_v28 = vpop.f32.mrb[5].mxu0  ;;  %v1006_v29 = vpop.f32.mrb[5].mxu1 }
  0xff   :  { %v983_v30 = vadd.f32 %v982_v28, %v981_v26  ;;  %v984_v31 = vpop.f32.mrb[6].mxu0  ;;  %v1506_v32 = vadd.f32 %v1006_v29, %v1005_v27  ;;  %v1008_v33 = vpop.f32.mrb[6].mxu1 }
 0x100   :  { %v985_v34 = vpop.f32.mrb[7].mxu0  ;;  %v1009_v35 = vpop.f32.mrb[7].mxu1 }
 0x101   :  { %v986_v36 = vadd.f32 %v985_v34, %v984_v31  ;;  %v1508_v37 = vadd.f32 %v1009_v35, %v1008_v33 }
 0x105   :  { %v987_v38 = vpop.f32.mrb[8].mxu0  ;;  %v1011_v39 = vpop.f32.mrb[8].mxu1 }
 0x106   :  { %v988_v40 = vpop.f32.mrb[9].mxu0  ;;  %v1012_v41 = vpop.f32.mrb[9].mxu1 }
 0x107   :  { %v1510_v42 = vadd.f32 %v988_v40, %v987_v38  ;;  %v990_v43 = vpop.f32.mrb[10].mxu0  ;;  %v1512_v44 = vadd.f32 %v1012_v41, %v1011_v39  ;;  %v1014_v45 = vpop.f32.mrb[10].mxu1 }
 0x108   :  { %v991_v46 = vpop.f32.mrb[11].mxu0  ;;  %v1015_v47 = vpop.f32.mrb[11].mxu1 }
 0x109   :  { %v992_v48 = vadd.f32 %v991_v46, %v990_v43 }
 0x10d   :  { %v993_v49 = vpop.f32.mrb[12].mxu0 }
 0x10e   :  { %v994_v50 = vpop.f32.mrb[13].mxu0 }
 0x10f   :  { %v1514_v51 = vadd.f32 %v994_v50, %v993_v49  ;;  %v996_v52 = vpop.f32.mrb[14].mxu0 }
 0x110   :  { %v997_v53 = vpop.f32.mrb[15].mxu0 }
 0x111   :  { %v1516_v54 = vadd.f32 %v997_v53, %v996_v52 }
 0x115   :  { %v1033_v55 = vpop.f32.mrb[12].mxu1  ;;  %v757_v56 = vpop.f32.mrb[16].mxu0 }
 0x116   :  { %v1034_v57 = vpop.f32.mrb[13].mxu1  ;;  %v1108_v58 = vpop.f32.mrb[17].mxu0 }
 0x117   :  { %v1035_v59 = vadd.f32 %v1034_v57, %v1033_v55  ;;  %v1036_v60 = vpop.f32.mrb[14].mxu1  ;;  %v760_v61 = vpop.f32.mrb[18].mxu0 }
 0x118   :  { %v1037_v62 = vpop.f32.mrb[15].mxu1  ;;  %v1109_v63 = vpop.f32.mrb[19].mxu0 }
 0x119   :  { %v670_v0 = vadd.f32 %v1035_v59, %v977_v20  ;;  %v1038_v1 = vadd.f32 %v1037_v62, %v1036_v60 }
 0x11b   :  { %v758_v2 = vadd.f32 %v757_v56, %v670_v0  ;;  %v673_v3 = vadd.f32 %v1038_v1, %v980_v24 }
 0x11d   :  { %811 = vst [vmem:[%s1570_s2] sm:$0xff] %v758_v2  ;;  %v761_v4 = vadd.f32 %v760_v61, %v673_v3  ;;  %v1039_v5 = vpop.f32.mrb[16].mxu1  ;;  %v765_v6 = vpop.f32.mrb[20].mxu0  ;;  %v842_v9 = vmul.f32 %v758_v2, %v758_v2 }
 0x11e   :  { %v1040_v7 = vpop.f32.mrb[17].mxu1  ;;  %v1112_v8 = vpop.f32.mrb[21].mxu0 }
 0x11f   :  { %812 = vst [vmem:[%s1570_s2 + $0x8] sm:$0xff] %v761_v4  ;;  %v824_v10 = vadd.f32 %v761_v4, %v758_v2  ;;  %v843_v11 = vmul.f32 %v761_v4, %v761_v4  ;;  %v1041_v12 = vadd.f32 %v1040_v7, %v1039_v5  ;;  %v1042_v13 = vpop.f32.mrb[18].mxu1  ;;  %v768_v14 = vpop.f32.mrb[22].mxu0 }
 0x120   :  { %v1043_v15 = vpop.f32.mrb[19].mxu1  ;;  %v1113_v16 = vpop.f32.mrb[23].mxu0 }
 0x121   :  { %v855_v17 = vadd.f32 %v843_v11, %v842_v9  ;;  %v678_v19 = vadd.f32 %v1041_v12, %v983_v30  ;;  %v1044_v20 = vadd.f32 %v1043_v15, %v1042_v13 }
 0x123   :  { %v766_v21 = vadd.f32 %v765_v6, %v678_v19  ;;  %v681_v22 = vadd.f32 %v1044_v20, %v986_v36 }
 0x125   :  { %813 = vst [vmem:[%s1570_s2 + $0x10] sm:$0xff] %v766_v21  ;;  %v825_v23 = vadd.f32 %v824_v10, %v766_v21  ;;  %v844_v24 = vmul.f32 %v766_v21, %v766_v21  ;;  %v769_v26 = vadd.f32 %v768_v14, %v681_v22  ;;  %v1045_v27 = vpop.f32.mrb[20].mxu1  ;;  %v773_v28 = vpop.f32.mrb[24].mxu0 }
 0x126   :  { %v1046_v29 = vpop.f32.mrb[21].mxu1  ;;  %v1116_v31 = vpop.f32.mrb[25].mxu0 }
 0x127   :  { %v856_v33 = vadd.f32 %v855_v17, %v844_v24  ;;  %814 = vst [vmem:[%s1570_s2 + $0x18] sm:$0xff] %v769_v26  ;;  %v826_v30 = vadd.f32 %v825_v23, %v769_v26  ;;  %v845_v34 = vmul.f32 %v769_v26, %v769_v26  ;;  %v1047_v35 = vadd.f32 %v1046_v29, %v1045_v27  ;;  %v1048_v36 = vpop.f32.mrb[22].mxu1  ;;  %v776_v38 = vpop.f32.mrb[26].mxu0 }
 0x128   :  { %v1049_v39 = vpop.f32.mrb[23].mxu1  ;;  %v1117_v40 = vpop.f32.mrb[27].mxu0 }
 0x129   :  { %v857_v41 = vadd.f32 %v856_v33, %v845_v34  ;;  %v686_v43 = vadd.f32 %v1047_v35, %v1510_v42  ;;  %v1050_v45 = vadd.f32 %v1049_v39, %v1048_v36 }
 0x12b   :  { %v774_v46 = vadd.f32 %v773_v28, %v686_v43  ;;  %v689_v47 = vadd.f32 %v1050_v45, %v992_v48 }
 0x12d   :  { %815 = vst [vmem:[%s1570_s2 + $0x20] sm:$0xff] %v774_v46  ;;  %v827_v49 = vadd.f32 %v826_v30, %v774_v46  ;;  %v846_v50 = vmul.f32 %v774_v46, %v774_v46  ;;  %v777_v52 = vadd.f32 %v776_v38, %v689_v47  ;;  %v1051_v53 = vpop.f32.mrb[24].mxu1  ;;  %v781_v55 = vpop.f32.mrb[28].mxu0 }
 0x12e   :  { %v1052_v56 = vpop.f32.mrb[25].mxu1  ;;  %v1120_v57 = vpop.f32.mrb[29].mxu0 }
 0x12f   :  { %v858_v58 = vadd.f32 %v857_v41, %v846_v50  ;;  %816 = vst [vmem:[%s1570_s2 + $0x28] sm:$0xff] %v777_v52  ;;  %v828_v42 = vadd.f32 %v827_v49, %v777_v52  ;;  %v847_v59 = vmul.f32 %v777_v52, %v777_v52  ;;  %v1053_v60 = vadd.f32 %v1052_v56, %v1051_v53  ;;  %v1054_v48 = vpop.f32.mrb[26].mxu1  ;;  %v784_v61 = vpop.f32.mrb[30].mxu0 }
 0x130   :  { %v1055_v62 = vpop.f32.mrb[27].mxu1  ;;  %v1121_v63 = vpop.f32.mrb[31].mxu0 }
 0x131   :  { %v859_v0 = vadd.f32 %v858_v58, %v847_v59  ;;  %v694_v1 = vadd.f32 %v1053_v60, %v1514_v51  ;;  %v1056_v2 = vadd.f32 %v1055_v62, %v1054_v48 }
 0x133   :  { %v782_v3 = vadd.f32 %v781_v55, %v694_v1  ;;  %v697_v4 = vadd.f32 %v1056_v2, %v1516_v54 }
 0x135   :  { %817 = vst [vmem:[%s1570_s2 + $0x30] sm:$0xff] %v782_v3  ;;  %v829_v5 = vadd.f32 %v828_v42, %v782_v3  ;;  %v848_v6 = vmul.f32 %v782_v3, %v782_v3  ;;  %v785_v7 = vadd.f32 %v784_v61, %v697_v4  ;;  %v1057_v8 = vpop.f32.mrb[28].mxu1  ;;  %v789_v9 = vpop.f32.mrb[32].mxu0 }
 0x136   :  { %v1058_v10 = vpop.f32.mrb[29].mxu1  ;;  %v1124_v11 = vpop.f32.mrb[33].mxu0 }
 0x137   :  { %v860_v12 = vadd.f32 %v859_v0, %v848_v6  ;;  %818 = vst [vmem:[%s1570_s2 + $0x38] sm:$0xff] %v785_v7  ;;  %v830_v51 = vadd.f32 %v829_v5, %v785_v7  ;;  %v849_v13 = vmul.f32 %v785_v7, %v785_v7  ;;  %v1059_v14 = vadd.f32 %v1058_v10, %v1057_v8  ;;  %v1060_v54 = vpop.f32.mrb[30].mxu1  ;;  %v792_v15 = vpop.f32.mrb[34].mxu0 }
 0x138   :  { %v1061_v16 = vpop.f32.mrb[31].mxu1  ;;  %v1125_v17 = vpop.f32.mrb[35].mxu0 }
 0x139   :  { %v861_v19 = vadd.f32 %v860_v12, %v849_v13  ;;  %v702_v20 = vadd.f32 %v1059_v14, %v1502_v18  ;;  %v1062_v21 = vadd.f32 %v1061_v16, %v1060_v54 }
 0x13b   :  { %v790_v22 = vadd.f32 %v789_v9, %v702_v20  ;;  %v705_v23 = vadd.f32 %v1062_v21, %v1504_v25 }
 0x13d   :  { %819 = vst [vmem:[%s1570_s2 + $0x40] sm:$0xff] %v790_v22  ;;  %v831_v24 = vadd.f32 %v830_v51, %v790_v22  ;;  %v850_v26 = vmul.f32 %v790_v22, %v790_v22  ;;  %v793_v27 = vadd.f32 %v792_v15, %v705_v23  ;;  %v1063_v28 = vpop.f32.mrb[32].mxu1  ;;  %v797_v29 = vpop.f32.mrb[36].mxu0 }
 0x13e   :  { %v1064_v31 = vpop.f32.mrb[33].mxu1  ;;  %v1128_v33 = vpop.f32.mrb[37].mxu0 }
 0x13f   :  { %v862_v30 = vadd.f32 %v861_v19, %v850_v26  ;;  %820 = vst [vmem:[%s1570_s2 + $0x48] sm:$0xff] %v793_v27  ;;  %v832_v18 = vadd.f32 %v831_v24, %v793_v27  ;;  %v851_v34 = vmul.f32 %v793_v27, %v793_v27  ;;  %v1065_v35 = vadd.f32 %v1064_v31, %v1063_v28  ;;  %v1066_v25 = vpop.f32.mrb[34].mxu1  ;;  %v800_v36 = vpop.f32.mrb[38].mxu0 }
 0x140   :  { %v1067_v38 = vpop.f32.mrb[35].mxu1  ;;  %v1129_v39 = vpop.f32.mrb[39].mxu0 }
 0x141   :  { %v863_v40 = vadd.f32 %v862_v30, %v851_v34  ;;  %v710_v41 = vadd.f32 %v1065_v35, %v1506_v32  ;;  %v1068_v43 = vadd.f32 %v1067_v38, %v1066_v25 }
 0x143   :  { %v798_v45 = vadd.f32 %v797_v29, %v710_v41  ;;  %v713_v46 = vadd.f32 %v1068_v43, %v1508_v37 }
 0x145   :  { %821 = vst [vmem:[%s1570_s2 + $0x50] sm:$0xff] %v798_v45  ;;  %v833_v47 = vadd.f32 %v832_v18, %v798_v45  ;;  %v852_v49 = vmul.f32 %v798_v45, %v798_v45  ;;  %v801_v50 = vadd.f32 %v800_v36, %v713_v46  ;;  %v1069_v52 = vpop.f32.mrb[36].mxu1  ;;  %v805_v53 = vpop.f32.mrb[40].mxu0 }
 0x146   :  { %v1070_v55 = vpop.f32.mrb[37].mxu1  ;;  %v1132_v56 = vpop.f32.mrb[41].mxu0 }
 0x147   :  { %v864_v57 = vadd.f32 %v863_v40, %v852_v49  ;;  %822 = vst [vmem:[%s1570_s2 + $0x58] sm:$0xff] %v801_v50  ;;  %v834_v32 = vadd.f32 %v833_v47, %v801_v50  ;;  %v853_v58 = vmul.f32 %v801_v50, %v801_v50  ;;  %v1071_v42 = vadd.f32 %v1070_v55, %v1069_v52  ;;  %v1072_v37 = vpop.f32.mrb[38].mxu1  ;;  %v808_v59 = vpop.f32.mrb[42].mxu0 }
 0x148   :  { %v1073_v60 = vpop.f32.mrb[39].mxu1  ;;  %v1133_v48 = vpop.f32.mrb[43].mxu0 }
 0x149   :  { %v865_v61 = vadd.f32 %v864_v57, %v853_v58  ;;  %v718_v62 = vadd.f32 %v1071_v42, %v1512_v44 }
 0x14b   :  { %v806_v63 = vadd.f32 %v805_v53, %v718_v62 }
 0x14d   :  { %823 = vst [vmem:[%s1570_s2 + $0x60] sm:$0xff] %v806_v63  ;;  %v835_v0 = vadd.f32 %v834_v32, %v806_v63  ;;  %v854_v1 = vmul.f32 %v806_v63, %v806_v63 }
 0x14f   :  { %v836_v2 = vrot.slane %v835_v0, 4  ;;  %v866_v3 = vadd.f32 %v865_v61, %v854_v1 }
 0x151   :  { %v837_v4 = vadd.f32 %v836_v2, %v835_v0  ;;  %v867_v5 = vrot.slane %v866_v3, 4 }
 0x153   :  { %v838_v6 = vrot.slane %v837_v4, 2  ;;  %v868_v7 = vadd.f32 %v867_v5, %v866_v3 }
 0x155   :  { %v839_v8 = vadd.f32 %v838_v6, %v837_v4  ;;  %v869_v9 = vrot.slane %v868_v7, 2 }
 0x157   :  { %v840_v10 = vrot.slane %v839_v8, 1  ;;  %v870_v11 = vadd.f32 %v869_v9, %v868_v7 }
 0x159   :  { %v871_v12 = vrot.slane %v870_v11, 1  ;;  %v841_v44 = vadd.f32 %v840_v10, %v839_v8 }
 0x15b   :  { %v872_v51 = vadd.f32 %v871_v12, %v870_v11 }
 0x15d   :  { %v874_v13 = vsel %vm873_vm1, %v841_v44, %v872_v51 }
 0x15e   :  { %875 = vst [vmem:[%s1571_s3] sm:$0x3] %v874_v13 }

// kernel: qlearner_forward.12
= control target key start
LH: loop header
LB: loop body
LE: loop exit
PB: predicated region body
PF: predicated region fallthrough
CT: control target
= control target key end

     0   :  { %v247_v7 = vmov 1966171168   ;;  %v32_v9 = vlaneseq  ;;  %s342_s1 = inlined_call_operand.vmem [shape: f32[1,2,128], index: 1, kind: input, shape index: {}]   ;;  %s343_s2 = inlined_call_operand.vmem [shape: f32[1,128], index: 2, kind: input, shape index: {}]   ;;  %s344_s0 = inlined_call_operand.vmem [shape: f32[104,128], index: 0, kind: input, shape index: {}]   ;;  %s345_s3 = inlined_call_operand.vmem [shape: f32[1,128], index: 3, kind: input, shape index: {}]   ;;  %s346_s4 = inlined_call_operand.vmem [shape: bf16[104,128], index: 4, kind: output, shape index: {}]  }
   0x1   :  { %v17_v0 = vld [vmem:[%s342_s1] sm:$0x3]  ;;  %v30_v8 = vunpack.c.l.s4 %v247_v7  ;;  %v50_v22 = vld [vmem:[%s344_s0 + $0x8] sm:$0xff]  ;;  %v51_v23 = vld [vmem:[%s344_s0 + $0x10] sm:$0xff] }
   0x2   :  { %v18_v1 = vmul.f32 0.010204081, %v17_v0  ;;  %v33_v11 = vshrl.u32 %v32_v9, 7  ;;  %v25_v16 = vld [vmem:[%s343_s2] sm:$0x1]  ;;  %v52_v24 = vld [vmem:[%s344_s0 + $0x18] sm:$0xff] }
   0x3   :  { %v31_v10 = vunpack.c.0.s8 %v30_v8  ;;  %v46_v20 = vld [vmem:[%s345_s3] sm:$0x1]  ;;  %v54_v28 = vld [vmem:[%s344_s0 + $0x28] sm:$0xff]  ;;  %v55_v29 = vld [vmem:[%s344_s0 + $0x30] sm:$0xff] }
   0x4   :  { %v19_v2 = vmul.f32 %v18_v1, %v18_v1  ;;  %v65_v18 = vsub.s32 0, %v33_v11  ;;  %v49_v21 = vld [vmem:[%s344_s0] sm:$0xff]  ;;  %v56_v30 = vld [vmem:[%s344_s0 + $0x38] sm:$0xff]  ;;  %v58_v32 = vld [vmem:[%s344_s0 + $0x48] sm:$0xff] }
   0x5   :  { %v34_v12 = vsub.s32 %v31_v10, %v33_v11  ;;  %v53_v27 = vld [vmem:[%s344_s0 + $0x20] sm:$0xff]  ;;  %v59_v37 = vld [vmem:[%s344_s0 + $0x50] sm:$0xff]  ;;  %v60_v38 = vld [vmem:[%s344_s0 + $0x58] sm:$0xff] }
   0x6   :  { %v21_v3 = vrot.slane %v19_v2, 7  ;;  %v57_v31 = vld [vmem:[%s344_s0 + $0x40] sm:$0xff] }
   0x7   :  { %v61_v39 = vld [vmem:[%s344_s0 + $0x60] sm:$0xff] }
   0x8   :  { %v23_v4 = vsub.f32 %v18_v1, %v21_v3 }
   0xa   :  { %v24_v5 = vmax.f32 %v23_v4, 0.0 }
   0xc   :  { %v26_v6 = vadd.f32 1e-05, %v24_v5 }
   0xe   :  { %245 = vrsqrt.f32 %v26_v6 }
  0x18   :  { %v246_v13 = vpop.eup %245 }
  0x19   :  { %v35_v14 = vrot.slane %v246_v13, %v34_v12 }
  0x1b   :  { %v36_v15 = vcombine.high %v35_v14, %v35_v14 }
  0x1d   :  { %v43_v17 = vrot.slane %v36_v15, %v34_v12 }
  0x1f   :  { %v45_v19 = vmul.f32 %v43_v17, %v25_v16 }
  0x21   :  { %v47_v25 = vmul.f32 %v45_v19, %v18_v1  ;;  %v66_v26 = vrot.slane %v45_v19, %v65_v18 }
  0x23   :  { %v48_v33 = vsub.f32 %v46_v20, %v47_v25  ;;  %v68_v34 = vmul.f32 %v66_v26, %v49_v21  ;;  %v69_v35 = vmul.f32 %v66_v26, %v50_v22  ;;  %v70_v36 = vmul.f32 %v66_v26, %v51_v23 }
  0x24   :  { %v71_v40 = vmul.f32 %v66_v26, %v52_v24  ;;  %v72_v41 = vmul.f32 %v66_v26, %v53_v27  ;;  %v73_v42 = vmul.f32 %v66_v26, %v54_v28  ;;  %v74_v43 = vmul.f32 %v66_v26, %v55_v29 }
  0x25   :  { %v85_v44 = vrot.slane %v48_v33, %v65_v18  ;;  %v75_v45 = vmul.f32 %v66_v26, %v56_v30  ;;  %v76_v46 = vmul.f32 %v66_v26, %v57_v31  ;;  %v77_v47 = vmul.f32 %v66_v26, %v58_v32 }
  0x26   :  { %v78_v48 = vmul.f32 %v66_v26, %v59_v37  ;;  %v79_v49 = vmul.f32 %v66_v26, %v60_v38  ;;  %v80_v50 = vmul.f32 %v66_v26, %v61_v39 }
  0x27   :  { %v87_v51 = vadd.f32 %v85_v44, %v68_v34  ;;  %v88_v52 = vadd.f32 %v85_v44, %v69_v35  ;;  %v89_v53 = vadd.f32 %v85_v44, %v70_v36  ;;  %v90_v54 = vadd.f32 %v85_v44, %v71_v40 }
  0x28   :  { %v91_v55 = vadd.f32 %v85_v44, %v72_v41  ;;  %v92_v56 = vadd.f32 %v85_v44, %v73_v42  ;;  %v93_v57 = vadd.f32 %v85_v44, %v74_v43  ;;  %v94_v58 = vadd.f32 %v85_v44, %v75_v45 }
  0x29   :  { %v100_v59 = vmax.f32 %v87_v51, 0.0  ;;  %v101_v60 = vmax.f32 %v88_v52, 0.0  ;;  %v102_v61 = vmax.f32 %v89_v53, 0.0  ;;  %v103_v62 = vmax.f32 %v90_v54, 0.0 }
  0x2a   :  { %v104_v63 = vmax.f32 %v91_v55, 0.0  ;;  %v105_v0 = vmax.f32 %v92_v56, 0.0  ;;  %v106_v1 = vmax.f32 %v93_v57, 0.0  ;;  %v107_v2 = vmax.f32 %v94_v58, 0.0 }
  0x2b   :  { %v212_v3 = vpack.c.bf16 %v101_v60, %v100_v59  ;;  %v217_v4 = vpack.c.bf16 %v103_v62, %v102_v61  ;;  %v95_v5 = vadd.f32 %v85_v44, %v76_v46  ;;  %v96_v6 = vadd.f32 %v85_v44, %v77_v47 }
  0x2c   :  { %v222_v7 = vpack.c.bf16 %v105_v0, %v104_v63  ;;  %v227_v8 = vpack.c.bf16 %v107_v2, %v106_v1  ;;  %v97_v9 = vadd.f32 %v85_v44, %v78_v48  ;;  %v98_v10 = vadd.f32 %v85_v44, %v79_v49 }
  0x2d   :  { %213 = vst [vmem:[%s346_s4] sm:$0xff] %v212_v3   ;;  %239 = vst [vmem:[%s346_s4 + $0x8] sm:$0xff] %v217_v4   ;;  %v108_v11 = vmax.f32 %v95_v5, 0.0  ;;  %v109_v12 = vmax.f32 %v96_v6, 0.0  ;;  %v99_v13 = vadd.f32 %v85_v44, %v80_v50 }
  0x2e   :  { %240 = vst [vmem:[%s346_s4 + $0x10] sm:$0xff] %v222_v7   ;;  %241 = vst [vmem:[%s346_s4 + $0x18] sm:$0xff] %v227_v8   ;;  %v110_v14 = vmax.f32 %v97_v9, 0.0  ;;  %v111_v15 = vmax.f32 %v98_v10, 0.0 }
  0x2f   :  { %v232_v16 = vpack.c.bf16 %v109_v12, %v108_v11  ;;  %v112_v17 = vmax.f32 %v99_v13, 0.0 }
  0x30   :  { %v237_v18 = vpack.c.bf16 %v111_v15, %v110_v14 }
  0x31   :  { %242 = vst [vmem:[%s346_s4 + $0x20] sm:$0xff] %v232_v16   ;;  %v208_v19 = vpack.c.bf16 %v112_v17, %v112_v17 }
  0x32   :  { %243 = vst [vmem:[%s346_s4 + $0x28] sm:$0xff] %v237_v18  }
  0x33   :  { %178 = vst [vmem:[%s346_s4 + $0x30] sm:$0xf] %v208_v19 }

// kernel: qlearner_forward.13
= control target key start
LH: loop header
LB: loop body
LE: loop exit
PB: predicated region body
PF: predicated region fallthrough
CT: control target
= control target key end

     0   :  { %vm9571_vm0 = vcmask 523264   ;;  %vm12411_vm1 = vcmask 48128   ;;  %s19707_s1 = inlined_call_operand.vmem [shape: bf16[3136,1024], index: 1, kind: input, shape index: {}]   ;;  %s19708_s0 = inlined_call_operand.vmem [shape: bf16[8,3136], index: 0, kind: input, shape index: {}]   ;;  %s19709_s3 = inlined_call_operand.vmem [shape: bf16[1024,128], index: 3, kind: input, shape index: {}]   ;;  %s19710_s2 = inlined_call_operand.vmem [shape: f32[1,1024], index: 2, kind: input, shape index: {}]   ;;  %s19711_s4 = inlined_call_operand.vmem [shape: f32[1,128], index: 4, kind: input, shape index: {}]   ;;  %s19712_s5 = inlined_call_operand.vmem [shape: f32[8,6], index: 5, kind: output, shape index: {}]  }
   0x1   :  { %v34_v0 = vld [vmem:[%s19707_s1] sm:$0xff]  ;;  %v35_v2 = vld [vmem:[%s19707_s1 + $0x8] sm:$0xff] }
   0x2   :  { %v38_v1 = vld [vmem:[%s19707_s1 + $0x20] sm:$0xff]  ;;  %v39_v4 = vld [vmem:[%s19707_s1 + $0x28] sm:$0xff] }
   0x3   :  { %v12452_v3 = vcombine.high %v34_v0, %v38_v1  ;;  %v12451_v5 = vcombine.low %v34_v0, %v38_v1  ;;  %v42_v6 = vld [vmem:[%s19707_s1 + $0x40] sm:$0xff]  ;;  %v12454_v8 = vcombine.high %v35_v2, %v39_v4  ;;  %v12453_v9 = vcombine.low %v35_v2, %v39_v4  ;;  %v43_v11 = vld [vmem:[%s19707_s1 + $0x48] sm:$0xff] }
   0x4   :  { %v46_v7 = vld [vmem:[%s19707_s1 + $0x60] sm:$0xff]  ;;  %v47_v12 = vld [vmem:[%s19707_s1 + $0x68] sm:$0xff] }
   0x5   :  { %v12460_v10 = vcombine.high %v42_v6, %v46_v7  ;;  %v50_v13 = vld [vmem:[%s19707_s1 + $0x80] sm:$0xff]  ;;  %9575 = vmatprep.subr.bf16.mxu0 %v12452_v3  ;;  %v12462_v14 = vcombine.high %v43_v11, %v47_v12  ;;  %v51_v16 = vld [vmem:[%s19707_s1 + $0x88] sm:$0xff]  ;;  %10108 = vmatprep.subr.bf16.mxu1 %v12454_v8  ;;  %v12459_v18 = vcombine.low %v42_v6, %v46_v7 }
   0x6   :  { %v54_v15 = vld [vmem:[%s19707_s1 + $0xa0] sm:$0xff]  ;;  %v55_v17 = vld [vmem:[%s19707_s1 + $0xa8] sm:$0xff]  ;;  %9576 = vmatpush1.bf16.msra.mxu0 %v12451_v5  ;;  %10109 = vmatpush1.bf16.msra.mxu1 %v12453_v9  ;;  %v12461_v19 = vcombine.low %v43_v11, %v47_v12 }
   0x7   :  { %9577 = vmatprep.subr.bf16.mxu0 %v12460_v10  ;;  %v12468_v20 = vcombine.high %v50_v13, %v54_v15  ;;  %10110 = vmatprep.subr.bf16.mxu1 %v12462_v14  ;;  %v12470_v21 = vcombine.high %v51_v16, %v55_v17  ;;  %v58_v22 = vld [vmem:[%s19707_s1 + $0xc0] sm:$0xff]  ;;  %v59_v24 = vld [vmem:[%s19707_s1 + $0xc8] sm:$0xff]  ;;  %v12467_v26 = vcombine.low %v50_v13, %v54_v15 }
   0x8   :  { %v62_v23 = vld [vmem:[%s19707_s1 + $0xe0] sm:$0xff]  ;;  %v63_v25 = vld [vmem:[%s19707_s1 + $0xe8] sm:$0xff]  ;;  %v12469_v27 = vcombine.low %v51_v16, %v55_v17 }
   0x9   :  { %v12476_v28 = vcombine.high %v58_v22, %v62_v23  ;;  %v12478_v29 = vcombine.high %v59_v24, %v63_v25  ;;  %v66_v30 = vld [vmem:[%s19707_s1 + $0x100] sm:$0xff]  ;;  %v67_v32 = vld [vmem:[%s19707_s1 + $0x108] sm:$0xff]  ;;  %v12475_v34 = vcombine.low %v58_v22, %v62_v23  ;;  %v12477_v35 = vcombine.low %v59_v24, %v63_v25 }
   0xa   :  { %9578 = vmatpush1.bf16.msra.mxu0 %v12459_v18  ;;  %10111 = vmatpush1.bf16.msra.mxu1 %v12461_v19  ;;  %v70_v31 = vld [vmem:[%s19707_s1 + $0x120] sm:$0xff]  ;;  %v71_v33 = vld [vmem:[%s19707_s1 + $0x128] sm:$0xff] }
   0xb   :  { %9579 = vmatprep.subr.bf16.mxu0 %v12468_v20  ;;  %10112 = vmatprep.subr.bf16.mxu1 %v12470_v21  ;;  %v12484_v36 = vcombine.high %v66_v30, %v70_v31  ;;  %v12486_v37 = vcombine.high %v67_v32, %v71_v33  ;;  %v74_v38 = vld [vmem:[%s19707_s1 + $0x140] sm:$0xff]  ;;  %v75_v40 = vld [vmem:[%s19707_s1 + $0x148] sm:$0xff]  ;;  %v12483_v42 = vcombine.low %v66_v30, %v70_v31 }
   0xc   :  { %v78_v39 = vld [vmem:[%s19707_s1 + $0x160] sm:$0xff]  ;;  %v79_v41 = vld [vmem:[%s19707_s1 + $0x168] sm:$0xff]  ;;  %v12485_v43 = vcombine.low %v67_v32, %v71_v33 }
   0xd   :  { %v12492_v44 = vcombine.high %v74_v38, %v78_v39  ;;  %v12494_v45 = vcombine.high %v75_v40, %v79_v41  ;;  %v82_v46 = vld [vmem:[%s19707_s1 + $0x180] sm:$0xff]  ;;  %v83_v48 = vld [vmem:[%s19707_s1 + $0x188] sm:$0xff]  ;;  %v12491_v50 = vcombine.low %v74_v38, %v78_v39  ;;  %v12493_v51 = vcombine.low %v75_v40, %v79_v41 }
   0xe   :  { %9580 = vmatpush1.bf16.msra.mxu0 %v12467_v26  ;;  %10113 = vmatpush1.bf16.msra.mxu1 %v12469_v27  ;;  %v86_v47 = vld [vmem:[%s19707_s1 + $0x1a0] sm:$0xff]  ;;  %v87_v49 = vld [vmem:[%s19707_s1 + $0x1a8] sm:$0xff] }
   0xf   :  { %9581 = vmatprep.subr.bf16.mxu0 %v12476_v28  ;;  %10114 = vmatprep.subr.bf16.mxu1 %v12478_v29  ;;  %v12500_v52 = vcombine.high %v82_v46, %v86_v47  ;;  %v14589_v53 = vld [vmem:[%s19708_s0] sm:$0xff]  ;;  %v12502_v54 = vcombine.high %v83_v48, %v87_v49  ;;  %v91_v58 = vld [vmem:[%s19707_s1 + $0x1c8] sm:$0xff]  ;;  %v12499_v60 = vcombine.low %v82_v46, %v86_v47 }
  0x10   :  { %v90_v55 = vld [vmem:[%s19707_s1 + $0x1c0] sm:$0xff]  ;;  %v14599_v57 = vcombine.high %v14589_v53, %v14589_v53  ;;  %v95_v59 = vld [vmem:[%s19707_s1 + $0x1e8] sm:$0xff]  ;;  %v12501_v61 = vcombine.low %v83_v48, %v87_v49 }
  0x11   :  { %v94_v56 = vld [vmem:[%s19707_s1 + $0x1e0] sm:$0xff]  ;;  %v12510_v63 = vcombine.high %v91_v58, %v95_v59  ;;  %v99_v2 = vld [vmem:[%s19707_s1 + $0x208] sm:$0xff]  ;;  %v12509_v5 = vcombine.low %v91_v58, %v95_v59 }
  0x12   :  { %9582 = vmatpush1.bf16.msra.mxu0 %v12475_v34  ;;  %10115 = vmatpush1.bf16.msra.mxu1 %v12477_v35  ;;  %v12508_v62 = vcombine.high %v90_v55, %v94_v56  ;;  %v98_v0 = vld [vmem:[%s19707_s1 + $0x200] sm:$0xff]  ;;  %v103_v3 = vld [vmem:[%s19707_s1 + $0x228] sm:$0xff]  ;;  %v12507_v4 = vcombine.low %v90_v55, %v94_v56 }
  0x13   :  { %9583 = vmatprep.subr.bf16.mxu0 %v12484_v36  ;;  %10116 = vmatprep.subr.bf16.mxu1 %v12486_v37  ;;  %v102_v1 = vld [vmem:[%s19707_s1 + $0x220] sm:$0xff]  ;;  %v12518_v7 = vcombine.high %v99_v2, %v103_v3  ;;  %v107_v10 = vld [vmem:[%s19707_s1 + $0x248] sm:$0xff]  ;;  %v12517_v13 = vcombine.low %v99_v2, %v103_v3 }
  0x14   :  { %9607 = vmatprep.mubr.bf16.mxu0 %v14599_v57  ;;  %10140 = vmatprep.mubr.bf16.mxu1 %v14599_v57  ;;  %v12516_v6 = vcombine.high %v98_v0, %v102_v1  ;;  %v106_v8 = vld [vmem:[%s19707_s1 + $0x240] sm:$0xff]  ;;  %v111_v11 = vld [vmem:[%s19707_s1 + $0x268] sm:$0xff]  ;;  %v12515_v12 = vcombine.low %v98_v0, %v102_v1 }
  0x15   :  { %v110_v9 = vld [vmem:[%s19707_s1 + $0x260] sm:$0xff]  ;;  %v12526_v15 = vcombine.high %v107_v10, %v111_v11  ;;  %v115_v18 = vld [vmem:[%s19707_s1 + $0x288] sm:$0xff]  ;;  %v12525_v21 = vcombine.low %v107_v10, %v111_v11 }
  0x16   :  { %9584 = vmatpush1.bf16.msra.mxu0 %v12483_v42  ;;  %10117 = vmatpush1.bf16.msra.mxu1 %v12485_v43  ;;  %v12524_v14 = vcombine.high %v106_v8, %v110_v9  ;;  %v114_v16 = vld [vmem:[%s19707_s1 + $0x280] sm:$0xff]  ;;  %v119_v19 = vld [vmem:[%s19707_s1 + $0x2a8] sm:$0xff]  ;;  %v12523_v20 = vcombine.low %v106_v8, %v110_v9 }
  0x17   :  { %9585 = vmatprep.subr.bf16.mxu0 %v12492_v44  ;;  %10118 = vmatprep.subr.bf16.mxu1 %v12494_v45  ;;  %v118_v17 = vld [vmem:[%s19707_s1 + $0x2a0] sm:$0xff]  ;;  %v12534_v23 = vcombine.high %v115_v18, %v119_v19  ;;  %v123_v26 = vld [vmem:[%s19707_s1 + $0x2c8] sm:$0xff]  ;;  %v12533_v29 = vcombine.low %v115_v18, %v119_v19 }
  0x18   :  { %v12532_v22 = vcombine.high %v114_v16, %v118_v17  ;;  %v122_v24 = vld [vmem:[%s19707_s1 + $0x2c0] sm:$0xff]  ;;  %v127_v27 = vld [vmem:[%s19707_s1 + $0x2e8] sm:$0xff]  ;;  %v12531_v28 = vcombine.low %v114_v16, %v118_v17 }
  0x19   :  { %v126_v25 = vld [vmem:[%s19707_s1 + $0x2e0] sm:$0xff]  ;;  %v12542_v31 = vcombine.high %v123_v26, %v127_v27  ;;  %v131_v34 = vld [vmem:[%s19707_s1 + $0x308] sm:$0xff]  ;;  %v12541_v37 = vcombine.low %v123_v26, %v127_v27 }
  0x1a   :  { %9586 = vmatpush1.bf16.msra.mxu0 %v12491_v50  ;;  %10119 = vmatpush1.bf16.msra.mxu1 %v12493_v51  ;;  %v12540_v30 = vcombine.high %v122_v24, %v126_v25  ;;  %v130_v32 = vld [vmem:[%s19707_s1 + $0x300] sm:$0xff]  ;;  %v135_v35 = vld [vmem:[%s19707_s1 + $0x328] sm:$0xff]  ;;  %v12539_v36 = vcombine.low %v122_v24, %v126_v25 }
  0x1b   :  { %9587 = vmatprep.subr.bf16.mxu0 %v12500_v52  ;;  %10120 = vmatprep.subr.bf16.mxu1 %v12502_v54  ;;  %v134_v33 = vld [vmem:[%s19707_s1 + $0x320] sm:$0xff]  ;;  %v12550_v39 = vcombine.high %v131_v34, %v135_v35  ;;  %v139_v42 = vld [vmem:[%s19707_s1 + $0x348] sm:$0xff]  ;;  %v12549_v45 = vcombine.low %v131_v34, %v135_v35 }
  0x1c   :  { %v12548_v38 = vcombine.high %v130_v32, %v134_v33  ;;  %v138_v40 = vld [vmem:[%s19707_s1 + $0x340] sm:$0xff]  ;;  %v143_v43 = vld [vmem:[%s19707_s1 + $0x368] sm:$0xff]  ;;  %v12547_v44 = vcombine.low %v130_v32, %v134_v33 }
  0x1d   :  { %v142_v41 = vld [vmem:[%s19707_s1 + $0x360] sm:$0xff]  ;;  %v12558_v47 = vcombine.high %v139_v42, %v143_v43  ;;  %v147_v50 = vld [vmem:[%s19707_s1 + $0x388] sm:$0xff]  ;;  %v12557_v54 = vcombine.low %v139_v42, %v143_v43 }
  0x1e   :  { %9588 = vmatpush1.bf16.msra.mxu0 %v12499_v60  ;;  %10121 = vmatpush1.bf16.msra.mxu1 %v12501_v61  ;;  %v12556_v46 = vcombine.high %v138_v40, %v142_v41  ;;  %v146_v48 = vld [vmem:[%s19707_s1 + $0x380] sm:$0xff]  ;;  %v151_v51 = vld [vmem:[%s19707_s1 + $0x3a8] sm:$0xff]  ;;  %v12555_v52 = vcombine.low %v138_v40, %v142_v41 }
  0x1f   :  { %9589 = vmatprep.subr.bf16.mxu0 %v12508_v62  ;;  %10122 = vmatprep.subr.bf16.mxu1 %v12510_v63  ;;  %v150_v49 = vld [vmem:[%s19707_s1 + $0x3a0] sm:$0xff]  ;;  %v12566_v56 = vcombine.high %v147_v50, %v151_v51  ;;  %v155_v60 = vld [vmem:[%s19707_s1 + $0x3c8] sm:$0xff]  ;;  %v12565_v63 = vcombine.low %v147_v50, %v151_v51 }
  0x20   :  { %v12564_v55 = vcombine.high %v146_v48, %v150_v49  ;;  %v154_v58 = vld [vmem:[%s19707_s1 + $0x3c0] sm:$0xff]  ;;  %v159_v61 = vld [vmem:[%s19707_s1 + $0x3e8] sm:$0xff]  ;;  %v12563_v62 = vcombine.low %v146_v48, %v150_v49 }
  0x21   :  { %v158_v59 = vld [vmem:[%s19707_s1 + $0x3e0] sm:$0xff]  ;;  %v12574_v1 = vcombine.high %v155_v60, %v159_v61 }
  0x22   :  { %9590 = vmatpush1.bf16.msra.mxu0 %v12507_v4  ;;  %10123 = vmatpush1.bf16.msra.mxu1 %v12509_v5  ;;  %v12572_v0 = vcombine.high %v154_v58, %v158_v59  ;;  %v162_v2 = vld [vmem:[%s19707_s1 + $0x400] sm:$0xff]  ;;  %v163_v4 = vld [vmem:[%s19707_s1 + $0x408] sm:$0xff] }
  0x23   :  { %9591 = vmatprep.subr.bf16.mxu0 %v12516_v6  ;;  %10124 = vmatprep.subr.bf16.mxu1 %v12518_v7  ;;  %v166_v3 = vld [vmem:[%s19707_s1 + $0x420] sm:$0xff]  ;;  %v167_v5 = vld [vmem:[%s19707_s1 + $0x428] sm:$0xff]  ;;  %v12571_v6 = vcombine.low %v154_v58, %v158_v59  ;;  %v12573_v7 = vcombine.low %v155_v60, %v159_v61 }
  0x24   :  { %v12580_v8 = vcombine.high %v162_v2, %v166_v3  ;;  %v12582_v9 = vcombine.high %v163_v4, %v167_v5  ;;  %v170_v10 = vld [vmem:[%s19707_s1 + $0x440] sm:$0xff]  ;;  %v12579_v16 = vcombine.low %v162_v2, %v166_v3  ;;  %v12581_v17 = vcombine.low %v163_v4, %v167_v5 }
  0x25   :  { %v174_v11 = vld [vmem:[%s19707_s1 + $0x460] sm:$0xff] }
  0x26   :  { %9592 = vmatpush1.bf16.msra.mxu0 %v12515_v12  ;;  %10125 = vmatpush1.bf16.msra.mxu1 %v12517_v13  ;;  %v14725_v12 = vcombine.low %v14589_v53, %v14589_v53  ;;  %v171_v13 = vld [vmem:[%s19707_s1 + $0x448] sm:$0xff]  ;;  %v12588_v53 = vcombine.high %v170_v10, %v174_v11  ;;  %v178_v19 = vld [vmem:[%s19707_s1 + $0x480] sm:$0xff]  ;;  %v12587_v24 = vcombine.low %v170_v10, %v174_v11 }
  0x27   :  { %9593 = vmatprep.subr.bf16.mxu0 %v12524_v14  ;;  %10126 = vmatprep.subr.bf16.mxu1 %v12526_v15  ;;  %v175_v14 = vld [vmem:[%s19707_s1 + $0x468] sm:$0xff] }
  0x28   :  { %v14736_v15 = vld [vmem:[%s19708_s0 + $0x8] sm:$0xff]  ;;  %v12590_v18 = vcombine.high %v171_v13, %v175_v14  ;;  %v12589_v25 = vcombine.low %v171_v13, %v175_v14 }
  0x2a   :  { %9594 = vmatpush1.bf16.msra.mxu0 %v12523_v20  ;;  %10127 = vmatpush1.bf16.msra.mxu1 %v12525_v21  ;;  %v182_v20 = vld [vmem:[%s19707_s1 + $0x4a0] sm:$0xff]  ;;  %v14746_v21 = vcombine.high %v14736_v15, %v14736_v15 }
  0x2b   :  { %9595 = vmatprep.subr.bf16.mxu0 %v12532_v22  ;;  %10128 = vmatprep.subr.bf16.mxu1 %v12534_v23  ;;  %v179_v22 = vld [vmem:[%s19707_s1 + $0x488] sm:$0xff]  ;;  %v12596_v26 = vcombine.high %v178_v19, %v182_v20  ;;  %v12595_v32 = vcombine.low %v178_v19, %v182_v20 }
  0x2c   :  { %v183_v23 = vld [vmem:[%s19707_s1 + $0x4a8] sm:$0xff] }
  0x2d   :  { %v12598_v27 = vcombine.high %v179_v22, %v183_v23  ;;  %v12597_v33 = vcombine.low %v179_v22, %v183_v23 }
  0x2e   :  { %9596 = vmatpush1.bf16.msra.mxu0 %v12531_v28  ;;  %10129 = vmatpush1.bf16.msra.mxu1 %v12533_v29  ;;  %v186_v28 = vld [vmem:[%s19707_s1 + $0x4c0] sm:$0xff] }
  0x2f   :  { %9597 = vmatprep.subr.bf16.mxu0 %v12540_v30  ;;  %10130 = vmatprep.subr.bf16.mxu1 %v12542_v31  ;;  %v190_v29 = vld [vmem:[%s19707_s1 + $0x4e0] sm:$0xff]  ;;  %v187_v30 = vld [vmem:[%s19707_s1 + $0x4c8] sm:$0xff] }
  0x30   :  { %v191_v31 = vld [vmem:[%s19707_s1 + $0x4e8] sm:$0xff]  ;;  %v12604_v34 = vcombine.high %v186_v28, %v190_v29  ;;  %v12603_v40 = vcombine.low %v186_v28, %v190_v29 }
  0x31   :  { %v12606_v35 = vcombine.high %v187_v30, %v191_v31  ;;  %v12605_v41 = vcombine.low %v187_v30, %v191_v31 }
  0x32   :  { %9598 = vmatpush1.bf16.msra.mxu0 %v12539_v36  ;;  %10131 = vmatpush1.bf16.msra.mxu1 %v12541_v37  ;;  %v194_v36 = vld [vmem:[%s19707_s1 + $0x500] sm:$0xff] }
  0x33   :  { %9599 = vmatprep.subr.bf16.mxu0 %v12548_v38  ;;  %10132 = vmatprep.subr.bf16.mxu1 %v12550_v39  ;;  %v198_v37 = vld [vmem:[%s19707_s1 + $0x520] sm:$0xff]  ;;  %v195_v38 = vld [vmem:[%s19707_s1 + $0x508] sm:$0xff] }
  0x34   :  { %v199_v39 = vld [vmem:[%s19707_s1 + $0x528] sm:$0xff]  ;;  %v12612_v42 = vcombine.high %v194_v36, %v198_v37  ;;  %v12611_v48 = vcombine.low %v194_v36, %v198_v37 }
  0x35   :  { %v12614_v43 = vcombine.high %v195_v38, %v199_v39  ;;  %v12613_v49 = vcombine.low %v195_v38, %v199_v39 }
  0x36   :  { %9600 = vmatpush1.bf16.msra.mxu0 %v12547_v44  ;;  %10133 = vmatpush1.bf16.msra.mxu1 %v12549_v45  ;;  %v202_v44 = vld [vmem:[%s19707_s1 + $0x540] sm:$0xff] }
  0x37   :  { %9601 = vmatprep.subr.bf16.mxu0 %v12556_v46  ;;  %10134 = vmatprep.subr.bf16.mxu1 %v12558_v47  ;;  %v206_v45 = vld [vmem:[%s19707_s1 + $0x560] sm:$0xff]  ;;  %v203_v46 = vld [vmem:[%s19707_s1 + $0x548] sm:$0xff] }
  0x38   :  { %v207_v47 = vld [vmem:[%s19707_s1 + $0x568] sm:$0xff]  ;;  %v12620_v50 = vcombine.high %v202_v44, %v206_v45  ;;  %v12619_v58 = vcombine.low %v202_v44, %v206_v45 }
  0x39   :  { %v12622_v51 = vcombine.high %v203_v46, %v207_v47  ;;  %v12621_v59 = vcombine.low %v203_v46, %v207_v47 }
  0x3a   :  { %9602 = vmatpush1.bf16.msra.mxu0 %v12555_v52  ;;  %10135 = vmatpush1.bf16.msra.mxu1 %v12557_v54  ;;  %v210_v52 = vld [vmem:[%s19707_s1 + $0x580] sm:$0xff] }
  0x3b   :  { %9603 = vmatprep.subr.bf16.mxu0 %v12564_v55  ;;  %10136 = vmatprep.subr.bf16.mxu1 %v12566_v56  ;;  %v214_v54 = vld [vmem:[%s19707_s1 + $0x5a0] sm:$0xff]  ;;  %v211_v55 = vld [vmem:[%s19707_s1 + $0x588] sm:$0xff] }
  0x3c   :  { %v215_v56 = vld [vmem:[%s19707_s1 + $0x5a8] sm:$0xff]  ;;  %v12628_v60 = vcombine.high %v210_v52, %v214_v54  ;;  %v12627_v2 = vcombine.low %v210_v52, %v214_v54 }
  0x3d   :  { %v12630_v61 = vcombine.high %v211_v55, %v215_v56  ;;  %v12629_v3 = vcombine.low %v211_v55, %v215_v56 }
  0x3e   :  { %9604 = vmatpush1.bf16.msra.mxu0 %v12563_v62  ;;  %10137 = vmatpush1.bf16.msra.mxu1 %v12565_v63  ;;  %v218_v62 = vld [vmem:[%s19707_s1 + $0x5c0] sm:$0xff] }
  0x3f   :  { %9605 = vmatprep.subr.bf16.mxu0 %v12572_v0  ;;  %10138 = vmatprep.subr.bf16.mxu1 %v12574_v1  ;;  %v222_v63 = vld [vmem:[%s19707_s1 + $0x5e0] sm:$0xff]  ;;  %v219_v0 = vld [vmem:[%s19707_s1 + $0x5c8] sm:$0xff] }
  0x40   :  { %v223_v1 = vld [vmem:[%s19707_s1 + $0x5e8] sm:$0xff]  ;;  %v12636_v4 = vcombine.high %v218_v62, %v222_v63  ;;  %v12635_v10 = vcombine.low %v218_v62, %v222_v63 }
  0x41   :  { %v12638_v5 = vcombine.high %v219_v0, %v223_v1  ;;  %v12637_v11 = vcombine.low %v219_v0, %v223_v1 }
  0x42   :  { %9606 = vmatpush1.bf16.msra.mxu0 %v12571_v6  ;;  %10139 = vmatpush1.bf16.msra.mxu1 %v12573_v7  ;;  %v226_v6 = vld [vmem:[%s19707_s1 + $0x600] sm:$0xff] }
  0x43   :  { %9616 = vmatprep.subr.bf16.mxu0 %v12580_v8  ;;  %10149 = vmatprep.subr.bf16.mxu1 %v12582_v9  ;;  %v230_v7 = vld [vmem:[%s19707_s1 + $0x620] sm:$0xff]  ;;  %v227_v8 = vld [vmem:[%s19707_s1 + $0x608] sm:$0xff] }
  0x44   :  { %v231_v9 = vld [vmem:[%s19707_s1 + $0x628] sm:$0xff]  ;;  %v12644_v13 = vcombine.high %v226_v6, %v230_v7  ;;  %v12643_v19 = vcombine.low %v226_v6, %v230_v7 }
  0x45   :  { %9608 = vmatmul.mubr.bf16.vlgmr.msra.gmra.mrb[0].mxu0 %v14725_v12  ;;  %10141 = vmatmul.mubr.bf16.vlgmr.msra.gmra.mrb[0].mxu1 %v14725_v12  ;;  %v12646_v14 = vcombine.high %v227_v8, %v231_v9  ;;  %v12645_v20 = vcombine.low %v227_v8, %v231_v9 }
  0x46   :  { %9617 = vmatpush1.bf16.msra.mxu0 %v12579_v16  ;;  %10150 = vmatpush1.bf16.msra.mxu1 %v12581_v17  ;;  %v234_v16 = vld [vmem:[%s19707_s1 + $0x640] sm:$0xff] }
  0x47   :  { %9618 = vmatprep.subr.bf16.mxu0 %v12588_v53  ;;  %10151 = vmatprep.subr.bf16.mxu1 %v12590_v18  ;;  %v238_v17 = vld [vmem:[%s19707_s1 + $0x660] sm:$0xff]  ;;  %v235_v53 = vld [vmem:[%s19707_s1 + $0x648] sm:$0xff] }
  0x48   :  { %9648 = vmatprep.mubr.bf16.mxu0 %v14746_v21  ;;  %10181 = vmatprep.mubr.bf16.mxu1 %v14746_v21  ;;  %v239_v18 = vld [vmem:[%s19707_s1 + $0x668] sm:$0xff]  ;;  %v12652_v22 = vcombine.high %v234_v16, %v238_v17  ;;  %v12651_v28 = vcombine.low %v234_v16, %v238_v17 }
  0x49   :  { %v12654_v23 = vcombine.high %v235_v53, %v239_v18  ;;  %v12653_v29 = vcombine.low %v235_v53, %v239_v18 }
  0x4a   :  { %9619 = vmatpush1.bf16.msra.mxu0 %v12587_v24  ;;  %10152 = vmatpush1.bf16.msra.mxu1 %v12589_v25  ;;  %v242_v24 = vld [vmem:[%s19707_s1 + $0x680] sm:$0xff] }
  0x4b   :  { %9620 = vmatprep.subr.bf16.mxu0 %v12596_v26  ;;  %10153 = vmatprep.subr.bf16.mxu1 %v12598_v27  ;;  %v246_v25 = vld [vmem:[%s19707_s1 + $0x6a0] sm:$0xff]  ;;  %v243_v26 = vld [vmem:[%s19707_s1 + $0x688] sm:$0xff] }
  0x4c   :  { %v247_v27 = vld [vmem:[%s19707_s1 + $0x6a8] sm:$0xff]  ;;  %v12660_v30 = vcombine.high %v242_v24, %v246_v25  ;;  %v12659_v36 = vcombine.low %v242_v24, %v246_v25  ;;  %v14945_v25 = vld [vmem:[%s19708_s0 + $0x10] sm:$0xff] }
  0x4d   :  { %v12662_v31 = vcombine.high %v243_v26, %v247_v27  ;;  %v12661_v37 = vcombine.low %v243_v26, %v247_v27  ;;  %v303_v24 = vld [vmem:[%s19707_s1 + $0x868] sm:$0xff] }
  0x4e   :  { %9621 = vmatpush1.bf16.msra.mxu0 %v12595_v32  ;;  %10154 = vmatpush1.bf16.msra.mxu1 %v12597_v33  ;;  %v250_v32 = vld [vmem:[%s19707_s1 + $0x6c0] sm:$0xff] }
  0x4f   :  { %9622 = vmatprep.subr.bf16.mxu0 %v12604_v34  ;;  %10155 = vmatprep.subr.bf16.mxu1 %v12606_v35  ;;  %v254_v33 = vld [vmem:[%s19707_s1 + $0x6e0] sm:$0xff]  ;;  %v251_v34 = vld [vmem:[%s19707_s1 + $0x6c8] sm:$0xff] }
  0x50   :  { %v255_v35 = vld [vmem:[%s19707_s1 + $0x6e8] sm:$0xff]  ;;  %v12668_v38 = vcombine.high %v250_v32, %v254_v33  ;;  %v12667_v44 = vcombine.low %v250_v32, %v254_v33 }
  0x51   :  { %v12670_v39 = vcombine.high %v251_v34, %v255_v35  ;;  %v12669_v45 = vcombine.low %v251_v34, %v255_v35  ;;  %v307_v32 = vld [vmem:[%s19707_s1 + $0x888] sm:$0xff] }
  0x52   :  { %9623 = vmatpush1.bf16.msra.mxu0 %v12603_v40  ;;  %10156 = vmatpush1.bf16.msra.mxu1 %v12605_v41  ;;  %v258_v40 = vld [vmem:[%s19707_s1 + $0x700] sm:$0xff]  ;;  %v311_v33 = vld [vmem:[%s19707_s1 + $0x8a8] sm:$0xff] }
  0x53   :  { %9624 = vmatprep.subr.bf16.mxu0 %v12612_v42  ;;  %10157 = vmatprep.subr.bf16.mxu1 %v12614_v43  ;;  %v262_v41 = vld [vmem:[%s19707_s1 + $0x720] sm:$0xff]  ;;  %v259_v42 = vld [vmem:[%s19707_s1 + $0x708] sm:$0xff] }
  0x54   :  { %v263_v43 = vld [vmem:[%s19707_s1 + $0x728] sm:$0xff]  ;;  %v12676_v46 = vcombine.high %v258_v40, %v262_v41  ;;  %v12675_v52 = vcombine.low %v258_v40, %v262_v41 }
  0x55   :  { %v12678_v47 = vcombine.high %v259_v42, %v263_v43  ;;  %v12677_v54 = vcombine.low %v259_v42, %v263_v43  ;;  %v315_v40 = vld [vmem:[%s19707_s1 + $0x8c8] sm:$0xff]  ;;  %v12725_v43 = vcombine.low %v307_v32, %v311_v33 }
  0x56   :  { %9625 = vmatpush1.bf16.msra.mxu0 %v12611_v48  ;;  %10158 = vmatpush1.bf16.msra.mxu1 %v12613_v49  ;;  %v266_v48 = vld [vmem:[%s19707_s1 + $0x740] sm:$0xff]  ;;  %v319_v41 = vld [vmem:[%s19707_s1 + $0x8e8] sm:$0xff] }
  0x57   :  { %9626 = vmatprep.subr.bf16.mxu0 %v12620_v50  ;;  %10159 = vmatprep.subr.bf16.mxu1 %v12622_v51  ;;  %v270_v49 = vld [vmem:[%s19707_s1 + $0x760] sm:$0xff]  ;;  %v267_v50 = vld [vmem:[%s19707_s1 + $0x748] sm:$0xff] }
  0x58   :  { %v271_v51 = vld [vmem:[%s19707_s1 + $0x768] sm:$0xff]  ;;  %v12684_v55 = vcombine.high %v266_v48, %v270_v49  ;;  %v12683_v62 = vcombine.low %v266_v48, %v270_v49 }
  0x59   :  { %v12686_v56 = vcombine.high %v267_v50, %v271_v51  ;;  %v12685_v63 = vcombine.low %v267_v50, %v271_v51  ;;  %v323_v48 = vld [vmem:[%s19707_s1 + $0x908] sm:$0xff]  ;;  %v12733_v51 = vcombine.low %v315_v40, %v319_v41 }
  0x5a   :  { %9627 = vmatpush1.bf16.msra.mxu0 %v12619_v58  ;;  %10160 = vmatpush1.bf16.msra.mxu1 %v12621_v59  ;;  %v274_v58 = vld [vmem:[%s19707_s1 + $0x780] sm:$0xff]  ;;  %v327_v49 = vld [vmem:[%s19707_s1 + $0x928] sm:$0xff] }
  0x5b   :  { %9628 = vmatprep.subr.bf16.mxu0 %v12628_v60  ;;  %10161 = vmatprep.subr.bf16.mxu1 %v12630_v61  ;;  %v278_v59 = vld [vmem:[%s19707_s1 + $0x7a0] sm:$0xff]  ;;  %v275_v60 = vld [vmem:[%s19707_s1 + $0x788] sm:$0xff] }
  0x5c   :  { %v279_v61 = vld [vmem:[%s19707_s1 + $0x7a8] sm:$0xff]  ;;  %v12692_v0 = vcombine.high %v274_v58, %v278_v59  ;;  %v12691_v6 = vcombine.low %v274_v58, %v278_v59 }
  0x5d   :  { %v12694_v1 = vcombine.high %v275_v60, %v279_v61  ;;  %v12693_v7 = vcombine.low %v275_v60, %v279_v61  ;;  %v331_v58 = vld [vmem:[%s19707_s1 + $0x948] sm:$0xff]  ;;  %v12741_v61 = vcombine.low %v323_v48, %v327_v49 }
  0x5e   :  { %9629 = vmatpush1.bf16.msra.mxu0 %v12627_v2  ;;  %10162 = vmatpush1.bf16.msra.mxu1 %v12629_v3  ;;  %v282_v2 = vld [vmem:[%s19707_s1 + $0x7c0] sm:$0xff]  ;;  %v335_v59 = vld [vmem:[%s19707_s1 + $0x968] sm:$0xff] }
  0x5f   :  { %9630 = vmatprep.subr.bf16.mxu0 %v12636_v4  ;;  %10163 = vmatprep.subr.bf16.mxu1 %v12638_v5  ;;  %v286_v3 = vld [vmem:[%s19707_s1 + $0x7e0] sm:$0xff]  ;;  %v283_v4 = vld [vmem:[%s19707_s1 + $0x7c8] sm:$0xff] }
  0x60   :  { %v287_v5 = vld [vmem:[%s19707_s1 + $0x7e8] sm:$0xff]  ;;  %v12700_v8 = vcombine.high %v282_v2, %v286_v3  ;;  %v12699_v16 = vcombine.low %v282_v2, %v286_v3 }
  0x61   :  { %v12702_v9 = vcombine.high %v283_v4, %v287_v5  ;;  %v12701_v17 = vcombine.low %v283_v4, %v287_v5  ;;  %v339_v2 = vld [vmem:[%s19707_s1 + $0x988] sm:$0xff]  ;;  %v12749_v5 = vcombine.low %v331_v58, %v335_v59 }
  0x62   :  { %9631 = vmatpush1.bf16.msra.mxu0 %v12635_v10  ;;  %10164 = vmatpush1.bf16.msra.mxu1 %v12637_v11  ;;  %v290_v10 = vld [vmem:[%s19707_s1 + $0x800] sm:$0xff]  ;;  %v343_v3 = vld [vmem:[%s19707_s1 + $0x9a8] sm:$0xff] }
  0x63   :  { %9632 = vmatprep.subr.bf16.mxu0 %v12644_v13  ;;  %10165 = vmatprep.subr.bf16.mxu1 %v12646_v14  ;;  %v294_v11 = vld [vmem:[%s19707_s1 + $0x820] sm:$0xff]  ;;  %v291_v13 = vld [vmem:[%s19707_s1 + $0x808] sm:$0xff] }
  0x64   :  { %v295_v14 = vld [vmem:[%s19707_s1 + $0x828] sm:$0xff]  ;;  %v12708_v53 = vcombine.high %v290_v10, %v294_v11  ;;  %v12707_v26 = vcombine.low %v290_v10, %v294_v11 }
  0x65   :  { %v12710_v18 = vcombine.high %v291_v13, %v295_v14  ;;  %v12709_v27 = vcombine.low %v291_v13, %v295_v14  ;;  %v347_v10 = vld [vmem:[%s19707_s1 + $0x9c8] sm:$0xff]  ;;  %v12757_v14 = vcombine.low %v339_v2, %v343_v3 }
  0x66   :  { %9633 = vmatpush1.bf16.msra.mxu0 %v12643_v19  ;;  %10166 = vmatpush1.bf16.msra.mxu1 %v12645_v20  ;;  %v298_v19 = vld [vmem:[%s19707_s1 + $0x840] sm:$0xff]  ;;  %v351_v11 = vld [vmem:[%s19707_s1 + $0x9e8] sm:$0xff] }
  0x67   :  { %9634 = vmatprep.subr.bf16.mxu0 %v12652_v22  ;;  %10167 = vmatprep.subr.bf16.mxu1 %v12654_v23  ;;  %v302_v20 = vld [vmem:[%s19707_s1 + $0x860] sm:$0xff]  ;;  %v14934_v22 = vcombine.low %v14736_v15, %v14736_v15  ;;  %v299_v23 = vld [vmem:[%s19707_s1 + $0x848] sm:$0xff] }
  0x68   :  { %v12716_v15 = vcombine.high %v298_v19, %v302_v20  ;;  %v12715_v34 = vcombine.low %v298_v19, %v302_v20  ;;  %v12717_v35 = vcombine.low %v299_v23, %v303_v24  ;;  %v355_v19 = vld [vmem:[%s19707_s1 + $0xa08] sm:$0xff] }
  0x69   :  { %v359_v20 = vld [vmem:[%s19707_s1 + $0xa28] sm:$0xff] }
  0x6a   :  { %9635 = vmatpush1.bf16.msra.mxu0 %v12651_v28  ;;  %10168 = vmatpush1.bf16.msra.mxu1 %v12653_v29  ;;  %v12718_v28 = vcombine.high %v299_v23, %v303_v24  ;;  %v306_v29 = vld [vmem:[%s19707_s1 + $0x880] sm:$0xff]  ;;  %v12765_v24 = vcombine.low %v347_v10, %v351_v11 }
  0x6b   :  { %9636 = vmatprep.subr.bf16.mxu0 %v12660_v30  ;;  %10169 = vmatprep.subr.bf16.mxu1 %v12662_v31  ;;  %v310_v30 = vld [vmem:[%s19707_s1 + $0x8a0] sm:$0xff]  ;;  %v14955_v31 = vcombine.high %v14945_v25, %v14945_v25 }
  0x6c   :  { %v12723_v42 = vcombine.low %v306_v29, %v310_v30 }
  0x6e   :  { %9637 = vmatpush1.bf16.msra.mxu0 %v12659_v36  ;;  %10170 = vmatpush1.bf16.msra.mxu1 %v12661_v37  ;;  %v12724_v36 = vcombine.high %v306_v29, %v310_v30  ;;  %v12726_v37 = vcombine.high %v307_v32, %v311_v33  ;;  %v363_v29 = vld [vmem:[%s19707_s1 + $0xa48] sm:$0xff]  ;;  %v12773_v33 = vcombine.low %v355_v19, %v359_v20 }
  0x6f   :  { %9638 = vmatprep.subr.bf16.mxu0 %v12668_v38  ;;  %10171 = vmatprep.subr.bf16.mxu1 %v12670_v39  ;;  %v314_v38 = vld [vmem:[%s19707_s1 + $0x8c0] sm:$0xff]  ;;  %v367_v30 = vld [vmem:[%s19707_s1 + $0xa68] sm:$0xff] }
  0x70   :  { %v318_v39 = vld [vmem:[%s19707_s1 + $0x8e0] sm:$0xff] }
  0x71   :  { %v12731_v50 = vcombine.low %v314_v38, %v318_v39 }
  0x72   :  { %9639 = vmatpush1.bf16.msra.mxu0 %v12667_v44  ;;  %10172 = vmatpush1.bf16.msra.mxu1 %v12669_v45  ;;  %v12732_v44 = vcombine.high %v314_v38, %v318_v39  ;;  %v12734_v45 = vcombine.high %v315_v40, %v319_v41  ;;  %v371_v38 = vld [vmem:[%s19707_s1 + $0xa88] sm:$0xff]  ;;  %v12781_v41 = vcombine.low %v363_v29, %v367_v30 }
  0x73   :  { %9640 = vmatprep.subr.bf16.mxu0 %v12676_v46  ;;  %10173 = vmatprep.subr.bf16.mxu1 %v12678_v47  ;;  %v322_v46 = vld [vmem:[%s19707_s1 + $0x900] sm:$0xff]  ;;  %v375_v39 = vld [vmem:[%s19707_s1 + $0xaa8] sm:$0xff] }
  0x74   :  { %v326_v47 = vld [vmem:[%s19707_s1 + $0x920] sm:$0xff] }
  0x75   :  { %v12739_v60 = vcombine.low %v322_v46, %v326_v47 }
  0x76   :  { %9641 = vmatpush1.bf16.msra.mxu0 %v12675_v52  ;;  %10174 = vmatpush1.bf16.msra.mxu1 %v12677_v54  ;;  %v12740_v52 = vcombine.high %v322_v46, %v326_v47  ;;  %v12742_v54 = vcombine.high %v323_v48, %v327_v49  ;;  %v379_v46 = vld [vmem:[%s19707_s1 + $0xac8] sm:$0xff]  ;;  %v12789_v49 = vcombine.low %v371_v38, %v375_v39 }
  0x77   :  { %9642 = vmatprep.subr.bf16.mxu0 %v12684_v55  ;;  %10175 = vmatprep.subr.bf16.mxu1 %v12686_v56  ;;  %v330_v55 = vld [vmem:[%s19707_s1 + $0x940] sm:$0xff]  ;;  %v383_v47 = vld [vmem:[%s19707_s1 + $0xae8] sm:$0xff] }
  0x78   :  { %v334_v56 = vld [vmem:[%s19707_s1 + $0x960] sm:$0xff] }
  0x79   :  { %v12747_v4 = vcombine.low %v330_v55, %v334_v56 }
  0x7a   :  { %9643 = vmatpush1.bf16.msra.mxu0 %v12683_v62  ;;  %10176 = vmatpush1.bf16.msra.mxu1 %v12685_v63  ;;  %v12748_v62 = vcombine.high %v330_v55, %v334_v56  ;;  %v12750_v63 = vcombine.high %v331_v58, %v335_v59  ;;  %v387_v55 = vld [vmem:[%s19707_s1 + $0xb08] sm:$0xff]  ;;  %v12797_v59 = vcombine.low %v379_v46, %v383_v47 }
  0x7b   :  { %9644 = vmatprep.subr.bf16.mxu0 %v12692_v0  ;;  %10177 = vmatprep.subr.bf16.mxu1 %v12694_v1  ;;  %v338_v0 = vld [vmem:[%s19707_s1 + $0x980] sm:$0xff]  ;;  %v391_v56 = vld [vmem:[%s19707_s1 + $0xb28] sm:$0xff] }
  0x7c   :  { %v342_v1 = vld [vmem:[%s19707_s1 + $0x9a0] sm:$0xff] }
  0x7d   :  { %v12755_v13 = vcombine.low %v338_v0, %v342_v1 }
  0x7e   :  { %9645 = vmatpush1.bf16.msra.mxu0 %v12691_v6  ;;  %10178 = vmatpush1.bf16.msra.mxu1 %v12693_v7  ;;  %v12756_v6 = vcombine.high %v338_v0, %v342_v1  ;;  %v12758_v7 = vcombine.high %v339_v2, %v343_v3  ;;  %v395_v0 = vld [vmem:[%s19707_s1 + $0xb48] sm:$0xff]  ;;  %v12805_v3 = vcombine.low %v387_v55, %v391_v56 }
  0x7f   :  { %9646 = vmatprep.subr.bf16.mxu0 %v12700_v8  ;;  %10179 = vmatprep.subr.bf16.mxu1 %v12702_v9  ;;  %v346_v8 = vld [vmem:[%s19707_s1 + $0x9c0] sm:$0xff]  ;;  %v399_v1 = vld [vmem:[%s19707_s1 + $0xb68] sm:$0xff] }
  0x80   :  { %v350_v9 = vld [vmem:[%s19707_s1 + $0x9e0] sm:$0xff] }
  0x81   :  { %v12763_v23 = vcombine.low %v346_v8, %v350_v9 }
  0x82   :  { %9647 = vmatpush1.bf16.msra.mxu0 %v12699_v16  ;;  %10180 = vmatpush1.bf16.msra.mxu1 %v12701_v17  ;;  %v12764_v16 = vcombine.high %v346_v8, %v350_v9  ;;  %v12766_v17 = vcombine.high %v347_v10, %v351_v11  ;;  %v403_v8 = vld [vmem:[%s19707_s1 + $0xb88] sm:$0xff]  ;;  %v12813_v11 = vcombine.low %v395_v0, %v399_v1 }
  0x83   :  { %9657 = vmatprep.subr.bf16.mxu0 %v12708_v53  ;;  %10190 = vmatprep.subr.bf16.mxu1 %v12710_v18  ;;  %v354_v53 = vld [vmem:[%s19707_s1 + $0xa00] sm:$0xff]  ;;  %v407_v9 = vld [vmem:[%s19707_s1 + $0xba8] sm:$0xff] }
  0x84   :  { %v358_v18 = vld [vmem:[%s19707_s1 + $0xa20] sm:$0xff] }
  0x85   :  { %9649 = vmatmul.mubr.bf16.vlgmr.msra.gmra.mrb[0].mxu0 %v14934_v22  ;;  %10182 = vmatmul.mubr.bf16.vlgmr.msra.gmra.mrb[0].mxu1 %v14934_v22  ;;  %v12771_v32 = vcombine.low %v354_v53, %v358_v18 }
  0x86   :  { %9658 = vmatpush1.bf16.msra.mxu0 %v12707_v26  ;;  %10191 = vmatpush1.bf16.msra.mxu1 %v12709_v27  ;;  %v12772_v26 = vcombine.high %v354_v53, %v358_v18  ;;  %v12774_v27 = vcombine.high %v355_v19, %v359_v20  ;;  %v411_v53 = vld [vmem:[%s19707_s1 + $0xbc8] sm:$0xff]  ;;  %v12821_v20 = vcombine.low %v403_v8, %v407_v9 }
  0x87   :  { %9659 = vmatprep.subr.bf16.mxu0 %v12716_v15  ;;  %10192 = vmatprep.subr.bf16.mxu1 %v12718_v28  ;;  %v362_v15 = vld [vmem:[%s19707_s1 + $0xa40] sm:$0xff]  ;;  %v415_v18 = vld [vmem:[%s19707_s1 + $0xbe8] sm:$0xff] }
  0x88   :  { %9689 = vmatprep.mubr.bf16.mxu0 %v14955_v31  ;;  %10222 = vmatprep.mubr.bf16.mxu1 %v14955_v31  ;;  %v366_v28 = vld [vmem:[%s19707_s1 + $0xa60] sm:$0xff] }
  0x89   :  { %v12779_v40 = vcombine.low %v362_v15, %v366_v28 }
  0x8a   :  { %9660 = vmatpush1.bf16.msra.mxu0 %v12715_v34  ;;  %10193 = vmatpush1.bf16.msra.mxu1 %v12717_v35  ;;  %v12780_v34 = vcombine.high %v362_v15, %v366_v28  ;;  %v12782_v35 = vcombine.high %v363_v29, %v367_v30  ;;  %v419_v15 = vld [vmem:[%s19707_s1 + $0xc08] sm:$0xff]  ;;  %v12829_v30 = vcombine.low %v411_v53, %v415_v18 }
  0x8b   :  { %9661 = vmatprep.subr.bf16.mxu0 %v12724_v36  ;;  %10194 = vmatprep.subr.bf16.mxu1 %v12726_v37  ;;  %v370_v36 = vld [vmem:[%s19707_s1 + $0xa80] sm:$0xff]  ;;  %v423_v28 = vld [vmem:[%s19707_s1 + $0xc28] sm:$0xff] }
  0x8c   :  { %v374_v37 = vld [vmem:[%s19707_s1 + $0xaa0] sm:$0xff] }
  0x8d   :  { %v12787_v48 = vcombine.low %v370_v36, %v374_v37 }
  0x8e   :  { %9662 = vmatpush1.bf16.msra.mxu0 %v12723_v42  ;;  %10195 = vmatpush1.bf16.msra.mxu1 %v12725_v43  ;;  %v12788_v42 = vcombine.high %v370_v36, %v374_v37  ;;  %v12790_v43 = vcombine.high %v371_v38, %v375_v39  ;;  %v15143_v36 = vcombine.low %v14945_v25, %v14945_v25  ;;  %v427_v37 = vld [vmem:[%s19707_s1 + $0xc48] sm:$0xff]  ;;  %v15154_v39 = vld [vmem:[%s19708_s0 + $0x18] sm:$0xff] }
  0x8f   :  { %9663 = vmatprep.subr.bf16.mxu0 %v12732_v44  ;;  %10196 = vmatprep.subr.bf16.mxu1 %v12734_v45  ;;  %v378_v44 = vld [vmem:[%s19707_s1 + $0xac0] sm:$0xff]  ;;  %v431_v38 = vld [vmem:[%s19707_s1 + $0xc68] sm:$0xff] }
  0x90   :  { %v382_v45 = vld [vmem:[%s19707_s1 + $0xae0] sm:$0xff] }
  0x91   :  { %v12795_v58 = vcombine.low %v378_v44, %v382_v45 }
  0x92   :  { %9664 = vmatpush1.bf16.msra.mxu0 %v12731_v50  ;;  %10197 = vmatpush1.bf16.msra.mxu1 %v12733_v51  ;;  %v12796_v50 = vcombine.high %v378_v44, %v382_v45  ;;  %v12798_v51 = vcombine.high %v379_v46, %v383_v47  ;;  %v438_v44 = vld [vmem:[%s19707_s1 + $0xca0] sm:$0xff]  ;;  %v15164_v45 = vcombine.high %v15154_v39, %v15154_v39  ;;  %v435_v46 = vld [vmem:[%s19707_s1 + $0xc88] sm:$0xff] }
  0x93   :  { %9665 = vmatprep.subr.bf16.mxu0 %v12740_v52  ;;  %10198 = vmatprep.subr.bf16.mxu1 %v12742_v54  ;;  %v386_v52 = vld [vmem:[%s19707_s1 + $0xb00] sm:$0xff]  ;;  %v439_v47 = vld [vmem:[%s19707_s1 + $0xca8] sm:$0xff] }
  0x94   :  { %v390_v54 = vld [vmem:[%s19707_s1 + $0xb20] sm:$0xff] }
  0x95   :  { %v12803_v2 = vcombine.low %v386_v52, %v390_v54 }
  0x96   :  { %9666 = vmatpush1.bf16.msra.mxu0 %v12739_v60  ;;  %10199 = vmatpush1.bf16.msra.mxu1 %v12741_v61  ;;  %v12804_v60 = vcombine.high %v386_v52, %v390_v54  ;;  %v12806_v61 = vcombine.high %v387_v55, %v391_v56  ;;  %v442_v52 = vld [vmem:[%s19707_s1 + $0xcc0] sm:$0xff]  ;;  %v443_v55 = vld [vmem:[%s19707_s1 + $0xcc8] sm:$0xff] }
  0x97   :  { %9667 = vmatprep.subr.bf16.mxu0 %v12748_v62  ;;  %10200 = vmatprep.subr.bf16.mxu1 %v12750_v63  ;;  %v394_v62 = vld [vmem:[%s19707_s1 + $0xb40] sm:$0xff]  ;;  %v447_v56 = vld [vmem:[%s19707_s1 + $0xce8] sm:$0xff] }
  0x98   :  { %v398_v63 = vld [vmem:[%s19707_s1 + $0xb60] sm:$0xff] }
  0x99   :  { %v12811_v10 = vcombine.low %v394_v62, %v398_v63  ;;  %v446_v54 = vld [vmem:[%s19707_s1 + $0xce0] sm:$0xff] }
  0x9a   :  { %9668 = vmatpush1.bf16.msra.mxu0 %v12747_v4  ;;  %10201 = vmatpush1.bf16.msra.mxu1 %v12749_v5  ;;  %v12812_v4 = vcombine.high %v394_v62, %v398_v63  ;;  %v12814_v5 = vcombine.high %v395_v0, %v399_v1  ;;  %v450_v62 = vld [vmem:[%s19707_s1 + $0xd00] sm:$0xff]  ;;  %v451_v0 = vld [vmem:[%s19707_s1 + $0xd08] sm:$0xff] }
  0x9b   :  { %9669 = vmatprep.subr.bf16.mxu0 %v12756_v6  ;;  %10202 = vmatprep.subr.bf16.mxu1 %v12758_v7  ;;  %v402_v6 = vld [vmem:[%s19707_s1 + $0xb80] sm:$0xff]  ;;  %v455_v1 = vld [vmem:[%s19707_s1 + $0xd28] sm:$0xff] }
  0x9c   :  { %v406_v7 = vld [vmem:[%s19707_s1 + $0xba0] sm:$0xff] }
  0x9d   :  { %v12819_v19 = vcombine.low %v402_v6, %v406_v7  ;;  %v454_v63 = vld [vmem:[%s19707_s1 + $0xd20] sm:$0xff] }
  0x9e   :  { %9670 = vmatpush1.bf16.msra.mxu0 %v12755_v13  ;;  %10203 = vmatpush1.bf16.msra.mxu1 %v12757_v14  ;;  %v12820_v13 = vcombine.high %v402_v6, %v406_v7  ;;  %v12822_v14 = vcombine.high %v403_v8, %v407_v9  ;;  %v458_v6 = vld [vmem:[%s19707_s1 + $0xd40] sm:$0xff]  ;;  %v459_v8 = vld [vmem:[%s19707_s1 + $0xd48] sm:$0xff] }
  0x9f   :  { %9671 = vmatprep.subr.bf16.mxu0 %v12764_v16  ;;  %10204 = vmatprep.subr.bf16.mxu1 %v12766_v17  ;;  %v410_v16 = vld [vmem:[%s19707_s1 + $0xbc0] sm:$0xff]  ;;  %v463_v9 = vld [vmem:[%s19707_s1 + $0xd68] sm:$0xff] }
  0xa0   :  { %v414_v17 = vld [vmem:[%s19707_s1 + $0xbe0] sm:$0xff] }
  0xa1   :  { %v12827_v29 = vcombine.low %v410_v16, %v414_v17  ;;  %v462_v7 = vld [vmem:[%s19707_s1 + $0xd60] sm:$0xff] }
  0xa2   :  { %9672 = vmatpush1.bf16.msra.mxu0 %v12763_v23  ;;  %10205 = vmatpush1.bf16.msra.mxu1 %v12765_v24  ;;  %v12828_v23 = vcombine.high %v410_v16, %v414_v17  ;;  %v12830_v24 = vcombine.high %v411_v53, %v415_v18  ;;  %v466_v16 = vld [vmem:[%s19707_s1 + $0xd80] sm:$0xff]  ;;  %v467_v53 = vld [vmem:[%s19707_s1 + $0xd88] sm:$0xff] }
  0xa3   :  { %9673 = vmatprep.subr.bf16.mxu0 %v12772_v26  ;;  %10206 = vmatprep.subr.bf16.mxu1 %v12774_v27  ;;  %v418_v26 = vld [vmem:[%s19707_s1 + $0xc00] sm:$0xff]  ;;  %v471_v18 = vld [vmem:[%s19707_s1 + $0xda8] sm:$0xff] }
  0xa4   :  { %v422_v27 = vld [vmem:[%s19707_s1 + $0xc20] sm:$0xff] }
  0xa5   :  { %v470_v17 = vld [vmem:[%s19707_s1 + $0xda0] sm:$0xff] }
  0xa6   :  { %9674 = vmatpush1.bf16.msra.mxu0 %v12771_v32  ;;  %10207 = vmatpush1.bf16.msra.mxu1 %v12773_v33  ;;  %v12836_v32 = vcombine.high %v418_v26, %v422_v27  ;;  %v12838_v33 = vcombine.high %v419_v15, %v423_v28 }
  0xa7   :  { %9675 = vmatprep.subr.bf16.mxu0 %v12780_v34  ;;  %10208 = vmatprep.subr.bf16.mxu1 %v12782_v35  ;;  %v426_v34 = vld [vmem:[%s19707_s1 + $0xc40] sm:$0xff] }
  0xa8   :  { %v430_v35 = vld [vmem:[%s19707_s1 + $0xc60] sm:$0xff] }
  0xa9   :  { %v12844_v25 = vcombine.high %v426_v34, %v430_v35 }
  0xaa   :  { %9676 = vmatpush1.bf16.msra.mxu0 %v12779_v40  ;;  %10209 = vmatpush1.bf16.msra.mxu1 %v12781_v41  ;;  %v12835_v40 = vcombine.low %v418_v26, %v422_v27  ;;  %v12837_v41 = vcombine.low %v419_v15, %v423_v28  ;;  %v474_v26 = vld [vmem:[%s19707_s1 + $0xdc0] sm:$0xff]  ;;  %v475_v15 = vld [vmem:[%s19707_s1 + $0xdc8] sm:$0xff] }
  0xab   :  { %9677 = vmatprep.subr.bf16.mxu0 %v12788_v42  ;;  %10210 = vmatprep.subr.bf16.mxu1 %v12790_v43  ;;  %v12846_v42 = vcombine.high %v427_v37, %v431_v38  ;;  %v434_v43 = vld [vmem:[%s19707_s1 + $0xc80] sm:$0xff]  ;;  %v479_v28 = vld [vmem:[%s19707_s1 + $0xde8] sm:$0xff] }
  0xac   :  { %v478_v27 = vld [vmem:[%s19707_s1 + $0xde0] sm:$0xff] }
  0xae   :  { %9678 = vmatpush1.bf16.msra.mxu0 %v12787_v48  ;;  %10211 = vmatpush1.bf16.msra.mxu1 %v12789_v49  ;;  %v12843_v48 = vcombine.low %v426_v34, %v430_v35  ;;  %v12845_v49 = vcombine.low %v427_v37, %v431_v38  ;;  %v482_v34 = vld [vmem:[%s19707_s1 + $0xe00] sm:$0xff]  ;;  %v483_v37 = vld [vmem:[%s19707_s1 + $0xe08] sm:$0xff] }
  0xaf   :  { %9679 = vmatprep.subr.bf16.mxu0 %v12796_v50  ;;  %10212 = vmatprep.subr.bf16.mxu1 %v12798_v51  ;;  %v12852_v50 = vcombine.high %v434_v43, %v438_v44  ;;  %v12854_v51 = vcombine.high %v435_v46, %v439_v47  ;;  %v486_v35 = vld [vmem:[%s19707_s1 + $0xe20] sm:$0xff]  ;;  %v487_v38 = vld [vmem:[%s19707_s1 + $0xe28] sm:$0xff] }
  0xb2   :  { %9680 = vmatpush1.bf16.msra.mxu0 %v12795_v58  ;;  %10213 = vmatpush1.bf16.msra.mxu1 %v12797_v59  ;;  %v12851_v58 = vcombine.low %v434_v43, %v438_v44  ;;  %v12853_v59 = vcombine.low %v435_v46, %v439_v47  ;;  %v490_v43 = vld [vmem:[%s19707_s1 + $0xe40] sm:$0xff]  ;;  %v491_v46 = vld [vmem:[%s19707_s1 + $0xe48] sm:$0xff] }
  0xb3   :  { %9681 = vmatprep.subr.bf16.mxu0 %v12804_v60  ;;  %10214 = vmatprep.subr.bf16.mxu1 %v12806_v61  ;;  %v12860_v60 = vcombine.high %v442_v52, %v446_v54  ;;  %v12862_v61 = vcombine.high %v443_v55, %v447_v56  ;;  %v494_v44 = vld [vmem:[%s19707_s1 + $0xe60] sm:$0xff]  ;;  %v495_v47 = vld [vmem:[%s19707_s1 + $0xe68] sm:$0xff] }
  0xb6   :  { %9682 = vmatpush1.bf16.msra.mxu0 %v12803_v2  ;;  %10215 = vmatpush1.bf16.msra.mxu1 %v12805_v3  ;;  %v12859_v2 = vcombine.low %v442_v52, %v446_v54  ;;  %v12861_v3 = vcombine.low %v443_v55, %v447_v56  ;;  %v498_v52 = vld [vmem:[%s19707_s1 + $0xe80] sm:$0xff]  ;;  %v499_v55 = vld [vmem:[%s19707_s1 + $0xe88] sm:$0xff] }
  0xb7   :  { %9683 = vmatprep.subr.bf16.mxu0 %v12812_v4  ;;  %10216 = vmatprep.subr.bf16.mxu1 %v12814_v5  ;;  %v12868_v4 = vcombine.high %v450_v62, %v454_v63  ;;  %v12870_v5 = vcombine.high %v451_v0, %v455_v1  ;;  %v502_v54 = vld [vmem:[%s19707_s1 + $0xea0] sm:$0xff]  ;;  %v503_v56 = vld [vmem:[%s19707_s1 + $0xea8] sm:$0xff] }
  0xba   :  { %9684 = vmatpush1.bf16.msra.mxu0 %v12811_v10  ;;  %10217 = vmatpush1.bf16.msra.mxu1 %v12813_v11  ;;  %v12867_v10 = vcombine.low %v450_v62, %v454_v63  ;;  %v12869_v11 = vcombine.low %v451_v0, %v455_v1  ;;  %v506_v62 = vld [vmem:[%s19707_s1 + $0xec0] sm:$0xff]  ;;  %v507_v0 = vld [vmem:[%s19707_s1 + $0xec8] sm:$0xff] }
  0xbb   :  { %9685 = vmatprep.subr.bf16.mxu0 %v12820_v13  ;;  %10218 = vmatprep.subr.bf16.mxu1 %v12822_v14  ;;  %v12876_v13 = vcombine.high %v458_v6, %v462_v7  ;;  %v12878_v14 = vcombine.high %v459_v8, %v463_v9  ;;  %v510_v63 = vld [vmem:[%s19707_s1 + $0xee0] sm:$0xff]  ;;  %v511_v1 = vld [vmem:[%s19707_s1 + $0xee8] sm:$0xff] }
  0xbe   :  { %9686 = vmatpush1.bf16.msra.mxu0 %v12819_v19  ;;  %10219 = vmatpush1.bf16.msra.mxu1 %v12821_v20  ;;  %v12875_v19 = vcombine.low %v458_v6, %v462_v7  ;;  %v12877_v20 = vcombine.low %v459_v8, %v463_v9  ;;  %v514_v6 = vld [vmem:[%s19707_s1 + $0xf00] sm:$0xff]  ;;  %v515_v8 = vld [vmem:[%s19707_s1 + $0xf08] sm:$0xff] }
  0xbf   :  { %9687 = vmatprep.subr.bf16.mxu0 %v12828_v23  ;;  %10220 = vmatprep.subr.bf16.mxu1 %v12830_v24  ;;  %v12884_v23 = vcombine.high %v466_v16, %v470_v17  ;;  %v12886_v24 = vcombine.high %v467_v53, %v471_v18  ;;  %v518_v7 = vld [vmem:[%s19707_s1 + $0xf20] sm:$0xff]  ;;  %v519_v9 = vld [vmem:[%s19707_s1 + $0xf28] sm:$0xff] }
  0xc2   :  { %9688 = vmatpush1.bf16.msra.mxu0 %v12827_v29  ;;  %10221 = vmatpush1.bf16.msra.mxu1 %v12829_v30  ;;  %v12883_v29 = vcombine.low %v466_v16, %v470_v17  ;;  %v12885_v30 = vcombine.low %v467_v53, %v471_v18  ;;  %v522_v16 = vld [vmem:[%s19707_s1 + $0xf40] sm:$0xff]  ;;  %v523_v53 = vld [vmem:[%s19707_s1 + $0xf48] sm:$0xff] }
  0xc3   :  { %9698 = vmatprep.subr.bf16.mxu0 %v12836_v32  ;;  %10231 = vmatprep.subr.bf16.mxu1 %v12838_v33  ;;  %v12892_v32 = vcombine.high %v474_v26, %v478_v27  ;;  %v12894_v33 = vcombine.high %v475_v15, %v479_v28  ;;  %v526_v17 = vld [vmem:[%s19707_s1 + $0xf60] sm:$0xff]  ;;  %v527_v18 = vld [vmem:[%s19707_s1 + $0xf68] sm:$0xff] }
  0xc5   :  { %9690 = vmatmul.mubr.bf16.vlgmr.msra.gmra.mrb[0].mxu0 %v15143_v36  ;;  %10223 = vmatmul.mubr.bf16.vlgmr.msra.gmra.mrb[0].mxu1 %v15143_v36 }
  0xc6   :  { %9699 = vmatpush1.bf16.msra.mxu0 %v12835_v40  ;;  %10232 = vmatpush1.bf16.msra.mxu1 %v12837_v41  ;;  %v12891_v40 = vcombine.low %v474_v26, %v478_v27  ;;  %v12893_v41 = vcombine.low %v475_v15, %v479_v28  ;;  %v530_v26 = vld [vmem:[%s19707_s1 + $0xf80] sm:$0xff]  ;;  %v531_v15 = vld [vmem:[%s19707_s1 + $0xf88] sm:$0xff] }
  0xc7   :  { %9700 = vmatprep.subr.bf16.mxu0 %v12844_v25  ;;  %10233 = vmatprep.subr.bf16.mxu1 %v12846_v42  ;;  %v12900_v25 = vcombine.high %v482_v34, %v486_v35  ;;  %v12902_v42 = vcombine.high %v483_v37, %v487_v38  ;;  %v534_v27 = vld [vmem:[%s19707_s1 + $0xfa0] sm:$0xff]  ;;  %v535_v28 = vld [vmem:[%s19707_s1 + $0xfa8] sm:$0xff] }
  0xc8   :  { %9730 = vmatprep.mubr.bf16.mxu0 %v15164_v45  ;;  %10263 = vmatprep.mubr.bf16.mxu1 %v15164_v45 }
  0xca   :  { %9701 = vmatpush1.bf16.msra.mxu0 %v12843_v48  ;;  %10234 = vmatpush1.bf16.msra.mxu1 %v12845_v49  ;;  %v12899_v48 = vcombine.low %v482_v34, %v486_v35  ;;  %v12901_v49 = vcombine.low %v483_v37, %v487_v38  ;;  %v538_v34 = vld [vmem:[%s19707_s1 + $0xfc0] sm:$0xff]  ;;  %v539_v37 = vld [vmem:[%s19707_s1 + $0xfc8] sm:$0xff] }
  0xcb   :  { %9702 = vmatprep.subr.bf16.mxu0 %v12852_v50  ;;  %10235 = vmatprep.subr.bf16.mxu1 %v12854_v51  ;;  %v12908_v50 = vcombine.high %v490_v43, %v494_v44  ;;  %v12910_v51 = vcombine.high %v491_v46, %v495_v47  ;;  %v542_v35 = vld [vmem:[%s19707_s1 + $0xfe0] sm:$0xff]  ;;  %v543_v38 = vld [vmem:[%s19707_s1 + $0xfe8] sm:$0xff] }
  0xce   :  { %9703 = vmatpush1.bf16.msra.mxu0 %v12851_v58  ;;  %10236 = vmatpush1.bf16.msra.mxu1 %v12853_v59  ;;  %v12907_v58 = vcombine.low %v490_v43, %v494_v44  ;;  %v12909_v59 = vcombine.low %v491_v46, %v495_v47  ;;  %v546_v43 = vld [vmem:[%s19707_s1 + $0x1000] sm:$0xff]  ;;  %v547_v46 = vld [vmem:[%s19707_s1 + $0x1008] sm:$0xff] }
  0xcf   :  { %9704 = vmatprep.subr.bf16.mxu0 %v12860_v60  ;;  %10237 = vmatprep.subr.bf16.mxu1 %v12862_v61  ;;  %v12916_v60 = vcombine.high %v498_v52, %v502_v54  ;;  %v12918_v61 = vcombine.high %v499_v55, %v503_v56  ;;  %v550_v44 = vld [vmem:[%s19707_s1 + $0x1020] sm:$0xff]  ;;  %v551_v47 = vld [vmem:[%s19707_s1 + $0x1028] sm:$0xff] }
  0xd2   :  { %9705 = vmatpush1.bf16.msra.mxu0 %v12859_v2  ;;  %10238 = vmatpush1.bf16.msra.mxu1 %v12861_v3  ;;  %v12915_v2 = vcombine.low %v498_v52, %v502_v54  ;;  %v12917_v3 = vcombine.low %v499_v55, %v503_v56  ;;  %v554_v52 = vld [vmem:[%s19707_s1 + $0x1040] sm:$0xff]  ;;  %v15352_v55 = vcombine.low %v15154_v39, %v15154_v39  ;;  %v555_v56 = vld [vmem:[%s19707_s1 + $0x1048] sm:$0xff] }
  0xd3   :  { %9706 = vmatprep.subr.bf16.mxu0 %v12868_v4  ;;  %10239 = vmatprep.subr.bf16.mxu1 %v12870_v5  ;;  %v12924_v4 = vcombine.high %v506_v62, %v510_v63  ;;  %v12926_v5 = vcombine.high %v507_v0, %v511_v1  ;;  %v558_v54 = vld [vmem:[%s19707_s1 + $0x1060] sm:$0xff] }
  0xd4   :  { %v12972_v39 = vcombine.high %v554_v52, %v558_v54 }
  0xd6   :  { %9707 = vmatpush1.bf16.msra.mxu0 %v12867_v10  ;;  %10240 = vmatpush1.bf16.msra.mxu1 %v12869_v11  ;;  %v12923_v10 = vcombine.low %v506_v62, %v510_v63  ;;  %v12925_v11 = vcombine.low %v507_v0, %v511_v1  ;;  %v562_v63 = vld [vmem:[%s19707_s1 + $0x1080] sm:$0xff] }
  0xd7   :  { %9708 = vmatprep.subr.bf16.mxu0 %v12876_v13  ;;  %10241 = vmatprep.subr.bf16.mxu1 %v12878_v14  ;;  %v12932_v13 = vcombine.high %v514_v6, %v518_v7  ;;  %v12934_v14 = vcombine.high %v515_v8, %v519_v9  ;;  %v566_v0 = vld [vmem:[%s19707_s1 + $0x10a0] sm:$0xff] }
  0xda   :  { %9709 = vmatpush1.bf16.msra.mxu0 %v12875_v19  ;;  %10242 = vmatpush1.bf16.msra.mxu1 %v12877_v20  ;;  %v12931_v19 = vcombine.low %v514_v6, %v518_v7  ;;  %v12933_v20 = vcombine.low %v515_v8, %v519_v9  ;;  %v12980_v6 = vcombine.high %v562_v63, %v566_v0  ;;  %v570_v8 = vld [vmem:[%s19707_s1 + $0x10c0] sm:$0xff] }
  0xdb   :  { %9710 = vmatprep.subr.bf16.mxu0 %v12884_v23  ;;  %10243 = vmatprep.subr.bf16.mxu1 %v12886_v24  ;;  %v12940_v23 = vcombine.high %v522_v16, %v526_v17  ;;  %v12942_v24 = vcombine.high %v523_v53, %v527_v18  ;;  %v574_v9 = vld [vmem:[%s19707_s1 + $0x10e0] sm:$0xff] }
  0xde   :  { %9711 = vmatpush1.bf16.msra.mxu0 %v12883_v29  ;;  %10244 = vmatpush1.bf16.msra.mxu1 %v12885_v30  ;;  %v12939_v29 = vcombine.low %v522_v16, %v526_v17  ;;  %v12941_v30 = vcombine.low %v523_v53, %v527_v18  ;;  %v12988_v16 = vcombine.high %v570_v8, %v574_v9  ;;  %v578_v53 = vld [vmem:[%s19707_s1 + $0x1100] sm:$0xff] }
  0xdf   :  { %9712 = vmatprep.subr.bf16.mxu0 %v12892_v32  ;;  %10245 = vmatprep.subr.bf16.mxu1 %v12894_v33  ;;  %v12948_v32 = vcombine.high %v530_v26, %v534_v27  ;;  %v12950_v33 = vcombine.high %v531_v15, %v535_v28  ;;  %v582_v18 = vld [vmem:[%s19707_s1 + $0x1120] sm:$0xff] }
  0xe2   :  { %9713 = vmatpush1.bf16.msra.mxu0 %v12891_v40  ;;  %10246 = vmatpush1.bf16.msra.mxu1 %v12893_v41  ;;  %v12947_v40 = vcombine.low %v530_v26, %v534_v27  ;;  %v12949_v41 = vcombine.low %v531_v15, %v535_v28  ;;  %v12996_v26 = vcombine.high %v578_v53, %v582_v18  ;;  %v586_v15 = vld [vmem:[%s19707_s1 + $0x1140] sm:$0xff] }
  0xe3   :  { %9714 = vmatprep.subr.bf16.mxu0 %v12900_v25  ;;  %10247 = vmatprep.subr.bf16.mxu1 %v12902_v42  ;;  %v12956_v25 = vcombine.high %v538_v34, %v542_v35  ;;  %v12958_v42 = vcombine.high %v539_v37, %v543_v38  ;;  %v590_v28 = vld [vmem:[%s19707_s1 + $0x1160] sm:$0xff] }
  0xe6   :  { %9715 = vmatpush1.bf16.msra.mxu0 %v12899_v48  ;;  %10248 = vmatpush1.bf16.msra.mxu1 %v12901_v49  ;;  %v12955_v48 = vcombine.low %v538_v34, %v542_v35  ;;  %v12957_v49 = vcombine.low %v539_v37, %v543_v38  ;;  %v13004_v34 = vcombine.high %v586_v15, %v590_v28  ;;  %v594_v37 = vld [vmem:[%s19707_s1 + $0x1180] sm:$0xff] }
  0xe7   :  { %9716 = vmatprep.subr.bf16.mxu0 %v12908_v50  ;;  %10249 = vmatprep.subr.bf16.mxu1 %v12910_v51  ;;  %v12964_v50 = vcombine.high %v546_v43, %v550_v44  ;;  %v12966_v51 = vcombine.high %v547_v46, %v551_v47  ;;  %v598_v38 = vld [vmem:[%s19707_s1 + $0x11a0] sm:$0xff] }
  0xea   :  { %9717 = vmatpush1.bf16.msra.mxu0 %v12907_v58  ;;  %10250 = vmatpush1.bf16.msra.mxu1 %v12909_v59  ;;  %v559_v58 = vld [vmem:[%s19707_s1 + $0x1068] sm:$0xff]  ;;  %v15363_v59 = vld [vmem:[%s19708_s0 + $0x20] sm:$0xff] }
  0xeb   :  { %9718 = vmatprep.subr.bf16.mxu0 %v12916_v60  ;;  %10251 = vmatprep.subr.bf16.mxu1 %v12918_v61  ;;  %v12963_v60 = vcombine.low %v546_v43, %v550_v44  ;;  %v12965_v61 = vcombine.low %v547_v46, %v551_v47  ;;  %v12974_v62 = vcombine.high %v555_v56, %v559_v58  ;;  %v602_v46 = vld [vmem:[%s19707_s1 + $0x11c0] sm:$0xff] }
  0xec   :  { %v15373_v1 = vcombine.high %v15363_v59, %v15363_v59  ;;  %v13012_v43 = vcombine.high %v594_v37, %v598_v38  ;;  %v606_v47 = vld [vmem:[%s19707_s1 + $0x11e0] sm:$0xff] }
  0xee   :  { %9719 = vmatpush1.bf16.msra.mxu0 %v12915_v2  ;;  %10252 = vmatpush1.bf16.msra.mxu1 %v12917_v3  ;;  %v563_v2 = vld [vmem:[%s19707_s1 + $0x1088] sm:$0xff] }
  0xef   :  { %9720 = vmatprep.subr.bf16.mxu0 %v12924_v4  ;;  %10253 = vmatprep.subr.bf16.mxu1 %v12926_v5  ;;  %v567_v3 = vld [vmem:[%s19707_s1 + $0x10a8] sm:$0xff]  ;;  %v12971_v4 = vcombine.low %v554_v52, %v558_v54  ;;  %v12973_v5 = vcombine.low %v555_v56, %v559_v58  ;;  %v13020_v52 = vcombine.high %v602_v46, %v606_v47  ;;  %v610_v56 = vld [vmem:[%s19707_s1 + $0x1200] sm:$0xff] }
  0xf0   :  { %v12982_v7 = vcombine.high %v563_v2, %v567_v3  ;;  %v614_v58 = vld [vmem:[%s19707_s1 + $0x1220] sm:$0xff] }
  0xf2   :  { %9721 = vmatpush1.bf16.msra.mxu0 %v12923_v10  ;;  %10254 = vmatpush1.bf16.msra.mxu1 %v12925_v11  ;;  %v571_v10 = vld [vmem:[%s19707_s1 + $0x10c8] sm:$0xff] }
  0xf3   :  { %9722 = vmatprep.subr.bf16.mxu0 %v12932_v13  ;;  %10255 = vmatprep.subr.bf16.mxu1 %v12934_v14  ;;  %v575_v11 = vld [vmem:[%s19707_s1 + $0x10e8] sm:$0xff]  ;;  %v12979_v13 = vcombine.low %v562_v63, %v566_v0  ;;  %v12981_v14 = vcombine.low %v563_v2, %v567_v3  ;;  %v13028_v63 = vcombine.high %v610_v56, %v614_v58  ;;  %v618_v2 = vld [vmem:[%s19707_s1 + $0x1240] sm:$0xff] }
  0xf4   :  { %v12990_v17 = vcombine.high %v571_v10, %v575_v11  ;;  %v622_v3 = vld [vmem:[%s19707_s1 + $0x1260] sm:$0xff] }
  0xf6   :  { %9723 = vmatpush1.bf16.msra.mxu0 %v12931_v19  ;;  %10256 = vmatpush1.bf16.msra.mxu1 %v12933_v20  ;;  %v579_v19 = vld [vmem:[%s19707_s1 + $0x1108] sm:$0xff] }
  0xf7   :  { %9724 = vmatprep.subr.bf16.mxu0 %v12940_v23  ;;  %10257 = vmatprep.subr.bf16.mxu1 %v12942_v24  ;;  %v583_v20 = vld [vmem:[%s19707_s1 + $0x1128] sm:$0xff]  ;;  %v12987_v23 = vcombine.low %v570_v8, %v574_v9  ;;  %v12989_v24 = vcombine.low %v571_v10, %v575_v11  ;;  %v13036_v8 = vcombine.high %v618_v2, %v622_v3  ;;  %v626_v10 = vld [vmem:[%s19707_s1 + $0x1280] sm:$0xff] }
  0xf8   :  { %v12998_v27 = vcombine.high %v579_v19, %v583_v20  ;;  %v630_v11 = vld [vmem:[%s19707_s1 + $0x12a0] sm:$0xff] }
  0xfa   :  { %9725 = vmatpush1.bf16.msra.mxu0 %v12939_v29  ;;  %10258 = vmatpush1.bf16.msra.mxu1 %v12941_v30  ;;  %v587_v29 = vld [vmem:[%s19707_s1 + $0x1148] sm:$0xff] }
  0xfb   :  { %9726 = vmatprep.subr.bf16.mxu0 %v12948_v32  ;;  %10259 = vmatprep.subr.bf16.mxu1 %v12950_v33  ;;  %v591_v30 = vld [vmem:[%s19707_s1 + $0x1168] sm:$0xff]  ;;  %v12995_v32 = vcombine.low %v578_v53, %v582_v18  ;;  %v12997_v33 = vcombine.low %v579_v19, %v583_v20  ;;  %v13044_v53 = vcombine.high %v626_v10, %v630_v11  ;;  %v634_v19 = vld [vmem:[%s19707_s1 + $0x12c0] sm:$0xff] }
  0xfc   :  { %v13006_v35 = vcombine.high %v587_v29, %v591_v30  ;;  %v638_v20 = vld [vmem:[%s19707_s1 + $0x12e0] sm:$0xff] }
  0xfe   :  { %9727 = vmatpush1.bf16.msra.mxu0 %v12947_v40  ;;  %10260 = vmatpush1.bf16.msra.mxu1 %v12949_v41  ;;  %v595_v40 = vld [vmem:[%s19707_s1 + $0x1188] sm:$0xff] }
  0xff   :  { %9728 = vmatprep.subr.bf16.mxu0 %v12956_v25  ;;  %10261 = vmatprep.subr.bf16.mxu1 %v12958_v42  ;;  %v599_v41 = vld [vmem:[%s19707_s1 + $0x11a8] sm:$0xff]  ;;  %v13003_v25 = vcombine.low %v586_v15, %v590_v28  ;;  %v13005_v42 = vcombine.low %v587_v29, %v591_v30  ;;  %v13052_v15 = vcombine.high %v634_v19, %v638_v20  ;;  %v642_v29 = vld [vmem:[%s19707_s1 + $0x1300] sm:$0xff] }
 0x100   :  { %v13014_v44 = vcombine.high %v595_v40, %v599_v41  ;;  %v646_v30 = vld [vmem:[%s19707_s1 + $0x1320] sm:$0xff] }
 0x102   :  { %9729 = vmatpush1.bf16.msra.mxu0 %v12955_v48  ;;  %10262 = vmatpush1.bf16.msra.mxu1 %v12957_v49  ;;  %v603_v48 = vld [vmem:[%s19707_s1 + $0x11c8] sm:$0xff] }
 0x103   :  { %9739 = vmatprep.subr.bf16.mxu0 %v12964_v50  ;;  %10272 = vmatprep.subr.bf16.mxu1 %v12966_v51  ;;  %v607_v49 = vld [vmem:[%s19707_s1 + $0x11e8] sm:$0xff]  ;;  %v13011_v50 = vcombine.low %v594_v37, %v598_v38  ;;  %v13013_v51 = vcombine.low %v595_v40, %v599_v41  ;;  %v13060_v37 = vcombine.high %v642_v29, %v646_v30  ;;  %v650_v40 = vld [vmem:[%s19707_s1 + $0x1340] sm:$0xff] }
 0x104   :  { %v13022_v54 = vcombine.high %v603_v48, %v607_v49  ;;  %v654_v41 = vld [vmem:[%s19707_s1 + $0x1360] sm:$0xff] }
 0x105   :  { %9731 = vmatmul.mubr.bf16.vlgmr.msra.gmra.mrb[0].mxu0 %v15352_v55  ;;  %10264 = vmatmul.mubr.bf16.vlgmr.msra.gmra.mrb[0].mxu1 %v15352_v55 }
 0x106   :  { %9740 = vmatpush1.bf16.msra.mxu0 %v12963_v60  ;;  %10273 = vmatpush1.bf16.msra.mxu1 %v12965_v61  ;;  %v611_v60 = vld [vmem:[%s19707_s1 + $0x1208] sm:$0xff] }
 0x107   :  { %9741 = vmatprep.subr.bf16.mxu0 %v12972_v39  ;;  %10274 = vmatprep.subr.bf16.mxu1 %v12974_v62  ;;  %v615_v61 = vld [vmem:[%s19707_s1 + $0x1228] sm:$0xff]  ;;  %v13019_v39 = vcombine.low %v602_v46, %v606_v47  ;;  %v13021_v62 = vcombine.low %v603_v48, %v607_v49  ;;  %v13068_v46 = vcombine.high %v650_v40, %v654_v41  ;;  %v658_v48 = vld [vmem:[%s19707_s1 + $0x1380] sm:$0xff] }
 0x108   :  { %9771 = vmatprep.mubr.bf16.mxu0 %v15373_v1  ;;  %10304 = vmatprep.mubr.bf16.mxu1 %v15373_v1  ;;  %v13030_v0 = vcombine.high %v611_v60, %v615_v61  ;;  %v662_v49 = vld [vmem:[%s19707_s1 + $0x13a0] sm:$0xff] }
 0x10a   :  { %9742 = vmatpush1.bf16.msra.mxu0 %v12971_v4  ;;  %10275 = vmatpush1.bf16.msra.mxu1 %v12973_v5  ;;  %v619_v4 = vld [vmem:[%s19707_s1 + $0x1248] sm:$0xff] }
 0x10b   :  { %9743 = vmatprep.subr.bf16.mxu0 %v12980_v6  ;;  %10276 = vmatprep.subr.bf16.mxu1 %v12982_v7  ;;  %v623_v5 = vld [vmem:[%s19707_s1 + $0x1268] sm:$0xff]  ;;  %v13027_v6 = vcombine.low %v610_v56, %v614_v58  ;;  %v13029_v7 = vcombine.low %v611_v60, %v615_v61  ;;  %v13076_v56 = vcombine.high %v658_v48, %v662_v49  ;;  %v666_v60 = vld [vmem:[%s19707_s1 + $0x13c0] sm:$0xff] }
 0x10c   :  { %v13038_v9 = vcombine.high %v619_v4, %v623_v5  ;;  %v670_v61 = vld [vmem:[%s19707_s1 + $0x13e0] sm:$0xff] }
 0x10e   :  { %9744 = vmatpush1.bf16.msra.mxu0 %v12979_v13  ;;  %10277 = vmatpush1.bf16.msra.mxu1 %v12981_v14  ;;  %v627_v13 = vld [vmem:[%s19707_s1 + $0x1288] sm:$0xff] }
 0x10f   :  { %9745 = vmatprep.subr.bf16.mxu0 %v12988_v16  ;;  %10278 = vmatprep.subr.bf16.mxu1 %v12990_v17  ;;  %v631_v14 = vld [vmem:[%s19707_s1 + $0x12a8] sm:$0xff]  ;;  %v13035_v16 = vcombine.low %v618_v2, %v622_v3  ;;  %v13037_v17 = vcombine.low %v619_v4, %v623_v5  ;;  %v13084_v2 = vcombine.high %v666_v60, %v670_v61  ;;  %v674_v4 = vld [vmem:[%s19707_s1 + $0x1400] sm:$0xff] }
 0x110   :  { %v13046_v18 = vcombine.high %v627_v13, %v631_v14  ;;  %v678_v5 = vld [vmem:[%s19707_s1 + $0x1420] sm:$0xff] }
 0x112   :  { %9746 = vmatpush1.bf16.msra.mxu0 %v12987_v23  ;;  %10279 = vmatpush1.bf16.msra.mxu1 %v12989_v24  ;;  %v635_v23 = vld [vmem:[%s19707_s1 + $0x12c8] sm:$0xff] }
 0x113   :  { %9747 = vmatprep.subr.bf16.mxu0 %v12996_v26  ;;  %10280 = vmatprep.subr.bf16.mxu1 %v12998_v27  ;;  %v639_v24 = vld [vmem:[%s19707_s1 + $0x12e8] sm:$0xff]  ;;  %v13043_v26 = vcombine.low %v626_v10, %v630_v11  ;;  %v13045_v27 = vcombine.low %v627_v13, %v631_v14  ;;  %v13092_v10 = vcombine.high %v674_v4, %v678_v5  ;;  %v682_v13 = vld [vmem:[%s19707_s1 + $0x1440] sm:$0xff] }
 0x114   :  { %v13054_v28 = vcombine.high %v635_v23, %v639_v24  ;;  %v686_v14 = vld [vmem:[%s19707_s1 + $0x1460] sm:$0xff] }
 0x116   :  { %9748 = vmatpush1.bf16.msra.mxu0 %v12995_v32  ;;  %10281 = vmatpush1.bf16.msra.mxu1 %v12997_v33  ;;  %v643_v32 = vld [vmem:[%s19707_s1 + $0x1308] sm:$0xff] }
 0x117   :  { %9749 = vmatprep.subr.bf16.mxu0 %v13004_v34  ;;  %10282 = vmatprep.subr.bf16.mxu1 %v13006_v35  ;;  %v647_v33 = vld [vmem:[%s19707_s1 + $0x1328] sm:$0xff]  ;;  %v13051_v34 = vcombine.low %v634_v19, %v638_v20  ;;  %v13053_v35 = vcombine.low %v635_v23, %v639_v24  ;;  %v13091_v19 = vcombine.low %v674_v4, %v678_v5  ;;  %v690_v24 = vld [vmem:[%s19707_s1 + $0x1480] sm:$0xff] }
 0x118   :  { %v13062_v38 = vcombine.high %v643_v32, %v647_v33 }
 0x11a   :  { %9750 = vmatpush1.bf16.msra.mxu0 %v13003_v25  ;;  %10283 = vmatpush1.bf16.msra.mxu1 %v13005_v42  ;;  %v651_v25 = vld [vmem:[%s19707_s1 + $0x1348] sm:$0xff] }
 0x11b   :  { %9751 = vmatprep.subr.bf16.mxu0 %v13012_v43  ;;  %10284 = vmatprep.subr.bf16.mxu1 %v13014_v44  ;;  %v655_v42 = vld [vmem:[%s19707_s1 + $0x1368] sm:$0xff]  ;;  %v13059_v43 = vcombine.low %v642_v29, %v646_v30  ;;  %v13061_v44 = vcombine.low %v643_v32, %v647_v33  ;;  %v13099_v29 = vcombine.low %v682_v13, %v686_v14 }
 0x11c   :  { %v13070_v47 = vcombine.high %v651_v25, %v655_v42 }
 0x11e   :  { %9752 = vmatpush1.bf16.msra.mxu0 %v13011_v50  ;;  %10285 = vmatpush1.bf16.msra.mxu1 %v13013_v51  ;;  %v659_v50 = vld [vmem:[%s19707_s1 + $0x1388] sm:$0xff] }
 0x11f   :  { %9753 = vmatprep.subr.bf16.mxu0 %v13020_v52  ;;  %10286 = vmatprep.subr.bf16.mxu1 %v13022_v54  ;;  %v663_v51 = vld [vmem:[%s19707_s1 + $0x13a8] sm:$0xff]  ;;  %v13067_v52 = vcombine.low %v650_v40, %v654_v41  ;;  %v13069_v54 = vcombine.low %v651_v25, %v655_v42 }
 0x120   :  { %v13078_v58 = vcombine.high %v659_v50, %v663_v51 }
 0x122   :  { %9754 = vmatpush1.bf16.msra.mxu0 %v13019_v39  ;;  %10287 = vmatpush1.bf16.msra.mxu1 %v13021_v62  ;;  %v667_v39 = vld [vmem:[%s19707_s1 + $0x13c8] sm:$0xff] }
 0x123   :  { %9755 = vmatprep.subr.bf16.mxu0 %v13028_v63  ;;  %10288 = vmatprep.subr.bf16.mxu1 %v13030_v0  ;;  %v671_v62 = vld [vmem:[%s19707_s1 + $0x13e8] sm:$0xff]  ;;  %v13075_v63 = vcombine.low %v658_v48, %v662_v49  ;;  %v13077_v0 = vcombine.low %v659_v50, %v663_v51 }
 0x124   :  { %v13086_v3 = vcombine.high %v667_v39, %v671_v62 }
 0x126   :  { %9756 = vmatpush1.bf16.msra.mxu0 %v13027_v6  ;;  %10289 = vmatpush1.bf16.msra.mxu1 %v13029_v7  ;;  %v675_v6 = vld [vmem:[%s19707_s1 + $0x1408] sm:$0xff] }
 0x127   :  { %9757 = vmatprep.subr.bf16.mxu0 %v13036_v8  ;;  %10290 = vmatprep.subr.bf16.mxu1 %v13038_v9  ;;  %v679_v7 = vld [vmem:[%s19707_s1 + $0x1428] sm:$0xff]  ;;  %v13083_v8 = vcombine.low %v666_v60, %v670_v61  ;;  %v13085_v9 = vcombine.low %v667_v39, %v671_v62 }
 0x128   :  { %v13094_v11 = vcombine.high %v675_v6, %v679_v7  ;;  %v13093_v20 = vcombine.low %v675_v6, %v679_v7 }
 0x12a   :  { %9758 = vmatpush1.bf16.msra.mxu0 %v13035_v16  ;;  %10291 = vmatpush1.bf16.msra.mxu1 %v13037_v17  ;;  %v15561_v16 = vcombine.low %v15363_v59, %v15363_v59  ;;  %v683_v17 = vld [vmem:[%s19707_s1 + $0x1448] sm:$0xff]  ;;  %v13100_v59 = vcombine.high %v682_v13, %v686_v14 }
 0x12b   :  { %9759 = vmatprep.subr.bf16.mxu0 %v13044_v53  ;;  %10292 = vmatprep.subr.bf16.mxu1 %v13046_v18  ;;  %v687_v53 = vld [vmem:[%s19707_s1 + $0x1468] sm:$0xff] }
 0x12c   :  { %v15572_v18 = vld [vmem:[%s19708_s0 + $0x28] sm:$0xff]  ;;  %v13102_v23 = vcombine.high %v683_v17, %v687_v53  ;;  %v13101_v30 = vcombine.low %v683_v17, %v687_v53 }
 0x12e   :  { %9760 = vmatpush1.bf16.msra.mxu0 %v13043_v26  ;;  %10293 = vmatpush1.bf16.msra.mxu1 %v13045_v27  ;;  %v694_v26 = vld [vmem:[%s19707_s1 + $0x14a0] sm:$0xff]  ;;  %v15582_v27 = vcombine.high %v15572_v18, %v15572_v18 }
 0x12f   :  { %9761 = vmatprep.subr.bf16.mxu0 %v13052_v15  ;;  %10294 = vmatprep.subr.bf16.mxu1 %v13054_v28  ;;  %v691_v15 = vld [vmem:[%s19707_s1 + $0x1488] sm:$0xff]  ;;  %v13108_v32 = vcombine.high %v690_v24, %v694_v26  ;;  %v13107_v40 = vcombine.low %v690_v24, %v694_v26 }
 0x130   :  { %v695_v28 = vld [vmem:[%s19707_s1 + $0x14a8] sm:$0xff] }
 0x131   :  { %v13110_v33 = vcombine.high %v691_v15, %v695_v28  ;;  %v13109_v41 = vcombine.low %v691_v15, %v695_v28 }
 0x132   :  { %9762 = vmatpush1.bf16.msra.mxu0 %v13051_v34  ;;  %10295 = vmatpush1.bf16.msra.mxu1 %v13053_v35  ;;  %v698_v34 = vld [vmem:[%s19707_s1 + $0x14c0] sm:$0xff] }
 0x133   :  { %9763 = vmatprep.subr.bf16.mxu0 %v13060_v37  ;;  %10296 = vmatprep.subr.bf16.mxu1 %v13062_v38  ;;  %v702_v35 = vld [vmem:[%s19707_s1 + $0x14e0] sm:$0xff]  ;;  %v699_v37 = vld [vmem:[%s19707_s1 + $0x14c8] sm:$0xff] }
 0x134   :  { %v703_v38 = vld [vmem:[%s19707_s1 + $0x14e8] sm:$0xff]  ;;  %v13116_v25 = vcombine.high %v698_v34, %v702_v35  ;;  %v13115_v48 = vcombine.low %v698_v34, %v702_v35 }
 0x135   :  { %v13118_v42 = vcombine.high %v699_v37, %v703_v38  ;;  %v13117_v49 = vcombine.low %v699_v37, %v703_v38 }
 0x136   :  { %9764 = vmatpush1.bf16.msra.mxu0 %v13059_v43  ;;  %10297 = vmatpush1.bf16.msra.mxu1 %v13061_v44  ;;  %v706_v43 = vld [vmem:[%s19707_s1 + $0x1500] sm:$0xff] }
 0x137   :  { %9765 = vmatprep.subr.bf16.mxu0 %v13068_v46  ;;  %10298 = vmatprep.subr.bf16.mxu1 %v13070_v47  ;;  %v710_v44 = vld [vmem:[%s19707_s1 + $0x1520] sm:$0xff]  ;;  %v707_v46 = vld [vmem:[%s19707_s1 + $0x1508] sm:$0xff] }
 0x138   :  { %v711_v47 = vld [vmem:[%s19707_s1 + $0x1528] sm:$0xff]  ;;  %v13124_v50 = vcombine.high %v706_v43, %v710_v44  ;;  %v13123_v60 = vcombine.low %v706_v43, %v710_v44 }
 0x139   :  { %v13126_v51 = vcombine.high %v707_v46, %v711_v47  ;;  %v13125_v61 = vcombine.low %v707_v46, %v711_v47 }
 0x13a   :  { %9766 = vmatpush1.bf16.msra.mxu0 %v13067_v52  ;;  %10299 = vmatpush1.bf16.msra.mxu1 %v13069_v54  ;;  %v714_v52 = vld [vmem:[%s19707_s1 + $0x1540] sm:$0xff] }
 0x13b   :  { %9767 = vmatprep.subr.bf16.mxu0 %v13076_v56  ;;  %10300 = vmatprep.subr.bf16.mxu1 %v13078_v58  ;;  %v718_v54 = vld [vmem:[%s19707_s1 + $0x1560] sm:$0xff]  ;;  %v715_v56 = vld [vmem:[%s19707_s1 + $0x1548] sm:$0xff] }
 0x13c   :  { %v719_v58 = vld [vmem:[%s19707_s1 + $0x1568] sm:$0xff]  ;;  %v13132_v39 = vcombine.high %v714_v52, %v718_v54  ;;  %v13131_v4 = vcombine.low %v714_v52, %v718_v54 }
 0x13d   :  { %v13134_v62 = vcombine.high %v715_v56, %v719_v58  ;;  %v13133_v5 = vcombine.low %v715_v56, %v719_v58 }
 0x13e   :  { %9768 = vmatpush1.bf16.msra.mxu0 %v13075_v63  ;;  %10301 = vmatpush1.bf16.msra.mxu1 %v13077_v0  ;;  %v722_v63 = vld [vmem:[%s19707_s1 + $0x1580] sm:$0xff] }
 0x13f   :  { %9769 = vmatprep.subr.bf16.mxu0 %v13084_v2  ;;  %10302 = vmatprep.subr.bf16.mxu1 %v13086_v3  ;;  %v726_v0 = vld [vmem:[%s19707_s1 + $0x15a0] sm:$0xff]  ;;  %v723_v2 = vld [vmem:[%s19707_s1 + $0x1588] sm:$0xff] }
 0x140   :  { %v727_v3 = vld [vmem:[%s19707_s1 + $0x15a8] sm:$0xff]  ;;  %v13140_v6 = vcombine.high %v722_v63, %v726_v0  ;;  %v13139_v13 = vcombine.low %v722_v63, %v726_v0 }
 0x141   :  { %v13142_v7 = vcombine.high %v723_v2, %v727_v3  ;;  %v13141_v14 = vcombine.low %v723_v2, %v727_v3 }
 0x142   :  { %9770 = vmatpush1.bf16.msra.mxu0 %v13083_v8  ;;  %10303 = vmatpush1.bf16.msra.mxu1 %v13085_v9  ;;  %v730_v8 = vld [vmem:[%s19707_s1 + $0x15c0] sm:$0xff] }
 0x143   :  { %9780 = vmatprep.subr.bf16.mxu0 %v13092_v10  ;;  %10313 = vmatprep.subr.bf16.mxu1 %v13094_v11  ;;  %v734_v9 = vld [vmem:[%s19707_s1 + $0x15e0] sm:$0xff]  ;;  %v731_v10 = vld [vmem:[%s19707_s1 + $0x15c8] sm:$0xff] }
 0x144   :  { %v735_v11 = vld [vmem:[%s19707_s1 + $0x15e8] sm:$0xff]  ;;  %v13148_v17 = vcombine.high %v730_v8, %v734_v9  ;;  %v13147_v24 = vcombine.low %v730_v8, %v734_v9 }
 0x145   :  { %9772 = vmatmul.mubr.bf16.vlgmr.msra.gmra.mrb[0].mxu0 %v15561_v16  ;;  %10305 = vmatmul.mubr.bf16.vlgmr.msra.gmra.mrb[0].mxu1 %v15561_v16  ;;  %v13150_v53 = vcombine.high %v731_v10, %v735_v11  ;;  %v13149_v26 = vcombine.low %v731_v10, %v735_v11 }
 0x146   :  { %9781 = vmatpush1.bf16.msra.mxu0 %v13091_v19  ;;  %10314 = vmatpush1.bf16.msra.mxu1 %v13093_v20  ;;  %v738_v19 = vld [vmem:[%s19707_s1 + $0x1600] sm:$0xff] }
 0x147   :  { %9782 = vmatprep.subr.bf16.mxu0 %v13100_v59  ;;  %10315 = vmatprep.subr.bf16.mxu1 %v13102_v23  ;;  %v742_v20 = vld [vmem:[%s19707_s1 + $0x1620] sm:$0xff]  ;;  %v739_v59 = vld [vmem:[%s19707_s1 + $0x1608] sm:$0xff] }
 0x148   :  { %9812 = vmatprep.mubr.bf16.mxu0 %v15582_v27  ;;  %10345 = vmatprep.mubr.bf16.mxu1 %v15582_v27  ;;  %v743_v23 = vld [vmem:[%s19707_s1 + $0x1628] sm:$0xff]  ;;  %v13156_v15 = vcombine.high %v738_v19, %v742_v20  ;;  %v13155_v34 = vcombine.low %v738_v19, %v742_v20 }
 0x149   :  { %v13158_v28 = vcombine.high %v739_v59, %v743_v23  ;;  %v13157_v35 = vcombine.low %v739_v59, %v743_v23 }
 0x14a   :  { %9783 = vmatpush1.bf16.msra.mxu0 %v13099_v29  ;;  %10316 = vmatpush1.bf16.msra.mxu1 %v13101_v30  ;;  %v746_v29 = vld [vmem:[%s19707_s1 + $0x1640] sm:$0xff] }
 0x14b   :  { %9784 = vmatprep.subr.bf16.mxu0 %v13108_v32  ;;  %10317 = vmatprep.subr.bf16.mxu1 %v13110_v33  ;;  %v750_v30 = vld [vmem:[%s19707_s1 + $0x1660] sm:$0xff]  ;;  %v747_v32 = vld [vmem:[%s19707_s1 + $0x1648] sm:$0xff] }
 0x14c   :  { %v751_v33 = vld [vmem:[%s19707_s1 + $0x1668] sm:$0xff]  ;;  %v13164_v37 = vcombine.high %v746_v29, %v750_v30  ;;  %v13163_v43 = vcombine.low %v746_v29, %v750_v30 }
 0x14d   :  { %v13166_v38 = vcombine.high %v747_v32, %v751_v33  ;;  %v13165_v44 = vcombine.low %v747_v32, %v751_v33 }
 0x14e   :  { %9785 = vmatpush1.bf16.msra.mxu0 %v13107_v40  ;;  %10318 = vmatpush1.bf16.msra.mxu1 %v13109_v41  ;;  %v754_v40 = vld [vmem:[%s19707_s1 + $0x1680] sm:$0xff] }
 0x14f   :  { %9786 = vmatprep.subr.bf16.mxu0 %v13116_v25  ;;  %10319 = vmatprep.subr.bf16.mxu1 %v13118_v42  ;;  %v758_v41 = vld [vmem:[%s19707_s1 + $0x16a0] sm:$0xff]  ;;  %v755_v25 = vld [vmem:[%s19707_s1 + $0x1688] sm:$0xff] }
 0x150   :  { %v759_v42 = vld [vmem:[%s19707_s1 + $0x16a8] sm:$0xff]  ;;  %v13172_v46 = vcombine.high %v754_v40, %v758_v41  ;;  %v13171_v52 = vcombine.low %v754_v40, %v758_v41 }
 0x151   :  { %v13174_v47 = vcombine.high %v755_v25, %v759_v42  ;;  %v13173_v54 = vcombine.low %v755_v25, %v759_v42 }
 0x152   :  { %9787 = vmatpush1.bf16.msra.mxu0 %v13115_v48  ;;  %10320 = vmatpush1.bf16.msra.mxu1 %v13117_v49  ;;  %v762_v48 = vld [vmem:[%s19707_s1 + $0x16c0] sm:$0xff] }
 0x153   :  { %9788 = vmatprep.subr.bf16.mxu0 %v13124_v50  ;;  %10321 = vmatprep.subr.bf16.mxu1 %v13126_v51  ;;  %v766_v49 = vld [vmem:[%s19707_s1 + $0x16e0] sm:$0xff]  ;;  %v763_v50 = vld [vmem:[%s19707_s1 + $0x16c8] sm:$0xff] }
 0x154   :  { %v767_v51 = vld [vmem:[%s19707_s1 + $0x16e8] sm:$0xff]  ;;  %v13180_v56 = vcombine.high %v762_v48, %v766_v49  ;;  %v13179_v63 = vcombine.low %v762_v48, %v766_v49  ;;  %v15781_v49 = vld [vmem:[%s19708_s0 + $0x30] sm:$0xff] }
 0x155   :  { %v13182_v58 = vcombine.high %v763_v50, %v767_v51  ;;  %v13181_v0 = vcombine.low %v763_v50, %v767_v51  ;;  %v815_v48 = vld [vmem:[%s19707_s1 + $0x1868] sm:$0xff] }
 0x156   :  { %9789 = vmatpush1.bf16.msra.mxu0 %v13123_v60  ;;  %10322 = vmatpush1.bf16.msra.mxu1 %v13125_v61  ;;  %v770_v60 = vld [vmem:[%s19707_s1 + $0x1700] sm:$0xff] }
 0x157   :  { %9790 = vmatprep.subr.bf16.mxu0 %v13132_v39  ;;  %10323 = vmatprep.subr.bf16.mxu1 %v13134_v62  ;;  %v774_v61 = vld [vmem:[%s19707_s1 + $0x1720] sm:$0xff]  ;;  %v771_v39 = vld [vmem:[%s19707_s1 + $0x1708] sm:$0xff] }
 0x158   :  { %v775_v62 = vld [vmem:[%s19707_s1 + $0x1728] sm:$0xff]  ;;  %v13188_v2 = vcombine.high %v770_v60, %v774_v61  ;;  %v13187_v8 = vcombine.low %v770_v60, %v774_v61 }
 0x159   :  { %v13190_v3 = vcombine.high %v771_v39, %v775_v62  ;;  %v13189_v9 = vcombine.low %v771_v39, %v775_v62  ;;  %v819_v60 = vld [vmem:[%s19707_s1 + $0x1888] sm:$0xff] }
 0x15a   :  { %9791 = vmatpush1.bf16.msra.mxu0 %v13131_v4  ;;  %10324 = vmatpush1.bf16.msra.mxu1 %v13133_v5  ;;  %v778_v4 = vld [vmem:[%s19707_s1 + $0x1740] sm:$0xff]  ;;  %v823_v61 = vld [vmem:[%s19707_s1 + $0x18a8] sm:$0xff] }
 0x15b   :  { %9792 = vmatprep.subr.bf16.mxu0 %v13140_v6  ;;  %10325 = vmatprep.subr.bf16.mxu1 %v13142_v7  ;;  %v782_v5 = vld [vmem:[%s19707_s1 + $0x1760] sm:$0xff]  ;;  %v779_v6 = vld [vmem:[%s19707_s1 + $0x1748] sm:$0xff] }
 0x15c   :  { %v783_v7 = vld [vmem:[%s19707_s1 + $0x1768] sm:$0xff]  ;;  %v13196_v10 = vcombine.high %v778_v4, %v782_v5  ;;  %v13195_v19 = vcombine.low %v778_v4, %v782_v5 }
 0x15d   :  { %v13198_v11 = vcombine.high %v779_v6, %v783_v7  ;;  %v13197_v20 = vcombine.low %v779_v6, %v783_v7  ;;  %v827_v4 = vld [vmem:[%s19707_s1 + $0x18c8] sm:$0xff]  ;;  %v13237_v7 = vcombine.low %v819_v60, %v823_v61 }
 0x15e   :  { %9793 = vmatpush1.bf16.msra.mxu0 %v13139_v13  ;;  %10326 = vmatpush1.bf16.msra.mxu1 %v13141_v14  ;;  %v786_v13 = vld [vmem:[%s19707_s1 + $0x1780] sm:$0xff]  ;;  %v831_v5 = vld [vmem:[%s19707_s1 + $0x18e8] sm:$0xff] }
 0x15f   :  { %9794 = vmatprep.subr.bf16.mxu0 %v13148_v17  ;;  %10327 = vmatprep.subr.bf16.mxu1 %v13150_v53  ;;  %v790_v14 = vld [vmem:[%s19707_s1 + $0x17a0] sm:$0xff]  ;;  %v787_v17 = vld [vmem:[%s19707_s1 + $0x1788] sm:$0xff] }
 0x160   :  { %v791_v53 = vld [vmem:[%s19707_s1 + $0x17a8] sm:$0xff]  ;;  %v13204_v59 = vcombine.high %v786_v13, %v790_v14  ;;  %v13203_v29 = vcombine.low %v786_v13, %v790_v14 }
 0x161   :  { %v13206_v23 = vcombine.high %v787_v17, %v791_v53  ;;  %v13205_v30 = vcombine.low %v787_v17, %v791_v53  ;;  %v835_v13 = vld [vmem:[%s19707_s1 + $0x1908] sm:$0xff]  ;;  %v13245_v53 = vcombine.low %v827_v4, %v831_v5 }
 0x162   :  { %9795 = vmatpush1.bf16.msra.mxu0 %v13147_v24  ;;  %10328 = vmatpush1.bf16.msra.mxu1 %v13149_v26  ;;  %v794_v24 = vld [vmem:[%s19707_s1 + $0x17c0] sm:$0xff]  ;;  %v839_v14 = vld [vmem:[%s19707_s1 + $0x1928] sm:$0xff] }
 0x163   :  { %9796 = vmatprep.subr.bf16.mxu0 %v13156_v15  ;;  %10329 = vmatprep.subr.bf16.mxu1 %v13158_v28  ;;  %v798_v26 = vld [vmem:[%s19707_s1 + $0x17e0] sm:$0xff]  ;;  %v795_v15 = vld [vmem:[%s19707_s1 + $0x17c8] sm:$0xff] }
 0x164   :  { %v799_v28 = vld [vmem:[%s19707_s1 + $0x17e8] sm:$0xff]  ;;  %v13212_v32 = vcombine.high %v794_v24, %v798_v26  ;;  %v13211_v40 = vcombine.low %v794_v24, %v798_v26 }
 0x165   :  { %v13214_v33 = vcombine.high %v795_v15, %v799_v28  ;;  %v13213_v41 = vcombine.low %v795_v15, %v799_v28  ;;  %v843_v24 = vld [vmem:[%s19707_s1 + $0x1948] sm:$0xff]  ;;  %v13253_v28 = vcombine.low %v835_v13, %v839_v14 }
 0x166   :  { %9797 = vmatpush1.bf16.msra.mxu0 %v13155_v34  ;;  %10330 = vmatpush1.bf16.msra.mxu1 %v13157_v35  ;;  %v802_v34 = vld [vmem:[%s19707_s1 + $0x1800] sm:$0xff]  ;;  %v847_v26 = vld [vmem:[%s19707_s1 + $0x1968] sm:$0xff] }
 0x167   :  { %9798 = vmatprep.subr.bf16.mxu0 %v13164_v37  ;;  %10331 = vmatprep.subr.bf16.mxu1 %v13166_v38  ;;  %v806_v35 = vld [vmem:[%s19707_s1 + $0x1820] sm:$0xff]  ;;  %v803_v37 = vld [vmem:[%s19707_s1 + $0x1808] sm:$0xff] }
 0x168   :  { %v807_v38 = vld [vmem:[%s19707_s1 + $0x1828] sm:$0xff]  ;;  %v13220_v25 = vcombine.high %v802_v34, %v806_v35  ;;  %v13219_v50 = vcombine.low %v802_v34, %v806_v35 }
 0x169   :  { %v13222_v42 = vcombine.high %v803_v37, %v807_v38  ;;  %v13221_v51 = vcombine.low %v803_v37, %v807_v38  ;;  %v851_v34 = vld [vmem:[%s19707_s1 + $0x1988] sm:$0xff]  ;;  %v13261_v38 = vcombine.low %v843_v24, %v847_v26 }
 0x16a   :  { %9799 = vmatpush1.bf16.msra.mxu0 %v13163_v43  ;;  %10332 = vmatpush1.bf16.msra.mxu1 %v13165_v44  ;;  %v810_v43 = vld [vmem:[%s19707_s1 + $0x1840] sm:$0xff]  ;;  %v855_v35 = vld [vmem:[%s19707_s1 + $0x19a8] sm:$0xff] }
 0x16b   :  { %9800 = vmatprep.subr.bf16.mxu0 %v13172_v46  ;;  %10333 = vmatprep.subr.bf16.mxu1 %v13174_v47  ;;  %v814_v44 = vld [vmem:[%s19707_s1 + $0x1860] sm:$0xff]  ;;  %v15770_v46 = vcombine.low %v15572_v18, %v15572_v18  ;;  %v811_v47 = vld [vmem:[%s19707_s1 + $0x1848] sm:$0xff] }
 0x16c   :  { %v13228_v18 = vcombine.high %v810_v43, %v814_v44  ;;  %v13227_v39 = vcombine.low %v810_v43, %v814_v44  ;;  %v13229_v62 = vcombine.low %v811_v47, %v815_v48  ;;  %v859_v43 = vld [vmem:[%s19707_s1 + $0x19c8] sm:$0xff] }
 0x16d   :  { %v863_v44 = vld [vmem:[%s19707_s1 + $0x19e8] sm:$0xff] }
 0x16e   :  { %9801 = vmatpush1.bf16.msra.mxu0 %v13171_v52  ;;  %10334 = vmatpush1.bf16.msra.mxu1 %v13173_v54  ;;  %v13230_v52 = vcombine.high %v811_v47, %v815_v48  ;;  %v818_v54 = vld [vmem:[%s19707_s1 + $0x1880] sm:$0xff]  ;;  %v13269_v48 = vcombine.low %v851_v34, %v855_v35 }
 0x16f   :  { %9802 = vmatprep.subr.bf16.mxu0 %v13180_v56  ;;  %10335 = vmatprep.subr.bf16.mxu1 %v13182_v58  ;;  %v822_v56 = vld [vmem:[%s19707_s1 + $0x18a0] sm:$0xff]  ;;  %v15791_v58 = vcombine.high %v15781_v49, %v15781_v49 }
 0x170   :  { %v13235_v6 = vcombine.low %v818_v54, %v822_v56 }
 0x172   :  { %9803 = vmatpush1.bf16.msra.mxu0 %v13179_v63  ;;  %10336 = vmatpush1.bf16.msra.mxu1 %v13181_v0  ;;  %v13236_v63 = vcombine.high %v818_v54, %v822_v56  ;;  %v13238_v0 = vcombine.high %v819_v60, %v823_v61  ;;  %v867_v54 = vld [vmem:[%s19707_s1 + $0x1a08] sm:$0xff]  ;;  %v13277_v61 = vcombine.low %v859_v43, %v863_v44 }
 0x173   :  { %9804 = vmatprep.subr.bf16.mxu0 %v13188_v2  ;;  %10337 = vmatprep.subr.bf16.mxu1 %v13190_v3  ;;  %v826_v2 = vld [vmem:[%s19707_s1 + $0x18c0] sm:$0xff]  ;;  %v871_v56 = vld [vmem:[%s19707_s1 + $0x1a28] sm:$0xff] }
 0x174   :  { %v830_v3 = vld [vmem:[%s19707_s1 + $0x18e0] sm:$0xff] }
 0x175   :  { %v13243_v17 = vcombine.low %v826_v2, %v830_v3 }
 0x176   :  { %9805 = vmatpush1.bf16.msra.mxu0 %v13187_v8  ;;  %10338 = vmatpush1.bf16.msra.mxu1 %v13189_v9  ;;  %v13244_v8 = vcombine.high %v826_v2, %v830_v3  ;;  %v13246_v9 = vcombine.high %v827_v4, %v831_v5  ;;  %v875_v2 = vld [vmem:[%s19707_s1 + $0x1a48] sm:$0xff]  ;;  %v13285_v5 = vcombine.low %v867_v54, %v871_v56 }
 0x177   :  { %9806 = vmatprep.subr.bf16.mxu0 %v13196_v10  ;;  %10339 = vmatprep.subr.bf16.mxu1 %v13198_v11  ;;  %v834_v10 = vld [vmem:[%s19707_s1 + $0x1900] sm:$0xff]  ;;  %v879_v3 = vld [vmem:[%s19707_s1 + $0x1a68] sm:$0xff] }
 0x178   :  { %v838_v11 = vld [vmem:[%s19707_s1 + $0x1920] sm:$0xff] }
 0x179   :  { %v13251_v15 = vcombine.low %v834_v10, %v838_v11 }
 0x17a   :  { %9807 = vmatpush1.bf16.msra.mxu0 %v13195_v19  ;;  %10340 = vmatpush1.bf16.msra.mxu1 %v13197_v20  ;;  %v13252_v19 = vcombine.high %v834_v10, %v838_v11  ;;  %v13254_v20 = vcombine.high %v835_v13, %v839_v14  ;;  %v883_v10 = vld [vmem:[%s19707_s1 + $0x1a88] sm:$0xff]  ;;  %v13293_v14 = vcombine.low %v875_v2, %v879_v3 }
 0x17b   :  { %9808 = vmatprep.subr.bf16.mxu0 %v13204_v59  ;;  %10341 = vmatprep.subr.bf16.mxu1 %v13206_v23  ;;  %v842_v59 = vld [vmem:[%s19707_s1 + $0x1940] sm:$0xff]  ;;  %v887_v11 = vld [vmem:[%s19707_s1 + $0x1aa8] sm:$0xff] }
 0x17c   :  { %v846_v23 = vld [vmem:[%s19707_s1 + $0x1960] sm:$0xff] }
 0x17d   :  { %v13259_v37 = vcombine.low %v842_v59, %v846_v23 }
 0x17e   :  { %9809 = vmatpush1.bf16.msra.mxu0 %v13203_v29  ;;  %10342 = vmatpush1.bf16.msra.mxu1 %v13205_v30  ;;  %v13260_v29 = vcombine.high %v842_v59, %v846_v23  ;;  %v13262_v30 = vcombine.high %v843_v24, %v847_v26  ;;  %v891_v59 = vld [vmem:[%s19707_s1 + $0x1ac8] sm:$0xff]  ;;  %v13301_v26 = vcombine.low %v883_v10, %v887_v11 }
 0x17f   :  { %9810 = vmatprep.subr.bf16.mxu0 %v13212_v32  ;;  %10343 = vmatprep.subr.bf16.mxu1 %v13214_v33  ;;  %v850_v32 = vld [vmem:[%s19707_s1 + $0x1980] sm:$0xff]  ;;  %v895_v23 = vld [vmem:[%s19707_s1 + $0x1ae8] sm:$0xff] }
 0x180   :  { %v854_v33 = vld [vmem:[%s19707_s1 + $0x19a0] sm:$0xff] }
 0x181   :  { %v13267_v47 = vcombine.low %v850_v32, %v854_v33 }
 0x182   :  { %9811 = vmatpush1.bf16.msra.mxu0 %v13211_v40  ;;  %10344 = vmatpush1.bf16.msra.mxu1 %v13213_v41  ;;  %v13268_v40 = vcombine.high %v850_v32, %v854_v33  ;;  %v13270_v41 = vcombine.high %v851_v34, %v855_v35  ;;  %v899_v32 = vld [vmem:[%s19707_s1 + $0x1b08] sm:$0xff]  ;;  %v13309_v35 = vcombine.low %v891_v59, %v895_v23 }
 0x183   :  { %9821 = vmatprep.subr.bf16.mxu0 %v13220_v25  ;;  %10354 = vmatprep.subr.bf16.mxu1 %v13222_v42  ;;  %v858_v25 = vld [vmem:[%s19707_s1 + $0x19c0] sm:$0xff]  ;;  %v903_v33 = vld [vmem:[%s19707_s1 + $0x1b28] sm:$0xff] }
 0x184   :  { %v862_v42 = vld [vmem:[%s19707_s1 + $0x19e0] sm:$0xff] }
 0x185   :  { %9813 = vmatmul.mubr.bf16.vlgmr.msra.gmra.mrb[0].mxu0 %v15770_v46  ;;  %10346 = vmatmul.mubr.bf16.vlgmr.msra.gmra.mrb[0].mxu1 %v15770_v46  ;;  %v13275_v60 = vcombine.low %v858_v25, %v862_v42 }
 0x186   :  { %9822 = vmatpush1.bf16.msra.mxu0 %v13219_v50  ;;  %10355 = vmatpush1.bf16.msra.mxu1 %v13221_v51  ;;  %v13276_v50 = vcombine.high %v858_v25, %v862_v42  ;;  %v13278_v51 = vcombine.high %v859_v43, %v863_v44  ;;  %v907_v25 = vld [vmem:[%s19707_s1 + $0x1b48] sm:$0xff]  ;;  %v13317_v44 = vcombine.low %v899_v32, %v903_v33 }
 0x187   :  { %9823 = vmatprep.subr.bf16.mxu0 %v13228_v18  ;;  %10356 = vmatprep.subr.bf16.mxu1 %v13230_v52  ;;  %v866_v18 = vld [vmem:[%s19707_s1 + $0x1a00] sm:$0xff]  ;;  %v911_v42 = vld [vmem:[%s19707_s1 + $0x1b68] sm:$0xff] }
 0x188   :  { %9853 = vmatprep.mubr.bf16.mxu0 %v15791_v58  ;;  %10386 = vmatprep.mubr.bf16.mxu1 %v15791_v58  ;;  %v870_v52 = vld [vmem:[%s19707_s1 + $0x1a20] sm:$0xff] }
 0x189   :  { %v13283_v4 = vcombine.low %v866_v18, %v870_v52 }
 0x18a   :  { %9824 = vmatpush1.bf16.msra.mxu0 %v13227_v39  ;;  %10357 = vmatpush1.bf16.msra.mxu1 %v13229_v62  ;;  %v13284_v39 = vcombine.high %v866_v18, %v870_v52  ;;  %v13286_v62 = vcombine.high %v867_v54, %v871_v56  ;;  %v915_v18 = vld [vmem:[%s19707_s1 + $0x1b88] sm:$0xff]  ;;  %v13325_v56 = vcombine.low %v907_v25, %v911_v42 }
 0x18b   :  { %9825 = vmatprep.subr.bf16.mxu0 %v13236_v63  ;;  %10358 = vmatprep.subr.bf16.mxu1 %v13238_v0  ;;  %v874_v63 = vld [vmem:[%s19707_s1 + $0x1a40] sm:$0xff]  ;;  %v919_v52 = vld [vmem:[%s19707_s1 + $0x1ba8] sm:$0xff] }
 0x18c   :  { %v878_v0 = vld [vmem:[%s19707_s1 + $0x1a60] sm:$0xff] }
 0x18d   :  { %v13291_v13 = vcombine.low %v874_v63, %v878_v0 }
 0x18e   :  { %9826 = vmatpush1.bf16.msra.mxu0 %v13235_v6  ;;  %10359 = vmatpush1.bf16.msra.mxu1 %v13237_v7  ;;  %v13292_v6 = vcombine.high %v874_v63, %v878_v0  ;;  %v13294_v7 = vcombine.high %v875_v2, %v879_v3  ;;  %v923_v63 = vld [vmem:[%s19707_s1 + $0x1bc8] sm:$0xff]  ;;  %v13333_v3 = vcombine.low %v915_v18, %v919_v52 }
 0x18f   :  { %9827 = vmatprep.subr.bf16.mxu0 %v13244_v8  ;;  %10360 = vmatprep.subr.bf16.mxu1 %v13246_v9  ;;  %v882_v8 = vld [vmem:[%s19707_s1 + $0x1a80] sm:$0xff]  ;;  %v927_v0 = vld [vmem:[%s19707_s1 + $0x1be8] sm:$0xff] }
 0x190   :  { %v886_v9 = vld [vmem:[%s19707_s1 + $0x1aa0] sm:$0xff] }
 0x191   :  { %v13299_v24 = vcombine.low %v882_v8, %v886_v9 }
 0x192   :  { %9828 = vmatpush1.bf16.msra.mxu0 %v13243_v17  ;;  %10361 = vmatpush1.bf16.msra.mxu1 %v13245_v53  ;;  %v13300_v17 = vcombine.high %v882_v8, %v886_v9  ;;  %v13302_v53 = vcombine.high %v883_v10, %v887_v11  ;;  %v931_v8 = vld [vmem:[%s19707_s1 + $0x1c08] sm:$0xff]  ;;  %v13341_v11 = vcombine.low %v923_v63, %v927_v0 }
 0x193   :  { %9829 = vmatprep.subr.bf16.mxu0 %v13252_v19  ;;  %10362 = vmatprep.subr.bf16.mxu1 %v13254_v20  ;;  %v890_v19 = vld [vmem:[%s19707_s1 + $0x1ac0] sm:$0xff]  ;;  %v935_v9 = vld [vmem:[%s19707_s1 + $0x1c28] sm:$0xff] }
 0x194   :  { %v894_v20 = vld [vmem:[%s19707_s1 + $0x1ae0] sm:$0xff] }
 0x195   :  { %v13307_v34 = vcombine.low %v890_v19, %v894_v20 }
 0x196   :  { %9830 = vmatpush1.bf16.msra.mxu0 %v13251_v15  ;;  %10363 = vmatpush1.bf16.msra.mxu1 %v13253_v28  ;;  %v13308_v15 = vcombine.high %v890_v19, %v894_v20  ;;  %v13310_v28 = vcombine.high %v891_v59, %v895_v23  ;;  %v15979_v19 = vcombine.low %v15781_v49, %v15781_v49  ;;  %v939_v20 = vld [vmem:[%s19707_s1 + $0x1c48] sm:$0xff]  ;;  %v15990_v23 = vld [vmem:[%s19708_s0 + $0x38] sm:$0xff] }
 0x197   :  { %9831 = vmatprep.subr.bf16.mxu0 %v13260_v29  ;;  %10364 = vmatprep.subr.bf16.mxu1 %v13262_v30  ;;  %v898_v29 = vld [vmem:[%s19707_s1 + $0x1b00] sm:$0xff]  ;;  %v943_v59 = vld [vmem:[%s19707_s1 + $0x1c68] sm:$0xff] }
 0x198   :  { %v902_v30 = vld [vmem:[%s19707_s1 + $0x1b20] sm:$0xff] }
 0x199   :  { %v13315_v43 = vcombine.low %v898_v29, %v902_v30 }
 0x19a   :  { %9832 = vmatpush1.bf16.msra.mxu0 %v13259_v37  ;;  %10365 = vmatpush1.bf16.msra.mxu1 %v13261_v38  ;;  %v13316_v37 = vcombine.high %v898_v29, %v902_v30  ;;  %v13318_v38 = vcombine.high %v899_v32, %v903_v33  ;;  %v950_v29 = vld [vmem:[%s19707_s1 + $0x1ca0] sm:$0xff]  ;;  %v16000_v30 = vcombine.high %v15990_v23, %v15990_v23  ;;  %v947_v32 = vld [vmem:[%s19707_s1 + $0x1c88] sm:$0xff] }
 0x19b   :  { %9833 = vmatprep.subr.bf16.mxu0 %v13268_v40  ;;  %10366 = vmatprep.subr.bf16.mxu1 %v13270_v41  ;;  %v906_v40 = vld [vmem:[%s19707_s1 + $0x1b40] sm:$0xff]  ;;  %v951_v33 = vld [vmem:[%s19707_s1 + $0x1ca8] sm:$0xff] }
 0x19c   :  { %v910_v41 = vld [vmem:[%s19707_s1 + $0x1b60] sm:$0xff] }
 0x19d   :  { %v13323_v54 = vcombine.low %v906_v40, %v910_v41 }
 0x19e   :  { %9834 = vmatpush1.bf16.msra.mxu0 %v13267_v47  ;;  %10367 = vmatpush1.bf16.msra.mxu1 %v13269_v48  ;;  %v13324_v47 = vcombine.high %v906_v40, %v910_v41  ;;  %v13326_v48 = vcombine.high %v907_v25, %v911_v42  ;;  %v954_v40 = vld [vmem:[%s19707_s1 + $0x1cc0] sm:$0xff]  ;;  %v955_v25 = vld [vmem:[%s19707_s1 + $0x1cc8] sm:$0xff] }
 0x19f   :  { %9835 = vmatprep.subr.bf16.mxu0 %v13276_v50  ;;  %10368 = vmatprep.subr.bf16.mxu1 %v13278_v51  ;;  %v914_v50 = vld [vmem:[%s19707_s1 + $0x1b80] sm:$0xff]  ;;  %v959_v42 = vld [vmem:[%s19707_s1 + $0x1ce8] sm:$0xff] }
 0x1a0   :  { %v918_v51 = vld [vmem:[%s19707_s1 + $0x1ba0] sm:$0xff] }
 0x1a1   :  { %v13331_v2 = vcombine.low %v914_v50, %v918_v51  ;;  %v958_v41 = vld [vmem:[%s19707_s1 + $0x1ce0] sm:$0xff] }
 0x1a2   :  { %9836 = vmatpush1.bf16.msra.mxu0 %v13275_v60  ;;  %10369 = vmatpush1.bf16.msra.mxu1 %v13277_v61  ;;  %v13332_v60 = vcombine.high %v914_v50, %v918_v51  ;;  %v13334_v61 = vcombine.high %v915_v18, %v919_v52  ;;  %v962_v50 = vld [vmem:[%s19707_s1 + $0x1d00] sm:$0xff]  ;;  %v963_v18 = vld [vmem:[%s19707_s1 + $0x1d08] sm:$0xff] }
 0x1a3   :  { %9837 = vmatprep.subr.bf16.mxu0 %v13284_v39  ;;  %10370 = vmatprep.subr.bf16.mxu1 %v13286_v62  ;;  %v922_v39 = vld [vmem:[%s19707_s1 + $0x1bc0] sm:$0xff]  ;;  %v967_v52 = vld [vmem:[%s19707_s1 + $0x1d28] sm:$0xff] }
 0x1a4   :  { %v926_v62 = vld [vmem:[%s19707_s1 + $0x1be0] sm:$0xff] }
 0x1a5   :  { %v13339_v10 = vcombine.low %v922_v39, %v926_v62  ;;  %v966_v51 = vld [vmem:[%s19707_s1 + $0x1d20] sm:$0xff] }
 0x1a6   :  { %9838 = vmatpush1.bf16.msra.mxu0 %v13283_v4  ;;  %10371 = vmatpush1.bf16.msra.mxu1 %v13285_v5  ;;  %v13340_v4 = vcombine.high %v922_v39, %v926_v62  ;;  %v13342_v5 = vcombine.high %v923_v63, %v927_v0  ;;  %v970_v39 = vld [vmem:[%s19707_s1 + $0x1d40] sm:$0xff]  ;;  %v971_v63 = vld [vmem:[%s19707_s1 + $0x1d48] sm:$0xff] }
 0x1a7   :  { %9839 = vmatprep.subr.bf16.mxu0 %v13292_v6  ;;  %10372 = vmatprep.subr.bf16.mxu1 %v13294_v7  ;;  %v930_v6 = vld [vmem:[%s19707_s1 + $0x1c00] sm:$0xff]  ;;  %v975_v0 = vld [vmem:[%s19707_s1 + $0x1d68] sm:$0xff] }
 0x1a8   :  { %v934_v7 = vld [vmem:[%s19707_s1 + $0x1c20] sm:$0xff] }
 0x1a9   :  { %v974_v62 = vld [vmem:[%s19707_s1 + $0x1d60] sm:$0xff] }
 0x1aa   :  { %9840 = vmatpush1.bf16.msra.mxu0 %v13291_v13  ;;  %10373 = vmatpush1.bf16.msra.mxu1 %v13293_v14  ;;  %v13348_v13 = vcombine.high %v930_v6, %v934_v7  ;;  %v13350_v14 = vcombine.high %v931_v8, %v935_v9 }
 0x1ab   :  { %9841 = vmatprep.subr.bf16.mxu0 %v13300_v17  ;;  %10374 = vmatprep.subr.bf16.mxu1 %v13302_v53  ;;  %v938_v17 = vld [vmem:[%s19707_s1 + $0x1c40] sm:$0xff] }
 0x1ac   :  { %v942_v53 = vld [vmem:[%s19707_s1 + $0x1c60] sm:$0xff] }
 0x1ad   :  { %v13356_v49 = vcombine.high %v938_v17, %v942_v53 }
 0x1ae   :  { %9842 = vmatpush1.bf16.msra.mxu0 %v13299_v24  ;;  %10375 = vmatpush1.bf16.msra.mxu1 %v13301_v26  ;;  %v13347_v24 = vcombine.low %v930_v6, %v934_v7  ;;  %v13349_v26 = vcombine.low %v931_v8, %v935_v9  ;;  %v978_v6 = vld [vmem:[%s19707_s1 + $0x1d80] sm:$0xff]  ;;  %v979_v8 = vld [vmem:[%s19707_s1 + $0x1d88] sm:$0xff] }
 0x1af   :  { %9843 = vmatprep.subr.bf16.mxu0 %v13308_v15  ;;  %10376 = vmatprep.subr.bf16.mxu1 %v13310_v28  ;;  %v13358_v15 = vcombine.high %v939_v20, %v943_v59  ;;  %v946_v28 = vld [vmem:[%s19707_s1 + $0x1c80] sm:$0xff]  ;;  %v983_v9 = vld [vmem:[%s19707_s1 + $0x1da8] sm:$0xff] }
 0x1b0   :  { %v982_v7 = vld [vmem:[%s19707_s1 + $0x1da0] sm:$0xff] }
 0x1b2   :  { %9844 = vmatpush1.bf16.msra.mxu0 %v13307_v34  ;;  %10377 = vmatpush1.bf16.msra.mxu1 %v13309_v35  ;;  %v13355_v34 = vcombine.low %v938_v17, %v942_v53  ;;  %v13357_v35 = vcombine.low %v939_v20, %v943_v59  ;;  %v986_v17 = vld [vmem:[%s19707_s1 + $0x1dc0] sm:$0xff]  ;;  %v987_v20 = vld [vmem:[%s19707_s1 + $0x1dc8] sm:$0xff] }
 0x1b3   :  { %9845 = vmatprep.subr.bf16.mxu0 %v13316_v37  ;;  %10378 = vmatprep.subr.bf16.mxu1 %v13318_v38  ;;  %v13364_v37 = vcombine.high %v946_v28, %v950_v29  ;;  %v13366_v38 = vcombine.high %v947_v32, %v951_v33  ;;  %v990_v53 = vld [vmem:[%s19707_s1 + $0x1de0] sm:$0xff]  ;;  %v991_v59 = vld [vmem:[%s19707_s1 + $0x1de8] sm:$0xff] }
 0x1b6   :  { %9846 = vmatpush1.bf16.msra.mxu0 %v13315_v43  ;;  %10379 = vmatpush1.bf16.msra.mxu1 %v13317_v44  ;;  %v13363_v43 = vcombine.low %v946_v28, %v950_v29  ;;  %v13365_v44 = vcombine.low %v947_v32, %v951_v33  ;;  %v994_v28 = vld [vmem:[%s19707_s1 + $0x1e00] sm:$0xff]  ;;  %v995_v32 = vld [vmem:[%s19707_s1 + $0x1e08] sm:$0xff] }
 0x1b7   :  { %9847 = vmatprep.subr.bf16.mxu0 %v13324_v47  ;;  %10380 = vmatprep.subr.bf16.mxu1 %v13326_v48  ;;  %v13372_v47 = vcombine.high %v954_v40, %v958_v41  ;;  %v13374_v48 = vcombine.high %v955_v25, %v959_v42  ;;  %v998_v29 = vld [vmem:[%s19707_s1 + $0x1e20] sm:$0xff]  ;;  %v999_v33 = vld [vmem:[%s19707_s1 + $0x1e28] sm:$0xff] }
 0x1ba   :  { %9848 = vmatpush1.bf16.msra.mxu0 %v13323_v54  ;;  %10381 = vmatpush1.bf16.msra.mxu1 %v13325_v56  ;;  %v13371_v54 = vcombine.low %v954_v40, %v958_v41  ;;  %v13373_v56 = vcombine.low %v955_v25, %v959_v42  ;;  %v1002_v40 = vld [vmem:[%s19707_s1 + $0x1e40] sm:$0xff]  ;;  %v1003_v25 = vld [vmem:[%s19707_s1 + $0x1e48] sm:$0xff] }
 0x1bb   :  { %9849 = vmatprep.subr.bf16.mxu0 %v13332_v60  ;;  %10382 = vmatprep.subr.bf16.mxu1 %v13334_v61  ;;  %v13380_v60 = vcombine.high %v962_v50, %v966_v51  ;;  %v13382_v61 = vcombine.high %v963_v18, %v967_v52  ;;  %v1006_v41 = vld [vmem:[%s19707_s1 + $0x1e60] sm:$0xff]  ;;  %v1007_v42 = vld [vmem:[%s19707_s1 + $0x1e68] sm:$0xff] }
 0x1be   :  { %9850 = vmatpush1.bf16.msra.mxu0 %v13331_v2  ;;  %10383 = vmatpush1.bf16.msra.mxu1 %v13333_v3  ;;  %v13379_v2 = vcombine.low %v962_v50, %v966_v51  ;;  %v13381_v3 = vcombine.low %v963_v18, %v967_v52  ;;  %v1010_v50 = vld [vmem:[%s19707_s1 + $0x1e80] sm:$0xff]  ;;  %v1011_v18 = vld [vmem:[%s19707_s1 + $0x1e88] sm:$0xff] }
 0x1bf   :  { %9851 = vmatprep.subr.bf16.mxu0 %v13340_v4  ;;  %10384 = vmatprep.subr.bf16.mxu1 %v13342_v5  ;;  %v13388_v4 = vcombine.high %v970_v39, %v974_v62  ;;  %v13390_v5 = vcombine.high %v971_v63, %v975_v0  ;;  %v1014_v51 = vld [vmem:[%s19707_s1 + $0x1ea0] sm:$0xff]  ;;  %v1015_v52 = vld [vmem:[%s19707_s1 + $0x1ea8] sm:$0xff] }
 0x1c2   :  { %9852 = vmatpush1.bf16.msra.mxu0 %v13339_v10  ;;  %10385 = vmatpush1.bf16.msra.mxu1 %v13341_v11  ;;  %v13387_v10 = vcombine.low %v970_v39, %v974_v62  ;;  %v13389_v11 = vcombine.low %v971_v63, %v975_v0  ;;  %v1018_v39 = vld [vmem:[%s19707_s1 + $0x1ec0] sm:$0xff]  ;;  %v1019_v63 = vld [vmem:[%s19707_s1 + $0x1ec8] sm:$0xff] }
 0x1c3   :  { %9862 = vmatprep.subr.bf16.mxu0 %v13348_v13  ;;  %10395 = vmatprep.subr.bf16.mxu1 %v13350_v14  ;;  %v13396_v13 = vcombine.high %v978_v6, %v982_v7  ;;  %v13398_v14 = vcombine.high %v979_v8, %v983_v9  ;;  %v1022_v62 = vld [vmem:[%s19707_s1 + $0x1ee0] sm:$0xff]  ;;  %v1023_v0 = vld [vmem:[%s19707_s1 + $0x1ee8] sm:$0xff] }
 0x1c5   :  { %9854 = vmatmul.mubr.bf16.vlgmr.msra.gmra.mrb[0].mxu0 %v15979_v19  ;;  %10387 = vmatmul.mubr.bf16.vlgmr.msra.gmra.mrb[0].mxu1 %v15979_v19 }
 0x1c6   :  { %9863 = vmatpush1.bf16.msra.mxu0 %v13347_v24  ;;  %10396 = vmatpush1.bf16.msra.mxu1 %v13349_v26  ;;  %v13395_v24 = vcombine.low %v978_v6, %v982_v7  ;;  %v13397_v26 = vcombine.low %v979_v8, %v983_v9  ;;  %v1026_v6 = vld [vmem:[%s19707_s1 + $0x1f00] sm:$0xff]  ;;  %v1027_v8 = vld [vmem:[%s19707_s1 + $0x1f08] sm:$0xff] }
 0x1c7   :  { %9864 = vmatprep.subr.bf16.mxu0 %v13356_v49  ;;  %10397 = vmatprep.subr.bf16.mxu1 %v13358_v15  ;;  %v13404_v49 = vcombine.high %v986_v17, %v990_v53  ;;  %v13406_v15 = vcombine.high %v987_v20, %v991_v59  ;;  %v1030_v7 = vld [vmem:[%s19707_s1 + $0x1f20] sm:$0xff]  ;;  %v1031_v9 = vld [vmem:[%s19707_s1 + $0x1f28] sm:$0xff] }
 0x1c8   :  { %9894 = vmatprep.mubr.bf16.mxu0 %v16000_v30  ;;  %10427 = vmatprep.mubr.bf16.mxu1 %v16000_v30 }
 0x1ca   :  { %9865 = vmatpush1.bf16.msra.mxu0 %v13355_v34  ;;  %10398 = vmatpush1.bf16.msra.mxu1 %v13357_v35  ;;  %v13403_v34 = vcombine.low %v986_v17, %v990_v53  ;;  %v13405_v35 = vcombine.low %v987_v20, %v991_v59  ;;  %v1034_v17 = vld [vmem:[%s19707_s1 + $0x1f40] sm:$0xff]  ;;  %v1035_v20 = vld [vmem:[%s19707_s1 + $0x1f48] sm:$0xff] }
 0x1cb   :  { %9866 = vmatprep.subr.bf16.mxu0 %v13364_v37  ;;  %10399 = vmatprep.subr.bf16.mxu1 %v13366_v38  ;;  %v13412_v37 = vcombine.high %v994_v28, %v998_v29  ;;  %v13414_v38 = vcombine.high %v995_v32, %v999_v33  ;;  %v1038_v53 = vld [vmem:[%s19707_s1 + $0x1f60] sm:$0xff]  ;;  %v1039_v59 = vld [vmem:[%s19707_s1 + $0x1f68] sm:$0xff] }
 0x1ce   :  { %9867 = vmatpush1.bf16.msra.mxu0 %v13363_v43  ;;  %10400 = vmatpush1.bf16.msra.mxu1 %v13365_v44  ;;  %v13411_v43 = vcombine.low %v994_v28, %v998_v29  ;;  %v13413_v44 = vcombine.low %v995_v32, %v999_v33  ;;  %v1042_v28 = vld [vmem:[%s19707_s1 + $0x1f80] sm:$0xff]  ;;  %v1043_v32 = vld [vmem:[%s19707_s1 + $0x1f88] sm:$0xff] }
 0x1cf   :  { %9868 = vmatprep.subr.bf16.mxu0 %v13372_v47  ;;  %10401 = vmatprep.subr.bf16.mxu1 %v13374_v48  ;;  %v13420_v47 = vcombine.high %v1002_v40, %v1006_v41  ;;  %v13422_v48 = vcombine.high %v1003_v25, %v1007_v42  ;;  %v1046_v29 = vld [vmem:[%s19707_s1 + $0x1fa0] sm:$0xff]  ;;  %v1047_v33 = vld [vmem:[%s19707_s1 + $0x1fa8] sm:$0xff] }
 0x1d2   :  { %9869 = vmatpush1.bf16.msra.mxu0 %v13371_v54  ;;  %10402 = vmatpush1.bf16.msra.mxu1 %v13373_v56  ;;  %v13419_v54 = vcombine.low %v1002_v40, %v1006_v41  ;;  %v13421_v56 = vcombine.low %v1003_v25, %v1007_v42  ;;  %v1050_v40 = vld [vmem:[%s19707_s1 + $0x1fc0] sm:$0xff]  ;;  %v1051_v25 = vld [vmem:[%s19707_s1 + $0x1fc8] sm:$0xff] }
 0x1d3   :  { %9870 = vmatprep.subr.bf16.mxu0 %v13380_v60  ;;  %10403 = vmatprep.subr.bf16.mxu1 %v13382_v61  ;;  %v13428_v60 = vcombine.high %v1010_v50, %v1014_v51  ;;  %v13430_v61 = vcombine.high %v1011_v18, %v1015_v52  ;;  %v1054_v41 = vld [vmem:[%s19707_s1 + $0x1fe0] sm:$0xff]  ;;  %v1055_v42 = vld [vmem:[%s19707_s1 + $0x1fe8] sm:$0xff] }
 0x1d6   :  { %9871 = vmatpush1.bf16.msra.mxu0 %v13379_v2  ;;  %10404 = vmatpush1.bf16.msra.mxu1 %v13381_v3  ;;  %v13427_v2 = vcombine.low %v1010_v50, %v1014_v51  ;;  %v13429_v3 = vcombine.low %v1011_v18, %v1015_v52  ;;  %v1058_v50 = vld [vmem:[%s19707_s1 + $0x2000] sm:$0xff]  ;;  %v1059_v18 = vld [vmem:[%s19707_s1 + $0x2008] sm:$0xff] }
 0x1d7   :  { %9872 = vmatprep.subr.bf16.mxu0 %v13388_v4  ;;  %10405 = vmatprep.subr.bf16.mxu1 %v13390_v5  ;;  %v13436_v4 = vcombine.high %v1018_v39, %v1022_v62  ;;  %v13438_v5 = vcombine.high %v1019_v63, %v1023_v0  ;;  %v1062_v51 = vld [vmem:[%s19707_s1 + $0x2020] sm:$0xff]  ;;  %v1063_v52 = vld [vmem:[%s19707_s1 + $0x2028] sm:$0xff] }
 0x1da   :  { %9873 = vmatpush1.bf16.msra.mxu0 %v13387_v10  ;;  %10406 = vmatpush1.bf16.msra.mxu1 %v13389_v11  ;;  %v13435_v10 = vcombine.low %v1018_v39, %v1022_v62  ;;  %v13437_v11 = vcombine.low %v1019_v63, %v1023_v0  ;;  %v1066_v39 = vld [vmem:[%s19707_s1 + $0x2040] sm:$0xff]  ;;  %v16188_v63 = vcombine.low %v15990_v23, %v15990_v23  ;;  %v1067_v0 = vld [vmem:[%s19707_s1 + $0x2048] sm:$0xff] }
 0x1db   :  { %9874 = vmatprep.subr.bf16.mxu0 %v13396_v13  ;;  %10407 = vmatprep.subr.bf16.mxu1 %v13398_v14  ;;  %v13444_v13 = vcombine.high %v1026_v6, %v1030_v7  ;;  %v13446_v14 = vcombine.high %v1027_v8, %v1031_v9  ;;  %v1070_v62 = vld [vmem:[%s19707_s1 + $0x2060] sm:$0xff] }
 0x1dc   :  { %v13484_v23 = vcombine.high %v1066_v39, %v1070_v62 }
 0x1de   :  { %9875 = vmatpush1.bf16.msra.mxu0 %v13395_v24  ;;  %10408 = vmatpush1.bf16.msra.mxu1 %v13397_v26  ;;  %v13443_v24 = vcombine.low %v1026_v6, %v1030_v7  ;;  %v13445_v26 = vcombine.low %v1027_v8, %v1031_v9  ;;  %v1074_v7 = vld [vmem:[%s19707_s1 + $0x2080] sm:$0xff] }
 0x1df   :  { %9876 = vmatprep.subr.bf16.mxu0 %v13404_v49  ;;  %10409 = vmatprep.subr.bf16.mxu1 %v13406_v15  ;;  %v13452_v49 = vcombine.high %v1034_v17, %v1038_v53  ;;  %v13454_v15 = vcombine.high %v1035_v20, %v1039_v59  ;;  %v1078_v8 = vld [vmem:[%s19707_s1 + $0x20a0] sm:$0xff] }
 0x1e2   :  { %9877 = vmatpush1.bf16.msra.mxu0 %v13403_v34  ;;  %10410 = vmatpush1.bf16.msra.mxu1 %v13405_v35  ;;  %v13451_v34 = vcombine.low %v1034_v17, %v1038_v53  ;;  %v13453_v35 = vcombine.low %v1035_v20, %v1039_v59  ;;  %v13492_v17 = vcombine.high %v1074_v7, %v1078_v8  ;;  %v1082_v20 = vld [vmem:[%s19707_s1 + $0x20c0] sm:$0xff] }
 0x1e3   :  { %9878 = vmatprep.subr.bf16.mxu0 %v13412_v37  ;;  %10411 = vmatprep.subr.bf16.mxu1 %v13414_v38  ;;  %v13460_v37 = vcombine.high %v1042_v28, %v1046_v29  ;;  %v13462_v38 = vcombine.high %v1043_v32, %v1047_v33  ;;  %v1086_v59 = vld [vmem:[%s19707_s1 + $0x20e0] sm:$0xff] }
 0x1e6   :  { %9879 = vmatpush1.bf16.msra.mxu0 %v13411_v43  ;;  %10412 = vmatpush1.bf16.msra.mxu1 %v13413_v44  ;;  %v13459_v43 = vcombine.low %v1042_v28, %v1046_v29  ;;  %v13461_v44 = vcombine.low %v1043_v32, %v1047_v33  ;;  %v13500_v28 = vcombine.high %v1082_v20, %v1086_v59  ;;  %v1090_v32 = vld [vmem:[%s19707_s1 + $0x2100] sm:$0xff] }
 0x1e7   :  { %9880 = vmatprep.subr.bf16.mxu0 %v13420_v47  ;;  %10413 = vmatprep.subr.bf16.mxu1 %v13422_v48  ;;  %v13468_v47 = vcombine.high %v1050_v40, %v1054_v41  ;;  %v13470_v48 = vcombine.high %v1051_v25, %v1055_v42  ;;  %v1094_v33 = vld [vmem:[%s19707_s1 + $0x2120] sm:$0xff] }
 0x1ea   :  { %9881 = vmatpush1.bf16.msra.mxu0 %v13419_v54  ;;  %10414 = vmatpush1.bf16.msra.mxu1 %v13421_v56  ;;  %v13467_v54 = vcombine.low %v1050_v40, %v1054_v41  ;;  %v13469_v56 = vcombine.low %v1051_v25, %v1055_v42  ;;  %v13508_v40 = vcombine.high %v1090_v32, %v1094_v33  ;;  %v1098_v25 = vld [vmem:[%s19707_s1 + $0x2140] sm:$0xff] }
 0x1eb   :  { %9882 = vmatprep.subr.bf16.mxu0 %v13428_v60  ;;  %10415 = vmatprep.subr.bf16.mxu1 %v13430_v61  ;;  %v13476_v60 = vcombine.high %v1058_v50, %v1062_v51  ;;  %v13478_v61 = vcombine.high %v1059_v18, %v1063_v52  ;;  %v1102_v42 = vld [vmem:[%s19707_s1 + $0x2160] sm:$0xff] }
 0x1ee   :  { %9883 = vmatpush1.bf16.msra.mxu0 %v13427_v2  ;;  %10416 = vmatpush1.bf16.msra.mxu1 %v13429_v3  ;;  %v1071_v2 = vld [vmem:[%s19707_s1 + $0x2068] sm:$0xff]  ;;  %v16199_v3 = vld [vmem:[%s19708_s0 + $0x40] sm:$0xff] }
 0x1ef   :  { %9884 = vmatprep.subr.bf16.mxu0 %v13436_v4  ;;  %10417 = vmatprep.subr.bf16.mxu1 %v13438_v5  ;;  %v13475_v4 = vcombine.low %v1058_v50, %v1062_v51  ;;  %v13477_v5 = vcombine.low %v1059_v18, %v1063_v52  ;;  %v13486_v6 = vcombine.high %v1067_v0, %v1071_v2  ;;  %v1106_v18 = vld [vmem:[%s19707_s1 + $0x2180] sm:$0xff] }
 0x1f0   :  { %v16209_v9 = vcombine.high %v16199_v3, %v16199_v3  ;;  %v13516_v50 = vcombine.high %v1098_v25, %v1102_v42  ;;  %v1110_v52 = vld [vmem:[%s19707_s1 + $0x21a0] sm:$0xff] }
 0x1f2   :  { %9885 = vmatpush1.bf16.msra.mxu0 %v13435_v10  ;;  %10418 = vmatpush1.bf16.msra.mxu1 %v13437_v11  ;;  %v1075_v10 = vld [vmem:[%s19707_s1 + $0x2088] sm:$0xff] }
 0x1f3   :  { %9886 = vmatprep.subr.bf16.mxu0 %v13444_v13  ;;  %10419 = vmatprep.subr.bf16.mxu1 %v13446_v14  ;;  %v1079_v11 = vld [vmem:[%s19707_s1 + $0x20a8] sm:$0xff]  ;;  %v13483_v13 = vcombine.low %v1066_v39, %v1070_v62  ;;  %v13485_v14 = vcombine.low %v1067_v0, %v1071_v2  ;;  %v13524_v39 = vcombine.high %v1106_v18, %v1110_v52  ;;  %v1114_v0 = vld [vmem:[%s19707_s1 + $0x21c0] sm:$0xff] }
 0x1f4   :  { %v13494_v53 = vcombine.high %v1075_v10, %v1079_v11  ;;  %v1118_v2 = vld [vmem:[%s19707_s1 + $0x21e0] sm:$0xff] }
 0x1f6   :  { %9887 = vmatpush1.bf16.msra.mxu0 %v13443_v24  ;;  %10420 = vmatpush1.bf16.msra.mxu1 %v13445_v26  ;;  %v1083_v24 = vld [vmem:[%s19707_s1 + $0x20c8] sm:$0xff] }
 0x1f7   :  { %9888 = vmatprep.subr.bf16.mxu0 %v13452_v49  ;;  %10421 = vmatprep.subr.bf16.mxu1 %v13454_v15  ;;  %v1087_v26 = vld [vmem:[%s19707_s1 + $0x20e8] sm:$0xff]  ;;  %v13491_v49 = vcombine.low %v1074_v7, %v1078_v8  ;;  %v13493_v15 = vcombine.low %v1075_v10, %v1079_v11  ;;  %v13532_v7 = vcombine.high %v1114_v0, %v1118_v2  ;;  %v1122_v10 = vld [vmem:[%s19707_s1 + $0x2200] sm:$0xff] }
 0x1f8   :  { %v13502_v29 = vcombine.high %v1083_v24, %v1087_v26  ;;  %v1126_v11 = vld [vmem:[%s19707_s1 + $0x2220] sm:$0xff] }
 0x1fa   :  { %9889 = vmatpush1.bf16.msra.mxu0 %v13451_v34  ;;  %10422 = vmatpush1.bf16.msra.mxu1 %v13453_v35  ;;  %v1091_v34 = vld [vmem:[%s19707_s1 + $0x2108] sm:$0xff] }
 0x1fb   :  { %9890 = vmatprep.subr.bf16.mxu0 %v13460_v37  ;;  %10423 = vmatprep.subr.bf16.mxu1 %v13462_v38  ;;  %v1095_v35 = vld [vmem:[%s19707_s1 + $0x2128] sm:$0xff]  ;;  %v13499_v37 = vcombine.low %v1082_v20, %v1086_v59  ;;  %v13501_v38 = vcombine.low %v1083_v24, %v1087_v26  ;;  %v13540_v20 = vcombine.high %v1122_v10, %v1126_v11  ;;  %v1130_v24 = vld [vmem:[%s19707_s1 + $0x2240] sm:$0xff] }
 0x1fc   :  { %v13510_v41 = vcombine.high %v1091_v34, %v1095_v35  ;;  %v1134_v26 = vld [vmem:[%s19707_s1 + $0x2260] sm:$0xff] }
 0x1fe   :  { %9891 = vmatpush1.bf16.msra.mxu0 %v13459_v43  ;;  %10424 = vmatpush1.bf16.msra.mxu1 %v13461_v44  ;;  %v1099_v43 = vld [vmem:[%s19707_s1 + $0x2148] sm:$0xff] }
 0x1ff   :  { %9892 = vmatprep.subr.bf16.mxu0 %v13468_v47  ;;  %10425 = vmatprep.subr.bf16.mxu1 %v13470_v48  ;;  %v1103_v44 = vld [vmem:[%s19707_s1 + $0x2168] sm:$0xff]  ;;  %v13507_v47 = vcombine.low %v1090_v32, %v1094_v33  ;;  %v13509_v48 = vcombine.low %v1091_v34, %v1095_v35  ;;  %v13548_v32 = vcombine.high %v1130_v24, %v1134_v26  ;;  %v1138_v34 = vld [vmem:[%s19707_s1 + $0x2280] sm:$0xff] }
 0x200   :  { %v13518_v51 = vcombine.high %v1099_v43, %v1103_v44  ;;  %v1142_v35 = vld [vmem:[%s19707_s1 + $0x22a0] sm:$0xff] }
 0x202   :  { %9893 = vmatpush1.bf16.msra.mxu0 %v13467_v54  ;;  %10426 = vmatpush1.bf16.msra.mxu1 %v13469_v56  ;;  %v1107_v54 = vld [vmem:[%s19707_s1 + $0x2188] sm:$0xff] }
 0x203   :  { %9903 = vmatprep.subr.bf16.mxu0 %v13476_v60  ;;  %10436 = vmatprep.subr.bf16.mxu1 %v13478_v61  ;;  %v1111_v56 = vld [vmem:[%s19707_s1 + $0x21a8] sm:$0xff]  ;;  %v13515_v60 = vcombine.low %v1098_v25, %v1102_v42  ;;  %v13517_v61 = vcombine.low %v1099_v43, %v1103_v44  ;;  %v13556_v25 = vcombine.high %v1138_v34, %v1142_v35  ;;  %v1146_v43 = vld [vmem:[%s19707_s1 + $0x22c0] sm:$0xff] }
 0x204   :  { %v13526_v62 = vcombine.high %v1107_v54, %v1111_v56  ;;  %v1150_v44 = vld [vmem:[%s19707_s1 + $0x22e0] sm:$0xff] }
 0x205   :  { %9895 = vmatmul.mubr.bf16.vlgmr.msra.gmra.mrb[0].mxu0 %v16188_v63  ;;  %10428 = vmatmul.mubr.bf16.vlgmr.msra.gmra.mrb[0].mxu1 %v16188_v63 }
 0x206   :  { %9904 = vmatpush1.bf16.msra.mxu0 %v13475_v4  ;;  %10437 = vmatpush1.bf16.msra.mxu1 %v13477_v5  ;;  %v1115_v4 = vld [vmem:[%s19707_s1 + $0x21c8] sm:$0xff] }
 0x207   :  { %9905 = vmatprep.subr.bf16.mxu0 %v13484_v23  ;;  %10438 = vmatprep.subr.bf16.mxu1 %v13486_v6  ;;  %v1119_v5 = vld [vmem:[%s19707_s1 + $0x21e8] sm:$0xff]  ;;  %v13523_v23 = vcombine.low %v1106_v18, %v1110_v52  ;;  %v13525_v6 = vcombine.low %v1107_v54, %v1111_v56  ;;  %v13564_v18 = vcombine.high %v1146_v43, %v1150_v44  ;;  %v1154_v54 = vld [vmem:[%s19707_s1 + $0x2300] sm:$0xff] }
 0x208   :  { %9935 = vmatprep.mubr.bf16.mxu0 %v16209_v9  ;;  %10468 = vmatprep.mubr.bf16.mxu1 %v16209_v9  ;;  %v13534_v8 = vcombine.high %v1115_v4, %v1119_v5  ;;  %v1158_v56 = vld [vmem:[%s19707_s1 + $0x2320] sm:$0xff] }
 0x20a   :  { %9906 = vmatpush1.bf16.msra.mxu0 %v13483_v13  ;;  %10439 = vmatpush1.bf16.msra.mxu1 %v13485_v14  ;;  %v1123_v13 = vld [vmem:[%s19707_s1 + $0x2208] sm:$0xff] }
 0x20b   :  { %9907 = vmatprep.subr.bf16.mxu0 %v13492_v17  ;;  %10440 = vmatprep.subr.bf16.mxu1 %v13494_v53  ;;  %v1127_v14 = vld [vmem:[%s19707_s1 + $0x2228] sm:$0xff]  ;;  %v13531_v17 = vcombine.low %v1114_v0, %v1118_v2  ;;  %v13533_v53 = vcombine.low %v1115_v4, %v1119_v5  ;;  %v13572_v0 = vcombine.high %v1154_v54, %v1158_v56  ;;  %v1162_v4 = vld [vmem:[%s19707_s1 + $0x2340] sm:$0xff] }
 0x20c   :  { %v13542_v59 = vcombine.high %v1123_v13, %v1127_v14  ;;  %v1166_v5 = vld [vmem:[%s19707_s1 + $0x2360] sm:$0xff] }
 0x20e   :  { %9908 = vmatpush1.bf16.msra.mxu0 %v13491_v49  ;;  %10441 = vmatpush1.bf16.msra.mxu1 %v13493_v15  ;;  %v1131_v49 = vld [vmem:[%s19707_s1 + $0x2248] sm:$0xff] }
 0x20f   :  { %9909 = vmatprep.subr.bf16.mxu0 %v13500_v28  ;;  %10442 = vmatprep.subr.bf16.mxu1 %v13502_v29  ;;  %v1135_v15 = vld [vmem:[%s19707_s1 + $0x2268] sm:$0xff]  ;;  %v13539_v28 = vcombine.low %v1122_v10, %v1126_v11  ;;  %v13541_v29 = vcombine.low %v1123_v13, %v1127_v14  ;;  %v13580_v10 = vcombine.high %v1162_v4, %v1166_v5  ;;  %v1170_v13 = vld [vmem:[%s19707_s1 + $0x2380] sm:$0xff] }
 0x210   :  { %v13550_v33 = vcombine.high %v1131_v49, %v1135_v15  ;;  %v1174_v14 = vld [vmem:[%s19707_s1 + $0x23a0] sm:$0xff] }
 0x212   :  { %9910 = vmatpush1.bf16.msra.mxu0 %v13499_v37  ;;  %10443 = vmatpush1.bf16.msra.mxu1 %v13501_v38  ;;  %v1139_v37 = vld [vmem:[%s19707_s1 + $0x2288] sm:$0xff] }
 0x213   :  { %9911 = vmatprep.subr.bf16.mxu0 %v13508_v40  ;;  %10444 = vmatprep.subr.bf16.mxu1 %v13510_v41  ;;  %v1143_v38 = vld [vmem:[%s19707_s1 + $0x22a8] sm:$0xff]  ;;  %v13547_v40 = vcombine.low %v1130_v24, %v1134_v26  ;;  %v13549_v41 = vcombine.low %v1131_v49, %v1135_v15  ;;  %v13588_v24 = vcombine.high %v1170_v13, %v1174_v14  ;;  %v1178_v49 = vld [vmem:[%s19707_s1 + $0x23c0] sm:$0xff] }
 0x214   :  { %v13558_v42 = vcombine.high %v1139_v37, %v1143_v38  ;;  %v1182_v15 = vld [vmem:[%s19707_s1 + $0x23e0] sm:$0xff] }
 0x216   :  { %9912 = vmatpush1.bf16.msra.mxu0 %v13507_v47  ;;  %10445 = vmatpush1.bf16.msra.mxu1 %v13509_v48  ;;  %v1147_v47 = vld [vmem:[%s19707_s1 + $0x22c8] sm:$0xff] }
 0x217   :  { %9913 = vmatprep.subr.bf16.mxu0 %v13516_v50  ;;  %10446 = vmatprep.subr.bf16.mxu1 %v13518_v51  ;;  %v1151_v48 = vld [vmem:[%s19707_s1 + $0x22e8] sm:$0xff]  ;;  %v13555_v50 = vcombine.low %v1138_v34, %v1142_v35  ;;  %v13557_v51 = vcombine.low %v1139_v37, %v1143_v38  ;;  %v13596_v34 = vcombine.high %v1178_v49, %v1182_v15  ;;  %v1186_v37 = vld [vmem:[%s19707_s1 + $0x2400] sm:$0xff] }
 0x218   :  { %v13566_v52 = vcombine.high %v1147_v47, %v1151_v48  ;;  %v1190_v38 = vld [vmem:[%s19707_s1 + $0x2420] sm:$0xff] }
 0x21a   :  { %9914 = vmatpush1.bf16.msra.mxu0 %v13515_v60  ;;  %10447 = vmatpush1.bf16.msra.mxu1 %v13517_v61  ;;  %v1155_v60 = vld [vmem:[%s19707_s1 + $0x2308] sm:$0xff] }
 0x21b   :  { %9915 = vmatprep.subr.bf16.mxu0 %v13524_v39  ;;  %10448 = vmatprep.subr.bf16.mxu1 %v13526_v62  ;;  %v1159_v61 = vld [vmem:[%s19707_s1 + $0x2328] sm:$0xff]  ;;  %v13563_v39 = vcombine.low %v1146_v43, %v1150_v44  ;;  %v13565_v62 = vcombine.low %v1147_v47, %v1151_v48  ;;  %v13604_v43 = vcombine.high %v1186_v37, %v1190_v38  ;;  %v1194_v47 = vld [vmem:[%s19707_s1 + $0x2440] sm:$0xff] }
 0x21c   :  { %v13574_v2 = vcombine.high %v1155_v60, %v1159_v61  ;;  %v1198_v48 = vld [vmem:[%s19707_s1 + $0x2460] sm:$0xff] }
 0x21e   :  { %9916 = vmatpush1.bf16.msra.mxu0 %v13523_v23  ;;  %10449 = vmatpush1.bf16.msra.mxu1 %v13525_v6  ;;  %v1163_v23 = vld [vmem:[%s19707_s1 + $0x2348] sm:$0xff] }
 0x21f   :  { %9917 = vmatprep.subr.bf16.mxu0 %v13532_v7  ;;  %10450 = vmatprep.subr.bf16.mxu1 %v13534_v8  ;;  %v1167_v6 = vld [vmem:[%s19707_s1 + $0x2368] sm:$0xff]  ;;  %v13571_v7 = vcombine.low %v1154_v54, %v1158_v56  ;;  %v13573_v8 = vcombine.low %v1155_v60, %v1159_v61  ;;  %v13603_v54 = vcombine.low %v1186_v37, %v1190_v38  ;;  %v1202_v61 = vld [vmem:[%s19707_s1 + $0x2480] sm:$0xff] }
 0x220   :  { %v13582_v11 = vcombine.high %v1163_v23, %v1167_v6 }
 0x222   :  { %9918 = vmatpush1.bf16.msra.mxu0 %v13531_v17  ;;  %10451 = vmatpush1.bf16.msra.mxu1 %v13533_v53  ;;  %v1171_v17 = vld [vmem:[%s19707_s1 + $0x2388] sm:$0xff] }
 0x223   :  { %9919 = vmatprep.subr.bf16.mxu0 %v13540_v20  ;;  %10452 = vmatprep.subr.bf16.mxu1 %v13542_v59  ;;  %v1175_v53 = vld [vmem:[%s19707_s1 + $0x23a8] sm:$0xff]  ;;  %v13579_v20 = vcombine.low %v1162_v4, %v1166_v5  ;;  %v13581_v59 = vcombine.low %v1163_v23, %v1167_v6  ;;  %v13611_v4 = vcombine.low %v1194_v47, %v1198_v48 }
 0x224   :  { %v13590_v26 = vcombine.high %v1171_v17, %v1175_v53 }
 0x226   :  { %9920 = vmatpush1.bf16.msra.mxu0 %v13539_v28  ;;  %10453 = vmatpush1.bf16.msra.mxu1 %v13541_v29  ;;  %v1179_v28 = vld [vmem:[%s19707_s1 + $0x23c8] sm:$0xff] }
 0x227   :  { %9921 = vmatprep.subr.bf16.mxu0 %v13548_v32  ;;  %10454 = vmatprep.subr.bf16.mxu1 %v13550_v33  ;;  %v1183_v29 = vld [vmem:[%s19707_s1 + $0x23e8] sm:$0xff]  ;;  %v13587_v32 = vcombine.low %v1170_v13, %v1174_v14  ;;  %v13589_v33 = vcombine.low %v1171_v17, %v1175_v53 }
 0x228   :  { %v13598_v35 = vcombine.high %v1179_v28, %v1183_v29 }
 0x22a   :  { %9922 = vmatpush1.bf16.msra.mxu0 %v13547_v40  ;;  %10455 = vmatpush1.bf16.msra.mxu1 %v13549_v41  ;;  %v1187_v40 = vld [vmem:[%s19707_s1 + $0x2408] sm:$0xff] }
 0x22b   :  { %9923 = vmatprep.subr.bf16.mxu0 %v13556_v25  ;;  %10456 = vmatprep.subr.bf16.mxu1 %v13558_v42  ;;  %v1191_v41 = vld [vmem:[%s19707_s1 + $0x2428] sm:$0xff]  ;;  %v13595_v25 = vcombine.low %v1178_v49, %v1182_v15  ;;  %v13597_v42 = vcombine.low %v1179_v28, %v1183_v29 }
 0x22c   :  { %v13606_v44 = vcombine.high %v1187_v40, %v1191_v41  ;;  %v13605_v56 = vcombine.low %v1187_v40, %v1191_v41 }
 0x22e   :  { %9924 = vmatpush1.bf16.msra.mxu0 %v13555_v50  ;;  %10457 = vmatpush1.bf16.msra.mxu1 %v13557_v51  ;;  %v16397_v50 = vcombine.low %v16199_v3, %v16199_v3  ;;  %v1195_v51 = vld [vmem:[%s19707_s1 + $0x2448] sm:$0xff]  ;;  %v13612_v3 = vcombine.high %v1194_v47, %v1198_v48 }
 0x22f   :  { %9925 = vmatprep.subr.bf16.mxu0 %v13564_v18  ;;  %10458 = vmatprep.subr.bf16.mxu1 %v13566_v52  ;;  %v1199_v18 = vld [vmem:[%s19707_s1 + $0x2468] sm:$0xff] }
 0x230   :  { %v16408_v52 = vld [vmem:[%s19708_s0 + $0x48] sm:$0xff]  ;;  %v13614_v60 = vcombine.high %v1195_v51, %v1199_v18  ;;  %v13613_v5 = vcombine.low %v1195_v51, %v1199_v18 }
 0x232   :  { %9926 = vmatpush1.bf16.msra.mxu0 %v13563_v39  ;;  %10459 = vmatpush1.bf16.msra.mxu1 %v13565_v62  ;;  %v1206_v39 = vld [vmem:[%s19707_s1 + $0x24a0] sm:$0xff]  ;;  %v16418_v62 = vcombine.high %v16408_v52, %v16408_v52 }
 0x233   :  { %9927 = vmatprep.subr.bf16.mxu0 %v13572_v0  ;;  %10460 = vmatprep.subr.bf16.mxu1 %v13574_v2  ;;  %v1203_v0 = vld [vmem:[%s19707_s1 + $0x2488] sm:$0xff]  ;;  %v13620_v23 = vcombine.high %v1202_v61, %v1206_v39  ;;  %v13619_v13 = vcombine.low %v1202_v61, %v1206_v39 }
 0x234   :  { %v1207_v2 = vld [vmem:[%s19707_s1 + $0x24a8] sm:$0xff] }
 0x235   :  { %v13622_v6 = vcombine.high %v1203_v0, %v1207_v2  ;;  %v13621_v14 = vcombine.low %v1203_v0, %v1207_v2 }
 0x236   :  { %9928 = vmatpush1.bf16.msra.mxu0 %v13571_v7  ;;  %10461 = vmatpush1.bf16.msra.mxu1 %v13573_v8  ;;  %v1210_v7 = vld [vmem:[%s19707_s1 + $0x24c0] sm:$0xff] }
 0x237   :  { %9929 = vmatprep.subr.bf16.mxu0 %v13580_v10  ;;  %10462 = vmatprep.subr.bf16.mxu1 %v13582_v11  ;;  %v1214_v8 = vld [vmem:[%s19707_s1 + $0x24e0] sm:$0xff]  ;;  %v1211_v10 = vld [vmem:[%s19707_s1 + $0x24c8] sm:$0xff] }
 0x238   :  { %v1215_v11 = vld [vmem:[%s19707_s1 + $0x24e8] sm:$0xff]  ;;  %v13628_v17 = vcombine.high %v1210_v7, %v1214_v8  ;;  %v13627_v49 = vcombine.low %v1210_v7, %v1214_v8 }
 0x239   :  { %v13630_v53 = vcombine.high %v1211_v10, %v1215_v11  ;;  %v13629_v15 = vcombine.low %v1211_v10, %v1215_v11 }
 0x23a   :  { %9930 = vmatpush1.bf16.msra.mxu0 %v13579_v20  ;;  %10463 = vmatpush1.bf16.msra.mxu1 %v13581_v59  ;;  %v1218_v20 = vld [vmem:[%s19707_s1 + $0x2500] sm:$0xff] }
 0x23b   :  { %9931 = vmatprep.subr.bf16.mxu0 %v13588_v24  ;;  %10464 = vmatprep.subr.bf16.mxu1 %v13590_v26  ;;  %v1222_v59 = vld [vmem:[%s19707_s1 + $0x2520] sm:$0xff]  ;;  %v1219_v24 = vld [vmem:[%s19707_s1 + $0x2508] sm:$0xff] }
 0x23c   :  { %v1223_v26 = vld [vmem:[%s19707_s1 + $0x2528] sm:$0xff]  ;;  %v13636_v28 = vcombine.high %v1218_v20, %v1222_v59  ;;  %v13635_v37 = vcombine.low %v1218_v20, %v1222_v59 }
 0x23d   :  { %v13638_v29 = vcombine.high %v1219_v24, %v1223_v26  ;;  %v13637_v38 = vcombine.low %v1219_v24, %v1223_v26 }
 0x23e   :  { %9932 = vmatpush1.bf16.msra.mxu0 %v13587_v32  ;;  %10465 = vmatpush1.bf16.msra.mxu1 %v13589_v33  ;;  %v1226_v32 = vld [vmem:[%s19707_s1 + $0x2540] sm:$0xff] }
 0x23f   :  { %9933 = vmatprep.subr.bf16.mxu0 %v13596_v34  ;;  %10466 = vmatprep.subr.bf16.mxu1 %v13598_v35  ;;  %v1230_v33 = vld [vmem:[%s19707_s1 + $0x2560] sm:$0xff]  ;;  %v1227_v34 = vld [vmem:[%s19707_s1 + $0x2548] sm:$0xff] }
 0x240   :  { %v1231_v35 = vld [vmem:[%s19707_s1 + $0x2568] sm:$0xff]  ;;  %v13644_v40 = vcombine.high %v1226_v32, %v1230_v33  ;;  %v13643_v47 = vcombine.low %v1226_v32, %v1230_v33 }
 0x241   :  { %v13646_v41 = vcombine.high %v1227_v34, %v1231_v35  ;;  %v13645_v48 = vcombine.low %v1227_v34, %v1231_v35 }
 0x242   :  { %9934 = vmatpush1.bf16.msra.mxu0 %v13595_v25  ;;  %10467 = vmatpush1.bf16.msra.mxu1 %v13597_v42  ;;  %v1234_v25 = vld [vmem:[%s19707_s1 + $0x2580] sm:$0xff] }
 0x243   :  { %9944 = vmatprep.subr.bf16.mxu0 %v13604_v43  ;;  %10477 = vmatprep.subr.bf16.mxu1 %v13606_v44  ;;  %v1238_v42 = vld [vmem:[%s19707_s1 + $0x25a0] sm:$0xff]  ;;  %v1235_v43 = vld [vmem:[%s19707_s1 + $0x2588] sm:$0xff] }
 0x244   :  { %v1239_v44 = vld [vmem:[%s19707_s1 + $0x25a8] sm:$0xff]  ;;  %v13652_v51 = vcombine.high %v1234_v25, %v1238_v42  ;;  %v13651_v61 = vcombine.low %v1234_v25, %v1238_v42 }
 0x245   :  { %9936 = vmatmul.mubr.bf16.vlgmr.msra.gmra.mrb[0].mxu0 %v16397_v50  ;;  %10469 = vmatmul.mubr.bf16.vlgmr.msra.gmra.mrb[0].mxu1 %v16397_v50  ;;  %v13654_v18 = vcombine.high %v1235_v43, %v1239_v44  ;;  %v13653_v39 = vcombine.low %v1235_v43, %v1239_v44 }
 0x246   :  { %9945 = vmatpush1.bf16.msra.mxu0 %v13603_v54  ;;  %10478 = vmatpush1.bf16.msra.mxu1 %v13605_v56  ;;  %v1242_v54 = vld [vmem:[%s19707_s1 + $0x25c0] sm:$0xff] }
 0x247   :  { %9946 = vmatprep.subr.bf16.mxu0 %v13612_v3  ;;  %10479 = vmatprep.subr.bf16.mxu1 %v13614_v60  ;;  %v1246_v56 = vld [vmem:[%s19707_s1 + $0x25e0] sm:$0xff]  ;;  %v1243_v3 = vld [vmem:[%s19707_s1 + $0x25c8] sm:$0xff] }
 0x248   :  { %9976 = vmatprep.mubr.bf16.mxu0 %v16418_v62  ;;  %10509 = vmatprep.mubr.bf16.mxu1 %v16418_v62  ;;  %v1247_v60 = vld [vmem:[%s19707_s1 + $0x25e8] sm:$0xff]  ;;  %v13660_v0 = vcombine.high %v1242_v54, %v1246_v56  ;;  %v13659_v7 = vcombine.low %v1242_v54, %v1246_v56 }
 0x249   :  { %v13662_v2 = vcombine.high %v1243_v3, %v1247_v60  ;;  %v13661_v8 = vcombine.low %v1243_v3, %v1247_v60 }
 0x24a   :  { %9947 = vmatpush1.bf16.msra.mxu0 %v13611_v4  ;;  %10480 = vmatpush1.bf16.msra.mxu1 %v13613_v5  ;;  %v1250_v4 = vld [vmem:[%s19707_s1 + $0x2600] sm:$0xff] }
 0x24b   :  { %9948 = vmatprep.subr.bf16.mxu0 %v13620_v23  ;;  %10481 = vmatprep.subr.bf16.mxu1 %v13622_v6  ;;  %v1254_v5 = vld [vmem:[%s19707_s1 + $0x2620] sm:$0xff]  ;;  %v1251_v23 = vld [vmem:[%s19707_s1 + $0x2608] sm:$0xff] }
 0x24c   :  { %v1255_v6 = vld [vmem:[%s19707_s1 + $0x2628] sm:$0xff]  ;;  %v13668_v10 = vcombine.high %v1250_v4, %v1254_v5  ;;  %v13667_v20 = vcombine.low %v1250_v4, %v1254_v5 }
 0x24d   :  { %v13670_v11 = vcombine.high %v1251_v23, %v1255_v6  ;;  %v13669_v59 = vcombine.low %v1251_v23, %v1255_v6 }
 0x24e   :  { %9949 = vmatpush1.bf16.msra.mxu0 %v13619_v13  ;;  %10482 = vmatpush1.bf16.msra.mxu1 %v13621_v14  ;;  %v1258_v13 = vld [vmem:[%s19707_s1 + $0x2640] sm:$0xff] }
 0x24f   :  { %9950 = vmatprep.subr.bf16.mxu0 %v13628_v17  ;;  %10483 = vmatprep.subr.bf16.mxu1 %v13630_v53  ;;  %v1262_v14 = vld [vmem:[%s19707_s1 + $0x2660] sm:$0xff]  ;;  %v1259_v17 = vld [vmem:[%s19707_s1 + $0x2648] sm:$0xff] }
 0x250   :  { %v1263_v53 = vld [vmem:[%s19707_s1 + $0x2668] sm:$0xff]  ;;  %v13676_v24 = vcombine.high %v1258_v13, %v1262_v14  ;;  %v13675_v32 = vcombine.low %v1258_v13, %v1262_v14 }
 0x251   :  { %v13678_v26 = vcombine.high %v1259_v17, %v1263_v53  ;;  %v13677_v33 = vcombine.low %v1259_v17, %v1263_v53 }
 0x252   :  { %9951 = vmatpush1.bf16.msra.mxu0 %v13627_v49  ;;  %10484 = vmatpush1.bf16.msra.mxu1 %v13629_v15  ;;  %v1266_v49 = vld [vmem:[%s19707_s1 + $0x2680] sm:$0xff] }
 0x253   :  { %9952 = vmatprep.subr.bf16.mxu0 %v13636_v28  ;;  %10485 = vmatprep.subr.bf16.mxu1 %v13638_v29  ;;  %v1270_v15 = vld [vmem:[%s19707_s1 + $0x26a0] sm:$0xff]  ;;  %v1267_v28 = vld [vmem:[%s19707_s1 + $0x2688] sm:$0xff] }
 0x254   :  { %v1271_v29 = vld [vmem:[%s19707_s1 + $0x26a8] sm:$0xff]  ;;  %v13684_v34 = vcombine.high %v1266_v49, %v1270_v15  ;;  %v13683_v25 = vcombine.low %v1266_v49, %v1270_v15 }
 0x255   :  { %v13686_v35 = vcombine.high %v1267_v28, %v1271_v29  ;;  %v13685_v42 = vcombine.low %v1267_v28, %v1271_v29 }
 0x256   :  { %9953 = vmatpush1.bf16.msra.mxu0 %v13635_v37  ;;  %10486 = vmatpush1.bf16.msra.mxu1 %v13637_v38  ;;  %v1274_v37 = vld [vmem:[%s19707_s1 + $0x26c0] sm:$0xff] }
 0x257   :  { %9954 = vmatprep.subr.bf16.mxu0 %v13644_v40  ;;  %10487 = vmatprep.subr.bf16.mxu1 %v13646_v41  ;;  %v1278_v38 = vld [vmem:[%s19707_s1 + $0x26e0] sm:$0xff]  ;;  %v1275_v40 = vld [vmem:[%s19707_s1 + $0x26c8] sm:$0xff] }
 0x258   :  { %v1279_v41 = vld [vmem:[%s19707_s1 + $0x26e8] sm:$0xff]  ;;  %v13692_v43 = vcombine.high %v1274_v37, %v1278_v38  ;;  %v13691_v54 = vcombine.low %v1274_v37, %v1278_v38 }
 0x259   :  { %v13694_v44 = vcombine.high %v1275_v40, %v1279_v41  ;;  %v13693_v56 = vcombine.low %v1275_v40, %v1279_v41 }
 0x25a   :  { %9955 = vmatpush1.bf16.msra.mxu0 %v13643_v47  ;;  %10488 = vmatpush1.bf16.msra.mxu1 %v13645_v48  ;;  %v1282_v47 = vld [vmem:[%s19707_s1 + $0x2700] sm:$0xff] }
 0x25b   :  { %9956 = vmatprep.subr.bf16.mxu0 %v13652_v51  ;;  %10489 = vmatprep.subr.bf16.mxu1 %v13654_v18  ;;  %v1286_v48 = vld [vmem:[%s19707_s1 + $0x2720] sm:$0xff]  ;;  %v1283_v51 = vld [vmem:[%s19707_s1 + $0x2708] sm:$0xff] }
 0x25c   :  { %v1287_v18 = vld [vmem:[%s19707_s1 + $0x2728] sm:$0xff]  ;;  %v13700_v3 = vcombine.high %v1282_v47, %v1286_v48  ;;  %v13699_v4 = vcombine.low %v1282_v47, %v1286_v48  ;;  %v16617_v48 = vld [vmem:[%s19708_s0 + $0x50] sm:$0xff] }
 0x25d   :  { %v13702_v60 = vcombine.high %v1283_v51, %v1287_v18  ;;  %v13701_v5 = vcombine.low %v1283_v51, %v1287_v18  ;;  %v1327_v47 = vld [vmem:[%s19707_s1 + $0x2868] sm:$0xff] }
 0x25e   :  { %9957 = vmatpush1.bf16.msra.mxu0 %v13651_v61  ;;  %10490 = vmatpush1.bf16.msra.mxu1 %v13653_v39  ;;  %v1290_v61 = vld [vmem:[%s19707_s1 + $0x2740] sm:$0xff] }
 0x25f   :  { %9958 = vmatprep.subr.bf16.mxu0 %v13660_v0  ;;  %10491 = vmatprep.subr.bf16.mxu1 %v13662_v2  ;;  %v1294_v39 = vld [vmem:[%s19707_s1 + $0x2760] sm:$0xff]  ;;  %v1291_v0 = vld [vmem:[%s19707_s1 + $0x2748] sm:$0xff] }
 0x260   :  { %v1295_v2 = vld [vmem:[%s19707_s1 + $0x2768] sm:$0xff]  ;;  %v13708_v23 = vcombine.high %v1290_v61, %v1294_v39  ;;  %v13707_v13 = vcombine.low %v1290_v61, %v1294_v39 }
 0x261   :  { %v13710_v6 = vcombine.high %v1291_v0, %v1295_v2  ;;  %v13709_v14 = vcombine.low %v1291_v0, %v1295_v2  ;;  %v1331_v61 = vld [vmem:[%s19707_s1 + $0x2888] sm:$0xff] }
 0x262   :  { %9959 = vmatpush1.bf16.msra.mxu0 %v13659_v7  ;;  %10492 = vmatpush1.bf16.msra.mxu1 %v13661_v8  ;;  %v1298_v7 = vld [vmem:[%s19707_s1 + $0x2780] sm:$0xff]  ;;  %v1335_v39 = vld [vmem:[%s19707_s1 + $0x28a8] sm:$0xff] }
 0x263   :  { %9960 = vmatprep.subr.bf16.mxu0 %v13668_v10  ;;  %10493 = vmatprep.subr.bf16.mxu1 %v13670_v11  ;;  %v1302_v8 = vld [vmem:[%s19707_s1 + $0x27a0] sm:$0xff]  ;;  %v1299_v10 = vld [vmem:[%s19707_s1 + $0x2788] sm:$0xff] }
 0x264   :  { %v1303_v11 = vld [vmem:[%s19707_s1 + $0x27a8] sm:$0xff]  ;;  %v13716_v17 = vcombine.high %v1298_v7, %v1302_v8  ;;  %v13715_v49 = vcombine.low %v1298_v7, %v1302_v8 }
 0x265   :  { %v13718_v53 = vcombine.high %v1299_v10, %v1303_v11  ;;  %v13717_v15 = vcombine.low %v1299_v10, %v1303_v11  ;;  %v1339_v7 = vld [vmem:[%s19707_s1 + $0x28c8] sm:$0xff]  ;;  %v13749_v11 = vcombine.low %v1331_v61, %v1335_v39 }
 0x266   :  { %9961 = vmatpush1.bf16.msra.mxu0 %v13667_v20  ;;  %10494 = vmatpush1.bf16.msra.mxu1 %v13669_v59  ;;  %v1306_v20 = vld [vmem:[%s19707_s1 + $0x27c0] sm:$0xff]  ;;  %v1343_v8 = vld [vmem:[%s19707_s1 + $0x28e8] sm:$0xff] }
 0x267   :  { %9962 = vmatprep.subr.bf16.mxu0 %v13676_v24  ;;  %10495 = vmatprep.subr.bf16.mxu1 %v13678_v26  ;;  %v1310_v59 = vld [vmem:[%s19707_s1 + $0x27e0] sm:$0xff]  ;;  %v1307_v24 = vld [vmem:[%s19707_s1 + $0x27c8] sm:$0xff] }
 0x268   :  { %v1311_v26 = vld [vmem:[%s19707_s1 + $0x27e8] sm:$0xff]  ;;  %v13724_v28 = vcombine.high %v1306_v20, %v1310_v59  ;;  %v13723_v37 = vcombine.low %v1306_v20, %v1310_v59 }
 0x269   :  { %v13726_v29 = vcombine.high %v1307_v24, %v1311_v26  ;;  %v13725_v38 = vcombine.low %v1307_v24, %v1311_v26  ;;  %v1347_v20 = vld [vmem:[%s19707_s1 + $0x2908] sm:$0xff]  ;;  %v13757_v26 = vcombine.low %v1339_v7, %v1343_v8 }
 0x26a   :  { %9963 = vmatpush1.bf16.msra.mxu0 %v13675_v32  ;;  %10496 = vmatpush1.bf16.msra.mxu1 %v13677_v33  ;;  %v1314_v32 = vld [vmem:[%s19707_s1 + $0x2800] sm:$0xff]  ;;  %v1351_v59 = vld [vmem:[%s19707_s1 + $0x2928] sm:$0xff] }
 0x26b   :  { %9964 = vmatprep.subr.bf16.mxu0 %v13684_v34  ;;  %10497 = vmatprep.subr.bf16.mxu1 %v13686_v35  ;;  %v1318_v33 = vld [vmem:[%s19707_s1 + $0x2820] sm:$0xff]  ;;  %v1315_v34 = vld [vmem:[%s19707_s1 + $0x2808] sm:$0xff] }
 0x26c   :  { %v1319_v35 = vld [vmem:[%s19707_s1 + $0x2828] sm:$0xff]  ;;  %v13732_v40 = vcombine.high %v1314_v32, %v1318_v33  ;;  %v13731_v51 = vcombine.low %v1314_v32, %v1318_v33 }
 0x26d   :  { %v13734_v41 = vcombine.high %v1315_v34, %v1319_v35  ;;  %v13733_v18 = vcombine.low %v1315_v34, %v1319_v35  ;;  %v1355_v32 = vld [vmem:[%s19707_s1 + $0x2948] sm:$0xff]  ;;  %v13765_v35 = vcombine.low %v1347_v20, %v1351_v59 }
 0x26e   :  { %9965 = vmatpush1.bf16.msra.mxu0 %v13683_v25  ;;  %10498 = vmatpush1.bf16.msra.mxu1 %v13685_v42  ;;  %v1322_v25 = vld [vmem:[%s19707_s1 + $0x2840] sm:$0xff]  ;;  %v1359_v33 = vld [vmem:[%s19707_s1 + $0x2968] sm:$0xff] }
 0x26f   :  { %9966 = vmatprep.subr.bf16.mxu0 %v13692_v43  ;;  %10499 = vmatprep.subr.bf16.mxu1 %v13694_v44  ;;  %v1326_v42 = vld [vmem:[%s19707_s1 + $0x2860] sm:$0xff]  ;;  %v16606_v43 = vcombine.low %v16408_v52, %v16408_v52  ;;  %v1323_v44 = vld [vmem:[%s19707_s1 + $0x2848] sm:$0xff] }
 0x270   :  { %v13740_v52 = vcombine.high %v1322_v25, %v1326_v42  ;;  %v13739_v0 = vcombine.low %v1322_v25, %v1326_v42  ;;  %v13741_v2 = vcombine.low %v1323_v44, %v1327_v47  ;;  %v14470_v25 = vmov 0   ;;  %v1363_v42 = vld [vmem:[%s19707_s1 + $0x2988] sm:$0xff] }
 0x271   :  { %14378 = vset.pattern.permute.xlu1 %v14470_v25  ;;  %14379 = vset.pattern.permute.xlu0 %v14470_v25 }
 0x272   :  { %9967 = vmatpush1.bf16.msra.mxu0 %v13691_v54  ;;  %10500 = vmatpush1.bf16.msra.mxu1 %v13693_v56  ;;  %v13742_v54 = vcombine.high %v1323_v44, %v1327_v47  ;;  %v1330_v56 = vld [vmem:[%s19707_s1 + $0x2880] sm:$0xff]  ;;  %v1367_v44 = vld [vmem:[%s19707_s1 + $0x29a8] sm:$0xff] }
 0x273   :  { %9968 = vmatprep.subr.bf16.mxu0 %v13700_v3  ;;  %10501 = vmatprep.subr.bf16.mxu1 %v13702_v60  ;;  %v1334_v3 = vld [vmem:[%s19707_s1 + $0x28a0] sm:$0xff]  ;;  %v16627_v60 = vcombine.high %v16617_v48, %v16617_v48 }
 0x274   :  { %v13747_v10 = vcombine.low %v1330_v56, %v1334_v3 }
 0x276   :  { %9969 = vmatpush1.bf16.msra.mxu0 %v13699_v4  ;;  %10502 = vmatpush1.bf16.msra.mxu1 %v13701_v5  ;;  %v13748_v4 = vcombine.high %v1330_v56, %v1334_v3  ;;  %v13750_v5 = vcombine.high %v1331_v61, %v1335_v39  ;;  %v1374_v56 = vld [vmem:[%s19707_s1 + $0x29e0] sm:$0xff]  ;;  %v1371_v3 = vld [vmem:[%s19707_s1 + $0x29c8] sm:$0xff] }
 0x277   :  { %9970 = vmatprep.subr.bf16.mxu0 %v13708_v23  ;;  %10503 = vmatprep.subr.bf16.mxu1 %v13710_v6  ;;  %v1338_v23 = vld [vmem:[%s19707_s1 + $0x28c0] sm:$0xff]  ;;  %v1375_v61 = vld [vmem:[%s19707_s1 + $0x29e8] sm:$0xff] }
 0x278   :  { %v1342_v6 = vld [vmem:[%s19707_s1 + $0x28e0] sm:$0xff] }
 0x279   :  { %v13755_v24 = vcombine.low %v1338_v23, %v1342_v6 }
 0x27a   :  { %9971 = vmatpush1.bf16.msra.mxu0 %v13707_v13  ;;  %10504 = vmatpush1.bf16.msra.mxu1 %v13709_v14  ;;  %v13756_v13 = vcombine.high %v1338_v23, %v1342_v6  ;;  %v13758_v14 = vcombine.high %v1339_v7, %v1343_v8  ;;  %v1382_v23 = vld [vmem:[%s19707_s1 + $0x2a20] sm:$0xff]  ;;  %v1379_v6 = vld [vmem:[%s19707_s1 + $0x2a08] sm:$0xff] }
 0x27b   :  { %9972 = vmatprep.subr.bf16.mxu0 %v13716_v17  ;;  %10505 = vmatprep.subr.bf16.mxu1 %v13718_v53  ;;  %v1346_v17 = vld [vmem:[%s19707_s1 + $0x2900] sm:$0xff]  ;;  %v1383_v7 = vld [vmem:[%s19707_s1 + $0x2a28] sm:$0xff] }
 0x27c   :  { %v1350_v53 = vld [vmem:[%s19707_s1 + $0x2920] sm:$0xff] }
 0x27d   :  { %v13763_v34 = vcombine.low %v1346_v17, %v1350_v53 }
 0x27e   :  { %9973 = vmatpush1.bf16.msra.mxu0 %v13715_v49  ;;  %10506 = vmatpush1.bf16.msra.mxu1 %v13717_v15  ;;  %v13764_v49 = vcombine.high %v1346_v17, %v1350_v53  ;;  %v13766_v15 = vcombine.high %v1347_v20, %v1351_v59  ;;  %v1390_v17 = vld [vmem:[%s19707_s1 + $0x2a60] sm:$0xff]  ;;  %v1387_v53 = vld [vmem:[%s19707_s1 + $0x2a48] sm:$0xff] }
 0x27f   :  { %9974 = vmatprep.subr.bf16.mxu0 %v13724_v28  ;;  %10507 = vmatprep.subr.bf16.mxu1 %v13726_v29  ;;  %v1354_v28 = vld [vmem:[%s19707_s1 + $0x2940] sm:$0xff]  ;;  %v1391_v20 = vld [vmem:[%s19707_s1 + $0x2a68] sm:$0xff] }
 0x280   :  { %v1358_v29 = vld [vmem:[%s19707_s1 + $0x2960] sm:$0xff] }
 0x281   :  { %v13771_v47 = vcombine.low %v1354_v28, %v1358_v29 }
 0x282   :  { %9975 = vmatpush1.bf16.msra.mxu0 %v13723_v37  ;;  %10508 = vmatpush1.bf16.msra.mxu1 %v13725_v38  ;;  %v13772_v37 = vcombine.high %v1354_v28, %v1358_v29  ;;  %v13774_v38 = vcombine.high %v1355_v32, %v1359_v33  ;;  %v1398_v28 = vld [vmem:[%s19707_s1 + $0x2aa0] sm:$0xff]  ;;  %v1395_v29 = vld [vmem:[%s19707_s1 + $0x2a88] sm:$0xff] }
 0x283   :  { %9985 = vmatprep.subr.bf16.mxu0 %v13732_v40  ;;  %10518 = vmatprep.subr.bf16.mxu1 %v13734_v41  ;;  %v1362_v40 = vld [vmem:[%s19707_s1 + $0x2980] sm:$0xff] }
 0x284   :  { %v1366_v41 = vld [vmem:[%s19707_s1 + $0x29a0] sm:$0xff] }
 0x285   :  { %9977 = vmatmul.mubr.bf16.vlgmr.msra.gmra.mrb[0].mxu0 %v16606_v43  ;;  %10510 = vmatmul.mubr.bf16.vlgmr.msra.gmra.mrb[0].mxu1 %v16606_v43  ;;  %v13779_v39 = vcombine.low %v1362_v40, %v1366_v41 }
 0x286   :  { %9986 = vmatpush1.bf16.msra.mxu0 %v13731_v51  ;;  %10519 = vmatpush1.bf16.msra.mxu1 %v13733_v18  ;;  %v13773_v51 = vcombine.low %v1355_v32, %v1359_v33  ;;  %v13780_v18 = vcombine.high %v1362_v40, %v1366_v41  ;;  %v1399_v32 = vld [vmem:[%s19707_s1 + $0x2aa8] sm:$0xff]  ;;  %v1406_v40 = vld [vmem:[%s19707_s1 + $0x2ae0] sm:$0xff] }
 0x287   :  { %9987 = vmatprep.subr.bf16.mxu0 %v13740_v52  ;;  %10520 = vmatprep.subr.bf16.mxu1 %v13742_v54  ;;  %v13782_v52 = vcombine.high %v1363_v42, %v1367_v44  ;;  %v1370_v54 = vld [vmem:[%s19707_s1 + $0x29c0] sm:$0xff]  ;;  %v1403_v41 = vld [vmem:[%s19707_s1 + $0x2ac8] sm:$0xff] }
 0x288   :  { %10017 = vmatprep.mubr.bf16.mxu0 %v16627_v60  ;;  %10550 = vmatprep.mubr.bf16.mxu1 %v16627_v60  ;;  %v13787_v8 = vcombine.low %v1370_v54, %v1374_v56 }
 0x28a   :  { %9988 = vmatpush1.bf16.msra.mxu0 %v13739_v0  ;;  %10521 = vmatpush1.bf16.msra.mxu1 %v13741_v2  ;;  %v13781_v0 = vcombine.low %v1363_v42, %v1367_v44  ;;  %v13788_v2 = vcombine.high %v1370_v54, %v1374_v56  ;;  %v1407_v42 = vld [vmem:[%s19707_s1 + $0x2ae8] sm:$0xff]  ;;  %v1414_v54 = vld [vmem:[%s19707_s1 + $0x2b20] sm:$0xff] }
 0x28b   :  { %9989 = vmatprep.subr.bf16.mxu0 %v13748_v4  ;;  %10522 = vmatprep.subr.bf16.mxu1 %v13750_v5  ;;  %v13790_v4 = vcombine.high %v1371_v3, %v1375_v61  ;;  %v1378_v5 = vld [vmem:[%s19707_s1 + $0x2a00] sm:$0xff]  ;;  %v1411_v56 = vld [vmem:[%s19707_s1 + $0x2b08] sm:$0xff] }
 0x28c   :  { %v13795_v59 = vcombine.low %v1378_v5, %v1382_v23 }
 0x28e   :  { %9990 = vmatpush1.bf16.msra.mxu0 %v13747_v10  ;;  %10523 = vmatpush1.bf16.msra.mxu1 %v13749_v11  ;;  %v13789_v10 = vcombine.low %v1371_v3, %v1375_v61  ;;  %v13796_v11 = vcombine.high %v1378_v5, %v1382_v23  ;;  %v1415_v3 = vld [vmem:[%s19707_s1 + $0x2b28] sm:$0xff]  ;;  %v1422_v5 = vld [vmem:[%s19707_s1 + $0x2b60] sm:$0xff] }
 0x28f   :  { %9991 = vmatprep.subr.bf16.mxu0 %v13756_v13  ;;  %10524 = vmatprep.subr.bf16.mxu1 %v13758_v14  ;;  %v13798_v13 = vcombine.high %v1379_v6, %v1383_v7  ;;  %v1386_v14 = vld [vmem:[%s19707_s1 + $0x2a40] sm:$0xff]  ;;  %v1419_v23 = vld [vmem:[%s19707_s1 + $0x2b48] sm:$0xff] }
 0x290   :  { %v13803_v33 = vcombine.low %v1386_v14, %v1390_v17 }
 0x292   :  { %9992 = vmatpush1.bf16.msra.mxu0 %v13755_v24  ;;  %10525 = vmatpush1.bf16.msra.mxu1 %v13757_v26  ;;  %v13797_v24 = vcombine.low %v1379_v6, %v1383_v7  ;;  %v13804_v26 = vcombine.high %v1386_v14, %v1390_v17  ;;  %v1423_v6 = vld [vmem:[%s19707_s1 + $0x2b68] sm:$0xff]  ;;  %v1430_v14 = vld [vmem:[%s19707_s1 + $0x2ba0] sm:$0xff] }
 0x293   :  { %9993 = vmatprep.subr.bf16.mxu0 %v13764_v49  ;;  %10526 = vmatprep.subr.bf16.mxu1 %v13766_v15  ;;  %v13806_v49 = vcombine.high %v1387_v53, %v1391_v20  ;;  %v1394_v15 = vld [vmem:[%s19707_s1 + $0x2a80] sm:$0xff]  ;;  %v1427_v17 = vld [vmem:[%s19707_s1 + $0x2b88] sm:$0xff] }
 0x294   :  { %v13811_v44 = vcombine.low %v1394_v15, %v1398_v28 }
 0x296   :  { %9994 = vmatpush1.bf16.msra.mxu0 %v13763_v34  ;;  %10527 = vmatpush1.bf16.msra.mxu1 %v13765_v35  ;;  %v13805_v34 = vcombine.low %v1387_v53, %v1391_v20  ;;  %v13812_v35 = vcombine.high %v1394_v15, %v1398_v28  ;;  %v1431_v53 = vld [vmem:[%s19707_s1 + $0x2ba8] sm:$0xff]  ;;  %v1438_v15 = vld [vmem:[%s19707_s1 + $0x2be0] sm:$0xff] }
 0x297   :  { %9995 = vmatprep.subr.bf16.mxu0 %v13772_v37  ;;  %10528 = vmatprep.subr.bf16.mxu1 %v13774_v38  ;;  %v13814_v37 = vcombine.high %v1395_v29, %v1399_v32  ;;  %v1402_v38 = vld [vmem:[%s19707_s1 + $0x2ac0] sm:$0xff]  ;;  %v1435_v28 = vld [vmem:[%s19707_s1 + $0x2bc8] sm:$0xff] }
 0x298   :  { %v13819_v61 = vcombine.low %v1402_v38, %v1406_v40 }
 0x29a   :  { %9996 = vmatpush1.bf16.msra.mxu0 %v13771_v47  ;;  %10529 = vmatpush1.bf16.msra.mxu1 %v13773_v51  ;;  %v13813_v47 = vcombine.low %v1395_v29, %v1399_v32  ;;  %v13820_v51 = vcombine.high %v1402_v38, %v1406_v40  ;;  %v1439_v29 = vld [vmem:[%s19707_s1 + $0x2be8] sm:$0xff]  ;;  %v1446_v38 = vld [vmem:[%s19707_s1 + $0x2c20] sm:$0xff] }
 0x29b   :  { %9997 = vmatprep.subr.bf16.mxu0 %v13780_v18  ;;  %10530 = vmatprep.subr.bf16.mxu1 %v13782_v52  ;;  %v13822_v18 = vcombine.high %v1403_v41, %v1407_v42  ;;  %v1410_v52 = vld [vmem:[%s19707_s1 + $0x2b00] sm:$0xff]  ;;  %v1443_v40 = vld [vmem:[%s19707_s1 + $0x2c08] sm:$0xff] }
 0x29c   :  { %v13827_v7 = vcombine.low %v1410_v52, %v1414_v54 }
 0x29e   :  { %9998 = vmatpush1.bf16.msra.mxu0 %v13779_v39  ;;  %10531 = vmatpush1.bf16.msra.mxu1 %v13781_v0  ;;  %v13821_v39 = vcombine.low %v1403_v41, %v1407_v42  ;;  %v13828_v0 = vcombine.high %v1410_v52, %v1414_v54  ;;  %v1447_v41 = vld [vmem:[%s19707_s1 + $0x2c28] sm:$0xff]  ;;  %v1454_v52 = vld [vmem:[%s19707_s1 + $0x2c60] sm:$0xff]  ;;  %v16817_v54 = vcombine.low %v16617_v48, %v16617_v48 }
 0x29f   :  { %9999 = vmatprep.subr.bf16.mxu0 %v13788_v2  ;;  %10532 = vmatprep.subr.bf16.mxu1 %v13790_v4  ;;  %v13830_v2 = vcombine.high %v1411_v56, %v1415_v3  ;;  %v1418_v4 = vld [vmem:[%s19707_s1 + $0x2b40] sm:$0xff] }
 0x2a0   :  { %v13835_v20 = vcombine.low %v1418_v4, %v1422_v5 }
 0x2a2   :  { %10000 = vmatpush1.bf16.msra.mxu0 %v13787_v8  ;;  %10533 = vmatpush1.bf16.msra.mxu1 %v13789_v10  ;;  %v13829_v8 = vcombine.low %v1411_v56, %v1415_v3  ;;  %v13836_v10 = vcombine.high %v1418_v4, %v1422_v5  ;;  %v1451_v56 = vld [vmem:[%s19707_s1 + $0x2c48] sm:$0xff]  ;;  %v1458_v4 = vld [vmem:[%s19707_s1 + $0x2c80] sm:$0xff] }
 0x2a3   :  { %10001 = vmatprep.subr.bf16.mxu0 %v13796_v11  ;;  %10534 = vmatprep.subr.bf16.mxu1 %v13798_v13  ;;  %v13838_v11 = vcombine.high %v1419_v23, %v1423_v6  ;;  %v1426_v13 = vld [vmem:[%s19707_s1 + $0x2b80] sm:$0xff]  ;;  %v1455_v3 = vld [vmem:[%s19707_s1 + $0x2c68] sm:$0xff] }
 0x2a4   :  { %v13843_v32 = vcombine.low %v1426_v13, %v1430_v14  ;;  %v1462_v5 = vld [vmem:[%s19707_s1 + $0x2ca0] sm:$0xff] }
 0x2a6   :  { %10002 = vmatpush1.bf16.msra.mxu0 %v13795_v59  ;;  %10535 = vmatpush1.bf16.msra.mxu1 %v13797_v24  ;;  %v13837_v59 = vcombine.low %v1419_v23, %v1423_v6  ;;  %v13844_v24 = vcombine.high %v1426_v13, %v1430_v14  ;;  %v1459_v6 = vld [vmem:[%s19707_s1 + $0x2c88] sm:$0xff]  ;;  %v1466_v14 = vld [vmem:[%s19707_s1 + $0x2cc0] sm:$0xff] }
 0x2a7   :  { %10003 = vmatprep.subr.bf16.mxu0 %v13804_v26  ;;  %10536 = vmatprep.subr.bf16.mxu1 %v13806_v49  ;;  %v13846_v26 = vcombine.high %v1427_v17, %v1431_v53  ;;  %v1434_v49 = vld [vmem:[%s19707_s1 + $0x2bc0] sm:$0xff] }
 0x2a8   :  { %v13851_v42 = vcombine.low %v1434_v49, %v1438_v15 }
 0x2aa   :  { %10004 = vmatpush1.bf16.msra.mxu0 %v13803_v33  ;;  %10537 = vmatpush1.bf16.msra.mxu1 %v13805_v34  ;;  %v13845_v33 = vcombine.low %v1427_v17, %v1431_v53  ;;  %v13852_v34 = vcombine.high %v1434_v49, %v1438_v15  ;;  %v1470_v17 = vld [vmem:[%s19707_s1 + $0x2ce0] sm:$0xff]  ;;  %v1467_v53 = vld [vmem:[%s19707_s1 + $0x2cc8] sm:$0xff] }
 0x2ab   :  { %10005 = vmatprep.subr.bf16.mxu0 %v13812_v35  ;;  %10538 = vmatprep.subr.bf16.mxu1 %v13814_v37  ;;  %v13854_v35 = vcombine.high %v1435_v28, %v1439_v29  ;;  %v1442_v37 = vld [vmem:[%s19707_s1 + $0x2c00] sm:$0xff] }
 0x2ac   :  { %v1474_v15 = vld [vmem:[%s19707_s1 + $0x2d00] sm:$0xff] }
 0x2ae   :  { %10006 = vmatpush1.bf16.msra.mxu0 %v13811_v44  ;;  %10539 = vmatpush1.bf16.msra.mxu1 %v13813_v47  ;;  %v13853_v44 = vcombine.low %v1435_v28, %v1439_v29  ;;  %v13860_v47 = vcombine.high %v1442_v37, %v1446_v38  ;;  %v1478_v28 = vld [vmem:[%s19707_s1 + $0x2d20] sm:$0xff]  ;;  %v1475_v29 = vld [vmem:[%s19707_s1 + $0x2d08] sm:$0xff] }
 0x2af   :  { %10007 = vmatprep.subr.bf16.mxu0 %v13820_v51  ;;  %10540 = vmatprep.subr.bf16.mxu1 %v13822_v18  ;;  %v13862_v51 = vcombine.high %v1443_v40, %v1447_v41  ;;  %v1450_v18 = vld [vmem:[%s19707_s1 + $0x2c40] sm:$0xff] }
 0x2b0   :  { %v13868_v48 = vcombine.high %v1450_v18, %v1454_v52 }
 0x2b2   :  { %10008 = vmatpush1.bf16.msra.mxu0 %v13819_v61  ;;  %10541 = vmatpush1.bf16.msra.mxu1 %v13821_v39  ;;  %v16828_v61 = vld [vmem:[%s19708_s0 + $0x58] sm:$0xff]  ;;  %v13859_v39 = vcombine.low %v1442_v37, %v1446_v38  ;;  %v1482_v38 = vld [vmem:[%s19707_s1 + $0x2d40] sm:$0xff] }
 0x2b3   :  { %10009 = vmatprep.subr.bf16.mxu0 %v13828_v0  ;;  %10542 = vmatprep.subr.bf16.mxu1 %v13830_v2  ;;  %v13861_v0 = vcombine.low %v1443_v40, %v1447_v41  ;;  %v13870_v2 = vcombine.high %v1451_v56, %v1455_v3  ;;  %v16838_v23 = vcombine.high %v16828_v61, %v16828_v61  ;;  %v1486_v40 = vld [vmem:[%s19707_s1 + $0x2d60] sm:$0xff]  ;;  %v1483_v41 = vld [vmem:[%s19707_s1 + $0x2d48] sm:$0xff] }
 0x2b6   :  { %10010 = vmatpush1.bf16.msra.mxu0 %v13827_v7  ;;  %10543 = vmatpush1.bf16.msra.mxu1 %v13829_v8  ;;  %v1463_v7 = vld [vmem:[%s19707_s1 + $0x2ca8] sm:$0xff]  ;;  %v13867_v8 = vcombine.low %v1450_v18, %v1454_v52  ;;  %v1490_v52 = vld [vmem:[%s19707_s1 + $0x2d80] sm:$0xff] }
 0x2b7   :  { %10011 = vmatprep.subr.bf16.mxu0 %v13836_v10  ;;  %10544 = vmatprep.subr.bf16.mxu1 %v13838_v11  ;;  %v13869_v10 = vcombine.low %v1451_v56, %v1455_v3  ;;  %v13876_v11 = vcombine.high %v1458_v4, %v1462_v5  ;;  %v13878_v13 = vcombine.high %v1459_v6, %v1463_v7  ;;  %v1494_v56 = vld [vmem:[%s19707_s1 + $0x2da0] sm:$0xff]  ;;  %v1491_v3 = vld [vmem:[%s19707_s1 + $0x2d88] sm:$0xff] }
 0x2ba   :  { %10012 = vmatpush1.bf16.msra.mxu0 %v13835_v20  ;;  %10545 = vmatpush1.bf16.msra.mxu1 %v13837_v59  ;;  %v1471_v20 = vld [vmem:[%s19707_s1 + $0x2ce8] sm:$0xff]  ;;  %v13875_v59 = vcombine.low %v1458_v4, %v1462_v5  ;;  %v1498_v5 = vld [vmem:[%s19707_s1 + $0x2dc0] sm:$0xff] }
 0x2bb   :  { %10013 = vmatprep.subr.bf16.mxu0 %v13844_v24  ;;  %10546 = vmatprep.subr.bf16.mxu1 %v13846_v26  ;;  %v13877_v24 = vcombine.low %v1459_v6, %v1463_v7  ;;  %v13884_v26 = vcombine.high %v1466_v14, %v1470_v17  ;;  %v13886_v49 = vcombine.high %v1467_v53, %v1471_v20  ;;  %v1502_v6 = vld [vmem:[%s19707_s1 + $0x2de0] sm:$0xff]  ;;  %v1499_v7 = vld [vmem:[%s19707_s1 + $0x2dc8] sm:$0xff] }
 0x2be   :  { %10014 = vmatpush1.bf16.msra.mxu0 %v13843_v32  ;;  %10547 = vmatpush1.bf16.msra.mxu1 %v13845_v33  ;;  %v1479_v32 = vld [vmem:[%s19707_s1 + $0x2d28] sm:$0xff]  ;;  %v13883_v33 = vcombine.low %v1466_v14, %v1470_v17  ;;  %v1506_v17 = vld [vmem:[%s19707_s1 + $0x2e00] sm:$0xff] }
 0x2bf   :  { %10015 = vmatprep.subr.bf16.mxu0 %v13852_v34  ;;  %10548 = vmatprep.subr.bf16.mxu1 %v13854_v35  ;;  %v13885_v34 = vcombine.low %v1467_v53, %v1471_v20  ;;  %v13892_v35 = vcombine.high %v1474_v15, %v1478_v28  ;;  %v13894_v37 = vcombine.high %v1475_v29, %v1479_v32  ;;  %v1510_v53 = vld [vmem:[%s19707_s1 + $0x2e20] sm:$0xff]  ;;  %v1507_v20 = vld [vmem:[%s19707_s1 + $0x2e08] sm:$0xff] }
 0x2c2   :  { %10016 = vmatpush1.bf16.msra.mxu0 %v13851_v42  ;;  %10549 = vmatpush1.bf16.msra.mxu1 %v13853_v44  ;;  %v1487_v42 = vld [vmem:[%s19707_s1 + $0x2d68] sm:$0xff]  ;;  %v13891_v44 = vcombine.low %v1474_v15, %v1478_v28  ;;  %v1514_v28 = vld [vmem:[%s19707_s1 + $0x2e40] sm:$0xff] }
 0x2c3   :  { %10026 = vmatprep.subr.bf16.mxu0 %v13860_v47  ;;  %10559 = vmatprep.subr.bf16.mxu1 %v13862_v51  ;;  %v13893_v47 = vcombine.low %v1475_v29, %v1479_v32  ;;  %v13900_v51 = vcombine.high %v1482_v38, %v1486_v40  ;;  %v13902_v18 = vcombine.high %v1483_v41, %v1487_v42  ;;  %v1518_v29 = vld [vmem:[%s19707_s1 + $0x2e60] sm:$0xff]  ;;  %v1515_v32 = vld [vmem:[%s19707_s1 + $0x2e48] sm:$0xff] }
 0x2c5   :  { %10018 = vmatmul.mubr.bf16.vlgmr.msra.gmra.mrb[0].mxu0 %v16817_v54  ;;  %10551 = vmatmul.mubr.bf16.vlgmr.msra.gmra.mrb[0].mxu1 %v16817_v54 }
 0x2c6   :  { %10027 = vmatpush1.bf16.msra.mxu0 %v13859_v39  ;;  %10560 = vmatpush1.bf16.msra.mxu1 %v13861_v0  ;;  %v1495_v39 = vld [vmem:[%s19707_s1 + $0x2da8] sm:$0xff]  ;;  %v13899_v0 = vcombine.low %v1482_v38, %v1486_v40  ;;  %v1522_v40 = vld [vmem:[%s19707_s1 + $0x2e80] sm:$0xff] }
 0x2c7   :  { %10028 = vmatprep.subr.bf16.mxu0 %v13868_v48  ;;  %10561 = vmatprep.subr.bf16.mxu1 %v13870_v2  ;;  %v13901_v48 = vcombine.low %v1483_v41, %v1487_v42  ;;  %v13908_v2 = vcombine.high %v1490_v52, %v1494_v56  ;;  %v13910_v4 = vcombine.high %v1491_v3, %v1495_v39  ;;  %v1526_v41 = vld [vmem:[%s19707_s1 + $0x2ea0] sm:$0xff]  ;;  %v1523_v42 = vld [vmem:[%s19707_s1 + $0x2e88] sm:$0xff] }
 0x2c8   :  { %10058 = vmatprep.mubr.bf16.mxu0 %v16838_v23  ;;  %10591 = vmatprep.mubr.bf16.mxu1 %v16838_v23 }
 0x2ca   :  { %10029 = vmatpush1.bf16.msra.mxu0 %v13867_v8  ;;  %10562 = vmatpush1.bf16.msra.mxu1 %v13869_v10  ;;  %v1503_v8 = vld [vmem:[%s19707_s1 + $0x2de8] sm:$0xff]  ;;  %v13907_v10 = vcombine.low %v1490_v52, %v1494_v56  ;;  %v1530_v56 = vld [vmem:[%s19707_s1 + $0x2ec0] sm:$0xff] }
 0x2cb   :  { %10030 = vmatprep.subr.bf16.mxu0 %v13876_v11  ;;  %10563 = vmatprep.subr.bf16.mxu1 %v13878_v13  ;;  %v13909_v11 = vcombine.low %v1491_v3, %v1495_v39  ;;  %v13916_v13 = vcombine.high %v1498_v5, %v1502_v6  ;;  %v13918_v14 = vcombine.high %v1499_v7, %v1503_v8  ;;  %v1534_v3 = vld [vmem:[%s19707_s1 + $0x2ee0] sm:$0xff]  ;;  %v1531_v39 = vld [vmem:[%s19707_s1 + $0x2ec8] sm:$0xff] }
 0x2ce   :  { %10031 = vmatpush1.bf16.msra.mxu0 %v13875_v59  ;;  %10564 = vmatpush1.bf16.msra.mxu1 %v13877_v24  ;;  %v1511_v59 = vld [vmem:[%s19707_s1 + $0x2e28] sm:$0xff]  ;;  %v13915_v24 = vcombine.low %v1498_v5, %v1502_v6  ;;  %v1538_v6 = vld [vmem:[%s19707_s1 + $0x2f00] sm:$0xff] }
 0x2cf   :  { %10032 = vmatprep.subr.bf16.mxu0 %v13884_v26  ;;  %10565 = vmatprep.subr.bf16.mxu1 %v13886_v49  ;;  %v13917_v26 = vcombine.low %v1499_v7, %v1503_v8  ;;  %v13924_v49 = vcombine.high %v1506_v17, %v1510_v53  ;;  %v13926_v15 = vcombine.high %v1507_v20, %v1511_v59  ;;  %v1542_v7 = vld [vmem:[%s19707_s1 + $0x2f20] sm:$0xff]  ;;  %v1539_v8 = vld [vmem:[%s19707_s1 + $0x2f08] sm:$0xff] }
 0x2d2   :  { %10033 = vmatpush1.bf16.msra.mxu0 %v13883_v33  ;;  %10566 = vmatpush1.bf16.msra.mxu1 %v13885_v34  ;;  %v1519_v33 = vld [vmem:[%s19707_s1 + $0x2e68] sm:$0xff]  ;;  %v13923_v34 = vcombine.low %v1506_v17, %v1510_v53  ;;  %v1546_v53 = vld [vmem:[%s19707_s1 + $0x2f40] sm:$0xff] }
 0x2d3   :  { %10034 = vmatprep.subr.bf16.mxu0 %v13892_v35  ;;  %10567 = vmatprep.subr.bf16.mxu1 %v13894_v37  ;;  %v13925_v35 = vcombine.low %v1507_v20, %v1511_v59  ;;  %v13932_v37 = vcombine.high %v1514_v28, %v1518_v29  ;;  %v13934_v38 = vcombine.high %v1515_v32, %v1519_v33  ;;  %v1550_v20 = vld [vmem:[%s19707_s1 + $0x2f60] sm:$0xff]  ;;  %v1547_v59 = vld [vmem:[%s19707_s1 + $0x2f48] sm:$0xff] }
 0x2d6   :  { %10035 = vmatpush1.bf16.msra.mxu0 %v13891_v44  ;;  %10568 = vmatpush1.bf16.msra.mxu1 %v13893_v47  ;;  %v1527_v44 = vld [vmem:[%s19707_s1 + $0x2ea8] sm:$0xff]  ;;  %v13931_v47 = vcombine.low %v1514_v28, %v1518_v29  ;;  %v1554_v29 = vld [vmem:[%s19707_s1 + $0x2f80] sm:$0xff] }
 0x2d7   :  { %10036 = vmatprep.subr.bf16.mxu0 %v13900_v51  ;;  %10569 = vmatprep.subr.bf16.mxu1 %v13902_v18  ;;  %v13933_v51 = vcombine.low %v1515_v32, %v1519_v33  ;;  %v13940_v18 = vcombine.high %v1522_v40, %v1526_v41  ;;  %v13942_v52 = vcombine.high %v1523_v42, %v1527_v44  ;;  %v1558_v32 = vld [vmem:[%s19707_s1 + $0x2fa0] sm:$0xff]  ;;  %v1555_v33 = vld [vmem:[%s19707_s1 + $0x2f88] sm:$0xff] }
 0x2da   :  { %10037 = vmatpush1.bf16.msra.mxu0 %v13899_v0  ;;  %10570 = vmatpush1.bf16.msra.mxu1 %v13901_v48  ;;  %v1535_v0 = vld [vmem:[%s19707_s1 + $0x2ee8] sm:$0xff]  ;;  %v13939_v48 = vcombine.low %v1522_v40, %v1526_v41  ;;  %v1562_v41 = vld [vmem:[%s19707_s1 + $0x2fc0] sm:$0xff] }
 0x2db   :  { %10038 = vmatprep.subr.bf16.mxu0 %v13908_v2  ;;  %10571 = vmatprep.subr.bf16.mxu1 %v13910_v4  ;;  %v13941_v2 = vcombine.low %v1523_v42, %v1527_v44  ;;  %v13948_v4 = vcombine.high %v1530_v56, %v1534_v3  ;;  %v13950_v5 = vcombine.high %v1531_v39, %v1535_v0  ;;  %v1566_v42 = vld [vmem:[%s19707_s1 + $0x2fe0] sm:$0xff]  ;;  %v1563_v44 = vld [vmem:[%s19707_s1 + $0x2fc8] sm:$0xff] }
 0x2de   :  { %10039 = vmatpush1.bf16.msra.mxu0 %v13907_v10  ;;  %10572 = vmatpush1.bf16.msra.mxu1 %v13909_v11  ;;  %v1543_v10 = vld [vmem:[%s19707_s1 + $0x2f28] sm:$0xff]  ;;  %v13947_v11 = vcombine.low %v1530_v56, %v1534_v3  ;;  %v1570_v3 = vld [vmem:[%s19707_s1 + $0x3000] sm:$0xff] }
 0x2df   :  { %10040 = vmatprep.subr.bf16.mxu0 %v13916_v13  ;;  %10573 = vmatprep.subr.bf16.mxu1 %v13918_v14  ;;  %v13949_v13 = vcombine.low %v1531_v39, %v1535_v0  ;;  %v13956_v14 = vcombine.high %v1538_v6, %v1542_v7  ;;  %v13958_v17 = vcombine.high %v1539_v8, %v1543_v10  ;;  %v1574_v39 = vld [vmem:[%s19707_s1 + $0x3020] sm:$0xff]  ;;  %v1571_v0 = vld [vmem:[%s19707_s1 + $0x3008] sm:$0xff] }
 0x2e2   :  { %10041 = vmatpush1.bf16.msra.mxu0 %v13915_v24  ;;  %10574 = vmatpush1.bf16.msra.mxu1 %v13917_v26  ;;  %v1551_v24 = vld [vmem:[%s19707_s1 + $0x2f68] sm:$0xff]  ;;  %v13955_v26 = vcombine.low %v1538_v6, %v1542_v7  ;;  %v1578_v7 = vld [vmem:[%s19707_s1 + $0x3040] sm:$0xff] }
 0x2e3   :  { %10042 = vmatprep.subr.bf16.mxu0 %v13924_v49  ;;  %10575 = vmatprep.subr.bf16.mxu1 %v13926_v15  ;;  %v13957_v49 = vcombine.low %v1539_v8, %v1543_v10  ;;  %v13964_v15 = vcombine.high %v1546_v53, %v1550_v20  ;;  %v13966_v28 = vcombine.high %v1547_v59, %v1551_v24  ;;  %v1582_v8 = vld [vmem:[%s19707_s1 + $0x3060] sm:$0xff] }
 0x2e4   :  { %v17026_v10 = vcombine.low %v16828_v61, %v16828_v61  ;;  %v1586_v61 = vld [vmem:[%s19707_s1 + $0x3080] sm:$0xff] }
 0x2e6   :  { %10043 = vmatpush1.bf16.msra.mxu0 %v13923_v34  ;;  %10576 = vmatpush1.bf16.msra.mxu1 %v13925_v35  ;;  %v1559_v34 = vld [vmem:[%s19707_s1 + $0x2fa8] sm:$0xff]  ;;  %v13963_v35 = vcombine.low %v1546_v53, %v1550_v20  ;;  %v13996_v53 = vcombine.high %v1578_v7, %v1582_v8 }
 0x2e7   :  { %10044 = vmatprep.subr.bf16.mxu0 %v13932_v37  ;;  %10577 = vmatprep.subr.bf16.mxu1 %v13934_v38  ;;  %v13965_v37 = vcombine.low %v1547_v59, %v1551_v24  ;;  %v13972_v38 = vcombine.high %v1554_v29, %v1558_v32  ;;  %v13974_v40 = vcombine.high %v1555_v33, %v1559_v34  ;;  %v1590_v59 = vld [vmem:[%s19707_s1 + $0x30a0] sm:$0xff]  ;;  %v1587_v24 = vld [vmem:[%s19707_s1 + $0x3088] sm:$0xff] }
 0x2ea   :  { %10045 = vmatpush1.bf16.msra.mxu0 %v13931_v47  ;;  %10578 = vmatpush1.bf16.msra.mxu1 %v13933_v51  ;;  %v1567_v47 = vld [vmem:[%s19707_s1 + $0x2fe8] sm:$0xff]  ;;  %v13971_v51 = vcombine.low %v1554_v29, %v1558_v32  ;;  %v1594_v32 = vld [vmem:[%s19707_s1 + $0x30c0] sm:$0xff] }
 0x2eb   :  { %10046 = vmatprep.subr.bf16.mxu0 %v13940_v18  ;;  %10579 = vmatprep.subr.bf16.mxu1 %v13942_v52  ;;  %v13973_v18 = vcombine.low %v1555_v33, %v1559_v34  ;;  %v13980_v52 = vcombine.high %v1562_v41, %v1566_v42  ;;  %v13982_v56 = vcombine.high %v1563_v44, %v1567_v47  ;;  %v1598_v33 = vld [vmem:[%s19707_s1 + $0x30e0] sm:$0xff]  ;;  %v1595_v34 = vld [vmem:[%s19707_s1 + $0x30c8] sm:$0xff] }
 0x2ee   :  { %10047 = vmatpush1.bf16.msra.mxu0 %v13939_v48  ;;  %10580 = vmatpush1.bf16.msra.mxu1 %v13941_v2  ;;  %v1575_v48 = vld [vmem:[%s19707_s1 + $0x3028] sm:$0xff]  ;;  %v13979_v2 = vcombine.low %v1562_v41, %v1566_v42  ;;  %v36_v42 = vld [vmem:[%s19707_s1 + $0x10] sm:$0xff] }
 0x2ef   :  { %10048 = vmatprep.subr.bf16.mxu0 %v13948_v4  ;;  %10581 = vmatprep.subr.bf16.mxu1 %v13950_v5  ;;  %v13981_v4 = vcombine.low %v1563_v44, %v1567_v47  ;;  %v13988_v5 = vcombine.high %v1570_v3, %v1574_v39  ;;  %v13990_v6 = vcombine.high %v1571_v0, %v1575_v48  ;;  %v40_v44 = vld [vmem:[%s19707_s1 + $0x30] sm:$0xff]  ;;  %v37_v47 = vld [vmem:[%s19707_s1 + $0x18] sm:$0xff] }
 0x2f2   :  { %10049 = vmatpush1.bf16.msra.mxu0 %v13947_v11  ;;  %10582 = vmatpush1.bf16.msra.mxu1 %v13949_v13  ;;  %v1579_v11 = vld [vmem:[%s19707_s1 + $0x3048] sm:$0xff] }
 0x2f3   :  { %10050 = vmatprep.subr.bf16.mxu0 %v13956_v14  ;;  %10583 = vmatprep.subr.bf16.mxu1 %v13958_v17  ;;  %v1583_v13 = vld [vmem:[%s19707_s1 + $0x3068] sm:$0xff]  ;;  %v13987_v14 = vcombine.low %v1570_v3, %v1574_v39  ;;  %v13989_v17 = vcombine.low %v1571_v0, %v1575_v48  ;;  %v44_v39 = vld [vmem:[%s19707_s1 + $0x50] sm:$0xff]  ;;  %v14404_v48 = vld [vmem:[%s19708_s0 + $0x60] ss:$0 sps:$4 sm:$0xff]  }
 0x2f4   :  { %v13998_v20 = vcombine.high %v1579_v11, %v1583_v13  ;;  %v48_v0 = vld [vmem:[%s19707_s1 + $0x70] sm:$0xff] }
 0x2f6   :  { %10051 = vmatpush1.bf16.msra.mxu0 %v13955_v26  ;;  %10584 = vmatpush1.bf16.msra.mxu1 %v13957_v49  ;;  %v1591_v26 = vld [vmem:[%s19707_s1 + $0x30a8] sm:$0xff]  ;;  %v13995_v49 = vcombine.low %v1578_v7, %v1582_v8  ;;  %v12464_v7 = vcombine.high %v44_v39, %v48_v0 }
 0x2f7   :  { %10052 = vmatprep.subr.bf16.mxu0 %v13964_v15  ;;  %10585 = vmatprep.subr.bf16.mxu1 %v13966_v28  ;;  %v13997_v15 = vcombine.low %v1579_v11, %v1583_v13  ;;  %v14004_v28 = vcombine.high %v1586_v61, %v1590_v59  ;;  %v14006_v29 = vcombine.high %v1587_v24, %v1591_v26  ;;  %v52_v11 = vld [vmem:[%s19707_s1 + $0x90] sm:$0xff] }
 0x2f8   :  { %v56_v13 = vld [vmem:[%s19707_s1 + $0xb0] sm:$0xff] }
 0x2fa   :  { %10053 = vmatpush1.bf16.msra.mxu0 %v13963_v35  ;;  %10586 = vmatpush1.bf16.msra.mxu1 %v13965_v37  ;;  %v1599_v35 = vld [vmem:[%s19707_s1 + $0x30e8] sm:$0xff]  ;;  %v14003_v37 = vcombine.low %v1586_v61, %v1590_v59  ;;  %v12472_v61 = vcombine.high %v52_v11, %v56_v13 }
 0x2fb   :  { %10054 = vmatprep.subr.bf16.mxu0 %v13972_v38  ;;  %10587 = vmatprep.subr.bf16.mxu1 %v13974_v40  ;;  %v14005_v38 = vcombine.low %v1587_v24, %v1591_v26  ;;  %v14012_v40 = vcombine.high %v1594_v32, %v1598_v33  ;;  %v14014_v41 = vcombine.high %v1595_v34, %v1599_v35  ;;  %v60_v24 = vld [vmem:[%s19707_s1 + $0xd0] sm:$0xff] }
 0x2fc   :  { %v64_v26 = vld [vmem:[%s19707_s1 + $0xf0] sm:$0xff] }
 0x2fe   :  { %10055 = vmatpush1.bf16.msra.mxu0 %v13971_v51  ;;  %10588 = vmatpush1.bf16.msra.mxu1 %v13973_v18  ;;  %v41_v51 = vld [vmem:[%s19707_s1 + $0x38] sm:$0xff]  ;;  %v14011_v18 = vcombine.low %v1594_v32, %v1598_v33  ;;  %v12480_v32 = vcombine.high %v60_v24, %v64_v26 }
 0x2ff   :  { %10056 = vmatprep.subr.bf16.mxu0 %v13980_v52  ;;  %10589 = vmatprep.subr.bf16.mxu1 %v13982_v56  ;;  %v14013_v52 = vcombine.low %v1595_v34, %v1599_v35  ;;  %v12456_v56 = vcombine.high %v36_v42, %v40_v44  ;;  %v12458_v3 = vcombine.high %v37_v47, %v41_v51  ;;  %v68_v34 = vld [vmem:[%s19707_s1 + $0x110] sm:$0xff] }
 0x300   :  { %v72_v35 = vld [vmem:[%s19707_s1 + $0x130] sm:$0xff] }
 0x302   :  { %10057 = vmatpush1.bf16.msra.mxu0 %v13979_v2  ;;  %10590 = vmatpush1.bf16.msra.mxu1 %v13981_v4  ;;  %v45_v2 = vld [vmem:[%s19707_s1 + $0x58] sm:$0xff] }
 0x303   :  { %10067 = vmatprep.subr.bf16.mxu0 %v13988_v5  ;;  %10600 = vmatprep.subr.bf16.mxu1 %v13990_v6  ;;  %v49_v4 = vld [vmem:[%s19707_s1 + $0x78] sm:$0xff]  ;;  %v12455_v5 = vcombine.low %v36_v42, %v40_v44  ;;  %v12457_v6 = vcombine.low %v37_v47, %v41_v51  ;;  %v76_v44 = vld [vmem:[%s19707_s1 + $0x150] sm:$0xff] }
 0x304   :  { %v12466_v8 = vcombine.high %v45_v2, %v49_v4  ;;  %v80_v47 = vld [vmem:[%s19707_s1 + $0x170] sm:$0xff]  ;;  %v77_v51 = vld [vmem:[%s19707_s1 + $0x158] sm:$0xff] }
 0x305   :  { %10059 = vmatmul.mubr.bf16.vlgmr.msra.gmra.mrb[0].mxu0 %v17026_v10  ;;  %10592 = vmatmul.mubr.bf16.vlgmr.msra.gmra.mrb[0].mxu1 %v17026_v10 }
 0x306   :  { %10068 = vmatpush1.bf16.msra.mxu0 %v13987_v14  ;;  %10601 = vmatpush1.bf16.msra.mxu1 %v13989_v17  ;;  %v53_v14 = vld [vmem:[%s19707_s1 + $0x98] sm:$0xff] }
 0x307   :  { %10069 = vmatprep.subr.bf16.mxu0 %v13996_v53  ;;  %10602 = vmatprep.subr.bf16.mxu1 %v13998_v20  ;;  %v57_v17 = vld [vmem:[%s19707_s1 + $0xb8] sm:$0xff]  ;;  %v12463_v53 = vcombine.low %v44_v39, %v48_v0  ;;  %v12465_v20 = vcombine.low %v45_v2, %v49_v4  ;;  %v84_v0 = vld [vmem:[%s19707_s1 + $0x190] sm:$0xff] }
 0x308   :  { %10099 = vmatprep.mubr.bf16.mxu0 %v14470_v25  ;;  %10632 = vmatprep.mubr.bf16.mxu1 %v14470_v25  ;;  %v12474_v59 = vcombine.high %v53_v14, %v57_v17  ;;  %v85_v2 = vld [vmem:[%s19707_s1 + $0x198] sm:$0xff] }
 0x309   :  { %v89_v4 = vld [vmem:[%s19707_s1 + $0x1b8] sm:$0xff] }
 0x30a   :  { %10070 = vmatpush1.bf16.msra.mxu0 %v13995_v49  ;;  %10603 = vmatpush1.bf16.msra.mxu1 %v13997_v15  ;;  %v61_v49 = vld [vmem:[%s19707_s1 + $0xd8] sm:$0xff] }
 0x30b   :  { %10071 = vmatprep.subr.bf16.mxu0 %v14004_v28  ;;  %10604 = vmatprep.subr.bf16.mxu1 %v14006_v29  ;;  %v65_v15 = vld [vmem:[%s19707_s1 + $0xf8] sm:$0xff]  ;;  %v12471_v28 = vcombine.low %v52_v11, %v56_v13  ;;  %v12473_v29 = vcombine.low %v53_v14, %v57_v17  ;;  %v92_v11 = vld [vmem:[%s19707_s1 + $0x1d0] sm:$0xff] }
 0x30c   :  { %v12482_v33 = vcombine.high %v61_v49, %v65_v15  ;;  %v96_v13 = vld [vmem:[%s19707_s1 + $0x1f0] sm:$0xff]  ;;  %v93_v14 = vld [vmem:[%s19707_s1 + $0x1d8] sm:$0xff] }
 0x30d   :  { %v97_v17 = vld [vmem:[%s19707_s1 + $0x1f8] sm:$0xff] }
 0x30e   :  { %10072 = vmatpush1.bf16.msra.mxu0 %v14003_v37  ;;  %10605 = vmatpush1.bf16.msra.mxu1 %v14005_v38  ;;  %v73_v37 = vld [vmem:[%s19707_s1 + $0x138] sm:$0xff]  ;;  %v12479_v38 = vcombine.low %v60_v24, %v64_v26  ;;  %v100_v24 = vld [vmem:[%s19707_s1 + $0x210] sm:$0xff] }
 0x30f   :  { %10073 = vmatprep.subr.bf16.mxu0 %v14012_v40  ;;  %10606 = vmatprep.subr.bf16.mxu1 %v14014_v41  ;;  %v12481_v40 = vcombine.low %v61_v49, %v65_v15  ;;  %v12488_v41 = vcombine.high %v68_v34, %v72_v35  ;;  %v104_v26 = vld [vmem:[%s19707_s1 + $0x230] sm:$0xff]  ;;  %v101_v49 = vld [vmem:[%s19707_s1 + $0x218] sm:$0xff] }
 0x310   :  { %v105_v15 = vld [vmem:[%s19707_s1 + $0x238] sm:$0xff] }
 0x312   :  { %10074 = vmatpush1.bf16.msra.mxu0 %v14011_v18  ;;  %10607 = vmatpush1.bf16.msra.mxu1 %v14013_v52  ;;  %v81_v18 = vld [vmem:[%s19707_s1 + $0x178] sm:$0xff]  ;;  %v12487_v52 = vcombine.low %v68_v34, %v72_v35  ;;  %v108_v34 = vld [vmem:[%s19707_s1 + $0x250] sm:$0xff] }
 0x313   :  { %10641 = vmatprep.subr.bf16.mxu0 %v12456_v56  ;;  %11174 = vmatprep.subr.bf16.mxu1 %v12458_v3  ;;  %v12496_v3 = vcombine.high %v76_v44, %v80_v47  ;;  %v12498_v39 = vcombine.high %v77_v51, %v81_v18  ;;  %v112_v35 = vld [vmem:[%s19707_s1 + $0x270] sm:$0xff] }
 0x315   :  { %14019 = vmatmul.mubr.msk.bf16.vlgmr.msra.gmra.mrb[0].mxu0 %vm9571_vm0, %v14404_v48  ;;  %14020 = vmatmul.mubr.msk.bf16.vlgmr.msra.gmra.mrb[0].mxu1 %vm9571_vm0, %v14404_v48  ;;  %v88_v48 = vld [vmem:[%s19707_s1 + $0x1b0] sm:$0xff] }
 0x316   :  { %10642 = vmatpush1.bf16.msra.mxu0 %v12455_v5  ;;  %11175 = vmatpush1.bf16.msra.mxu1 %v12457_v6  ;;  %v12495_v5 = vcombine.low %v76_v44, %v80_v47  ;;  %v12497_v6 = vcombine.low %v77_v51, %v81_v18  ;;  %v116_v44 = vld [vmem:[%s19707_s1 + $0x290] sm:$0xff]  ;;  %v117_v51 = vld [vmem:[%s19707_s1 + $0x298] sm:$0xff] }
 0x317   :  { %10643 = vmatprep.subr.bf16.mxu0 %v12464_v7  ;;  %11176 = vmatprep.subr.bf16.mxu1 %v12466_v8  ;;  %v12504_v7 = vcombine.high %v84_v0, %v88_v48  ;;  %v12506_v8 = vcombine.high %v85_v2, %v89_v4  ;;  %v120_v47 = vld [vmem:[%s19707_s1 + $0x2b0] sm:$0xff]  ;;  %v121_v18 = vld [vmem:[%s19707_s1 + $0x2b8] sm:$0xff] }
 0x318   :  { %10673 = vmatprep.mubr.bf16.mxu0 %v14599_v57  ;;  %11206 = vmatprep.mubr.bf16.mxu1 %v14599_v57  ;;  %v69_v57 = vld [vmem:[%s19707_s1 + $0x118] sm:$0xff] }
 0x319   :  { %v12490_v42 = vcombine.high %v69_v57, %v73_v37  ;;  %v12489_v56 = vcombine.low %v69_v57, %v73_v37  ;;  %v109_v57 = vld [vmem:[%s19707_s1 + $0x258] sm:$0xff] }
 0x31a   :  { %10644 = vmatpush1.bf16.msra.mxu0 %v12463_v53  ;;  %11177 = vmatpush1.bf16.msra.mxu1 %v12465_v20  ;;  %v12503_v53 = vcombine.low %v84_v0, %v88_v48  ;;  %v12505_v20 = vcombine.low %v85_v2, %v89_v4  ;;  %v113_v37 = vld [vmem:[%s19707_s1 + $0x278] sm:$0xff]  ;;  %v124_v0 = vld [vmem:[%s19707_s1 + $0x2d0] sm:$0xff] }
 0x31b   :  { %10645 = vmatprep.subr.bf16.mxu0 %v12472_v61  ;;  %11178 = vmatprep.subr.bf16.mxu1 %v12474_v59  ;;  %v12512_v61 = vcombine.high %v92_v11, %v96_v13  ;;  %v12514_v59 = vcombine.high %v93_v14, %v97_v17  ;;  %v128_v48 = vld [vmem:[%s19707_s1 + $0x2f0] sm:$0xff]  ;;  %v125_v2 = vld [vmem:[%s19707_s1 + $0x2d8] sm:$0xff] }
 0x31c   :  { %v129_v4 = vld [vmem:[%s19707_s1 + $0x2f8] sm:$0xff] }
 0x31e   :  { %10646 = vmatpush1.bf16.msra.mxu0 %v12471_v28  ;;  %11179 = vmatpush1.bf16.msra.mxu1 %v12473_v29  ;;  %v12511_v28 = vcombine.low %v92_v11, %v96_v13  ;;  %v12513_v29 = vcombine.low %v93_v14, %v97_v17  ;;  %v132_v11 = vld [vmem:[%s19707_s1 + $0x310] sm:$0xff]  ;;  %v133_v14 = vld [vmem:[%s19707_s1 + $0x318] sm:$0xff] }
 0x31f   :  { %10647 = vmatprep.subr.bf16.mxu0 %v12480_v32  ;;  %11180 = vmatprep.subr.bf16.mxu1 %v12482_v33  ;;  %v12520_v32 = vcombine.high %v100_v24, %v104_v26  ;;  %v12522_v33 = vcombine.high %v101_v49, %v105_v15  ;;  %v136_v13 = vld [vmem:[%s19707_s1 + $0x330] sm:$0xff]  ;;  %v137_v17 = vld [vmem:[%s19707_s1 + $0x338] sm:$0xff] }
 0x322   :  { %10648 = vmatpush1.bf16.msra.mxu0 %v12479_v38  ;;  %11181 = vmatpush1.bf16.msra.mxu1 %v12481_v40  ;;  %v12519_v38 = vcombine.low %v100_v24, %v104_v26  ;;  %v12521_v40 = vcombine.low %v101_v49, %v105_v15  ;;  %v140_v24 = vld [vmem:[%s19707_s1 + $0x350] sm:$0xff]  ;;  %v141_v49 = vld [vmem:[%s19707_s1 + $0x358] sm:$0xff] }
 0x323   :  { %10649 = vmatprep.subr.bf16.mxu0 %v12488_v41  ;;  %11182 = vmatprep.subr.bf16.mxu1 %v12490_v42  ;;  %v12528_v41 = vcombine.high %v108_v34, %v112_v35  ;;  %v12530_v42 = vcombine.high %v109_v57, %v113_v37  ;;  %v144_v26 = vld [vmem:[%s19707_s1 + $0x370] sm:$0xff]  ;;  %v145_v15 = vld [vmem:[%s19707_s1 + $0x378] sm:$0xff] }
 0x326   :  { %10650 = vmatpush1.bf16.msra.mxu0 %v12487_v52  ;;  %11183 = vmatpush1.bf16.msra.mxu1 %v12489_v56  ;;  %v12527_v52 = vcombine.low %v108_v34, %v112_v35  ;;  %v12529_v56 = vcombine.low %v109_v57, %v113_v37  ;;  %v148_v34 = vld [vmem:[%s19707_s1 + $0x390] sm:$0xff]  ;;  %v149_v57 = vld [vmem:[%s19707_s1 + $0x398] sm:$0xff] }
 0x327   :  { %10651 = vmatprep.subr.bf16.mxu0 %v12496_v3  ;;  %11184 = vmatprep.subr.bf16.mxu1 %v12498_v39  ;;  %v12536_v3 = vcombine.high %v116_v44, %v120_v47  ;;  %v12538_v39 = vcombine.high %v117_v51, %v121_v18  ;;  %v152_v35 = vld [vmem:[%s19707_s1 + $0x3b0] sm:$0xff]  ;;  %v153_v37 = vld [vmem:[%s19707_s1 + $0x3b8] sm:$0xff] }
 0x32a   :  { %10652 = vmatpush1.bf16.msra.mxu0 %v12495_v5  ;;  %11185 = vmatpush1.bf16.msra.mxu1 %v12497_v6  ;;  %v12535_v5 = vcombine.low %v116_v44, %v120_v47  ;;  %v12537_v6 = vcombine.low %v117_v51, %v121_v18  ;;  %v156_v44 = vld [vmem:[%s19707_s1 + $0x3d0] sm:$0xff]  ;;  %v157_v51 = vld [vmem:[%s19707_s1 + $0x3d8] sm:$0xff] }
 0x32b   :  { %10653 = vmatprep.subr.bf16.mxu0 %v12504_v7  ;;  %11186 = vmatprep.subr.bf16.mxu1 %v12506_v8  ;;  %v12544_v7 = vcombine.high %v124_v0, %v128_v48  ;;  %v12546_v8 = vcombine.high %v125_v2, %v129_v4  ;;  %v160_v47 = vld [vmem:[%s19707_s1 + $0x3f0] sm:$0xff]  ;;  %v161_v18 = vld [vmem:[%s19707_s1 + $0x3f8] sm:$0xff] }
 0x32e   :  { %10654 = vmatpush1.bf16.msra.mxu0 %v12503_v53  ;;  %11187 = vmatpush1.bf16.msra.mxu1 %v12505_v20  ;;  %v12543_v53 = vcombine.low %v124_v0, %v128_v48  ;;  %v12545_v20 = vcombine.low %v125_v2, %v129_v4  ;;  %v164_v0 = vld [vmem:[%s19707_s1 + $0x410] sm:$0xff]  ;;  %v165_v2 = vld [vmem:[%s19707_s1 + $0x418] sm:$0xff] }
 0x32f   :  { %10655 = vmatprep.subr.bf16.mxu0 %v12512_v61  ;;  %11188 = vmatprep.subr.bf16.mxu1 %v12514_v59  ;;  %v12552_v61 = vcombine.high %v132_v11, %v136_v13  ;;  %v12554_v59 = vcombine.high %v133_v14, %v137_v17  ;;  %v168_v48 = vld [vmem:[%s19707_s1 + $0x430] sm:$0xff]  ;;  %v169_v4 = vld [vmem:[%s19707_s1 + $0x438] sm:$0xff] }
 0x332   :  { %10656 = vmatpush1.bf16.msra.mxu0 %v12511_v28  ;;  %11189 = vmatpush1.bf16.msra.mxu1 %v12513_v29  ;;  %v12551_v28 = vcombine.low %v132_v11, %v136_v13  ;;  %v12553_v29 = vcombine.low %v133_v14, %v137_v17  ;;  %v172_v11 = vld [vmem:[%s19707_s1 + $0x450] sm:$0xff]  ;;  %v173_v14 = vld [vmem:[%s19707_s1 + $0x458] sm:$0xff] }
 0x333   :  { %10657 = vmatprep.subr.bf16.mxu0 %v12520_v32  ;;  %11190 = vmatprep.subr.bf16.mxu1 %v12522_v33  ;;  %v12560_v32 = vcombine.high %v140_v24, %v144_v26  ;;  %v12562_v33 = vcombine.high %v141_v49, %v145_v15  ;;  %v176_v13 = vld [vmem:[%s19707_s1 + $0x470] sm:$0xff]  ;;  %v177_v17 = vld [vmem:[%s19707_s1 + $0x478] sm:$0xff] }
 0x336   :  { %10658 = vmatpush1.bf16.msra.mxu0 %v12519_v38  ;;  %11191 = vmatpush1.bf16.msra.mxu1 %v12521_v40  ;;  %v12559_v38 = vcombine.low %v140_v24, %v144_v26  ;;  %v12561_v40 = vcombine.low %v141_v49, %v145_v15  ;;  %v180_v24 = vld [vmem:[%s19707_s1 + $0x490] sm:$0xff]  ;;  %v181_v49 = vld [vmem:[%s19707_s1 + $0x498] sm:$0xff] }
 0x337   :  { %10659 = vmatprep.subr.bf16.mxu0 %v12528_v41  ;;  %11192 = vmatprep.subr.bf16.mxu1 %v12530_v42  ;;  %v12568_v41 = vcombine.high %v148_v34, %v152_v35  ;;  %v12570_v42 = vcombine.high %v149_v57, %v153_v37  ;;  %v184_v26 = vld [vmem:[%s19707_s1 + $0x4b0] sm:$0xff]  ;;  %v185_v15 = vld [vmem:[%s19707_s1 + $0x4b8] sm:$0xff] }
 0x33a   :  { %10660 = vmatpush1.bf16.msra.mxu0 %v12527_v52  ;;  %11193 = vmatpush1.bf16.msra.mxu1 %v12529_v56  ;;  %v12567_v52 = vcombine.low %v148_v34, %v152_v35  ;;  %v12569_v56 = vcombine.low %v149_v57, %v153_v37  ;;  %v188_v34 = vld [vmem:[%s19707_s1 + $0x4d0] sm:$0xff]  ;;  %v193_v57 = vld [vmem:[%s19707_s1 + $0x4f8] sm:$0xff]  ;;  %v12599_v37 = vcombine.low %v180_v24, %v184_v26 }
 0x33b   :  { %10661 = vmatprep.subr.bf16.mxu0 %v12536_v3  ;;  %11194 = vmatprep.subr.bf16.mxu1 %v12538_v39  ;;  %v12576_v3 = vcombine.high %v156_v44, %v160_v47  ;;  %v12578_v39 = vcombine.high %v157_v51, %v161_v18  ;;  %v192_v35 = vld [vmem:[%s19707_s1 + $0x4f0] sm:$0xff] }
 0x33e   :  { %10662 = vmatpush1.bf16.msra.mxu0 %v12535_v5  ;;  %11195 = vmatpush1.bf16.msra.mxu1 %v12537_v6  ;;  %v12575_v5 = vcombine.low %v156_v44, %v160_v47  ;;  %v12577_v6 = vcombine.low %v157_v51, %v161_v18  ;;  %v200_v44 = vld [vmem:[%s19707_s1 + $0x530] sm:$0xff]  ;;  %v201_v47 = vld [vmem:[%s19707_s1 + $0x538] sm:$0xff]  ;;  %v12607_v51 = vcombine.low %v188_v34, %v192_v35 }
 0x33f   :  { %10663 = vmatprep.subr.bf16.mxu0 %v12544_v7  ;;  %11196 = vmatprep.subr.bf16.mxu1 %v12546_v8  ;;  %v12584_v7 = vcombine.high %v164_v0, %v168_v48  ;;  %v12586_v8 = vcombine.high %v165_v2, %v169_v4 }
 0x342   :  { %10664 = vmatpush1.bf16.msra.mxu0 %v12543_v53  ;;  %11197 = vmatpush1.bf16.msra.mxu1 %v12545_v20  ;;  %v12583_v53 = vcombine.low %v164_v0, %v168_v48  ;;  %v12585_v20 = vcombine.low %v165_v2, %v169_v4  ;;  %v205_v0 = vld [vmem:[%s19707_s1 + $0x558] sm:$0xff] }
 0x343   :  { %10665 = vmatprep.subr.bf16.mxu0 %v12552_v61  ;;  %11198 = vmatprep.subr.bf16.mxu1 %v12554_v59  ;;  %v12592_v61 = vcombine.high %v172_v11, %v176_v13  ;;  %v12594_v59 = vcombine.high %v173_v14, %v177_v17  ;;  %v209_v48 = vld [vmem:[%s19707_s1 + $0x578] sm:$0xff] }
 0x346   :  { %10666 = vmatpush1.bf16.msra.mxu0 %v12551_v28  ;;  %11199 = vmatpush1.bf16.msra.mxu1 %v12553_v29  ;;  %v12591_v28 = vcombine.low %v172_v11, %v176_v13  ;;  %v12593_v29 = vcombine.low %v173_v14, %v177_v17  ;;  %v213_v11 = vld [vmem:[%s19707_s1 + $0x598] sm:$0xff]  ;;  %v12625_v17 = vcombine.low %v205_v0, %v209_v48 }
 0x347   :  { %10667 = vmatprep.subr.bf16.mxu0 %v12560_v32  ;;  %11200 = vmatprep.subr.bf16.mxu1 %v12562_v33  ;;  %v12600_v32 = vcombine.high %v180_v24, %v184_v26  ;;  %v12602_v33 = vcombine.high %v181_v49, %v185_v15  ;;  %v217_v13 = vld [vmem:[%s19707_s1 + $0x5b8] sm:$0xff] }
 0x348   :  { %v221_v24 = vld [vmem:[%s19707_s1 + $0x5d8] sm:$0xff] }
 0x349   :  { %v225_v26 = vld [vmem:[%s19707_s1 + $0x5f8] sm:$0xff] }
 0x34a   :  { %10668 = vmatpush1.bf16.msra.mxu0 %v12559_v38  ;;  %11201 = vmatpush1.bf16.msra.mxu1 %v12561_v40  ;;  %v12601_v38 = vcombine.low %v181_v49, %v185_v15  ;;  %v12608_v40 = vcombine.high %v188_v34, %v192_v35  ;;  %v12633_v15 = vcombine.low %v213_v11, %v217_v13  ;;  %v229_v34 = vld [vmem:[%s19707_s1 + $0x618] sm:$0xff] }
 0x34b   :  { %10669 = vmatprep.subr.bf16.mxu0 %v12568_v41  ;;  %11202 = vmatprep.subr.bf16.mxu1 %v12570_v42  ;;  %v196_v42 = vld [vmem:[%s19707_s1 + $0x510] sm:$0xff]  ;;  %v233_v35 = vld [vmem:[%s19707_s1 + $0x638] sm:$0xff] }
 0x34c   :  { %v12615_v2 = vcombine.low %v196_v42, %v200_v44 }
 0x34e   :  { %10670 = vmatpush1.bf16.msra.mxu0 %v12567_v52  ;;  %11203 = vmatpush1.bf16.msra.mxu1 %v12569_v56  ;;  %v12616_v52 = vcombine.high %v196_v42, %v200_v44  ;;  %v237_v42 = vld [vmem:[%s19707_s1 + $0x658] sm:$0xff] }
 0x34f   :  { %10671 = vmatprep.subr.bf16.mxu0 %v12576_v3  ;;  %11204 = vmatprep.subr.bf16.mxu1 %v12578_v39  ;;  %v204_v3 = vld [vmem:[%s19707_s1 + $0x550] sm:$0xff]  ;;  %v241_v44 = vld [vmem:[%s19707_s1 + $0x678] sm:$0xff] }
 0x350   :  { %v208_v39 = vld [vmem:[%s19707_s1 + $0x570] sm:$0xff] }
 0x351   :  { %v12623_v14 = vcombine.low %v204_v3, %v208_v39 }
 0x352   :  { %10672 = vmatpush1.bf16.msra.mxu0 %v12575_v5  ;;  %11205 = vmatpush1.bf16.msra.mxu1 %v12577_v6  ;;  %v12624_v5 = vcombine.high %v204_v3, %v208_v39  ;;  %v12626_v6 = vcombine.high %v205_v0, %v209_v48  ;;  %v245_v3 = vld [vmem:[%s19707_s1 + $0x698] sm:$0xff]  ;;  %v12657_v48 = vcombine.low %v237_v42, %v241_v44 }
 0x353   :  { %10682 = vmatprep.subr.bf16.mxu0 %v12584_v7  ;;  %11215 = vmatprep.subr.bf16.mxu1 %v12586_v8  ;;  %v212_v7 = vld [vmem:[%s19707_s1 + $0x590] sm:$0xff]  ;;  %v249_v39 = vld [vmem:[%s19707_s1 + $0x6b8] sm:$0xff] }
 0x354   :  { %v216_v8 = vld [vmem:[%s19707_s1 + $0x5b0] sm:$0xff] }
 0x355   :  { %10674 = vmatmul.mubr.bf16.vlgmr.msra.gmra.mrb[4].mxu0 %v14725_v12  ;;  %11207 = vmatmul.mubr.bf16.vlgmr.msra.gmra.mrb[4].mxu1 %v14725_v12  ;;  %v189_v12 = vld [vmem:[%s19707_s1 + $0x4d8] sm:$0xff]  ;;  %v12631_v49 = vcombine.low %v212_v7, %v216_v8 }
 0x356   :  { %10683 = vmatpush1.bf16.msra.mxu0 %v12583_v53  ;;  %11216 = vmatpush1.bf16.msra.mxu1 %v12585_v20  ;;  %v12610_v41 = vcombine.high %v189_v12, %v193_v57  ;;  %v12609_v18 = vcombine.low %v189_v12, %v193_v57  ;;  %v12632_v53 = vcombine.high %v212_v7, %v216_v8  ;;  %v253_v7 = vld [vmem:[%s19707_s1 + $0x6d8] sm:$0xff] }
 0x357   :  { %10684 = vmatprep.subr.bf16.mxu0 %v12592_v61  ;;  %11217 = vmatprep.subr.bf16.mxu1 %v12594_v59  ;;  %v12634_v20 = vcombine.high %v213_v11, %v217_v13  ;;  %v220_v61 = vld [vmem:[%s19707_s1 + $0x5d0] sm:$0xff]  ;;  %v12641_v57 = vcombine.low %v221_v24, %v225_v26  ;;  %v257_v8 = vld [vmem:[%s19707_s1 + $0x6f8] sm:$0xff]  ;;  %v12665_v13 = vcombine.low %v245_v3, %v249_v39 }
 0x358   :  { %10714 = vmatprep.mubr.bf16.mxu0 %v14746_v21  ;;  %11247 = vmatprep.mubr.bf16.mxu1 %v14746_v21  ;;  %v197_v21 = vld [vmem:[%s19707_s1 + $0x518] sm:$0xff]  ;;  %v224_v59 = vld [vmem:[%s19707_s1 + $0x5f0] sm:$0xff] }
 0x359   :  { %v12618_v56 = vcombine.high %v197_v21, %v201_v47  ;;  %v12617_v4 = vcombine.low %v197_v21, %v201_v47  ;;  %v12639_v12 = vcombine.low %v220_v61, %v224_v59  ;;  %v12649_v47 = vcombine.low %v229_v34, %v233_v35 }
 0x35a   :  { %10685 = vmatpush1.bf16.msra.mxu0 %v12591_v28  ;;  %11218 = vmatpush1.bf16.msra.mxu1 %v12593_v29  ;;  %v12640_v28 = vcombine.high %v220_v61, %v224_v59  ;;  %v12642_v29 = vcombine.high %v221_v24, %v225_v26  ;;  %v261_v61 = vld [vmem:[%s19707_s1 + $0x718] sm:$0xff]  ;;  %v12673_v26 = vcombine.low %v253_v7, %v257_v8 }
 0x35b   :  { %10686 = vmatprep.subr.bf16.mxu0 %v12600_v32  ;;  %11219 = vmatprep.subr.bf16.mxu1 %v12602_v33  ;;  %v228_v32 = vld [vmem:[%s19707_s1 + $0x610] sm:$0xff]  ;;  %v265_v59 = vld [vmem:[%s19707_s1 + $0x738] sm:$0xff] }
 0x35c   :  { %v232_v33 = vld [vmem:[%s19707_s1 + $0x630] sm:$0xff] }
 0x35d   :  { %v12647_v21 = vcombine.low %v228_v32, %v232_v33 }
 0x35e   :  { %10687 = vmatpush1.bf16.msra.mxu0 %v12599_v37  ;;  %11220 = vmatpush1.bf16.msra.mxu1 %v12601_v38  ;;  %v12648_v37 = vcombine.high %v228_v32, %v232_v33  ;;  %v12650_v38 = vcombine.high %v229_v34, %v233_v35  ;;  %v269_v32 = vld [vmem:[%s19707_s1 + $0x758] sm:$0xff]  ;;  %v12681_v35 = vcombine.low %v261_v61, %v265_v59 }
 0x35f   :  { %10688 = vmatprep.subr.bf16.mxu0 %v12608_v40  ;;  %11221 = vmatprep.subr.bf16.mxu1 %v12610_v41  ;;  %v236_v40 = vld [vmem:[%s19707_s1 + $0x650] sm:$0xff]  ;;  %v273_v33 = vld [vmem:[%s19707_s1 + $0x778] sm:$0xff] }
 0x360   :  { %v240_v41 = vld [vmem:[%s19707_s1 + $0x670] sm:$0xff] }
 0x361   :  { %v12655_v0 = vcombine.low %v236_v40, %v240_v41 }
 0x362   :  { %10689 = vmatpush1.bf16.msra.mxu0 %v12607_v51  ;;  %11222 = vmatpush1.bf16.msra.mxu1 %v12609_v18  ;;  %v12656_v51 = vcombine.high %v236_v40, %v240_v41  ;;  %v12658_v18 = vcombine.high %v237_v42, %v241_v44  ;;  %v277_v40 = vld [vmem:[%s19707_s1 + $0x798] sm:$0xff]  ;;  %v12689_v44 = vcombine.low %v269_v32, %v273_v33 }
 0x363   :  { %10690 = vmatprep.subr.bf16.mxu0 %v12616_v52  ;;  %11223 = vmatprep.subr.bf16.mxu1 %v12618_v56  ;;  %v244_v52 = vld [vmem:[%s19707_s1 + $0x690] sm:$0xff]  ;;  %v281_v41 = vld [vmem:[%s19707_s1 + $0x7b8] sm:$0xff] }
 0x364   :  { %v248_v56 = vld [vmem:[%s19707_s1 + $0x6b0] sm:$0xff] }
 0x365   :  { %v12663_v11 = vcombine.low %v244_v52, %v248_v56 }
 0x366   :  { %10691 = vmatpush1.bf16.msra.mxu0 %v12615_v2  ;;  %11224 = vmatpush1.bf16.msra.mxu1 %v12617_v4  ;;  %v12664_v2 = vcombine.high %v244_v52, %v248_v56  ;;  %v12666_v4 = vcombine.high %v245_v3, %v249_v39  ;;  %v285_v52 = vld [vmem:[%s19707_s1 + $0x7d8] sm:$0xff]  ;;  %v12697_v39 = vcombine.low %v277_v40, %v281_v41 }
 0x367   :  { %10692 = vmatprep.subr.bf16.mxu0 %v12624_v5  ;;  %11225 = vmatprep.subr.bf16.mxu1 %v12626_v6  ;;  %v252_v5 = vld [vmem:[%s19707_s1 + $0x6d0] sm:$0xff]  ;;  %v289_v56 = vld [vmem:[%s19707_s1 + $0x7f8] sm:$0xff] }
 0x368   :  { %v256_v6 = vld [vmem:[%s19707_s1 + $0x6f0] sm:$0xff] }
 0x369   :  { %v12671_v24 = vcombine.low %v252_v5, %v256_v6 }
 0x36a   :  { %10693 = vmatpush1.bf16.msra.mxu0 %v12623_v14  ;;  %11226 = vmatpush1.bf16.msra.mxu1 %v12625_v17  ;;  %v12672_v14 = vcombine.high %v252_v5, %v256_v6  ;;  %v12674_v17 = vcombine.high %v253_v7, %v257_v8  ;;  %v293_v5 = vld [vmem:[%s19707_s1 + $0x818] sm:$0xff]  ;;  %v12705_v8 = vcombine.low %v285_v52, %v289_v56 }
 0x36b   :  { %10694 = vmatprep.subr.bf16.mxu0 %v12632_v53  ;;  %11227 = vmatprep.subr.bf16.mxu1 %v12634_v20  ;;  %v260_v53 = vld [vmem:[%s19707_s1 + $0x710] sm:$0xff]  ;;  %v297_v6 = vld [vmem:[%s19707_s1 + $0x838] sm:$0xff] }
 0x36c   :  { %v264_v20 = vld [vmem:[%s19707_s1 + $0x730] sm:$0xff] }
 0x36d   :  { %v12679_v34 = vcombine.low %v260_v53, %v264_v20 }
 0x36e   :  { %10695 = vmatpush1.bf16.msra.mxu0 %v12631_v49  ;;  %11228 = vmatpush1.bf16.msra.mxu1 %v12633_v15  ;;  %v12680_v49 = vcombine.high %v260_v53, %v264_v20  ;;  %v12682_v15 = vcombine.high %v261_v61, %v265_v59  ;;  %v301_v53 = vld [vmem:[%s19707_s1 + $0x858] sm:$0xff]  ;;  %v12713_v59 = vcombine.low %v293_v5, %v297_v6 }
 0x36f   :  { %10696 = vmatprep.subr.bf16.mxu0 %v12640_v28  ;;  %11229 = vmatprep.subr.bf16.mxu1 %v12642_v29  ;;  %v268_v28 = vld [vmem:[%s19707_s1 + $0x750] sm:$0xff]  ;;  %v305_v20 = vld [vmem:[%s19707_s1 + $0x878] sm:$0xff] }
 0x370   :  { %v272_v29 = vld [vmem:[%s19707_s1 + $0x770] sm:$0xff] }
 0x371   :  { %v12687_v42 = vcombine.low %v268_v28, %v272_v29 }
 0x372   :  { %10697 = vmatpush1.bf16.msra.mxu0 %v12639_v12  ;;  %11230 = vmatpush1.bf16.msra.mxu1 %v12641_v57  ;;  %v12688_v12 = vcombine.high %v268_v28, %v272_v29  ;;  %v12690_v57 = vcombine.high %v269_v32, %v273_v33  ;;  %v309_v28 = vld [vmem:[%s19707_s1 + $0x898] sm:$0xff]  ;;  %v12721_v33 = vcombine.low %v301_v53, %v305_v20 }
 0x373   :  { %10698 = vmatprep.subr.bf16.mxu0 %v12648_v37  ;;  %11231 = vmatprep.subr.bf16.mxu1 %v12650_v38  ;;  %v276_v37 = vld [vmem:[%s19707_s1 + $0x790] sm:$0xff]  ;;  %v313_v29 = vld [vmem:[%s19707_s1 + $0x8b8] sm:$0xff] }
 0x374   :  { %v280_v38 = vld [vmem:[%s19707_s1 + $0x7b0] sm:$0xff] }
 0x375   :  { %v12695_v3 = vcombine.low %v276_v37, %v280_v38 }
 0x376   :  { %10699 = vmatpush1.bf16.msra.mxu0 %v12647_v21  ;;  %11232 = vmatpush1.bf16.msra.mxu1 %v12649_v47  ;;  %v12696_v21 = vcombine.high %v276_v37, %v280_v38  ;;  %v12698_v47 = vcombine.high %v277_v40, %v281_v41  ;;  %v321_v37 = vld [vmem:[%s19707_s1 + $0x8f8] sm:$0xff]  ;;  %v12729_v40 = vcombine.low %v309_v28, %v313_v29 }
 0x377   :  { %10700 = vmatprep.subr.bf16.mxu0 %v12656_v51  ;;  %11233 = vmatprep.subr.bf16.mxu1 %v12658_v18  ;;  %v284_v51 = vld [vmem:[%s19707_s1 + $0x7d0] sm:$0xff] }
 0x378   :  { %v288_v18 = vld [vmem:[%s19707_s1 + $0x7f0] sm:$0xff] }
 0x379   :  { %v12703_v7 = vcombine.low %v284_v51, %v288_v18 }
 0x37a   :  { %10701 = vmatpush1.bf16.msra.mxu0 %v12655_v0  ;;  %11234 = vmatpush1.bf16.msra.mxu1 %v12657_v48  ;;  %v12704_v0 = vcombine.high %v284_v51, %v288_v18  ;;  %v12706_v48 = vcombine.high %v285_v52, %v289_v56 }
 0x37b   :  { %10702 = vmatprep.subr.bf16.mxu0 %v12664_v2  ;;  %11235 = vmatprep.subr.bf16.mxu1 %v12666_v4  ;;  %v292_v2 = vld [vmem:[%s19707_s1 + $0x810] sm:$0xff] }
 0x37c   :  { %v296_v4 = vld [vmem:[%s19707_s1 + $0x830] sm:$0xff] }
 0x37d   :  { %v12711_v61 = vcombine.low %v292_v2, %v296_v4 }
 0x37e   :  { %10703 = vmatpush1.bf16.msra.mxu0 %v12663_v11  ;;  %11236 = vmatpush1.bf16.msra.mxu1 %v12665_v13  ;;  %v12712_v11 = vcombine.high %v292_v2, %v296_v4  ;;  %v12714_v13 = vcombine.high %v293_v5, %v297_v6 }
 0x37f   :  { %10704 = vmatprep.subr.bf16.mxu0 %v12672_v14  ;;  %11237 = vmatprep.subr.bf16.mxu1 %v12674_v17  ;;  %v300_v14 = vld [vmem:[%s19707_s1 + $0x850] sm:$0xff] }
 0x380   :  { %v304_v17 = vld [vmem:[%s19707_s1 + $0x870] sm:$0xff] }
 0x381   :  { %v12719_v32 = vcombine.low %v300_v14, %v304_v17 }
 0x382   :  { %10705 = vmatpush1.bf16.msra.mxu0 %v12671_v24  ;;  %11238 = vmatpush1.bf16.msra.mxu1 %v12673_v26  ;;  %v12720_v24 = vcombine.high %v300_v14, %v304_v17  ;;  %v12722_v26 = vcombine.high %v301_v53, %v305_v20 }
 0x383   :  { %10706 = vmatprep.subr.bf16.mxu0 %v12680_v49  ;;  %11239 = vmatprep.subr.bf16.mxu1 %v12682_v15  ;;  %v308_v49 = vld [vmem:[%s19707_s1 + $0x890] sm:$0xff] }
 0x384   :  { %v312_v15 = vld [vmem:[%s19707_s1 + $0x8b0] sm:$0xff] }
 0x385   :  { %v12727_v38 = vcombine.low %v308_v49, %v312_v15 }
 0x386   :  { %10707 = vmatpush1.bf16.msra.mxu0 %v12679_v34  ;;  %11240 = vmatpush1.bf16.msra.mxu1 %v12681_v35  ;;  %v12728_v34 = vcombine.high %v308_v49, %v312_v15  ;;  %v12730_v35 = vcombine.high %v309_v28, %v313_v29 }
 0x387   :  { %10708 = vmatprep.subr.bf16.mxu0 %v12688_v12  ;;  %11241 = vmatprep.subr.bf16.mxu1 %v12690_v57  ;;  %v316_v12 = vld [vmem:[%s19707_s1 + $0x8d0] sm:$0xff] }
 0x388   :  { %v320_v57 = vld [vmem:[%s19707_s1 + $0x8f0] sm:$0xff] }
 0x389   :  { %v12736_v41 = vcombine.high %v316_v12, %v320_v57  ;;  %v12735_v51 = vcombine.low %v316_v12, %v320_v57 }
 0x38a   :  { %10709 = vmatpush1.bf16.msra.mxu0 %v12687_v42  ;;  %11242 = vmatpush1.bf16.msra.mxu1 %v12689_v44  ;;  %v324_v44 = vld [vmem:[%s19707_s1 + $0x910] sm:$0xff] }
 0x38b   :  { %10710 = vmatprep.subr.bf16.mxu0 %v12696_v21  ;;  %11243 = vmatprep.subr.bf16.mxu1 %v12698_v47  ;;  %v328_v21 = vld [vmem:[%s19707_s1 + $0x930] sm:$0xff]  ;;  %v329_v47 = vld [vmem:[%s19707_s1 + $0x938] sm:$0xff] }
 0x38c   :  { %v12744_v52 = vcombine.high %v324_v44, %v328_v21  ;;  %v12743_v2 = vcombine.low %v324_v44, %v328_v21 }
 0x38e   :  { %10711 = vmatpush1.bf16.msra.mxu0 %v12695_v3  ;;  %11244 = vmatpush1.bf16.msra.mxu1 %v12697_v39  ;;  %v332_v3 = vld [vmem:[%s19707_s1 + $0x950] sm:$0xff] }
 0x38f   :  { %10712 = vmatprep.subr.bf16.mxu0 %v12704_v0  ;;  %11245 = vmatprep.subr.bf16.mxu1 %v12706_v48  ;;  %v336_v39 = vld [vmem:[%s19707_s1 + $0x970] sm:$0xff]  ;;  %v333_v0 = vld [vmem:[%s19707_s1 + $0x958] sm:$0xff] }
 0x390   :  { %v337_v48 = vld [vmem:[%s19707_s1 + $0x978] sm:$0xff]  ;;  %v12752_v5 = vcombine.high %v332_v3, %v336_v39  ;;  %v12751_v14 = vcombine.low %v332_v3, %v336_v39 }
 0x391   :  { %v12754_v6 = vcombine.high %v333_v0, %v337_v48  ;;  %v12753_v17 = vcombine.low %v333_v0, %v337_v48 }
 0x392   :  { %10713 = vmatpush1.bf16.msra.mxu0 %v12703_v7  ;;  %11246 = vmatpush1.bf16.msra.mxu1 %v12705_v8  ;;  %v340_v7 = vld [vmem:[%s19707_s1 + $0x990] sm:$0xff] }
 0x393   :  { %10723 = vmatprep.subr.bf16.mxu0 %v12712_v11  ;;  %11256 = vmatprep.subr.bf16.mxu1 %v12714_v13  ;;  %v344_v8 = vld [vmem:[%s19707_s1 + $0x9b0] sm:$0xff]  ;;  %v341_v11 = vld [vmem:[%s19707_s1 + $0x998] sm:$0xff] }
 0x394   :  { %v345_v13 = vld [vmem:[%s19707_s1 + $0x9b8] sm:$0xff]  ;;  %v12760_v53 = vcombine.high %v340_v7, %v344_v8  ;;  %v12759_v49 = vcombine.low %v340_v7, %v344_v8 }
 0x395   :  { %10715 = vmatmul.mubr.bf16.vlgmr.msra.gmra.mrb[4].mxu0 %v14934_v22  ;;  %11248 = vmatmul.mubr.bf16.vlgmr.msra.gmra.mrb[4].mxu1 %v14934_v22  ;;  %v317_v22 = vld [vmem:[%s19707_s1 + $0x8d8] sm:$0xff]  ;;  %v12762_v20 = vcombine.high %v341_v11, %v345_v13  ;;  %v12761_v15 = vcombine.low %v341_v11, %v345_v13 }
 0x396   :  { %10724 = vmatpush1.bf16.msra.mxu0 %v12711_v61  ;;  %11257 = vmatpush1.bf16.msra.mxu1 %v12713_v59  ;;  %v12738_v42 = vcombine.high %v317_v22, %v321_v37  ;;  %v12737_v18 = vcombine.low %v317_v22, %v321_v37  ;;  %v348_v61 = vld [vmem:[%s19707_s1 + $0x9d0] sm:$0xff] }
 0x397   :  { %10725 = vmatprep.subr.bf16.mxu0 %v12720_v24  ;;  %11258 = vmatprep.subr.bf16.mxu1 %v12722_v26  ;;  %v352_v59 = vld [vmem:[%s19707_s1 + $0x9f0] sm:$0xff]  ;;  %v349_v24 = vld [vmem:[%s19707_s1 + $0x9d8] sm:$0xff] }
 0x398   :  { %10755 = vmatprep.mubr.bf16.mxu0 %v14955_v31  ;;  %11288 = vmatprep.mubr.bf16.mxu1 %v14955_v31  ;;  %v325_v31 = vld [vmem:[%s19707_s1 + $0x918] sm:$0xff]  ;;  %v12768_v28 = vcombine.high %v348_v61, %v352_v59  ;;  %v12767_v12 = vcombine.low %v348_v61, %v352_v59 }
 0x399   :  { %v12746_v56 = vcombine.high %v325_v31, %v329_v47  ;;  %v12745_v4 = vcombine.low %v325_v31, %v329_v47  ;;  %v353_v26 = vld [vmem:[%s19707_s1 + $0x9f8] sm:$0xff] }
 0x39a   :  { %10726 = vmatpush1.bf16.msra.mxu0 %v12719_v32  ;;  %11259 = vmatpush1.bf16.msra.mxu1 %v12721_v33  ;;  %v12770_v29 = vcombine.high %v349_v24, %v353_v26  ;;  %v356_v32 = vld [vmem:[%s19707_s1 + $0xa10] sm:$0xff]  ;;  %v12769_v57 = vcombine.low %v349_v24, %v353_v26 }
 0x39b   :  { %10727 = vmatprep.subr.bf16.mxu0 %v12728_v34  ;;  %11260 = vmatprep.subr.bf16.mxu1 %v12730_v35  ;;  %v360_v33 = vld [vmem:[%s19707_s1 + $0xa30] sm:$0xff]  ;;  %v357_v34 = vld [vmem:[%s19707_s1 + $0xa18] sm:$0xff] }
 0x39c   :  { %v361_v35 = vld [vmem:[%s19707_s1 + $0xa38] sm:$0xff]  ;;  %v12776_v22 = vcombine.high %v356_v32, %v360_v33  ;;  %v12775_v44 = vcombine.low %v356_v32, %v360_v33 }
 0x39d   :  { %v12778_v37 = vcombine.high %v357_v34, %v361_v35  ;;  %v12777_v21 = vcombine.low %v357_v34, %v361_v35 }
 0x39e   :  { %10728 = vmatpush1.bf16.msra.mxu0 %v12727_v38  ;;  %11261 = vmatpush1.bf16.msra.mxu1 %v12729_v40  ;;  %v364_v38 = vld [vmem:[%s19707_s1 + $0xa50] sm:$0xff] }
 0x39f   :  { %10729 = vmatprep.subr.bf16.mxu0 %v12736_v41  ;;  %11262 = vmatprep.subr.bf16.mxu1 %v12738_v42  ;;  %v368_v40 = vld [vmem:[%s19707_s1 + $0xa70] sm:$0xff]  ;;  %v365_v41 = vld [vmem:[%s19707_s1 + $0xa58] sm:$0xff] }
 0x3a0   :  { %v369_v42 = vld [vmem:[%s19707_s1 + $0xa78] sm:$0xff]  ;;  %v12784_v31 = vcombine.high %v364_v38, %v368_v40  ;;  %v12783_v3 = vcombine.low %v364_v38, %v368_v40 }
 0x3a1   :  { %v12786_v47 = vcombine.high %v365_v41, %v369_v42  ;;  %v12785_v39 = vcombine.low %v365_v41, %v369_v42 }
 0x3a2   :  { %10730 = vmatpush1.bf16.msra.mxu0 %v12735_v51  ;;  %11263 = vmatpush1.bf16.msra.mxu1 %v12737_v18  ;;  %v372_v51 = vld [vmem:[%s19707_s1 + $0xa90] sm:$0xff] }
 0x3a3   :  { %10731 = vmatprep.subr.bf16.mxu0 %v12744_v52  ;;  %11264 = vmatprep.subr.bf16.mxu1 %v12746_v56  ;;  %v376_v18 = vld [vmem:[%s19707_s1 + $0xab0] sm:$0xff]  ;;  %v373_v52 = vld [vmem:[%s19707_s1 + $0xa98] sm:$0xff] }
 0x3a4   :  { %v377_v56 = vld [vmem:[%s19707_s1 + $0xab8] sm:$0xff]  ;;  %v12792_v0 = vcombine.high %v372_v51, %v376_v18  ;;  %v12791_v7 = vcombine.low %v372_v51, %v376_v18 }
 0x3a5   :  { %v12794_v48 = vcombine.high %v373_v52, %v377_v56  ;;  %v12793_v8 = vcombine.low %v373_v52, %v377_v56 }
 0x3a6   :  { %10732 = vmatpush1.bf16.msra.mxu0 %v12743_v2  ;;  %11265 = vmatpush1.bf16.msra.mxu1 %v12745_v4  ;;  %v380_v2 = vld [vmem:[%s19707_s1 + $0xad0] sm:$0xff] }
 0x3a7   :  { %10733 = vmatprep.subr.bf16.mxu0 %v12752_v5  ;;  %11266 = vmatprep.subr.bf16.mxu1 %v12754_v6  ;;  %v384_v4 = vld [vmem:[%s19707_s1 + $0xaf0] sm:$0xff]  ;;  %v381_v5 = vld [vmem:[%s19707_s1 + $0xad8] sm:$0xff] }
 0x3a8   :  { %v385_v6 = vld [vmem:[%s19707_s1 + $0xaf8] sm:$0xff]  ;;  %v12800_v11 = vcombine.high %v380_v2, %v384_v4  ;;  %v12799_v61 = vcombine.low %v380_v2, %v384_v4 }
 0x3a9   :  { %v12802_v13 = vcombine.high %v381_v5, %v385_v6  ;;  %v12801_v59 = vcombine.low %v381_v5, %v385_v6 }
 0x3aa   :  { %10734 = vmatpush1.bf16.msra.mxu0 %v12751_v14  ;;  %11267 = vmatpush1.bf16.msra.mxu1 %v12753_v17  ;;  %v388_v14 = vld [vmem:[%s19707_s1 + $0xb10] sm:$0xff] }
 0x3ab   :  { %10735 = vmatprep.subr.bf16.mxu0 %v12760_v53  ;;  %11268 = vmatprep.subr.bf16.mxu1 %v12762_v20  ;;  %v392_v17 = vld [vmem:[%s19707_s1 + $0xb30] sm:$0xff]  ;;  %v389_v53 = vld [vmem:[%s19707_s1 + $0xb18] sm:$0xff] }
 0x3ac   :  { %v393_v20 = vld [vmem:[%s19707_s1 + $0xb38] sm:$0xff]  ;;  %v12808_v24 = vcombine.high %v388_v14, %v392_v17  ;;  %v12807_v32 = vcombine.low %v388_v14, %v392_v17 }
 0x3ad   :  { %v12810_v26 = vcombine.high %v389_v53, %v393_v20  ;;  %v12809_v33 = vcombine.low %v389_v53, %v393_v20 }
 0x3ae   :  { %10736 = vmatpush1.bf16.msra.mxu0 %v12759_v49  ;;  %11269 = vmatpush1.bf16.msra.mxu1 %v12761_v15  ;;  %v396_v49 = vld [vmem:[%s19707_s1 + $0xb50] sm:$0xff] }
 0x3af   :  { %10737 = vmatprep.subr.bf16.mxu0 %v12768_v28  ;;  %11270 = vmatprep.subr.bf16.mxu1 %v12770_v29  ;;  %v400_v15 = vld [vmem:[%s19707_s1 + $0xb70] sm:$0xff]  ;;  %v397_v28 = vld [vmem:[%s19707_s1 + $0xb58] sm:$0xff] }
 0x3b0   :  { %v401_v29 = vld [vmem:[%s19707_s1 + $0xb78] sm:$0xff]  ;;  %v12816_v34 = vcombine.high %v396_v49, %v400_v15  ;;  %v12815_v38 = vcombine.low %v396_v49, %v400_v15 }
 0x3b1   :  { %v12818_v35 = vcombine.high %v397_v28, %v401_v29  ;;  %v12817_v40 = vcombine.low %v397_v28, %v401_v29 }
 0x3b2   :  { %10738 = vmatpush1.bf16.msra.mxu0 %v12767_v12  ;;  %11271 = vmatpush1.bf16.msra.mxu1 %v12769_v57  ;;  %v404_v12 = vld [vmem:[%s19707_s1 + $0xb90] sm:$0xff] }
 0x3b3   :  { %10739 = vmatprep.subr.bf16.mxu0 %v12776_v22  ;;  %11272 = vmatprep.subr.bf16.mxu1 %v12778_v37  ;;  %v408_v57 = vld [vmem:[%s19707_s1 + $0xbb0] sm:$0xff]  ;;  %v405_v22 = vld [vmem:[%s19707_s1 + $0xb98] sm:$0xff] }
 0x3b4   :  { %v409_v37 = vld [vmem:[%s19707_s1 + $0xbb8] sm:$0xff]  ;;  %v12824_v41 = vcombine.high %v404_v12, %v408_v57  ;;  %v12823_v51 = vcombine.low %v404_v12, %v408_v57 }
 0x3b5   :  { %v12826_v42 = vcombine.high %v405_v22, %v409_v37  ;;  %v12825_v18 = vcombine.low %v405_v22, %v409_v37  ;;  %v452_v37 = vld [vmem:[%s19707_s1 + $0xd10] sm:$0xff] }
 0x3b6   :  { %10740 = vmatpush1.bf16.msra.mxu0 %v12775_v44  ;;  %11273 = vmatpush1.bf16.msra.mxu1 %v12777_v21  ;;  %v412_v44 = vld [vmem:[%s19707_s1 + $0xbd0] sm:$0xff] }
 0x3b7   :  { %10741 = vmatprep.subr.bf16.mxu0 %v12784_v31  ;;  %11274 = vmatprep.subr.bf16.mxu1 %v12786_v47  ;;  %v416_v21 = vld [vmem:[%s19707_s1 + $0xbf0] sm:$0xff]  ;;  %v413_v31 = vld [vmem:[%s19707_s1 + $0xbd8] sm:$0xff] }
 0x3b8   :  { %v417_v47 = vld [vmem:[%s19707_s1 + $0xbf8] sm:$0xff]  ;;  %v12832_v52 = vcombine.high %v412_v44, %v416_v21  ;;  %v12831_v2 = vcombine.low %v412_v44, %v416_v21 }
 0x3b9   :  { %v12834_v56 = vcombine.high %v413_v31, %v417_v47  ;;  %v12833_v4 = vcombine.low %v413_v31, %v417_v47  ;;  %v460_v31 = vld [vmem:[%s19707_s1 + $0xd50] sm:$0xff] }
 0x3ba   :  { %10742 = vmatpush1.bf16.msra.mxu0 %v12783_v3  ;;  %11275 = vmatpush1.bf16.msra.mxu1 %v12785_v39  ;;  %v420_v3 = vld [vmem:[%s19707_s1 + $0xc10] sm:$0xff] }
 0x3bb   :  { %10743 = vmatprep.subr.bf16.mxu0 %v12792_v0  ;;  %11276 = vmatprep.subr.bf16.mxu1 %v12794_v48  ;;  %v424_v39 = vld [vmem:[%s19707_s1 + $0xc30] sm:$0xff]  ;;  %v421_v0 = vld [vmem:[%s19707_s1 + $0xc18] sm:$0xff] }
 0x3bc   :  { %v425_v48 = vld [vmem:[%s19707_s1 + $0xc38] sm:$0xff]  ;;  %v12840_v5 = vcombine.high %v420_v3, %v424_v39  ;;  %v12839_v14 = vcombine.low %v420_v3, %v424_v39  ;;  %v464_v47 = vld [vmem:[%s19707_s1 + $0xd70] sm:$0xff] }
 0x3bd   :  { %v12842_v6 = vcombine.high %v421_v0, %v425_v48  ;;  %v12841_v17 = vcombine.low %v421_v0, %v425_v48  ;;  %v12880_v3 = vcombine.high %v460_v31, %v464_v47  ;;  %v468_v0 = vld [vmem:[%s19707_s1 + $0xd90] sm:$0xff] }
 0x3be   :  { %10744 = vmatpush1.bf16.msra.mxu0 %v12791_v7  ;;  %11277 = vmatpush1.bf16.msra.mxu1 %v12793_v8  ;;  %v428_v7 = vld [vmem:[%s19707_s1 + $0xc50] sm:$0xff] }
 0x3bf   :  { %10745 = vmatprep.subr.bf16.mxu0 %v12800_v11  ;;  %11278 = vmatprep.subr.bf16.mxu1 %v12802_v13  ;;  %v432_v8 = vld [vmem:[%s19707_s1 + $0xc70] sm:$0xff]  ;;  %v429_v11 = vld [vmem:[%s19707_s1 + $0xc58] sm:$0xff] }
 0x3c0   :  { %v433_v13 = vld [vmem:[%s19707_s1 + $0xc78] sm:$0xff]  ;;  %v12848_v53 = vcombine.high %v428_v7, %v432_v8  ;;  %v12847_v49 = vcombine.low %v428_v7, %v432_v8  ;;  %v472_v48 = vld [vmem:[%s19707_s1 + $0xdb0] sm:$0xff] }
 0x3c1   :  { %v12850_v20 = vcombine.high %v429_v11, %v433_v13  ;;  %v12849_v15 = vcombine.low %v429_v11, %v433_v13  ;;  %v12888_v7 = vcombine.high %v468_v0, %v472_v48  ;;  %v476_v13 = vld [vmem:[%s19707_s1 + $0xdd0] sm:$0xff] }
 0x3c2   :  { %10746 = vmatpush1.bf16.msra.mxu0 %v12799_v61  ;;  %11279 = vmatpush1.bf16.msra.mxu1 %v12801_v59  ;;  %v436_v61 = vld [vmem:[%s19707_s1 + $0xc90] sm:$0xff] }
 0x3c3   :  { %10747 = vmatprep.subr.bf16.mxu0 %v12808_v24  ;;  %11280 = vmatprep.subr.bf16.mxu1 %v12810_v26  ;;  %v440_v59 = vld [vmem:[%s19707_s1 + $0xcb0] sm:$0xff]  ;;  %v437_v24 = vld [vmem:[%s19707_s1 + $0xc98] sm:$0xff] }
 0x3c4   :  { %v441_v26 = vld [vmem:[%s19707_s1 + $0xcb8] sm:$0xff]  ;;  %v12856_v28 = vcombine.high %v436_v61, %v440_v59 }
 0x3c5   :  { %v12858_v29 = vcombine.high %v437_v24, %v441_v26  ;;  %v12857_v12 = vcombine.low %v437_v24, %v441_v26  ;;  %v12887_v26 = vcombine.low %v468_v0, %v472_v48 }
 0x3c6   :  { %10748 = vmatpush1.bf16.msra.mxu0 %v12807_v32  ;;  %11281 = vmatpush1.bf16.msra.mxu1 %v12809_v33  ;;  %v444_v32 = vld [vmem:[%s19707_s1 + $0xcd0] sm:$0xff] }
 0x3c7   :  { %10749 = vmatprep.subr.bf16.mxu0 %v12816_v34  ;;  %11282 = vmatprep.subr.bf16.mxu1 %v12818_v35  ;;  %v448_v33 = vld [vmem:[%s19707_s1 + $0xcf0] sm:$0xff]  ;;  %v449_v34 = vld [vmem:[%s19707_s1 + $0xcf8] sm:$0xff]  ;;  %v12855_v35 = vcombine.low %v436_v61, %v440_v59 }
 0x3c8   :  { %v12864_v57 = vcombine.high %v444_v32, %v448_v33  ;;  %v481_v61 = vld [vmem:[%s19707_s1 + $0xdf8] sm:$0xff] }
 0x3ca   :  { %10750 = vmatpush1.bf16.msra.mxu0 %v12815_v38  ;;  %11283 = vmatpush1.bf16.msra.mxu1 %v12817_v40  ;;  %v456_v38 = vld [vmem:[%s19707_s1 + $0xd30] sm:$0xff]  ;;  %v457_v40 = vld [vmem:[%s19707_s1 + $0xd38] sm:$0xff] }
 0x3cb   :  { %10751 = vmatprep.subr.bf16.mxu0 %v12824_v41  ;;  %11284 = vmatprep.subr.bf16.mxu1 %v12826_v42  ;;  %v12863_v41 = vcombine.low %v444_v32, %v448_v33  ;;  %v12872_v44 = vcombine.high %v452_v37, %v456_v38 }
 0x3ce   :  { %10752 = vmatpush1.bf16.msra.mxu0 %v12823_v51  ;;  %11285 = vmatpush1.bf16.msra.mxu1 %v12825_v18  ;;  %v461_v51 = vld [vmem:[%s19707_s1 + $0xd58] sm:$0xff] }
 0x3cf   :  { %10753 = vmatprep.subr.bf16.mxu0 %v12832_v52  ;;  %11286 = vmatprep.subr.bf16.mxu1 %v12834_v56  ;;  %v465_v18 = vld [vmem:[%s19707_s1 + $0xd78] sm:$0xff]  ;;  %v12871_v52 = vcombine.low %v452_v37, %v456_v38 }
 0x3d0   :  { %v12882_v39 = vcombine.high %v461_v51, %v465_v18 }
 0x3d2   :  { %10754 = vmatpush1.bf16.msra.mxu0 %v12831_v2  ;;  %11287 = vmatpush1.bf16.msra.mxu1 %v12833_v4  ;;  %v469_v2 = vld [vmem:[%s19707_s1 + $0xd98] sm:$0xff] }
 0x3d3   :  { %10764 = vmatprep.subr.bf16.mxu0 %v12840_v5  ;;  %11297 = vmatprep.subr.bf16.mxu1 %v12842_v6  ;;  %v473_v4 = vld [vmem:[%s19707_s1 + $0xdb8] sm:$0xff]  ;;  %v12879_v5 = vcombine.low %v460_v31, %v464_v47  ;;  %v12881_v6 = vcombine.low %v461_v51, %v465_v18  ;;  %v500_v51 = vld [vmem:[%s19707_s1 + $0xe90] sm:$0xff] }
 0x3d4   :  { %v12890_v11 = vcombine.high %v469_v2, %v473_v4  ;;  %v504_v18 = vld [vmem:[%s19707_s1 + $0xeb0] sm:$0xff] }
 0x3d5   :  { %10756 = vmatmul.mubr.bf16.vlgmr.msra.gmra.mrb[4].mxu0 %v15143_v36  ;;  %11289 = vmatmul.mubr.bf16.vlgmr.msra.gmra.mrb[4].mxu1 %v15143_v36  ;;  %v445_v36 = vld [vmem:[%s19707_s1 + $0xcd8] sm:$0xff]  ;;  %v12920_v0 = vcombine.high %v500_v51, %v504_v18 }
 0x3d6   :  { %10765 = vmatpush1.bf16.msra.mxu0 %v12839_v14  ;;  %11298 = vmatpush1.bf16.msra.mxu1 %v12841_v17  ;;  %v12866_v22 = vcombine.high %v445_v36, %v449_v34  ;;  %v12865_v42 = vcombine.low %v445_v36, %v449_v34  ;;  %v480_v14 = vld [vmem:[%s19707_s1 + $0xdf0] sm:$0xff] }
 0x3d7   :  { %10766 = vmatprep.subr.bf16.mxu0 %v12848_v53  ;;  %11299 = vmatprep.subr.bf16.mxu1 %v12850_v20  ;;  %v477_v20 = vld [vmem:[%s19707_s1 + $0xdd8] sm:$0xff]  ;;  %v484_v36 = vld [vmem:[%s19707_s1 + $0xe10] sm:$0xff] }
 0x3d8   :  { %10796 = vmatprep.mubr.bf16.mxu0 %v15164_v45  ;;  %11329 = vmatprep.mubr.bf16.mxu1 %v15164_v45  ;;  %v453_v45 = vld [vmem:[%s19707_s1 + $0xd18] sm:$0xff]  ;;  %v12898_v33 = vcombine.high %v477_v20, %v481_v61  ;;  %v488_v34 = vld [vmem:[%s19707_s1 + $0xe30] sm:$0xff] }
 0x3d9   :  { %v12874_v21 = vcombine.high %v453_v45, %v457_v40  ;;  %v12873_v56 = vcombine.low %v453_v45, %v457_v40  ;;  %v12904_v37 = vcombine.high %v484_v36, %v488_v34  ;;  %v492_v45 = vld [vmem:[%s19707_s1 + $0xe50] sm:$0xff] }
 0x3da   :  { %10767 = vmatpush1.bf16.msra.mxu0 %v12847_v49  ;;  %11300 = vmatpush1.bf16.msra.mxu1 %v12849_v15  ;;  %v496_v40 = vld [vmem:[%s19707_s1 + $0xe70] sm:$0xff] }
 0x3db   :  { %10768 = vmatprep.subr.bf16.mxu0 %v12856_v28  ;;  %11301 = vmatprep.subr.bf16.mxu1 %v12858_v29  ;;  %v12889_v28 = vcombine.low %v469_v2, %v473_v4  ;;  %v12896_v29 = vcombine.high %v476_v13, %v480_v14  ;;  %v12912_v31 = vcombine.high %v492_v45, %v496_v40  ;;  %v508_v2 = vld [vmem:[%s19707_s1 + $0xed0] sm:$0xff] }
 0x3dc   :  { %v512_v4 = vld [vmem:[%s19707_s1 + $0xef0] sm:$0xff] }
 0x3de   :  { %10769 = vmatpush1.bf16.msra.mxu0 %v12855_v35  ;;  %11302 = vmatpush1.bf16.msra.mxu1 %v12857_v12  ;;  %v485_v35 = vld [vmem:[%s19707_s1 + $0xe18] sm:$0xff] }
 0x3df   :  { %10770 = vmatprep.subr.bf16.mxu0 %v12864_v57  ;;  %11303 = vmatprep.subr.bf16.mxu1 %v12866_v22  ;;  %v489_v12 = vld [vmem:[%s19707_s1 + $0xe38] sm:$0xff]  ;;  %v12895_v57 = vcombine.low %v476_v13, %v480_v14  ;;  %v12897_v22 = vcombine.low %v477_v20, %v481_v61  ;;  %v12928_v13 = vcombine.high %v508_v2, %v512_v4  ;;  %v516_v20 = vld [vmem:[%s19707_s1 + $0xf10] sm:$0xff] }
 0x3e0   :  { %v12906_v38 = vcombine.high %v485_v35, %v489_v12  ;;  %v520_v61 = vld [vmem:[%s19707_s1 + $0xf30] sm:$0xff] }
 0x3e2   :  { %10771 = vmatpush1.bf16.msra.mxu0 %v12863_v41  ;;  %11304 = vmatpush1.bf16.msra.mxu1 %v12865_v42  ;;  %v493_v41 = vld [vmem:[%s19707_s1 + $0xe58] sm:$0xff] }
 0x3e3   :  { %10772 = vmatprep.subr.bf16.mxu0 %v12872_v44  ;;  %11305 = vmatprep.subr.bf16.mxu1 %v12874_v21  ;;  %v497_v42 = vld [vmem:[%s19707_s1 + $0xe78] sm:$0xff]  ;;  %v12903_v44 = vcombine.low %v484_v36, %v488_v34  ;;  %v12905_v21 = vcombine.low %v485_v35, %v489_v12  ;;  %v12935_v35 = vcombine.low %v516_v20, %v520_v61 }
 0x3e4   :  { %v12914_v47 = vcombine.high %v493_v41, %v497_v42  ;;  %v525_v36 = vld [vmem:[%s19707_s1 + $0xf58] sm:$0xff] }
 0x3e5   :  { %v529_v34 = vld [vmem:[%s19707_s1 + $0xf78] sm:$0xff] }
 0x3e6   :  { %10773 = vmatpush1.bf16.msra.mxu0 %v12871_v52  ;;  %11306 = vmatpush1.bf16.msra.mxu1 %v12873_v56  ;;  %v501_v52 = vld [vmem:[%s19707_s1 + $0xe98] sm:$0xff] }
 0x3e7   :  { %10774 = vmatprep.subr.bf16.mxu0 %v12880_v3  ;;  %11307 = vmatprep.subr.bf16.mxu1 %v12882_v39  ;;  %v505_v56 = vld [vmem:[%s19707_s1 + $0xeb8] sm:$0xff]  ;;  %v12911_v3 = vcombine.low %v492_v45, %v496_v40  ;;  %v12913_v39 = vcombine.low %v493_v41, %v497_v42  ;;  %v12945_v42 = vcombine.low %v525_v36, %v529_v34 }
 0x3e8   :  { %v17741_v8 = vpop.f32.mrb[0].mxu0  ;;  %v17749_v17 = vpop.f32.mrb[0].mxu1  ;;  %v12922_v48 = vcombine.high %v501_v52, %v505_v56  ;;  %v533_v45 = vld [vmem:[%s19707_s1 + $0xf98] sm:$0xff] }
 0x3e9   :  { %v17751_v53 = vpop.f32.mrb[1].mxu0  ;;  %v17759_v59 = vpop.f32.mrb[1].mxu1  ;;  %v537_v40 = vld [vmem:[%s19707_s1 + $0xfb8] sm:$0xff] }
 0x3ea   :  { %v10105_v24 = vpop.f32.mrb[2].mxu0  ;;  %10775 = vmatpush1.bf16.msra.mxu0 %v12879_v5  ;;  %v10638_v49 = vpop.f32.mrb[2].mxu1  ;;  %11308 = vmatpush1.bf16.msra.mxu1 %v12881_v6  ;;  %v509_v5 = vld [vmem:[%s19707_s1 + $0xed8] sm:$0xff] }
 0x3eb   :  { %v10106_v15 = vpop.f32.mrb[3].mxu0  ;;  %10776 = vmatprep.subr.bf16.mxu0 %v12888_v7  ;;  %v10639_v32 = vpop.f32.mrb[3].mxu1  ;;  %11309 = vmatprep.subr.bf16.mxu1 %v12890_v11  ;;  %v513_v6 = vld [vmem:[%s19707_s1 + $0xef8] sm:$0xff]  ;;  %v12919_v7 = vcombine.low %v500_v51, %v504_v18  ;;  %v12921_v11 = vcombine.low %v501_v52, %v505_v56  ;;  %v12927_v49 = vcombine.low %v508_v2, %v512_v4 }
 0x3ec   :  { %v12930_v14 = vcombine.high %v509_v5, %v513_v6  ;;  %v517_v24 = vld [vmem:[%s19707_s1 + $0xf18] sm:$0xff]  ;;  %v12929_v15 = vcombine.low %v509_v5, %v513_v6  ;;  %v524_v32 = vld [vmem:[%s19707_s1 + $0xf50] sm:$0xff]  ;;  %v12953_v56 = vcombine.low %v533_v45, %v537_v40 }
 0x3ed   :  { %v541_v51 = vld [vmem:[%s19707_s1 + $0xfd8] sm:$0xff] }
 0x3ee   :  { %10777 = vmatpush1.bf16.msra.mxu0 %v12887_v26  ;;  %11310 = vmatpush1.bf16.msra.mxu1 %v12889_v28  ;;  %v521_v26 = vld [vmem:[%s19707_s1 + $0xf38] sm:$0xff]  ;;  %v12936_v28 = vcombine.high %v516_v20, %v520_v61 }
 0x3ef   :  { %10778 = vmatprep.subr.bf16.mxu0 %v12896_v29  ;;  %11311 = vmatprep.subr.bf16.mxu1 %v12898_v33  ;;  %v12938_v29 = vcombine.high %v517_v24, %v521_v26  ;;  %v528_v33 = vld [vmem:[%s19707_s1 + $0xf70] sm:$0xff]  ;;  %v12937_v12 = vcombine.low %v517_v24, %v521_v26  ;;  %v545_v18 = vld [vmem:[%s19707_s1 + $0xff8] sm:$0xff] }
 0x3f0   :  { %v12943_v41 = vcombine.low %v524_v32, %v528_v33  ;;  %v549_v2 = vld [vmem:[%s19707_s1 + $0x1018] sm:$0xff]  ;;  %v12961_v6 = vcombine.low %v541_v51, %v545_v18 }
 0x3f1   :  { %v553_v4 = vld [vmem:[%s19707_s1 + $0x1038] sm:$0xff] }
 0x3f2   :  { %10779 = vmatpush1.bf16.msra.mxu0 %v12895_v57  ;;  %11312 = vmatpush1.bf16.msra.mxu1 %v12897_v22  ;;  %v12944_v57 = vcombine.high %v524_v32, %v528_v33  ;;  %v12946_v22 = vcombine.high %v525_v36, %v529_v34  ;;  %v557_v20 = vld [vmem:[%s19707_s1 + $0x1058] sm:$0xff]  ;;  %v12969_v26 = vcombine.low %v549_v2, %v553_v4 }
 0x3f3   :  { %10780 = vmatprep.subr.bf16.mxu0 %v12904_v37  ;;  %11313 = vmatprep.subr.bf16.mxu1 %v12906_v38  ;;  %v532_v37 = vld [vmem:[%s19707_s1 + $0xf90] sm:$0xff]  ;;  %v561_v61 = vld [vmem:[%s19707_s1 + $0x1078] sm:$0xff] }
 0x3f4   :  { %v536_v38 = vld [vmem:[%s19707_s1 + $0xfb0] sm:$0xff]  ;;  %v565_v32 = vld [vmem:[%s19707_s1 + $0x1098] sm:$0xff]  ;;  %v12977_v34 = vcombine.low %v557_v20, %v561_v61 }
 0x3f5   :  { %v12951_v52 = vcombine.low %v532_v37, %v536_v38  ;;  %v569_v33 = vld [vmem:[%s19707_s1 + $0x10b8] sm:$0xff] }
 0x3f6   :  { %10781 = vmatpush1.bf16.msra.mxu0 %v12903_v44  ;;  %11314 = vmatpush1.bf16.msra.mxu1 %v12905_v21  ;;  %v12952_v44 = vcombine.high %v532_v37, %v536_v38  ;;  %v12954_v21 = vcombine.high %v533_v45, %v537_v40  ;;  %v577_v37 = vld [vmem:[%s19707_s1 + $0x10f8] sm:$0xff]  ;;  %v12985_v45 = vcombine.low %v565_v32, %v569_v33 }
 0x3f7   :  { %10782 = vmatprep.subr.bf16.mxu0 %v12912_v31  ;;  %11315 = vmatprep.subr.bf16.mxu1 %v12914_v47  ;;  %v540_v31 = vld [vmem:[%s19707_s1 + $0xfd0] sm:$0xff] }
 0x3f8   :  { %v544_v47 = vld [vmem:[%s19707_s1 + $0xff0] sm:$0xff] }
 0x3f9   :  { %v12959_v5 = vcombine.low %v540_v31, %v544_v47 }
 0x3fa   :  { %10783 = vmatpush1.bf16.msra.mxu0 %v12911_v3  ;;  %11316 = vmatpush1.bf16.msra.mxu1 %v12913_v39  ;;  %v12960_v3 = vcombine.high %v540_v31, %v544_v47  ;;  %v12962_v39 = vcombine.high %v541_v51, %v545_v18 }
 0x3fb   :  { %10784 = vmatprep.subr.bf16.mxu0 %v12920_v0  ;;  %11317 = vmatprep.subr.bf16.mxu1 %v12922_v48  ;;  %v548_v0 = vld [vmem:[%s19707_s1 + $0x1010] sm:$0xff] }
 0x3fc   :  { %v552_v48 = vld [vmem:[%s19707_s1 + $0x1030] sm:$0xff] }
 0x3fd   :  { %v12967_v24 = vcombine.low %v548_v0, %v552_v48 }
 0x3fe   :  { %10785 = vmatpush1.bf16.msra.mxu0 %v12919_v7  ;;  %11318 = vmatpush1.bf16.msra.mxu1 %v12921_v11  ;;  %v12968_v7 = vcombine.high %v548_v0, %v552_v48  ;;  %v12970_v11 = vcombine.high %v549_v2, %v553_v4 }
 0x3ff   :  { %10786 = vmatprep.subr.bf16.mxu0 %v12928_v13  ;;  %11319 = vmatprep.subr.bf16.mxu1 %v12930_v14  ;;  %v556_v13 = vld [vmem:[%s19707_s1 + $0x1050] sm:$0xff] }
 0x400   :  { %v560_v14 = vld [vmem:[%s19707_s1 + $0x1070] sm:$0xff] }
 0x401   :  { %v12975_v36 = vcombine.low %v556_v13, %v560_v14 }
 0x402   :  { %10787 = vmatpush1.bf16.msra.mxu0 %v12927_v49  ;;  %11320 = vmatpush1.bf16.msra.mxu1 %v12929_v15  ;;  %v12976_v49 = vcombine.high %v556_v13, %v560_v14  ;;  %v12978_v15 = vcombine.high %v557_v20, %v561_v61 }
 0x403   :  { %10788 = vmatprep.subr.bf16.mxu0 %v12936_v28  ;;  %11321 = vmatprep.subr.bf16.mxu1 %v12938_v29  ;;  %v564_v28 = vld [vmem:[%s19707_s1 + $0x1090] sm:$0xff] }
 0x404   :  { %v568_v29 = vld [vmem:[%s19707_s1 + $0x10b0] sm:$0xff] }
 0x405   :  { %v12983_v38 = vcombine.low %v564_v28, %v568_v29 }
 0x406   :  { %10789 = vmatpush1.bf16.msra.mxu0 %v12935_v35  ;;  %11322 = vmatpush1.bf16.msra.mxu1 %v12937_v12  ;;  %v12984_v35 = vcombine.high %v564_v28, %v568_v29  ;;  %v12986_v12 = vcombine.high %v565_v32, %v569_v33 }
 0x407   :  { %10790 = vmatprep.subr.bf16.mxu0 %v12944_v57  ;;  %11323 = vmatprep.subr.bf16.mxu1 %v12946_v22  ;;  %v572_v57 = vld [vmem:[%s19707_s1 + $0x10d0] sm:$0xff] }
 0x408   :  { %v576_v22 = vld [vmem:[%s19707_s1 + $0x10f0] sm:$0xff] }
 0x409   :  { %v12992_v40 = vcombine.high %v572_v57, %v576_v22  ;;  %v12991_v31 = vcombine.low %v572_v57, %v576_v22 }
 0x40a   :  { %10791 = vmatpush1.bf16.msra.mxu0 %v12943_v41  ;;  %11324 = vmatpush1.bf16.msra.mxu1 %v12945_v42  ;;  %v580_v42 = vld [vmem:[%s19707_s1 + $0x1110] sm:$0xff] }
 0x40b   :  { %10792 = vmatprep.subr.bf16.mxu0 %v12952_v44  ;;  %11325 = vmatprep.subr.bf16.mxu1 %v12954_v21  ;;  %v584_v44 = vld [vmem:[%s19707_s1 + $0x1130] sm:$0xff]  ;;  %v585_v21 = vld [vmem:[%s19707_s1 + $0x1138] sm:$0xff] }
 0x40c   :  { %v13000_v51 = vcombine.high %v580_v42, %v584_v44  ;;  %v12999_v0 = vcombine.low %v580_v42, %v584_v44 }
 0x40e   :  { %10793 = vmatpush1.bf16.msra.mxu0 %v12951_v52  ;;  %11326 = vmatpush1.bf16.msra.mxu1 %v12953_v56  ;;  %v588_v52 = vld [vmem:[%s19707_s1 + $0x1150] sm:$0xff] }
 0x40f   :  { %10794 = vmatprep.subr.bf16.mxu0 %v12960_v3  ;;  %11327 = vmatprep.subr.bf16.mxu1 %v12962_v39  ;;  %v592_v56 = vld [vmem:[%s19707_s1 + $0x1170] sm:$0xff]  ;;  %v589_v3 = vld [vmem:[%s19707_s1 + $0x1158] sm:$0xff] }
 0x410   :  { %v593_v39 = vld [vmem:[%s19707_s1 + $0x1178] sm:$0xff]  ;;  %v13008_v2 = vcombine.high %v588_v52, %v592_v56  ;;  %v13007_v13 = vcombine.low %v588_v52, %v592_v56 }
 0x411   :  { %v13010_v4 = vcombine.high %v589_v3, %v593_v39  ;;  %v13009_v14 = vcombine.low %v589_v3, %v593_v39 }
 0x412   :  { %10795 = vmatpush1.bf16.msra.mxu0 %v12959_v5  ;;  %11328 = vmatpush1.bf16.msra.mxu1 %v12961_v6  ;;  %v596_v5 = vld [vmem:[%s19707_s1 + $0x1190] sm:$0xff] }
 0x413   :  { %10805 = vmatprep.subr.bf16.mxu0 %v12968_v7  ;;  %11338 = vmatprep.subr.bf16.mxu1 %v12970_v11  ;;  %v600_v6 = vld [vmem:[%s19707_s1 + $0x11b0] sm:$0xff]  ;;  %v597_v7 = vld [vmem:[%s19707_s1 + $0x1198] sm:$0xff] }
 0x414   :  { %v601_v11 = vld [vmem:[%s19707_s1 + $0x11b8] sm:$0xff]  ;;  %v13016_v20 = vcombine.high %v596_v5, %v600_v6  ;;  %v13015_v28 = vcombine.low %v596_v5, %v600_v6 }
 0x415   :  { %10797 = vmatmul.mubr.bf16.vlgmr.msra.gmra.mrb[4].mxu0 %v15352_v55  ;;  %11330 = vmatmul.mubr.bf16.vlgmr.msra.gmra.mrb[4].mxu1 %v15352_v55  ;;  %v573_v55 = vld [vmem:[%s19707_s1 + $0x10d8] sm:$0xff]  ;;  %v13018_v61 = vcombine.high %v597_v7, %v601_v11  ;;  %v13017_v29 = vcombine.low %v597_v7, %v601_v11 }
 0x416   :  { %10806 = vmatpush1.bf16.msra.mxu0 %v12967_v24  ;;  %11339 = vmatpush1.bf16.msra.mxu1 %v12969_v26  ;;  %v12994_v41 = vcombine.high %v573_v55, %v577_v37  ;;  %v12993_v47 = vcombine.low %v573_v55, %v577_v37  ;;  %v604_v24 = vld [vmem:[%s19707_s1 + $0x11d0] sm:$0xff] }
 0x417   :  { %10807 = vmatprep.subr.bf16.mxu0 %v12976_v49  ;;  %11340 = vmatprep.subr.bf16.mxu1 %v12978_v15  ;;  %v608_v26 = vld [vmem:[%s19707_s1 + $0x11f0] sm:$0xff]  ;;  %v605_v49 = vld [vmem:[%s19707_s1 + $0x11d8] sm:$0xff] }
 0x418   :  { %10837 = vmatprep.mubr.bf16.mxu0 %v15373_v1  ;;  %11370 = vmatprep.mubr.bf16.mxu1 %v15373_v1  ;;  %v581_v1 = vld [vmem:[%s19707_s1 + $0x1118] sm:$0xff]  ;;  %v13024_v32 = vcombine.high %v604_v24, %v608_v26  ;;  %v13023_v57 = vcombine.low %v604_v24, %v608_v26 }
 0x419   :  { %v13002_v18 = vcombine.high %v581_v1, %v585_v21  ;;  %v13001_v48 = vcombine.low %v581_v1, %v585_v21  ;;  %v609_v15 = vld [vmem:[%s19707_s1 + $0x11f8] sm:$0xff] }
 0x41a   :  { %10808 = vmatpush1.bf16.msra.mxu0 %v12975_v36  ;;  %11341 = vmatpush1.bf16.msra.mxu1 %v12977_v34  ;;  %v13026_v33 = vcombine.high %v605_v49, %v609_v15  ;;  %v612_v36 = vld [vmem:[%s19707_s1 + $0x1210] sm:$0xff]  ;;  %v13025_v22 = vcombine.low %v605_v49, %v609_v15 }
 0x41b   :  { %10809 = vmatprep.subr.bf16.mxu0 %v12984_v35  ;;  %11342 = vmatprep.subr.bf16.mxu1 %v12986_v12  ;;  %v616_v34 = vld [vmem:[%s19707_s1 + $0x1230] sm:$0xff]  ;;  %v613_v35 = vld [vmem:[%s19707_s1 + $0x1218] sm:$0xff] }
 0x41c   :  { %v617_v12 = vld [vmem:[%s19707_s1 + $0x1238] sm:$0xff]  ;;  %v13032_v55 = vcombine.high %v612_v36, %v616_v34  ;;  %v13031_v42 = vcombine.low %v612_v36, %v616_v34 }
 0x41d   :  { %v13034_v37 = vcombine.high %v613_v35, %v617_v12  ;;  %v13033_v44 = vcombine.low %v613_v35, %v617_v12 }
 0x41e   :  { %10810 = vmatpush1.bf16.msra.mxu0 %v12983_v38  ;;  %11343 = vmatpush1.bf16.msra.mxu1 %v12985_v45  ;;  %v620_v38 = vld [vmem:[%s19707_s1 + $0x1250] sm:$0xff] }
 0x41f   :  { %10811 = vmatprep.subr.bf16.mxu0 %v12992_v40  ;;  %11344 = vmatprep.subr.bf16.mxu1 %v12994_v41  ;;  %v624_v45 = vld [vmem:[%s19707_s1 + $0x1270] sm:$0xff]  ;;  %v621_v40 = vld [vmem:[%s19707_s1 + $0x1258] sm:$0xff] }
 0x420   :  { %v625_v41 = vld [vmem:[%s19707_s1 + $0x1278] sm:$0xff]  ;;  %v13040_v1 = vcombine.high %v620_v38, %v624_v45  ;;  %v13039_v52 = vcombine.low %v620_v38, %v624_v45 }
 0x421   :  { %v13042_v21 = vcombine.high %v621_v40, %v625_v41  ;;  %v13041_v56 = vcombine.low %v621_v40, %v625_v41 }
 0x422   :  { %10812 = vmatpush1.bf16.msra.mxu0 %v12991_v31  ;;  %11345 = vmatpush1.bf16.msra.mxu1 %v12993_v47  ;;  %v628_v31 = vld [vmem:[%s19707_s1 + $0x1290] sm:$0xff] }
 0x423   :  { %10813 = vmatprep.subr.bf16.mxu0 %v13000_v51  ;;  %11346 = vmatprep.subr.bf16.mxu1 %v13002_v18  ;;  %v632_v47 = vld [vmem:[%s19707_s1 + $0x12b0] sm:$0xff]  ;;  %v629_v51 = vld [vmem:[%s19707_s1 + $0x1298] sm:$0xff] }
 0x424   :  { %v633_v18 = vld [vmem:[%s19707_s1 + $0x12b8] sm:$0xff]  ;;  %v13048_v3 = vcombine.high %v628_v31, %v632_v47  ;;  %v13047_v5 = vcombine.low %v628_v31, %v632_v47 }
 0x425   :  { %v13050_v39 = vcombine.high %v629_v51, %v633_v18  ;;  %v13049_v6 = vcombine.low %v629_v51, %v633_v18 }
 0x426   :  { %10814 = vmatpush1.bf16.msra.mxu0 %v12999_v0  ;;  %11347 = vmatpush1.bf16.msra.mxu1 %v13001_v48  ;;  %v636_v0 = vld [vmem:[%s19707_s1 + $0x12d0] sm:$0xff] }
 0x427   :  { %10815 = vmatprep.subr.bf16.mxu0 %v13008_v2  ;;  %11348 = vmatprep.subr.bf16.mxu1 %v13010_v4  ;;  %v640_v48 = vld [vmem:[%s19707_s1 + $0x12f0] sm:$0xff]  ;;  %v637_v2 = vld [vmem:[%s19707_s1 + $0x12d8] sm:$0xff] }
 0x428   :  { %v641_v4 = vld [vmem:[%s19707_s1 + $0x12f8] sm:$0xff]  ;;  %v13056_v7 = vcombine.high %v636_v0, %v640_v48  ;;  %v13055_v24 = vcombine.low %v636_v0, %v640_v48 }
 0x429   :  { %v13058_v11 = vcombine.high %v637_v2, %v641_v4  ;;  %v13057_v26 = vcombine.low %v637_v2, %v641_v4 }
 0x42a   :  { %10816 = vmatpush1.bf16.msra.mxu0 %v13007_v13  ;;  %11349 = vmatpush1.bf16.msra.mxu1 %v13009_v14  ;;  %v644_v13 = vld [vmem:[%s19707_s1 + $0x1310] sm:$0xff] }
 0x42b   :  { %10817 = vmatprep.subr.bf16.mxu0 %v13016_v20  ;;  %11350 = vmatprep.subr.bf16.mxu1 %v13018_v61  ;;  %v648_v14 = vld [vmem:[%s19707_s1 + $0x1330] sm:$0xff]  ;;  %v645_v20 = vld [vmem:[%s19707_s1 + $0x1318] sm:$0xff] }
 0x42c   :  { %v649_v61 = vld [vmem:[%s19707_s1 + $0x1338] sm:$0xff]  ;;  %v13064_v49 = vcombine.high %v644_v13, %v648_v14  ;;  %v13063_v36 = vcombine.low %v644_v13, %v648_v14 }
 0x42d   :  { %v13066_v15 = vcombine.high %v645_v20, %v649_v61  ;;  %v13065_v34 = vcombine.low %v645_v20, %v649_v61 }
 0x42e   :  { %10818 = vmatpush1.bf16.msra.mxu0 %v13015_v28  ;;  %11351 = vmatpush1.bf16.msra.mxu1 %v13017_v29  ;;  %v652_v28 = vld [vmem:[%s19707_s1 + $0x1350] sm:$0xff] }
 0x42f   :  { %10819 = vmatprep.subr.bf16.mxu0 %v13024_v32  ;;  %11352 = vmatprep.subr.bf16.mxu1 %v13026_v33  ;;  %v656_v29 = vld [vmem:[%s19707_s1 + $0x1370] sm:$0xff]  ;;  %v653_v32 = vld [vmem:[%s19707_s1 + $0x1358] sm:$0xff] }
 0x430   :  { %v657_v33 = vld [vmem:[%s19707_s1 + $0x1378] sm:$0xff]  ;;  %v13072_v35 = vcombine.high %v652_v28, %v656_v29  ;;  %v13071_v38 = vcombine.low %v652_v28, %v656_v29 }
 0x431   :  { %v13074_v12 = vcombine.high %v653_v32, %v657_v33  ;;  %v13073_v45 = vcombine.low %v653_v32, %v657_v33 }
 0x432   :  { %10820 = vmatpush1.bf16.msra.mxu0 %v13023_v57  ;;  %11353 = vmatpush1.bf16.msra.mxu1 %v13025_v22  ;;  %v660_v57 = vld [vmem:[%s19707_s1 + $0x1390] sm:$0xff] }
 0x433   :  { %10821 = vmatprep.subr.bf16.mxu0 %v13032_v55  ;;  %11354 = vmatprep.subr.bf16.mxu1 %v13034_v37  ;;  %v664_v22 = vld [vmem:[%s19707_s1 + $0x13b0] sm:$0xff]  ;;  %v661_v55 = vld [vmem:[%s19707_s1 + $0x1398] sm:$0xff] }
 0x434   :  { %v665_v37 = vld [vmem:[%s19707_s1 + $0x13b8] sm:$0xff]  ;;  %v13080_v40 = vcombine.high %v660_v57, %v664_v22  ;;  %v13079_v31 = vcombine.low %v660_v57, %v664_v22 }
 0x435   :  { %v13082_v41 = vcombine.high %v661_v55, %v665_v37  ;;  %v13081_v47 = vcombine.low %v661_v55, %v665_v37  ;;  %v708_v37 = vld [vmem:[%s19707_s1 + $0x1510] sm:$0xff] }
 0x436   :  { %10822 = vmatpush1.bf16.msra.mxu0 %v13031_v42  ;;  %11355 = vmatpush1.bf16.msra.mxu1 %v13033_v44  ;;  %v668_v42 = vld [vmem:[%s19707_s1 + $0x13d0] sm:$0xff] }
 0x437   :  { %10823 = vmatprep.subr.bf16.mxu0 %v13040_v1  ;;  %11356 = vmatprep.subr.bf16.mxu1 %v13042_v21  ;;  %v672_v44 = vld [vmem:[%s19707_s1 + $0x13f0] sm:$0xff]  ;;  %v669_v1 = vld [vmem:[%s19707_s1 + $0x13d8] sm:$0xff] }
 0x438   :  { %v673_v21 = vld [vmem:[%s19707_s1 + $0x13f8] sm:$0xff]  ;;  %v13088_v51 = vcombine.high %v668_v42, %v672_v44  ;;  %v13087_v0 = vcombine.low %v668_v42, %v672_v44 }
 0x439   :  { %v13090_v18 = vcombine.high %v669_v1, %v673_v21  ;;  %v13089_v48 = vcombine.low %v669_v1, %v673_v21  ;;  %v716_v1 = vld [vmem:[%s19707_s1 + $0x1550] sm:$0xff] }
 0x43a   :  { %10824 = vmatpush1.bf16.msra.mxu0 %v13039_v52  ;;  %11357 = vmatpush1.bf16.msra.mxu1 %v13041_v56  ;;  %v676_v52 = vld [vmem:[%s19707_s1 + $0x1410] sm:$0xff] }
 0x43b   :  { %10825 = vmatprep.subr.bf16.mxu0 %v13048_v3  ;;  %11358 = vmatprep.subr.bf16.mxu1 %v13050_v39  ;;  %v680_v56 = vld [vmem:[%s19707_s1 + $0x1430] sm:$0xff]  ;;  %v677_v3 = vld [vmem:[%s19707_s1 + $0x1418] sm:$0xff] }
 0x43c   :  { %v681_v39 = vld [vmem:[%s19707_s1 + $0x1438] sm:$0xff]  ;;  %v13096_v2 = vcombine.high %v676_v52, %v680_v56  ;;  %v13095_v13 = vcombine.low %v676_v52, %v680_v56  ;;  %v720_v21 = vld [vmem:[%s19707_s1 + $0x1570] sm:$0xff] }
 0x43d   :  { %v13098_v4 = vcombine.high %v677_v3, %v681_v39  ;;  %v13097_v14 = vcombine.low %v677_v3, %v681_v39  ;;  %v13136_v52 = vcombine.high %v716_v1, %v720_v21  ;;  %v724_v3 = vld [vmem:[%s19707_s1 + $0x1590] sm:$0xff] }
 0x43e   :  { %10826 = vmatpush1.bf16.msra.mxu0 %v13047_v5  ;;  %11359 = vmatpush1.bf16.msra.mxu1 %v13049_v6  ;;  %v684_v5 = vld [vmem:[%s19707_s1 + $0x1450] sm:$0xff] }
 0x43f   :  { %10827 = vmatprep.subr.bf16.mxu0 %v13056_v7  ;;  %11360 = vmatprep.subr.bf16.mxu1 %v13058_v11  ;;  %v688_v6 = vld [vmem:[%s19707_s1 + $0x1470] sm:$0xff]  ;;  %v685_v7 = vld [vmem:[%s19707_s1 + $0x1458] sm:$0xff] }
 0x440   :  { %v689_v11 = vld [vmem:[%s19707_s1 + $0x1478] sm:$0xff]  ;;  %v13104_v20 = vcombine.high %v684_v5, %v688_v6  ;;  %v13103_v28 = vcombine.low %v684_v5, %v688_v6  ;;  %v728_v39 = vld [vmem:[%s19707_s1 + $0x15b0] sm:$0xff] }
 0x441   :  { %v13106_v61 = vcombine.high %v685_v7, %v689_v11  ;;  %v13105_v29 = vcombine.low %v685_v7, %v689_v11  ;;  %v13144_v5 = vcombine.high %v724_v3, %v728_v39  ;;  %v732_v7 = vld [vmem:[%s19707_s1 + $0x15d0] sm:$0xff] }
 0x442   :  { %10828 = vmatpush1.bf16.msra.mxu0 %v13055_v24  ;;  %11361 = vmatpush1.bf16.msra.mxu1 %v13057_v26  ;;  %v692_v24 = vld [vmem:[%s19707_s1 + $0x1490] sm:$0xff] }
 0x443   :  { %10829 = vmatprep.subr.bf16.mxu0 %v13064_v49  ;;  %11362 = vmatprep.subr.bf16.mxu1 %v13066_v15  ;;  %v696_v26 = vld [vmem:[%s19707_s1 + $0x14b0] sm:$0xff]  ;;  %v693_v49 = vld [vmem:[%s19707_s1 + $0x1498] sm:$0xff] }
 0x444   :  { %v697_v15 = vld [vmem:[%s19707_s1 + $0x14b8] sm:$0xff]  ;;  %v13112_v32 = vcombine.high %v692_v24, %v696_v26  ;;  %v736_v11 = vld [vmem:[%s19707_s1 + $0x15f0] sm:$0xff] }
 0x445   :  { %v13114_v33 = vcombine.high %v693_v49, %v697_v15  ;;  %v13113_v57 = vcombine.low %v693_v49, %v697_v15  ;;  %v740_v49 = vld [vmem:[%s19707_s1 + $0x1610] sm:$0xff] }
 0x446   :  { %10830 = vmatpush1.bf16.msra.mxu0 %v13063_v36  ;;  %11363 = vmatpush1.bf16.msra.mxu1 %v13065_v34  ;;  %v700_v36 = vld [vmem:[%s19707_s1 + $0x14d0] sm:$0xff] }
 0x447   :  { %10831 = vmatprep.subr.bf16.mxu0 %v13072_v35  ;;  %11364 = vmatprep.subr.bf16.mxu1 %v13074_v12  ;;  %v704_v34 = vld [vmem:[%s19707_s1 + $0x14f0] sm:$0xff]  ;;  %v705_v35 = vld [vmem:[%s19707_s1 + $0x14f8] sm:$0xff]  ;;  %v13111_v12 = vcombine.low %v692_v24, %v696_v26  ;;  %v13152_v24 = vcombine.high %v732_v7, %v736_v11 }
 0x448   :  { %v13120_v22 = vcombine.high %v700_v36, %v704_v34  ;;  %v744_v15 = vld [vmem:[%s19707_s1 + $0x1630] sm:$0xff] }
 0x44a   :  { %10832 = vmatpush1.bf16.msra.mxu0 %v13071_v38  ;;  %11365 = vmatpush1.bf16.msra.mxu1 %v13073_v45  ;;  %v712_v38 = vld [vmem:[%s19707_s1 + $0x1530] sm:$0xff]  ;;  %v713_v45 = vld [vmem:[%s19707_s1 + $0x1538] sm:$0xff] }
 0x44b   :  { %10833 = vmatprep.subr.bf16.mxu0 %v13080_v40  ;;  %11366 = vmatprep.subr.bf16.mxu1 %v13082_v41  ;;  %v13119_v40 = vcombine.low %v700_v36, %v704_v34  ;;  %v13128_v42 = vcombine.high %v708_v37, %v712_v38  ;;  %v13160_v36 = vcombine.high %v740_v49, %v744_v15 }
 0x44e   :  { %10834 = vmatpush1.bf16.msra.mxu0 %v13079_v31  ;;  %11367 = vmatpush1.bf16.msra.mxu1 %v13081_v47  ;;  %v717_v31 = vld [vmem:[%s19707_s1 + $0x1558] sm:$0xff] }
 0x44f   :  { %10835 = vmatprep.subr.bf16.mxu0 %v13088_v51  ;;  %11368 = vmatprep.subr.bf16.mxu1 %v13090_v18  ;;  %v721_v47 = vld [vmem:[%s19707_s1 + $0x1578] sm:$0xff]  ;;  %v13127_v51 = vcombine.low %v708_v37, %v712_v38 }
 0x450   :  { %v13138_v56 = vcombine.high %v717_v31, %v721_v47 }
 0x452   :  { %10836 = vmatpush1.bf16.msra.mxu0 %v13087_v0  ;;  %11369 = vmatpush1.bf16.msra.mxu1 %v13089_v48  ;;  %v725_v0 = vld [vmem:[%s19707_s1 + $0x1598] sm:$0xff] }
 0x453   :  { %10846 = vmatprep.subr.bf16.mxu0 %v13096_v2  ;;  %11379 = vmatprep.subr.bf16.mxu1 %v13098_v4  ;;  %v729_v48 = vld [vmem:[%s19707_s1 + $0x15b8] sm:$0xff]  ;;  %v13135_v2 = vcombine.low %v716_v1, %v720_v21  ;;  %v13137_v4 = vcombine.low %v717_v31, %v721_v47  ;;  %v764_v31 = vld [vmem:[%s19707_s1 + $0x16d0] sm:$0xff] }
 0x454   :  { %v13146_v6 = vcombine.high %v725_v0, %v729_v48  ;;  %v768_v47 = vld [vmem:[%s19707_s1 + $0x16f0] sm:$0xff] }
 0x455   :  { %10838 = vmatmul.mubr.bf16.vlgmr.msra.gmra.mrb[4].mxu0 %v15561_v16  ;;  %11371 = vmatmul.mubr.bf16.vlgmr.msra.gmra.mrb[4].mxu1 %v15561_v16  ;;  %v701_v16 = vld [vmem:[%s19707_s1 + $0x14d8] sm:$0xff] }
 0x456   :  { %10847 = vmatpush1.bf16.msra.mxu0 %v13095_v13  ;;  %11380 = vmatpush1.bf16.msra.mxu1 %v13097_v14  ;;  %v13122_v55 = vcombine.high %v701_v16, %v705_v35  ;;  %v13121_v41 = vcombine.low %v701_v16, %v705_v35  ;;  %v733_v13 = vld [vmem:[%s19707_s1 + $0x15d8] sm:$0xff]  ;;  %v748_v16 = vld [vmem:[%s19707_s1 + $0x1650] sm:$0xff] }
 0x457   :  { %10848 = vmatprep.subr.bf16.mxu0 %v13104_v20  ;;  %11381 = vmatprep.subr.bf16.mxu1 %v13106_v61  ;;  %v737_v14 = vld [vmem:[%s19707_s1 + $0x15f8] sm:$0xff]  ;;  %v13143_v20 = vcombine.low %v724_v3, %v728_v39  ;;  %v13145_v61 = vcombine.low %v725_v0, %v729_v48  ;;  %v752_v35 = vld [vmem:[%s19707_s1 + $0x1670] sm:$0xff]  ;;  %v13184_v3 = vcombine.high %v764_v31, %v768_v47 }
 0x458   :  { %10878 = vmatprep.mubr.bf16.mxu0 %v15582_v27  ;;  %11411 = vmatprep.mubr.bf16.mxu1 %v15582_v27  ;;  %v709_v27 = vld [vmem:[%s19707_s1 + $0x1518] sm:$0xff]  ;;  %v13154_v26 = vcombine.high %v733_v13, %v737_v14  ;;  %v13168_v37 = vcombine.high %v748_v16, %v752_v35  ;;  %v772_v0 = vld [vmem:[%s19707_s1 + $0x1710] sm:$0xff] }
 0x459   :  { %v13130_v44 = vcombine.high %v709_v27, %v713_v45  ;;  %v13129_v18 = vcombine.low %v709_v27, %v713_v45  ;;  %v756_v27 = vld [vmem:[%s19707_s1 + $0x1690] sm:$0xff] }
 0x45a   :  { %10849 = vmatpush1.bf16.msra.mxu0 %v13103_v28  ;;  %11382 = vmatpush1.bf16.msra.mxu1 %v13105_v29  ;;  %v741_v28 = vld [vmem:[%s19707_s1 + $0x1618] sm:$0xff]  ;;  %v760_v45 = vld [vmem:[%s19707_s1 + $0x16b0] sm:$0xff] }
 0x45b   :  { %10850 = vmatprep.subr.bf16.mxu0 %v13112_v32  ;;  %11383 = vmatprep.subr.bf16.mxu1 %v13114_v33  ;;  %v745_v29 = vld [vmem:[%s19707_s1 + $0x1638] sm:$0xff]  ;;  %v13151_v32 = vcombine.low %v732_v7, %v736_v11  ;;  %v13153_v33 = vcombine.low %v733_v13, %v737_v14  ;;  %v13176_v1 = vcombine.high %v756_v27, %v760_v45  ;;  %v776_v48 = vld [vmem:[%s19707_s1 + $0x1730] sm:$0xff] }
 0x45c   :  { %v13162_v34 = vcombine.high %v741_v28, %v745_v29  ;;  %v13192_v7 = vcombine.high %v772_v0, %v776_v48  ;;  %v780_v13 = vld [vmem:[%s19707_s1 + $0x1750] sm:$0xff] }
 0x45d   :  { %v784_v14 = vld [vmem:[%s19707_s1 + $0x1770] sm:$0xff] }
 0x45e   :  { %10851 = vmatpush1.bf16.msra.mxu0 %v13111_v12  ;;  %11384 = vmatpush1.bf16.msra.mxu1 %v13113_v57  ;;  %v749_v12 = vld [vmem:[%s19707_s1 + $0x1658] sm:$0xff] }
 0x45f   :  { %10852 = vmatprep.subr.bf16.mxu0 %v13120_v22  ;;  %11385 = vmatprep.subr.bf16.mxu1 %v13122_v55  ;;  %v753_v57 = vld [vmem:[%s19707_s1 + $0x1678] sm:$0xff]  ;;  %v13159_v22 = vcombine.low %v740_v49, %v744_v15  ;;  %v13161_v55 = vcombine.low %v741_v28, %v745_v29  ;;  %v13200_v49 = vcombine.high %v780_v13, %v784_v14  ;;  %v788_v28 = vld [vmem:[%s19707_s1 + $0x1790] sm:$0xff] }
 0x460   :  { %v13170_v38 = vcombine.high %v749_v12, %v753_v57  ;;  %v792_v29 = vld [vmem:[%s19707_s1 + $0x17b0] sm:$0xff] }
 0x462   :  { %10853 = vmatpush1.bf16.msra.mxu0 %v13119_v40  ;;  %11386 = vmatpush1.bf16.msra.mxu1 %v13121_v41  ;;  %v757_v40 = vld [vmem:[%s19707_s1 + $0x1698] sm:$0xff] }
 0x463   :  { %10854 = vmatprep.subr.bf16.mxu0 %v13128_v42  ;;  %11387 = vmatprep.subr.bf16.mxu1 %v13130_v44  ;;  %v761_v41 = vld [vmem:[%s19707_s1 + $0x16b8] sm:$0xff]  ;;  %v13167_v42 = vcombine.low %v748_v16, %v752_v35  ;;  %v13169_v44 = vcombine.low %v749_v12, %v753_v57  ;;  %v13208_v16 = vcombine.high %v788_v28, %v792_v29  ;;  %v796_v12 = vld [vmem:[%s19707_s1 + $0x17d0] sm:$0xff] }
 0x464   :  { %v13178_v21 = vcombine.high %v757_v40, %v761_v41  ;;  %v800_v57 = vld [vmem:[%s19707_s1 + $0x17f0] sm:$0xff] }
 0x466   :  { %10855 = vmatpush1.bf16.msra.mxu0 %v13127_v51  ;;  %11388 = vmatpush1.bf16.msra.mxu1 %v13129_v18  ;;  %v765_v51 = vld [vmem:[%s19707_s1 + $0x16d8] sm:$0xff] }
 0x467   :  { %10856 = vmatprep.subr.bf16.mxu0 %v13136_v52  ;;  %11389 = vmatprep.subr.bf16.mxu1 %v13138_v56  ;;  %v769_v18 = vld [vmem:[%s19707_s1 + $0x16f8] sm:$0xff]  ;;  %v13175_v52 = vcombine.low %v756_v27, %v760_v45  ;;  %v13177_v56 = vcombine.low %v757_v40, %v761_v41  ;;  %v13216_v27 = vcombine.high %v796_v12, %v800_v57  ;;  %v804_v40 = vld [vmem:[%s19707_s1 + $0x1810] sm:$0xff] }
 0x468   :  { %v13186_v39 = vcombine.high %v765_v51, %v769_v18  ;;  %v808_v41 = vld [vmem:[%s19707_s1 + $0x1830] sm:$0xff] }
 0x46a   :  { %10857 = vmatpush1.bf16.msra.mxu0 %v13135_v2  ;;  %11390 = vmatpush1.bf16.msra.mxu1 %v13137_v4  ;;  %v773_v2 = vld [vmem:[%s19707_s1 + $0x1718] sm:$0xff] }
 0x46b   :  { %10858 = vmatprep.subr.bf16.mxu0 %v13144_v5  ;;  %11391 = vmatprep.subr.bf16.mxu1 %v13146_v6  ;;  %v777_v4 = vld [vmem:[%s19707_s1 + $0x1738] sm:$0xff]  ;;  %v13183_v5 = vcombine.low %v764_v31, %v768_v47  ;;  %v13185_v6 = vcombine.low %v765_v51, %v769_v18  ;;  %v13224_v31 = vcombine.high %v804_v40, %v808_v41  ;;  %v812_v51 = vld [vmem:[%s19707_s1 + $0x1850] sm:$0xff] }
 0x46c   :  { %v13194_v11 = vcombine.high %v773_v2, %v777_v4  ;;  %v816_v18 = vld [vmem:[%s19707_s1 + $0x1870] sm:$0xff] }
 0x46e   :  { %10859 = vmatpush1.bf16.msra.mxu0 %v13143_v20  ;;  %11392 = vmatpush1.bf16.msra.mxu1 %v13145_v61  ;;  %v781_v20 = vld [vmem:[%s19707_s1 + $0x1758] sm:$0xff] }
 0x46f   :  { %10860 = vmatprep.subr.bf16.mxu0 %v13152_v24  ;;  %11393 = vmatprep.subr.bf16.mxu1 %v13154_v26  ;;  %v785_v61 = vld [vmem:[%s19707_s1 + $0x1778] sm:$0xff]  ;;  %v13191_v24 = vcombine.low %v772_v0, %v776_v48  ;;  %v13193_v26 = vcombine.low %v773_v2, %v777_v4  ;;  %v13232_v0 = vcombine.high %v812_v51, %v816_v18  ;;  %v820_v2 = vld [vmem:[%s19707_s1 + $0x1890] sm:$0xff] }
 0x470   :  { %v13202_v15 = vcombine.high %v781_v20, %v785_v61  ;;  %v824_v4 = vld [vmem:[%s19707_s1 + $0x18b0] sm:$0xff] }
 0x472   :  { %10861 = vmatpush1.bf16.msra.mxu0 %v13151_v32  ;;  %11394 = vmatpush1.bf16.msra.mxu1 %v13153_v33  ;;  %v789_v32 = vld [vmem:[%s19707_s1 + $0x1798] sm:$0xff] }
 0x473   :  { %10862 = vmatprep.subr.bf16.mxu0 %v13160_v36  ;;  %11395 = vmatprep.subr.bf16.mxu1 %v13162_v34  ;;  %v793_v33 = vld [vmem:[%s19707_s1 + $0x17b8] sm:$0xff]  ;;  %v13199_v36 = vcombine.low %v780_v13, %v784_v14  ;;  %v13201_v34 = vcombine.low %v781_v20, %v785_v61  ;;  %v13240_v13 = vcombine.high %v820_v2, %v824_v4  ;;  %v828_v20 = vld [vmem:[%s19707_s1 + $0x18d0] sm:$0xff] }
 0x474   :  { %v13210_v35 = vcombine.high %v789_v32, %v793_v33  ;;  %v832_v61 = vld [vmem:[%s19707_s1 + $0x18f0] sm:$0xff] }
 0x476   :  { %10863 = vmatpush1.bf16.msra.mxu0 %v13159_v22  ;;  %11396 = vmatpush1.bf16.msra.mxu1 %v13161_v55  ;;  %v797_v22 = vld [vmem:[%s19707_s1 + $0x17d8] sm:$0xff] }
 0x477   :  { %10864 = vmatprep.subr.bf16.mxu0 %v13168_v37  ;;  %11397 = vmatprep.subr.bf16.mxu1 %v13170_v38  ;;  %v801_v55 = vld [vmem:[%s19707_s1 + $0x17f8] sm:$0xff]  ;;  %v13207_v37 = vcombine.low %v788_v28, %v792_v29  ;;  %v13209_v38 = vcombine.low %v789_v32, %v793_v33  ;;  %v836_v29 = vld [vmem:[%s19707_s1 + $0x1910] sm:$0xff] }
 0x478   :  { %v13218_v45 = vcombine.high %v797_v22, %v801_v55  ;;  %v840_v32 = vld [vmem:[%s19707_s1 + $0x1930] sm:$0xff]  ;;  %v841_v33 = vld [vmem:[%s19707_s1 + $0x1938] sm:$0xff] }
 0x47a   :  { %10865 = vmatpush1.bf16.msra.mxu0 %v13167_v42  ;;  %11398 = vmatpush1.bf16.msra.mxu1 %v13169_v44  ;;  %v805_v42 = vld [vmem:[%s19707_s1 + $0x1818] sm:$0xff] }
 0x47b   :  { %10866 = vmatprep.subr.bf16.mxu0 %v13176_v1  ;;  %11399 = vmatprep.subr.bf16.mxu1 %v13178_v21  ;;  %v809_v44 = vld [vmem:[%s19707_s1 + $0x1838] sm:$0xff]  ;;  %v13215_v1 = vcombine.low %v796_v12, %v800_v57  ;;  %v13217_v21 = vcombine.low %v797_v22, %v801_v55  ;;  %v844_v12 = vld [vmem:[%s19707_s1 + $0x1950] sm:$0xff] }
 0x47c   :  { %v13226_v47 = vcombine.high %v805_v42, %v809_v44  ;;  %v848_v57 = vld [vmem:[%s19707_s1 + $0x1970] sm:$0xff]  ;;  %v845_v22 = vld [vmem:[%s19707_s1 + $0x1958] sm:$0xff] }
 0x47d   :  { %v849_v55 = vld [vmem:[%s19707_s1 + $0x1978] sm:$0xff] }
 0x47e   :  { %10867 = vmatpush1.bf16.msra.mxu0 %v13175_v52  ;;  %11400 = vmatpush1.bf16.msra.mxu1 %v13177_v56  ;;  %v813_v52 = vld [vmem:[%s19707_s1 + $0x1858] sm:$0xff] }
 0x47f   :  { %10868 = vmatprep.subr.bf16.mxu0 %v13184_v3  ;;  %11401 = vmatprep.subr.bf16.mxu1 %v13186_v39  ;;  %v817_v56 = vld [vmem:[%s19707_s1 + $0x1878] sm:$0xff]  ;;  %v13223_v3 = vcombine.low %v804_v40, %v808_v41  ;;  %v13225_v39 = vcombine.low %v805_v42, %v809_v44  ;;  %v852_v40 = vld [vmem:[%s19707_s1 + $0x1990] sm:$0xff] }
 0x480   :  { %v13234_v48 = vcombine.high %v813_v52, %v817_v56  ;;  %v856_v41 = vld [vmem:[%s19707_s1 + $0x19b0] sm:$0xff]  ;;  %v853_v42 = vld [vmem:[%s19707_s1 + $0x1998] sm:$0xff] }
 0x481   :  { %v857_v44 = vld [vmem:[%s19707_s1 + $0x19b8] sm:$0xff] }
 0x482   :  { %10869 = vmatpush1.bf16.msra.mxu0 %v13183_v5  ;;  %11402 = vmatpush1.bf16.msra.mxu1 %v13185_v6  ;;  %v821_v5 = vld [vmem:[%s19707_s1 + $0x1898] sm:$0xff] }
 0x483   :  { %10870 = vmatprep.subr.bf16.mxu0 %v13192_v7  ;;  %11403 = vmatprep.subr.bf16.mxu1 %v13194_v11  ;;  %v825_v6 = vld [vmem:[%s19707_s1 + $0x18b8] sm:$0xff]  ;;  %v13231_v7 = vcombine.low %v812_v51, %v816_v18  ;;  %v13233_v11 = vcombine.low %v813_v52, %v817_v56  ;;  %v860_v51 = vld [vmem:[%s19707_s1 + $0x19d0] sm:$0xff] }
 0x484   :  { %v13242_v14 = vcombine.high %v821_v5, %v825_v6  ;;  %v864_v18 = vld [vmem:[%s19707_s1 + $0x19f0] sm:$0xff]  ;;  %v861_v52 = vld [vmem:[%s19707_s1 + $0x19d8] sm:$0xff] }
 0x485   :  { %v865_v56 = vld [vmem:[%s19707_s1 + $0x19f8] sm:$0xff] }
 0x486   :  { %10871 = vmatpush1.bf16.msra.mxu0 %v13191_v24  ;;  %11404 = vmatpush1.bf16.msra.mxu1 %v13193_v26  ;;  %v833_v24 = vld [vmem:[%s19707_s1 + $0x18f8] sm:$0xff]  ;;  %v13239_v26 = vcombine.low %v820_v2, %v824_v4  ;;  %v868_v2 = vld [vmem:[%s19707_s1 + $0x1a10] sm:$0xff] }
 0x487   :  { %10872 = vmatprep.subr.bf16.mxu0 %v13200_v49  ;;  %11405 = vmatprep.subr.bf16.mxu1 %v13202_v15  ;;  %v13241_v49 = vcombine.low %v821_v5, %v825_v6  ;;  %v13248_v15 = vcombine.high %v828_v20, %v832_v61  ;;  %v872_v4 = vld [vmem:[%s19707_s1 + $0x1a30] sm:$0xff]  ;;  %v869_v5 = vld [vmem:[%s19707_s1 + $0x1a18] sm:$0xff] }
 0x488   :  { %v873_v6 = vld [vmem:[%s19707_s1 + $0x1a38] sm:$0xff] }
 0x48a   :  { %10873 = vmatpush1.bf16.msra.mxu0 %v13199_v36  ;;  %11406 = vmatpush1.bf16.msra.mxu1 %v13201_v34  ;;  %v13247_v36 = vcombine.low %v828_v20, %v832_v61  ;;  %v876_v20 = vld [vmem:[%s19707_s1 + $0x1a50] sm:$0xff] }
 0x48b   :  { %10874 = vmatprep.subr.bf16.mxu0 %v13208_v16  ;;  %11407 = vmatprep.subr.bf16.mxu1 %v13210_v35  ;;  %v13256_v16 = vcombine.high %v836_v29, %v840_v32  ;;  %v880_v61 = vld [vmem:[%s19707_s1 + $0x1a70] sm:$0xff] }
 0x48e   :  { %10875 = vmatpush1.bf16.msra.mxu0 %v13207_v37  ;;  %11408 = vmatpush1.bf16.msra.mxu1 %v13209_v38  ;;  %v13255_v37 = vcombine.low %v836_v29, %v840_v32  ;;  %v884_v29 = vld [vmem:[%s19707_s1 + $0x1a90] sm:$0xff] }
 0x48f   :  { %10876 = vmatprep.subr.bf16.mxu0 %v13216_v27  ;;  %11409 = vmatprep.subr.bf16.mxu1 %v13218_v45  ;;  %v13264_v27 = vcombine.high %v844_v12, %v848_v57  ;;  %v13266_v45 = vcombine.high %v845_v22, %v849_v55  ;;  %v888_v32 = vld [vmem:[%s19707_s1 + $0x1ab0] sm:$0xff] }
 0x492   :  { %10877 = vmatpush1.bf16.msra.mxu0 %v13215_v1  ;;  %11410 = vmatpush1.bf16.msra.mxu1 %v13217_v21  ;;  %v13263_v1 = vcombine.low %v844_v12, %v848_v57  ;;  %v13265_v21 = vcombine.low %v845_v22, %v849_v55  ;;  %v892_v12 = vld [vmem:[%s19707_s1 + $0x1ad0] sm:$0xff]  ;;  %v893_v22 = vld [vmem:[%s19707_s1 + $0x1ad8] sm:$0xff] }
 0x493   :  { %10887 = vmatprep.subr.bf16.mxu0 %v13224_v31  ;;  %11420 = vmatprep.subr.bf16.mxu1 %v13226_v47  ;;  %v13272_v31 = vcombine.high %v852_v40, %v856_v41  ;;  %v13274_v47 = vcombine.high %v853_v42, %v857_v44  ;;  %v896_v57 = vld [vmem:[%s19707_s1 + $0x1af0] sm:$0xff]  ;;  %v897_v55 = vld [vmem:[%s19707_s1 + $0x1af8] sm:$0xff] }
 0x495   :  { %10879 = vmatmul.mubr.bf16.vlgmr.msra.gmra.mrb[4].mxu0 %v15770_v46  ;;  %11412 = vmatmul.mubr.bf16.vlgmr.msra.gmra.mrb[4].mxu1 %v15770_v46  ;;  %v829_v46 = vld [vmem:[%s19707_s1 + $0x18d8] sm:$0xff] }
 0x496   :  { %10888 = vmatpush1.bf16.msra.mxu0 %v13223_v3  ;;  %11421 = vmatpush1.bf16.msra.mxu1 %v13225_v39  ;;  %v13250_v28 = vcombine.high %v829_v46, %v833_v24  ;;  %v13249_v34 = vcombine.low %v829_v46, %v833_v24  ;;  %v13271_v3 = vcombine.low %v852_v40, %v856_v41  ;;  %v877_v46 = vld [vmem:[%s19707_s1 + $0x1a58] sm:$0xff]  ;;  %v900_v40 = vld [vmem:[%s19707_s1 + $0x1b10] sm:$0xff] }
 0x497   :  { %10889 = vmatprep.subr.bf16.mxu0 %v13232_v0  ;;  %11422 = vmatprep.subr.bf16.mxu1 %v13234_v48  ;;  %v13273_v39 = vcombine.low %v853_v42, %v857_v44  ;;  %v13280_v0 = vcombine.high %v860_v51, %v864_v18  ;;  %v13282_v48 = vcombine.high %v861_v52, %v865_v56  ;;  %v881_v24 = vld [vmem:[%s19707_s1 + $0x1a78] sm:$0xff]  ;;  %v904_v41 = vld [vmem:[%s19707_s1 + $0x1b30] sm:$0xff] }
 0x498   :  { %10919 = vmatprep.mubr.bf16.mxu0 %v15791_v58  ;;  %11452 = vmatprep.mubr.bf16.mxu1 %v15791_v58  ;;  %v837_v58 = vld [vmem:[%s19707_s1 + $0x1918] sm:$0xff] }
 0x499   :  { %v13258_v35 = vcombine.high %v837_v58, %v841_v33  ;;  %v13257_v38 = vcombine.low %v837_v58, %v841_v33  ;;  %v885_v58 = vld [vmem:[%s19707_s1 + $0x1a98] sm:$0xff] }
 0x49a   :  { %10890 = vmatpush1.bf16.msra.mxu0 %v13231_v7  ;;  %11423 = vmatpush1.bf16.msra.mxu1 %v13233_v11  ;;  %v13279_v7 = vcombine.low %v860_v51, %v864_v18  ;;  %v13281_v11 = vcombine.low %v861_v52, %v865_v56  ;;  %v889_v33 = vld [vmem:[%s19707_s1 + $0x1ab8] sm:$0xff]  ;;  %v908_v51 = vld [vmem:[%s19707_s1 + $0x1b50] sm:$0xff] }
 0x49b   :  { %10891 = vmatprep.subr.bf16.mxu0 %v13240_v13  ;;  %11424 = vmatprep.subr.bf16.mxu1 %v13242_v14  ;;  %v13288_v13 = vcombine.high %v868_v2, %v872_v4  ;;  %v13290_v14 = vcombine.high %v869_v5, %v873_v6  ;;  %v901_v42 = vld [vmem:[%s19707_s1 + $0x1b18] sm:$0xff]  ;;  %v912_v18 = vld [vmem:[%s19707_s1 + $0x1b70] sm:$0xff] }
 0x49c   :  { %v905_v44 = vld [vmem:[%s19707_s1 + $0x1b38] sm:$0xff] }
 0x49d   :  { %v909_v52 = vld [vmem:[%s19707_s1 + $0x1b58] sm:$0xff] }
 0x49e   :  { %10892 = vmatpush1.bf16.msra.mxu0 %v13239_v26  ;;  %11425 = vmatpush1.bf16.msra.mxu1 %v13241_v49  ;;  %v13287_v26 = vcombine.low %v868_v2, %v872_v4  ;;  %v13289_v49 = vcombine.low %v869_v5, %v873_v6  ;;  %v913_v56 = vld [vmem:[%s19707_s1 + $0x1b78] sm:$0xff]  ;;  %v916_v2 = vld [vmem:[%s19707_s1 + $0x1b90] sm:$0xff] }
 0x49f   :  { %10893 = vmatprep.subr.bf16.mxu0 %v13248_v15  ;;  %11426 = vmatprep.subr.bf16.mxu1 %v13250_v28  ;;  %v13296_v15 = vcombine.high %v876_v20, %v880_v61  ;;  %v13298_v28 = vcombine.high %v877_v46, %v881_v24  ;;  %v920_v4 = vld [vmem:[%s19707_s1 + $0x1bb0] sm:$0xff]  ;;  %v917_v5 = vld [vmem:[%s19707_s1 + $0x1b98] sm:$0xff] }
 0x4a0   :  { %v921_v6 = vld [vmem:[%s19707_s1 + $0x1bb8] sm:$0xff] }
 0x4a2   :  { %10894 = vmatpush1.bf16.msra.mxu0 %v13247_v36  ;;  %11427 = vmatpush1.bf16.msra.mxu1 %v13249_v34  ;;  %v13295_v36 = vcombine.low %v876_v20, %v880_v61  ;;  %v13297_v34 = vcombine.low %v877_v46, %v881_v24  ;;  %v924_v20 = vld [vmem:[%s19707_s1 + $0x1bd0] sm:$0xff]  ;;  %v925_v46 = vld [vmem:[%s19707_s1 + $0x1bd8] sm:$0xff] }
 0x4a3   :  { %10895 = vmatprep.subr.bf16.mxu0 %v13256_v16  ;;  %11428 = vmatprep.subr.bf16.mxu1 %v13258_v35  ;;  %v13304_v16 = vcombine.high %v884_v29, %v888_v32  ;;  %v13306_v35 = vcombine.high %v885_v58, %v889_v33  ;;  %v928_v61 = vld [vmem:[%s19707_s1 + $0x1bf0] sm:$0xff]  ;;  %v929_v24 = vld [vmem:[%s19707_s1 + $0x1bf8] sm:$0xff] }
 0x4a6   :  { %10896 = vmatpush1.bf16.msra.mxu0 %v13255_v37  ;;  %11429 = vmatpush1.bf16.msra.mxu1 %v13257_v38  ;;  %v13303_v37 = vcombine.low %v884_v29, %v888_v32  ;;  %v13305_v38 = vcombine.low %v885_v58, %v889_v33  ;;  %v932_v29 = vld [vmem:[%s19707_s1 + $0x1c10] sm:$0xff]  ;;  %v933_v58 = vld [vmem:[%s19707_s1 + $0x1c18] sm:$0xff] }
 0x4a7   :  { %10897 = vmatprep.subr.bf16.mxu0 %v13264_v27  ;;  %11430 = vmatprep.subr.bf16.mxu1 %v13266_v45  ;;  %v13312_v27 = vcombine.high %v892_v12, %v896_v57  ;;  %v13314_v45 = vcombine.high %v893_v22, %v897_v55  ;;  %v936_v32 = vld [vmem:[%s19707_s1 + $0x1c30] sm:$0xff]  ;;  %v937_v33 = vld [vmem:[%s19707_s1 + $0x1c38] sm:$0xff] }
 0x4aa   :  { %10898 = vmatpush1.bf16.msra.mxu0 %v13263_v1  ;;  %11431 = vmatpush1.bf16.msra.mxu1 %v13265_v21  ;;  %v13311_v1 = vcombine.low %v892_v12, %v896_v57  ;;  %v13313_v21 = vcombine.low %v893_v22, %v897_v55  ;;  %v940_v12 = vld [vmem:[%s19707_s1 + $0x1c50] sm:$0xff]  ;;  %v941_v22 = vld [vmem:[%s19707_s1 + $0x1c58] sm:$0xff] }
 0x4ab   :  { %10899 = vmatprep.subr.bf16.mxu0 %v13272_v31  ;;  %11432 = vmatprep.subr.bf16.mxu1 %v13274_v47  ;;  %v13320_v31 = vcombine.high %v900_v40, %v904_v41  ;;  %v13322_v47 = vcombine.high %v901_v42, %v905_v44  ;;  %v944_v57 = vld [vmem:[%s19707_s1 + $0x1c70] sm:$0xff]  ;;  %v945_v55 = vld [vmem:[%s19707_s1 + $0x1c78] sm:$0xff] }
 0x4ae   :  { %10900 = vmatpush1.bf16.msra.mxu0 %v13271_v3  ;;  %11433 = vmatpush1.bf16.msra.mxu1 %v13273_v39  ;;  %v13319_v3 = vcombine.low %v900_v40, %v904_v41  ;;  %v13321_v39 = vcombine.low %v901_v42, %v905_v44  ;;  %v948_v40 = vld [vmem:[%s19707_s1 + $0x1c90] sm:$0xff]  ;;  %v949_v42 = vld [vmem:[%s19707_s1 + $0x1c98] sm:$0xff] }
 0x4af   :  { %10901 = vmatprep.subr.bf16.mxu0 %v13280_v0  ;;  %11434 = vmatprep.subr.bf16.mxu1 %v13282_v48  ;;  %v13328_v0 = vcombine.high %v908_v51, %v912_v18  ;;  %v13330_v48 = vcombine.high %v909_v52, %v913_v56  ;;  %v952_v41 = vld [vmem:[%s19707_s1 + $0x1cb0] sm:$0xff]  ;;  %v953_v44 = vld [vmem:[%s19707_s1 + $0x1cb8] sm:$0xff] }
 0x4b2   :  { %10902 = vmatpush1.bf16.msra.mxu0 %v13279_v7  ;;  %11435 = vmatpush1.bf16.msra.mxu1 %v13281_v11  ;;  %v13327_v7 = vcombine.low %v908_v51, %v912_v18  ;;  %v13329_v11 = vcombine.low %v909_v52, %v913_v56  ;;  %v956_v51 = vld [vmem:[%s19707_s1 + $0x1cd0] sm:$0xff]  ;;  %v961_v52 = vld [vmem:[%s19707_s1 + $0x1cf8] sm:$0xff]  ;;  %v13367_v56 = vcombine.low %v948_v40, %v952_v41 }
 0x4b3   :  { %10903 = vmatprep.subr.bf16.mxu0 %v13288_v13  ;;  %11436 = vmatprep.subr.bf16.mxu1 %v13290_v14  ;;  %v13336_v13 = vcombine.high %v916_v2, %v920_v4  ;;  %v13338_v14 = vcombine.high %v917_v5, %v921_v6  ;;  %v960_v18 = vld [vmem:[%s19707_s1 + $0x1cf0] sm:$0xff] }
 0x4b6   :  { %10904 = vmatpush1.bf16.msra.mxu0 %v13287_v26  ;;  %11437 = vmatpush1.bf16.msra.mxu1 %v13289_v49  ;;  %v13335_v26 = vcombine.low %v916_v2, %v920_v4  ;;  %v13337_v49 = vcombine.low %v917_v5, %v921_v6  ;;  %v968_v2 = vld [vmem:[%s19707_s1 + $0x1d30] sm:$0xff]  ;;  %v969_v4 = vld [vmem:[%s19707_s1 + $0x1d38] sm:$0xff]  ;;  %v13375_v5 = vcombine.low %v956_v51, %v960_v18 }
 0x4b7   :  { %10905 = vmatprep.subr.bf16.mxu0 %v13296_v15  ;;  %11438 = vmatprep.subr.bf16.mxu1 %v13298_v28  ;;  %v13344_v15 = vcombine.high %v924_v20, %v928_v61  ;;  %v13346_v28 = vcombine.high %v925_v46, %v929_v24 }
 0x4ba   :  { %10906 = vmatpush1.bf16.msra.mxu0 %v13295_v36  ;;  %11439 = vmatpush1.bf16.msra.mxu1 %v13297_v34  ;;  %v13343_v36 = vcombine.low %v924_v20, %v928_v61  ;;  %v13345_v34 = vcombine.low %v925_v46, %v929_v24  ;;  %v973_v20 = vld [vmem:[%s19707_s1 + $0x1d58] sm:$0xff] }
 0x4bb   :  { %10907 = vmatprep.subr.bf16.mxu0 %v13304_v16  ;;  %11440 = vmatprep.subr.bf16.mxu1 %v13306_v35  ;;  %v13352_v16 = vcombine.high %v932_v29, %v936_v32  ;;  %v13354_v35 = vcombine.high %v933_v58, %v937_v33  ;;  %v977_v61 = vld [vmem:[%s19707_s1 + $0x1d78] sm:$0xff] }
 0x4be   :  { %10908 = vmatpush1.bf16.msra.mxu0 %v13303_v37  ;;  %11441 = vmatpush1.bf16.msra.mxu1 %v13305_v38  ;;  %v13351_v37 = vcombine.low %v932_v29, %v936_v32  ;;  %v13353_v38 = vcombine.low %v933_v58, %v937_v33  ;;  %v981_v29 = vld [vmem:[%s19707_s1 + $0x1d98] sm:$0xff]  ;;  %v13393_v33 = vcombine.low %v973_v20, %v977_v61 }
 0x4bf   :  { %10909 = vmatprep.subr.bf16.mxu0 %v13312_v27  ;;  %11442 = vmatprep.subr.bf16.mxu1 %v13314_v45  ;;  %v13360_v27 = vcombine.high %v940_v12, %v944_v57  ;;  %v13362_v45 = vcombine.high %v941_v22, %v945_v55  ;;  %v985_v32 = vld [vmem:[%s19707_s1 + $0x1db8] sm:$0xff] }
 0x4c2   :  { %10910 = vmatpush1.bf16.msra.mxu0 %v13311_v1  ;;  %11443 = vmatpush1.bf16.msra.mxu1 %v13313_v21  ;;  %v13359_v1 = vcombine.low %v940_v12, %v944_v57  ;;  %v13361_v21 = vcombine.low %v941_v22, %v945_v55  ;;  %v989_v12 = vld [vmem:[%s19707_s1 + $0x1dd8] sm:$0xff]  ;;  %v13401_v55 = vcombine.low %v981_v29, %v985_v32 }
 0x4c3   :  { %10911 = vmatprep.subr.bf16.mxu0 %v13320_v31  ;;  %11444 = vmatprep.subr.bf16.mxu1 %v13322_v47  ;;  %v13368_v31 = vcombine.high %v948_v40, %v952_v41  ;;  %v13370_v47 = vcombine.high %v949_v42, %v953_v44  ;;  %v993_v57 = vld [vmem:[%s19707_s1 + $0x1df8] sm:$0xff] }
 0x4c4   :  { %v997_v40 = vld [vmem:[%s19707_s1 + $0x1e18] sm:$0xff] }
 0x4c5   :  { %v1001_v41 = vld [vmem:[%s19707_s1 + $0x1e38] sm:$0xff] }
 0x4c6   :  { %10912 = vmatpush1.bf16.msra.mxu0 %v13319_v3  ;;  %11445 = vmatpush1.bf16.msra.mxu1 %v13321_v39  ;;  %v13369_v3 = vcombine.low %v949_v42, %v953_v44  ;;  %v13376_v39 = vcombine.high %v956_v51, %v960_v18  ;;  %v13409_v44 = vcombine.low %v989_v12, %v993_v57  ;;  %v1005_v51 = vld [vmem:[%s19707_s1 + $0x1e58] sm:$0xff] }
 0x4c7   :  { %10913 = vmatprep.subr.bf16.mxu0 %v13328_v0  ;;  %11446 = vmatprep.subr.bf16.mxu1 %v13330_v48  ;;  %v964_v48 = vld [vmem:[%s19707_s1 + $0x1d10] sm:$0xff]  ;;  %v1009_v18 = vld [vmem:[%s19707_s1 + $0x1e78] sm:$0xff] }
 0x4c8   :  { %v13383_v46 = vcombine.low %v964_v48, %v968_v2 }
 0x4ca   :  { %10914 = vmatpush1.bf16.msra.mxu0 %v13327_v7  ;;  %11447 = vmatpush1.bf16.msra.mxu1 %v13329_v11  ;;  %v13384_v7 = vcombine.high %v964_v48, %v968_v2  ;;  %v1013_v48 = vld [vmem:[%s19707_s1 + $0x1e98] sm:$0xff] }
 0x4cb   :  { %10915 = vmatprep.subr.bf16.mxu0 %v13336_v13  ;;  %11448 = vmatprep.subr.bf16.mxu1 %v13338_v14  ;;  %v972_v13 = vld [vmem:[%s19707_s1 + $0x1d50] sm:$0xff]  ;;  %v1017_v2 = vld [vmem:[%s19707_s1 + $0x1eb8] sm:$0xff] }
 0x4cc   :  { %v976_v14 = vld [vmem:[%s19707_s1 + $0x1d70] sm:$0xff] }
 0x4cd   :  { %v13391_v58 = vcombine.low %v972_v13, %v976_v14 }
 0x4ce   :  { %10916 = vmatpush1.bf16.msra.mxu0 %v13335_v26  ;;  %11449 = vmatpush1.bf16.msra.mxu1 %v13337_v49  ;;  %v13392_v26 = vcombine.high %v972_v13, %v976_v14  ;;  %v13394_v49 = vcombine.high %v973_v20, %v977_v61  ;;  %v1021_v13 = vld [vmem:[%s19707_s1 + $0x1ed8] sm:$0xff]  ;;  %v13433_v61 = vcombine.low %v1013_v48, %v1017_v2 }
 0x4cf   :  { %10917 = vmatprep.subr.bf16.mxu0 %v13344_v15  ;;  %11450 = vmatprep.subr.bf16.mxu1 %v13346_v28  ;;  %v980_v15 = vld [vmem:[%s19707_s1 + $0x1d90] sm:$0xff]  ;;  %v1025_v14 = vld [vmem:[%s19707_s1 + $0x1ef8] sm:$0xff] }
 0x4d0   :  { %v984_v28 = vld [vmem:[%s19707_s1 + $0x1db0] sm:$0xff] }
 0x4d1   :  { %v13399_v22 = vcombine.low %v980_v15, %v984_v28 }
 0x4d2   :  { %10918 = vmatpush1.bf16.msra.mxu0 %v13343_v36  ;;  %11451 = vmatpush1.bf16.msra.mxu1 %v13345_v34  ;;  %v13400_v36 = vcombine.high %v980_v15, %v984_v28  ;;  %v13402_v34 = vcombine.high %v981_v29, %v985_v32  ;;  %v1029_v15 = vld [vmem:[%s19707_s1 + $0x1f18] sm:$0xff]  ;;  %v13441_v32 = vcombine.low %v1021_v13, %v1025_v14 }
 0x4d3   :  { %10928 = vmatprep.subr.bf16.mxu0 %v13352_v16  ;;  %11461 = vmatprep.subr.bf16.mxu1 %v13354_v35  ;;  %v988_v16 = vld [vmem:[%s19707_s1 + $0x1dd0] sm:$0xff]  ;;  %v1033_v28 = vld [vmem:[%s19707_s1 + $0x1f38] sm:$0xff] }
 0x4d4   :  { %v992_v35 = vld [vmem:[%s19707_s1 + $0x1df0] sm:$0xff] }
 0x4d5   :  { %10920 = vmatmul.mubr.bf16.vlgmr.msra.gmra.mrb[4].mxu0 %v15979_v19  ;;  %11453 = vmatmul.mubr.bf16.vlgmr.msra.gmra.mrb[4].mxu1 %v15979_v19  ;;  %v957_v19 = vld [vmem:[%s19707_s1 + $0x1cd8] sm:$0xff]  ;;  %v13407_v42 = vcombine.low %v988_v16, %v992_v35 }
 0x4d6   :  { %10929 = vmatpush1.bf16.msra.mxu0 %v13351_v37  ;;  %11462 = vmatpush1.bf16.msra.mxu1 %v13353_v38  ;;  %v13378_v0 = vcombine.high %v957_v19, %v961_v52  ;;  %v13377_v6 = vcombine.low %v957_v19, %v961_v52  ;;  %v13408_v37 = vcombine.high %v988_v16, %v992_v35  ;;  %v1037_v16 = vld [vmem:[%s19707_s1 + $0x1f58] sm:$0xff] }
 0x4d7   :  { %10930 = vmatprep.subr.bf16.mxu0 %v13360_v27  ;;  %11463 = vmatprep.subr.bf16.mxu1 %v13362_v45  ;;  %v13410_v38 = vcombine.high %v989_v12, %v993_v57  ;;  %v996_v27 = vld [vmem:[%s19707_s1 + $0x1e10] sm:$0xff]  ;;  %v13417_v52 = vcombine.low %v997_v40, %v1001_v41  ;;  %v1041_v35 = vld [vmem:[%s19707_s1 + $0x1f78] sm:$0xff]  ;;  %v13449_v57 = vcombine.low %v1029_v15, %v1033_v28 }
 0x4d8   :  { %10960 = vmatprep.mubr.bf16.mxu0 %v16000_v30  ;;  %11493 = vmatprep.mubr.bf16.mxu1 %v16000_v30  ;;  %v965_v30 = vld [vmem:[%s19707_s1 + $0x1d18] sm:$0xff]  ;;  %v1000_v45 = vld [vmem:[%s19707_s1 + $0x1e30] sm:$0xff] }
 0x4d9   :  { %v13386_v11 = vcombine.high %v965_v30, %v969_v4  ;;  %v13385_v24 = vcombine.low %v965_v30, %v969_v4  ;;  %v13415_v19 = vcombine.low %v996_v27, %v1000_v45  ;;  %v13425_v4 = vcombine.low %v1005_v51, %v1009_v18 }
 0x4da   :  { %10931 = vmatpush1.bf16.msra.mxu0 %v13359_v1  ;;  %11464 = vmatpush1.bf16.msra.mxu1 %v13361_v21  ;;  %v13416_v1 = vcombine.high %v996_v27, %v1000_v45  ;;  %v13418_v21 = vcombine.high %v997_v40, %v1001_v41  ;;  %v1045_v27 = vld [vmem:[%s19707_s1 + $0x1f98] sm:$0xff]  ;;  %v13457_v41 = vcombine.low %v1037_v16, %v1041_v35 }
 0x4db   :  { %10932 = vmatprep.subr.bf16.mxu0 %v13368_v31  ;;  %11465 = vmatprep.subr.bf16.mxu1 %v13370_v47  ;;  %v1004_v31 = vld [vmem:[%s19707_s1 + $0x1e50] sm:$0xff]  ;;  %v1049_v45 = vld [vmem:[%s19707_s1 + $0x1fb8] sm:$0xff] }
 0x4dc   :  { %v1008_v47 = vld [vmem:[%s19707_s1 + $0x1e70] sm:$0xff] }
 0x4dd   :  { %v13423_v30 = vcombine.low %v1004_v31, %v1008_v47 }
 0x4de   :  { %10933 = vmatpush1.bf16.msra.mxu0 %v13367_v56  ;;  %11466 = vmatpush1.bf16.msra.mxu1 %v13369_v3  ;;  %v13424_v56 = vcombine.high %v1004_v31, %v1008_v47  ;;  %v13426_v3 = vcombine.high %v1005_v51, %v1009_v18  ;;  %v1053_v31 = vld [vmem:[%s19707_s1 + $0x1fd8] sm:$0xff]  ;;  %v13465_v18 = vcombine.low %v1045_v27, %v1049_v45 }
 0x4df   :  { %10934 = vmatprep.subr.bf16.mxu0 %v13376_v39  ;;  %11467 = vmatprep.subr.bf16.mxu1 %v13378_v0  ;;  %v1012_v39 = vld [vmem:[%s19707_s1 + $0x1e90] sm:$0xff]  ;;  %v1057_v47 = vld [vmem:[%s19707_s1 + $0x1ff8] sm:$0xff] }
 0x4e0   :  { %v1016_v0 = vld [vmem:[%s19707_s1 + $0x1eb0] sm:$0xff] }
 0x4e1   :  { %v13431_v20 = vcombine.low %v1012_v39, %v1016_v0 }
 0x4e2   :  { %10935 = vmatpush1.bf16.msra.mxu0 %v13375_v5  ;;  %11468 = vmatpush1.bf16.msra.mxu1 %v13377_v6  ;;  %v13432_v5 = vcombine.high %v1012_v39, %v1016_v0  ;;  %v13434_v6 = vcombine.high %v1013_v48, %v1017_v2  ;;  %v1061_v39 = vld [vmem:[%s19707_s1 + $0x2018] sm:$0xff]  ;;  %v13473_v2 = vcombine.low %v1053_v31, %v1057_v47 }
 0x4e3   :  { %10936 = vmatprep.subr.bf16.mxu0 %v13384_v7  ;;  %11469 = vmatprep.subr.bf16.mxu1 %v13386_v11  ;;  %v1020_v7 = vld [vmem:[%s19707_s1 + $0x1ed0] sm:$0xff]  ;;  %v1065_v0 = vld [vmem:[%s19707_s1 + $0x2038] sm:$0xff] }
 0x4e4   :  { %v1024_v11 = vld [vmem:[%s19707_s1 + $0x1ef0] sm:$0xff] }
 0x4e5   :  { %v13439_v29 = vcombine.low %v1020_v7, %v1024_v11 }
 0x4e6   :  { %10937 = vmatpush1.bf16.msra.mxu0 %v13383_v46  ;;  %11470 = vmatpush1.bf16.msra.mxu1 %v13385_v24  ;;  %v13440_v46 = vcombine.high %v1020_v7, %v1024_v11  ;;  %v13442_v24 = vcombine.high %v1021_v13, %v1025_v14  ;;  %v1069_v7 = vld [vmem:[%s19707_s1 + $0x2058] sm:$0xff]  ;;  %v13481_v14 = vcombine.low %v1061_v39, %v1065_v0 }
 0x4e7   :  { %10938 = vmatprep.subr.bf16.mxu0 %v13392_v26  ;;  %11471 = vmatprep.subr.bf16.mxu1 %v13394_v49  ;;  %v1028_v26 = vld [vmem:[%s19707_s1 + $0x1f10] sm:$0xff]  ;;  %v1073_v11 = vld [vmem:[%s19707_s1 + $0x2078] sm:$0xff] }
 0x4e8   :  { %v1032_v49 = vld [vmem:[%s19707_s1 + $0x1f30] sm:$0xff] }
 0x4e9   :  { %v13447_v12 = vcombine.low %v1028_v26, %v1032_v49 }
 0x4ea   :  { %10939 = vmatpush1.bf16.msra.mxu0 %v13391_v58  ;;  %11472 = vmatpush1.bf16.msra.mxu1 %v13393_v33  ;;  %v13448_v58 = vcombine.high %v1028_v26, %v1032_v49  ;;  %v13450_v33 = vcombine.high %v1029_v15, %v1033_v28  ;;  %v1077_v26 = vld [vmem:[%s19707_s1 + $0x2098] sm:$0xff]  ;;  %v13489_v28 = vcombine.low %v1069_v7, %v1073_v11 }
 0x4eb   :  { %10940 = vmatprep.subr.bf16.mxu0 %v13400_v36  ;;  %11473 = vmatprep.subr.bf16.mxu1 %v13402_v34  ;;  %v1036_v36 = vld [vmem:[%s19707_s1 + $0x1f50] sm:$0xff]  ;;  %v1081_v49 = vld [vmem:[%s19707_s1 + $0x20b8] sm:$0xff] }
 0x4ec   :  { %v1040_v34 = vld [vmem:[%s19707_s1 + $0x1f70] sm:$0xff] }
 0x4ed   :  { %v13455_v40 = vcombine.low %v1036_v36, %v1040_v34 }
 0x4ee   :  { %10941 = vmatpush1.bf16.msra.mxu0 %v13399_v22  ;;  %11474 = vmatpush1.bf16.msra.mxu1 %v13401_v55  ;;  %v13456_v22 = vcombine.high %v1036_v36, %v1040_v34  ;;  %v13458_v55 = vcombine.high %v1037_v16, %v1041_v35  ;;  %v1089_v36 = vld [vmem:[%s19707_s1 + $0x20f8] sm:$0xff]  ;;  %v13497_v16 = vcombine.low %v1077_v26, %v1081_v49 }
 0x4ef   :  { %10942 = vmatprep.subr.bf16.mxu0 %v13408_v37  ;;  %11475 = vmatprep.subr.bf16.mxu1 %v13410_v38  ;;  %v1044_v37 = vld [vmem:[%s19707_s1 + $0x1f90] sm:$0xff] }
 0x4f0   :  { %v1048_v38 = vld [vmem:[%s19707_s1 + $0x1fb0] sm:$0xff] }
 0x4f1   :  { %v13463_v51 = vcombine.low %v1044_v37, %v1048_v38 }
 0x4f2   :  { %10943 = vmatpush1.bf16.msra.mxu0 %v13407_v42  ;;  %11476 = vmatpush1.bf16.msra.mxu1 %v13409_v44  ;;  %v13464_v42 = vcombine.high %v1044_v37, %v1048_v38  ;;  %v13466_v44 = vcombine.high %v1045_v27, %v1049_v45 }
 0x4f3   :  { %10944 = vmatprep.subr.bf16.mxu0 %v13416_v1  ;;  %11477 = vmatprep.subr.bf16.mxu1 %v13418_v21  ;;  %v1052_v1 = vld [vmem:[%s19707_s1 + $0x1fd0] sm:$0xff] }
 0x4f4   :  { %v1056_v21 = vld [vmem:[%s19707_s1 + $0x1ff0] sm:$0xff] }
 0x4f5   :  { %v13471_v48 = vcombine.low %v1052_v1, %v1056_v21 }
 0x4f6   :  { %10945 = vmatpush1.bf16.msra.mxu0 %v13415_v19  ;;  %11478 = vmatpush1.bf16.msra.mxu1 %v13417_v52  ;;  %v13472_v19 = vcombine.high %v1052_v1, %v1056_v21  ;;  %v13474_v52 = vcombine.high %v1053_v31, %v1057_v47 }
 0x4f7   :  { %10946 = vmatprep.subr.bf16.mxu0 %v13424_v56  ;;  %11479 = vmatprep.subr.bf16.mxu1 %v13426_v3  ;;  %v1060_v56 = vld [vmem:[%s19707_s1 + $0x2010] sm:$0xff] }
 0x4f8   :  { %v1064_v3 = vld [vmem:[%s19707_s1 + $0x2030] sm:$0xff] }
 0x4f9   :  { %v13479_v13 = vcombine.low %v1060_v56, %v1064_v3 }
 0x4fa   :  { %10947 = vmatpush1.bf16.msra.mxu0 %v13423_v30  ;;  %11480 = vmatpush1.bf16.msra.mxu1 %v13425_v4  ;;  %v13480_v30 = vcombine.high %v1060_v56, %v1064_v3  ;;  %v13482_v4 = vcombine.high %v1061_v39, %v1065_v0 }
 0x4fb   :  { %10948 = vmatprep.subr.bf16.mxu0 %v13432_v5  ;;  %11481 = vmatprep.subr.bf16.mxu1 %v13434_v6  ;;  %v1068_v5 = vld [vmem:[%s19707_s1 + $0x2050] sm:$0xff] }
 0x4fc   :  { %v1072_v6 = vld [vmem:[%s19707_s1 + $0x2070] sm:$0xff] }
 0x4fd   :  { %v13487_v15 = vcombine.low %v1068_v5, %v1072_v6 }
 0x4fe   :  { %10949 = vmatpush1.bf16.msra.mxu0 %v13431_v20  ;;  %11482 = vmatpush1.bf16.msra.mxu1 %v13433_v61  ;;  %v13488_v20 = vcombine.high %v1068_v5, %v1072_v6  ;;  %v13490_v61 = vcombine.high %v1069_v7, %v1073_v11 }
 0x4ff   :  { %10950 = vmatprep.subr.bf16.mxu0 %v13440_v46  ;;  %11483 = vmatprep.subr.bf16.mxu1 %v13442_v24  ;;  %v1076_v46 = vld [vmem:[%s19707_s1 + $0x2090] sm:$0xff] }
 0x500   :  { %v1080_v24 = vld [vmem:[%s19707_s1 + $0x20b0] sm:$0xff] }
 0x501   :  { %v13495_v34 = vcombine.low %v1076_v46, %v1080_v24 }
 0x502   :  { %10951 = vmatpush1.bf16.msra.mxu0 %v13439_v29  ;;  %11484 = vmatpush1.bf16.msra.mxu1 %v13441_v32  ;;  %v13496_v29 = vcombine.high %v1076_v46, %v1080_v24  ;;  %v13498_v32 = vcombine.high %v1077_v26, %v1081_v49 }
 0x503   :  { %10952 = vmatprep.subr.bf16.mxu0 %v13448_v58  ;;  %11485 = vmatprep.subr.bf16.mxu1 %v13450_v33  ;;  %v1084_v58 = vld [vmem:[%s19707_s1 + $0x20d0] sm:$0xff] }
 0x504   :  { %v1088_v33 = vld [vmem:[%s19707_s1 + $0x20f0] sm:$0xff] }
 0x505   :  { %v13504_v35 = vcombine.high %v1084_v58, %v1088_v33  ;;  %v13503_v37 = vcombine.low %v1084_v58, %v1088_v33 }
 0x506   :  { %10953 = vmatpush1.bf16.msra.mxu0 %v13447_v12  ;;  %11486 = vmatpush1.bf16.msra.mxu1 %v13449_v57  ;;  %v1092_v57 = vld [vmem:[%s19707_s1 + $0x2110] sm:$0xff] }
 0x507   :  { %10954 = vmatprep.subr.bf16.mxu0 %v13456_v22  ;;  %11487 = vmatprep.subr.bf16.mxu1 %v13458_v55  ;;  %v1096_v22 = vld [vmem:[%s19707_s1 + $0x2130] sm:$0xff]  ;;  %v1097_v55 = vld [vmem:[%s19707_s1 + $0x2138] sm:$0xff] }
 0x508   :  { %v13512_v27 = vcombine.high %v1092_v57, %v1096_v22  ;;  %v13511_v1 = vcombine.low %v1092_v57, %v1096_v22 }
 0x50a   :  { %10955 = vmatpush1.bf16.msra.mxu0 %v13455_v40  ;;  %11488 = vmatpush1.bf16.msra.mxu1 %v13457_v41  ;;  %v1100_v40 = vld [vmem:[%s19707_s1 + $0x2150] sm:$0xff] }
 0x50b   :  { %10956 = vmatprep.subr.bf16.mxu0 %v13464_v42  ;;  %11489 = vmatprep.subr.bf16.mxu1 %v13466_v44  ;;  %v1104_v41 = vld [vmem:[%s19707_s1 + $0x2170] sm:$0xff]  ;;  %v1101_v42 = vld [vmem:[%s19707_s1 + $0x2158] sm:$0xff] }
 0x50c   :  { %v1105_v44 = vld [vmem:[%s19707_s1 + $0x2178] sm:$0xff]  ;;  %v13520_v31 = vcombine.high %v1100_v40, %v1104_v41  ;;  %v13519_v56 = vcombine.low %v1100_v40, %v1104_v41 }
 0x50d   :  { %v13522_v47 = vcombine.high %v1101_v42, %v1105_v44  ;;  %v13521_v3 = vcombine.low %v1101_v42, %v1105_v44 }
 0x50e   :  { %10957 = vmatpush1.bf16.msra.mxu0 %v13463_v51  ;;  %11490 = vmatpush1.bf16.msra.mxu1 %v13465_v18  ;;  %v1108_v51 = vld [vmem:[%s19707_s1 + $0x2190] sm:$0xff] }
 0x50f   :  { %10958 = vmatprep.subr.bf16.mxu0 %v13472_v19  ;;  %11491 = vmatprep.subr.bf16.mxu1 %v13474_v52  ;;  %v1112_v18 = vld [vmem:[%s19707_s1 + $0x21b0] sm:$0xff]  ;;  %v1109_v19 = vld [vmem:[%s19707_s1 + $0x2198] sm:$0xff] }
 0x510   :  { %v1113_v52 = vld [vmem:[%s19707_s1 + $0x21b8] sm:$0xff]  ;;  %v13528_v39 = vcombine.high %v1108_v51, %v1112_v18  ;;  %v13527_v5 = vcombine.low %v1108_v51, %v1112_v18 }
 0x511   :  { %v13530_v0 = vcombine.high %v1109_v19, %v1113_v52  ;;  %v13529_v6 = vcombine.low %v1109_v19, %v1113_v52 }
 0x512   :  { %10959 = vmatpush1.bf16.msra.mxu0 %v13471_v48  ;;  %11492 = vmatpush1.bf16.msra.mxu1 %v13473_v2  ;;  %v1116_v48 = vld [vmem:[%s19707_s1 + $0x21d0] sm:$0xff] }
 0x513   :  { %10969 = vmatprep.subr.bf16.mxu0 %v13480_v30  ;;  %11502 = vmatprep.subr.bf16.mxu1 %v13482_v4  ;;  %v1120_v2 = vld [vmem:[%s19707_s1 + $0x21f0] sm:$0xff]  ;;  %v1117_v30 = vld [vmem:[%s19707_s1 + $0x21d8] sm:$0xff] }
 0x514   :  { %v1121_v4 = vld [vmem:[%s19707_s1 + $0x21f8] sm:$0xff]  ;;  %v13536_v7 = vcombine.high %v1116_v48, %v1120_v2  ;;  %v13535_v46 = vcombine.low %v1116_v48, %v1120_v2 }
 0x515   :  { %10961 = vmatmul.mubr.bf16.vlgmr.msra.gmra.mrb[4].mxu0 %v16188_v63  ;;  %11494 = vmatmul.mubr.bf16.vlgmr.msra.gmra.mrb[4].mxu1 %v16188_v63  ;;  %v1085_v63 = vld [vmem:[%s19707_s1 + $0x20d8] sm:$0xff]  ;;  %v13538_v11 = vcombine.high %v1117_v30, %v1121_v4  ;;  %v13537_v24 = vcombine.low %v1117_v30, %v1121_v4 }
 0x516   :  { %10970 = vmatpush1.bf16.msra.mxu0 %v13479_v13  ;;  %11503 = vmatpush1.bf16.msra.mxu1 %v13481_v14  ;;  %v13506_v12 = vcombine.high %v1085_v63, %v1089_v36  ;;  %v13505_v38 = vcombine.low %v1085_v63, %v1089_v36  ;;  %v1124_v13 = vld [vmem:[%s19707_s1 + $0x2210] sm:$0xff] }
 0x517   :  { %10971 = vmatprep.subr.bf16.mxu0 %v13488_v20  ;;  %11504 = vmatprep.subr.bf16.mxu1 %v13490_v61  ;;  %v1128_v14 = vld [vmem:[%s19707_s1 + $0x2230] sm:$0xff]  ;;  %v1125_v20 = vld [vmem:[%s19707_s1 + $0x2218] sm:$0xff] }
 0x518   :  { %11001 = vmatprep.mubr.bf16.mxu0 %v16209_v9  ;;  %11534 = vmatprep.mubr.bf16.mxu1 %v16209_v9  ;;  %v1093_v9 = vld [vmem:[%s19707_s1 + $0x2118] sm:$0xff]  ;;  %v13544_v26 = vcombine.high %v1124_v13, %v1128_v14  ;;  %v13543_v58 = vcombine.low %v1124_v13, %v1128_v14 }
 0x519   :  { %v13514_v45 = vcombine.high %v1093_v9, %v1097_v55  ;;  %v13513_v21 = vcombine.low %v1093_v9, %v1097_v55  ;;  %v1129_v61 = vld [vmem:[%s19707_s1 + $0x2238] sm:$0xff] }
 0x51a   :  { %10972 = vmatpush1.bf16.msra.mxu0 %v13487_v15  ;;  %11505 = vmatpush1.bf16.msra.mxu1 %v13489_v28  ;;  %v13546_v49 = vcombine.high %v1125_v20, %v1129_v61  ;;  %v1132_v15 = vld [vmem:[%s19707_s1 + $0x2250] sm:$0xff]  ;;  %v13545_v33 = vcombine.low %v1125_v20, %v1129_v61 }
 0x51b   :  { %10973 = vmatprep.subr.bf16.mxu0 %v13496_v29  ;;  %11506 = vmatprep.subr.bf16.mxu1 %v13498_v32  ;;  %v1136_v28 = vld [vmem:[%s19707_s1 + $0x2270] sm:$0xff]  ;;  %v1133_v29 = vld [vmem:[%s19707_s1 + $0x2258] sm:$0xff] }
 0x51c   :  { %v1137_v32 = vld [vmem:[%s19707_s1 + $0x2278] sm:$0xff]  ;;  %v13552_v63 = vcombine.high %v1132_v15, %v1136_v28  ;;  %v13551_v57 = vcombine.low %v1132_v15, %v1136_v28 }
 0x51d   :  { %v13554_v36 = vcombine.high %v1133_v29, %v1137_v32  ;;  %v13553_v22 = vcombine.low %v1133_v29, %v1137_v32 }
 0x51e   :  { %10974 = vmatpush1.bf16.msra.mxu0 %v13495_v34  ;;  %11507 = vmatpush1.bf16.msra.mxu1 %v13497_v16  ;;  %v1140_v34 = vld [vmem:[%s19707_s1 + $0x2290] sm:$0xff] }
 0x51f   :  { %10975 = vmatprep.subr.bf16.mxu0 %v13504_v35  ;;  %11508 = vmatprep.subr.bf16.mxu1 %v13506_v12  ;;  %v1144_v16 = vld [vmem:[%s19707_s1 + $0x22b0] sm:$0xff]  ;;  %v1141_v35 = vld [vmem:[%s19707_s1 + $0x2298] sm:$0xff] }
 0x520   :  { %v1145_v12 = vld [vmem:[%s19707_s1 + $0x22b8] sm:$0xff]  ;;  %v13560_v9 = vcombine.high %v1140_v34, %v1144_v16  ;;  %v13559_v40 = vcombine.low %v1140_v34, %v1144_v16 }
 0x521   :  { %v13562_v55 = vcombine.high %v1141_v35, %v1145_v12  ;;  %v13561_v41 = vcombine.low %v1141_v35, %v1145_v12 }
 0x522   :  { %10976 = vmatpush1.bf16.msra.mxu0 %v13503_v37  ;;  %11509 = vmatpush1.bf16.msra.mxu1 %v13505_v38  ;;  %v1148_v37 = vld [vmem:[%s19707_s1 + $0x22d0] sm:$0xff] }
 0x523   :  { %10977 = vmatprep.subr.bf16.mxu0 %v13512_v27  ;;  %11510 = vmatprep.subr.bf16.mxu1 %v13514_v45  ;;  %v1152_v38 = vld [vmem:[%s19707_s1 + $0x22f0] sm:$0xff]  ;;  %v1149_v27 = vld [vmem:[%s19707_s1 + $0x22d8] sm:$0xff] }
 0x524   :  { %v1153_v45 = vld [vmem:[%s19707_s1 + $0x22f8] sm:$0xff]  ;;  %v13568_v42 = vcombine.high %v1148_v37, %v1152_v38  ;;  %v13567_v51 = vcombine.low %v1148_v37, %v1152_v38 }
 0x525   :  { %v13570_v44 = vcombine.high %v1149_v27, %v1153_v45  ;;  %v13569_v18 = vcombine.low %v1149_v27, %v1153_v45 }
 0x526   :  { %10978 = vmatpush1.bf16.msra.mxu0 %v13511_v1  ;;  %11511 = vmatpush1.bf16.msra.mxu1 %v13513_v21  ;;  %v1156_v1 = vld [vmem:[%s19707_s1 + $0x2310] sm:$0xff] }
 0x527   :  { %10979 = vmatprep.subr.bf16.mxu0 %v13520_v31  ;;  %11512 = vmatprep.subr.bf16.mxu1 %v13522_v47  ;;  %v1160_v21 = vld [vmem:[%s19707_s1 + $0x2330] sm:$0xff]  ;;  %v1157_v31 = vld [vmem:[%s19707_s1 + $0x2318] sm:$0xff] }
 0x528   :  { %v1161_v47 = vld [vmem:[%s19707_s1 + $0x2338] sm:$0xff]  ;;  %v13576_v19 = vcombine.high %v1156_v1, %v1160_v21  ;;  %v13575_v48 = vcombine.low %v1156_v1, %v1160_v21 }
 0x529   :  { %v13578_v52 = vcombine.high %v1157_v31, %v1161_v47  ;;  %v13577_v2 = vcombine.low %v1157_v31, %v1161_v47 }
 0x52a   :  { %10980 = vmatpush1.bf16.msra.mxu0 %v13519_v56  ;;  %11513 = vmatpush1.bf16.msra.mxu1 %v13521_v3  ;;  %v1164_v56 = vld [vmem:[%s19707_s1 + $0x2350] sm:$0xff] }
 0x52b   :  { %10981 = vmatprep.subr.bf16.mxu0 %v13528_v39  ;;  %11514 = vmatprep.subr.bf16.mxu1 %v13530_v0  ;;  %v1168_v3 = vld [vmem:[%s19707_s1 + $0x2370] sm:$0xff]  ;;  %v1165_v39 = vld [vmem:[%s19707_s1 + $0x2358] sm:$0xff] }
 0x52c   :  { %v1169_v0 = vld [vmem:[%s19707_s1 + $0x2378] sm:$0xff]  ;;  %v13584_v30 = vcombine.high %v1164_v56, %v1168_v3  ;;  %v13583_v13 = vcombine.low %v1164_v56, %v1168_v3 }
 0x52d   :  { %v13586_v4 = vcombine.high %v1165_v39, %v1169_v0  ;;  %v13585_v14 = vcombine.low %v1165_v39, %v1169_v0  ;;  %v1220_v0 = vld [vmem:[%s19707_s1 + $0x2510] sm:$0xff] }
 0x52e   :  { %10982 = vmatpush1.bf16.msra.mxu0 %v13527_v5  ;;  %11515 = vmatpush1.bf16.msra.mxu1 %v13529_v6  ;;  %v1172_v5 = vld [vmem:[%s19707_s1 + $0x2390] sm:$0xff] }
 0x52f   :  { %10983 = vmatprep.subr.bf16.mxu0 %v13536_v7  ;;  %11516 = vmatprep.subr.bf16.mxu1 %v13538_v11  ;;  %v1176_v6 = vld [vmem:[%s19707_s1 + $0x23b0] sm:$0xff]  ;;  %v1173_v7 = vld [vmem:[%s19707_s1 + $0x2398] sm:$0xff] }
 0x530   :  { %v1177_v11 = vld [vmem:[%s19707_s1 + $0x23b8] sm:$0xff]  ;;  %v13592_v20 = vcombine.high %v1172_v5, %v1176_v6  ;;  %v13591_v15 = vcombine.low %v1172_v5, %v1176_v6 }
 0x531   :  { %v13594_v61 = vcombine.high %v1173_v7, %v1177_v11  ;;  %v13593_v28 = vcombine.low %v1173_v7, %v1177_v11  ;;  %v1228_v7 = vld [vmem:[%s19707_s1 + $0x2550] sm:$0xff] }
 0x532   :  { %10984 = vmatpush1.bf16.msra.mxu0 %v13535_v46  ;;  %11517 = vmatpush1.bf16.msra.mxu1 %v13537_v24  ;;  %v1180_v46 = vld [vmem:[%s19707_s1 + $0x23d0] sm:$0xff] }
 0x533   :  { %10985 = vmatprep.subr.bf16.mxu0 %v13544_v26  ;;  %11518 = vmatprep.subr.bf16.mxu1 %v13546_v49  ;;  %v1184_v24 = vld [vmem:[%s19707_s1 + $0x23f0] sm:$0xff]  ;;  %v1181_v26 = vld [vmem:[%s19707_s1 + $0x23d8] sm:$0xff] }
 0x534   :  { %v1185_v49 = vld [vmem:[%s19707_s1 + $0x23f8] sm:$0xff]  ;;  %v13600_v29 = vcombine.high %v1180_v46, %v1184_v24  ;;  %v13599_v34 = vcombine.low %v1180_v46, %v1184_v24  ;;  %v1232_v11 = vld [vmem:[%s19707_s1 + $0x2570] sm:$0xff] }
 0x535   :  { %v13602_v32 = vcombine.high %v1181_v26, %v1185_v49  ;;  %v13601_v16 = vcombine.low %v1181_v26, %v1185_v49  ;;  %v13648_v46 = vcombine.high %v1228_v7, %v1232_v11  ;;  %v1236_v26 = vld [vmem:[%s19707_s1 + $0x2590] sm:$0xff] }
 0x536   :  { %10986 = vmatpush1.bf16.msra.mxu0 %v13543_v58  ;;  %11519 = vmatpush1.bf16.msra.mxu1 %v13545_v33  ;;  %v1188_v58 = vld [vmem:[%s19707_s1 + $0x2410] sm:$0xff] }
 0x537   :  { %10987 = vmatprep.subr.bf16.mxu0 %v13552_v63  ;;  %11520 = vmatprep.subr.bf16.mxu1 %v13554_v36  ;;  %v1192_v33 = vld [vmem:[%s19707_s1 + $0x2430] sm:$0xff]  ;;  %v1189_v63 = vld [vmem:[%s19707_s1 + $0x2418] sm:$0xff] }
 0x538   :  { %v1193_v36 = vld [vmem:[%s19707_s1 + $0x2438] sm:$0xff]  ;;  %v13608_v35 = vcombine.high %v1188_v58, %v1192_v33  ;;  %v13607_v37 = vcombine.low %v1188_v58, %v1192_v33  ;;  %v1240_v49 = vld [vmem:[%s19707_s1 + $0x25b0] sm:$0xff] }
 0x539   :  { %v13610_v12 = vcombine.high %v1189_v63, %v1193_v36  ;;  %v13609_v38 = vcombine.low %v1189_v63, %v1193_v36  ;;  %v13656_v58 = vcombine.high %v1236_v26, %v1240_v49  ;;  %v1244_v63 = vld [vmem:[%s19707_s1 + $0x25d0] sm:$0xff] }
 0x53a   :  { %10988 = vmatpush1.bf16.msra.mxu0 %v13551_v57  ;;  %11521 = vmatpush1.bf16.msra.mxu1 %v13553_v22  ;;  %v1196_v57 = vld [vmem:[%s19707_s1 + $0x2450] sm:$0xff] }
 0x53b   :  { %10989 = vmatprep.subr.bf16.mxu0 %v13560_v9  ;;  %11522 = vmatprep.subr.bf16.mxu1 %v13562_v55  ;;  %v1200_v22 = vld [vmem:[%s19707_s1 + $0x2470] sm:$0xff]  ;;  %v1197_v9 = vld [vmem:[%s19707_s1 + $0x2458] sm:$0xff] }
 0x53c   :  { %v1201_v55 = vld [vmem:[%s19707_s1 + $0x2478] sm:$0xff]  ;;  %v13616_v27 = vcombine.high %v1196_v57, %v1200_v22  ;;  %v13615_v1 = vcombine.low %v1196_v57, %v1200_v22  ;;  %v1248_v36 = vld [vmem:[%s19707_s1 + $0x25f0] sm:$0xff] }
 0x53d   :  { %v13618_v45 = vcombine.high %v1197_v9, %v1201_v55  ;;  %v13617_v21 = vcombine.low %v1197_v9, %v1201_v55  ;;  %v13664_v57 = vcombine.high %v1244_v63, %v1248_v36  ;;  %v1252_v9 = vld [vmem:[%s19707_s1 + $0x2610] sm:$0xff] }
 0x53e   :  { %10990 = vmatpush1.bf16.msra.mxu0 %v13559_v40  ;;  %11523 = vmatpush1.bf16.msra.mxu1 %v13561_v41  ;;  %v1204_v40 = vld [vmem:[%s19707_s1 + $0x2490] sm:$0xff] }
 0x53f   :  { %10991 = vmatprep.subr.bf16.mxu0 %v13568_v42  ;;  %11524 = vmatprep.subr.bf16.mxu1 %v13570_v44  ;;  %v1208_v41 = vld [vmem:[%s19707_s1 + $0x24b0] sm:$0xff]  ;;  %v1205_v42 = vld [vmem:[%s19707_s1 + $0x2498] sm:$0xff] }
 0x540   :  { %v1209_v44 = vld [vmem:[%s19707_s1 + $0x24b8] sm:$0xff]  ;;  %v13624_v31 = vcombine.high %v1204_v40, %v1208_v41  ;;  %v1256_v55 = vld [vmem:[%s19707_s1 + $0x2630] sm:$0xff] }
 0x541   :  { %v13626_v47 = vcombine.high %v1205_v42, %v1209_v44  ;;  %v13625_v56 = vcombine.low %v1205_v42, %v1209_v44  ;;  %v1260_v42 = vld [vmem:[%s19707_s1 + $0x2650] sm:$0xff] }
 0x542   :  { %10992 = vmatpush1.bf16.msra.mxu0 %v13567_v51  ;;  %11525 = vmatpush1.bf16.msra.mxu1 %v13569_v18  ;;  %v1212_v51 = vld [vmem:[%s19707_s1 + $0x24d0] sm:$0xff] }
 0x543   :  { %10993 = vmatprep.subr.bf16.mxu0 %v13576_v19  ;;  %11526 = vmatprep.subr.bf16.mxu1 %v13578_v52  ;;  %v1216_v18 = vld [vmem:[%s19707_s1 + $0x24f0] sm:$0xff]  ;;  %v1217_v19 = vld [vmem:[%s19707_s1 + $0x24f8] sm:$0xff]  ;;  %v13623_v52 = vcombine.low %v1204_v40, %v1208_v41  ;;  %v13672_v40 = vcombine.high %v1252_v9, %v1256_v55 }
 0x544   :  { %v13632_v3 = vcombine.high %v1212_v51, %v1216_v18  ;;  %v1264_v44 = vld [vmem:[%s19707_s1 + $0x2670] sm:$0xff] }
 0x546   :  { %10994 = vmatpush1.bf16.msra.mxu0 %v13575_v48  ;;  %11527 = vmatpush1.bf16.msra.mxu1 %v13577_v2  ;;  %v1224_v48 = vld [vmem:[%s19707_s1 + $0x2530] sm:$0xff]  ;;  %v1225_v2 = vld [vmem:[%s19707_s1 + $0x2538] sm:$0xff] }
 0x547   :  { %10995 = vmatprep.subr.bf16.mxu0 %v13584_v30  ;;  %11528 = vmatprep.subr.bf16.mxu1 %v13586_v4  ;;  %v13631_v30 = vcombine.low %v1212_v51, %v1216_v18  ;;  %v13640_v5 = vcombine.high %v1220_v0, %v1224_v48  ;;  %v13680_v51 = vcombine.high %v1260_v42, %v1264_v44 }
 0x54a   :  { %10996 = vmatpush1.bf16.msra.mxu0 %v13583_v13  ;;  %11529 = vmatpush1.bf16.msra.mxu1 %v13585_v14  ;;  %v1229_v13 = vld [vmem:[%s19707_s1 + $0x2558] sm:$0xff] }
 0x54b   :  { %10997 = vmatprep.subr.bf16.mxu0 %v13592_v20  ;;  %11530 = vmatprep.subr.bf16.mxu1 %v13594_v61  ;;  %v1233_v14 = vld [vmem:[%s19707_s1 + $0x2578] sm:$0xff]  ;;  %v13639_v20 = vcombine.low %v1220_v0, %v1224_v48 }
 0x54c   :  { %v13650_v24 = vcombine.high %v1229_v13, %v1233_v14 }
 0x54e   :  { %10998 = vmatpush1.bf16.msra.mxu0 %v13591_v15  ;;  %11531 = vmatpush1.bf16.msra.mxu1 %v13593_v28  ;;  %v1237_v15 = vld [vmem:[%s19707_s1 + $0x2598] sm:$0xff] }
 0x54f   :  { %10999 = vmatprep.subr.bf16.mxu0 %v13600_v29  ;;  %11532 = vmatprep.subr.bf16.mxu1 %v13602_v32  ;;  %v1241_v28 = vld [vmem:[%s19707_s1 + $0x25b8] sm:$0xff]  ;;  %v13647_v29 = vcombine.low %v1228_v7, %v1232_v11  ;;  %v13649_v32 = vcombine.low %v1229_v13, %v1233_v14  ;;  %v1284_v13 = vld [vmem:[%s19707_s1 + $0x2710] sm:$0xff] }
 0x550   :  { %v13658_v33 = vcombine.high %v1237_v15, %v1241_v28  ;;  %v1288_v14 = vld [vmem:[%s19707_s1 + $0x2730] sm:$0xff] }
 0x552   :  { %11000 = vmatpush1.bf16.msra.mxu0 %v13599_v34  ;;  %11533 = vmatpush1.bf16.msra.mxu1 %v13601_v16  ;;  %v1245_v34 = vld [vmem:[%s19707_s1 + $0x25d8] sm:$0xff] }
 0x553   :  { %11010 = vmatprep.subr.bf16.mxu0 %v13608_v35  ;;  %11543 = vmatprep.subr.bf16.mxu1 %v13610_v12  ;;  %v1249_v16 = vld [vmem:[%s19707_s1 + $0x25f8] sm:$0xff]  ;;  %v13655_v35 = vcombine.low %v1236_v26, %v1240_v49  ;;  %v13657_v12 = vcombine.low %v1237_v15, %v1241_v28  ;;  %v13704_v26 = vcombine.high %v1284_v13, %v1288_v14  ;;  %v1292_v15 = vld [vmem:[%s19707_s1 + $0x2750] sm:$0xff] }
 0x554   :  { %v13666_v22 = vcombine.high %v1245_v34, %v1249_v16  ;;  %v1296_v28 = vld [vmem:[%s19707_s1 + $0x2770] sm:$0xff] }
 0x555   :  { %11002 = vmatmul.mubr.bf16.vlgmr.msra.gmra.mrb[4].mxu0 %v16397_v50  ;;  %11535 = vmatmul.mubr.bf16.vlgmr.msra.gmra.mrb[4].mxu1 %v16397_v50  ;;  %v1213_v50 = vld [vmem:[%s19707_s1 + $0x24d8] sm:$0xff] }
 0x556   :  { %11011 = vmatpush1.bf16.msra.mxu0 %v13607_v37  ;;  %11544 = vmatpush1.bf16.msra.mxu1 %v13609_v38  ;;  %v13634_v39 = vcombine.high %v1213_v50, %v1217_v19  ;;  %v13633_v4 = vcombine.low %v1213_v50, %v1217_v19  ;;  %v1253_v37 = vld [vmem:[%s19707_s1 + $0x2618] sm:$0xff]  ;;  %v1268_v50 = vld [vmem:[%s19707_s1 + $0x2690] sm:$0xff] }
 0x557   :  { %11012 = vmatprep.subr.bf16.mxu0 %v13616_v27  ;;  %11545 = vmatprep.subr.bf16.mxu1 %v13618_v45  ;;  %v1257_v38 = vld [vmem:[%s19707_s1 + $0x2638] sm:$0xff]  ;;  %v13663_v27 = vcombine.low %v1244_v63, %v1248_v36  ;;  %v13665_v45 = vcombine.low %v1245_v34, %v1249_v16  ;;  %v1272_v19 = vld [vmem:[%s19707_s1 + $0x26b0] sm:$0xff]  ;;  %v13712_v63 = vcombine.high %v1292_v15, %v1296_v28 }
 0x558   :  { %11042 = vmatprep.mubr.bf16.mxu0 %v16418_v62  ;;  %11575 = vmatprep.mubr.bf16.mxu1 %v16418_v62  ;;  %v1221_v62 = vld [vmem:[%s19707_s1 + $0x2518] sm:$0xff]  ;;  %v13674_v41 = vcombine.high %v1253_v37, %v1257_v38  ;;  %v13688_v0 = vcombine.high %v1268_v50, %v1272_v19  ;;  %v1300_v34 = vld [vmem:[%s19707_s1 + $0x2790] sm:$0xff] }
 0x559   :  { %v13642_v6 = vcombine.high %v1221_v62, %v1225_v2  ;;  %v13641_v61 = vcombine.low %v1221_v62, %v1225_v2  ;;  %v1276_v62 = vld [vmem:[%s19707_s1 + $0x26d0] sm:$0xff] }
 0x55a   :  { %11013 = vmatpush1.bf16.msra.mxu0 %v13615_v1  ;;  %11546 = vmatpush1.bf16.msra.mxu1 %v13617_v21  ;;  %v1261_v1 = vld [vmem:[%s19707_s1 + $0x2658] sm:$0xff]  ;;  %v1280_v2 = vld [vmem:[%s19707_s1 + $0x26f0] sm:$0xff] }
 0x55b   :  { %11014 = vmatprep.subr.bf16.mxu0 %v13624_v31  ;;  %11547 = vmatprep.subr.bf16.mxu1 %v13626_v47  ;;  %v1265_v21 = vld [vmem:[%s19707_s1 + $0x2678] sm:$0xff]  ;;  %v13671_v31 = vcombine.low %v1252_v9, %v1256_v55  ;;  %v13673_v47 = vcombine.low %v1253_v37, %v1257_v38  ;;  %v13696_v7 = vcombine.high %v1276_v62, %v1280_v2  ;;  %v1304_v16 = vld [vmem:[%s19707_s1 + $0x27b0] sm:$0xff] }
 0x55c   :  { %v13682_v18 = vcombine.high %v1261_v1, %v1265_v21  ;;  %v13720_v9 = vcombine.high %v1300_v34, %v1304_v16  ;;  %v1308_v37 = vld [vmem:[%s19707_s1 + $0x27d0] sm:$0xff] }
 0x55d   :  { %v1312_v38 = vld [vmem:[%s19707_s1 + $0x27f0] sm:$0xff] }
 0x55e   :  { %11015 = vmatpush1.bf16.msra.mxu0 %v13623_v52  ;;  %11548 = vmatpush1.bf16.msra.mxu1 %v13625_v56  ;;  %v1269_v52 = vld [vmem:[%s19707_s1 + $0x2698] sm:$0xff] }
 0x55f   :  { %11016 = vmatprep.subr.bf16.mxu0 %v13632_v3  ;;  %11549 = vmatprep.subr.bf16.mxu1 %v13634_v39  ;;  %v1273_v56 = vld [vmem:[%s19707_s1 + $0x26b8] sm:$0xff]  ;;  %v13679_v3 = vcombine.low %v1260_v42, %v1264_v44  ;;  %v13681_v39 = vcombine.low %v1261_v1, %v1265_v21  ;;  %v13728_v42 = vcombine.high %v1308_v37, %v1312_v38  ;;  %v1316_v1 = vld [vmem:[%s19707_s1 + $0x2810] sm:$0xff] }
 0x560   :  { %v13690_v48 = vcombine.high %v1269_v52, %v1273_v56  ;;  %v1320_v21 = vld [vmem:[%s19707_s1 + $0x2830] sm:$0xff] }
 0x562   :  { %11017 = vmatpush1.bf16.msra.mxu0 %v13631_v30  ;;  %11550 = vmatpush1.bf16.msra.mxu1 %v13633_v4  ;;  %v1277_v30 = vld [vmem:[%s19707_s1 + $0x26d8] sm:$0xff] }
 0x563   :  { %11018 = vmatprep.subr.bf16.mxu0 %v13640_v5  ;;  %11551 = vmatprep.subr.bf16.mxu1 %v13642_v6  ;;  %v1281_v4 = vld [vmem:[%s19707_s1 + $0x26f8] sm:$0xff]  ;;  %v13687_v5 = vcombine.low %v1268_v50, %v1272_v19  ;;  %v13689_v6 = vcombine.low %v1269_v52, %v1273_v56  ;;  %v13736_v50 = vcombine.high %v1316_v1, %v1320_v21  ;;  %v1324_v52 = vld [vmem:[%s19707_s1 + $0x2850] sm:$0xff] }
 0x564   :  { %v13698_v11 = vcombine.high %v1277_v30, %v1281_v4  ;;  %v1328_v56 = vld [vmem:[%s19707_s1 + $0x2870] sm:$0xff] }
 0x566   :  { %11019 = vmatpush1.bf16.msra.mxu0 %v13639_v20  ;;  %11552 = vmatpush1.bf16.msra.mxu1 %v13641_v61  ;;  %v1285_v20 = vld [vmem:[%s19707_s1 + $0x2718] sm:$0xff] }
 0x567   :  { %11020 = vmatprep.subr.bf16.mxu0 %v13648_v46  ;;  %11553 = vmatprep.subr.bf16.mxu1 %v13650_v24  ;;  %v1289_v61 = vld [vmem:[%s19707_s1 + $0x2738] sm:$0xff]  ;;  %v13695_v46 = vcombine.low %v1276_v62, %v1280_v2  ;;  %v13697_v24 = vcombine.low %v1277_v30, %v1281_v4  ;;  %v13744_v62 = vcombine.high %v1324_v52, %v1328_v56  ;;  %v1332_v30 = vld [vmem:[%s19707_s1 + $0x2890] sm:$0xff] }
 0x568   :  { %v13706_v49 = vcombine.high %v1285_v20, %v1289_v61  ;;  %v1336_v4 = vld [vmem:[%s19707_s1 + $0x28b0] sm:$0xff] }
 0x56a   :  { %11021 = vmatpush1.bf16.msra.mxu0 %v13647_v29  ;;  %11554 = vmatpush1.bf16.msra.mxu1 %v13649_v32  ;;  %v1293_v29 = vld [vmem:[%s19707_s1 + $0x2758] sm:$0xff] }
 0x56b   :  { %11022 = vmatprep.subr.bf16.mxu0 %v13656_v58  ;;  %11555 = vmatprep.subr.bf16.mxu1 %v13658_v33  ;;  %v1297_v32 = vld [vmem:[%s19707_s1 + $0x2778] sm:$0xff]  ;;  %v13703_v58 = vcombine.low %v1284_v13, %v1288_v14  ;;  %v13705_v33 = vcombine.low %v1285_v20, %v1289_v61  ;;  %v13752_v13 = vcombine.high %v1332_v30, %v1336_v4  ;;  %v1340_v20 = vld [vmem:[%s19707_s1 + $0x28d0] sm:$0xff] }
 0x56c   :  { %v13714_v36 = vcombine.high %v1293_v29, %v1297_v32  ;;  %v1344_v61 = vld [vmem:[%s19707_s1 + $0x28f0] sm:$0xff] }
 0x56e   :  { %11023 = vmatpush1.bf16.msra.mxu0 %v13655_v35  ;;  %11556 = vmatpush1.bf16.msra.mxu1 %v13657_v12  ;;  %v1301_v35 = vld [vmem:[%s19707_s1 + $0x2798] sm:$0xff] }
 0x56f   :  { %11024 = vmatprep.subr.bf16.mxu0 %v13664_v57  ;;  %11557 = vmatprep.subr.bf16.mxu1 %v13666_v22  ;;  %v1305_v12 = vld [vmem:[%s19707_s1 + $0x27b8] sm:$0xff]  ;;  %v13711_v57 = vcombine.low %v1292_v15, %v1296_v28  ;;  %v13713_v22 = vcombine.low %v1293_v29, %v1297_v32  ;;  %v1348_v28 = vld [vmem:[%s19707_s1 + $0x2910] sm:$0xff] }
 0x570   :  { %v13722_v55 = vcombine.high %v1301_v35, %v1305_v12  ;;  %v1352_v29 = vld [vmem:[%s19707_s1 + $0x2930] sm:$0xff]  ;;  %v1353_v32 = vld [vmem:[%s19707_s1 + $0x2938] sm:$0xff] }
 0x572   :  { %11025 = vmatpush1.bf16.msra.mxu0 %v13663_v27  ;;  %11558 = vmatpush1.bf16.msra.mxu1 %v13665_v45  ;;  %v1309_v27 = vld [vmem:[%s19707_s1 + $0x27d8] sm:$0xff] }
 0x573   :  { %11026 = vmatprep.subr.bf16.mxu0 %v13672_v40  ;;  %11559 = vmatprep.subr.bf16.mxu1 %v13674_v41  ;;  %v1313_v45 = vld [vmem:[%s19707_s1 + $0x27f8] sm:$0xff]  ;;  %v13719_v40 = vcombine.low %v1300_v34, %v1304_v16  ;;  %v13721_v41 = vcombine.low %v1301_v35, %v1305_v12  ;;  %v1356_v34 = vld [vmem:[%s19707_s1 + $0x2950] sm:$0xff] }
 0x574   :  { %v13730_v44 = vcombine.high %v1309_v27, %v1313_v45  ;;  %v1360_v16 = vld [vmem:[%s19707_s1 + $0x2970] sm:$0xff]  ;;  %v1357_v35 = vld [vmem:[%s19707_s1 + $0x2958] sm:$0xff] }
 0x575   :  { %v1361_v12 = vld [vmem:[%s19707_s1 + $0x2978] sm:$0xff] }
 0x576   :  { %11027 = vmatpush1.bf16.msra.mxu0 %v13671_v31  ;;  %11560 = vmatpush1.bf16.msra.mxu1 %v13673_v47  ;;  %v1317_v31 = vld [vmem:[%s19707_s1 + $0x2818] sm:$0xff] }
 0x577   :  { %11028 = vmatprep.subr.bf16.mxu0 %v13680_v51  ;;  %11561 = vmatprep.subr.bf16.mxu1 %v13682_v18  ;;  %v1321_v47 = vld [vmem:[%s19707_s1 + $0x2838] sm:$0xff]  ;;  %v13727_v51 = vcombine.low %v1308_v37, %v1312_v38  ;;  %v13729_v18 = vcombine.low %v1309_v27, %v1313_v45  ;;  %v1368_v37 = vld [vmem:[%s19707_s1 + $0x29b0] sm:$0xff]  ;;  %v13778_v38 = vcombine.high %v1357_v35, %v1361_v12 }
 0x578   :  { %v13738_v19 = vcombine.high %v1317_v31, %v1321_v47  ;;  %v1365_v27 = vld [vmem:[%s19707_s1 + $0x2998] sm:$0xff] }
 0x579   :  { %v1369_v45 = vld [vmem:[%s19707_s1 + $0x29b8] sm:$0xff] }
 0x57a   :  { %11029 = vmatpush1.bf16.msra.mxu0 %v13679_v3  ;;  %11562 = vmatpush1.bf16.msra.mxu1 %v13681_v39  ;;  %v1325_v3 = vld [vmem:[%s19707_s1 + $0x2858] sm:$0xff] }
 0x57b   :  { %11030 = vmatprep.subr.bf16.mxu0 %v13688_v0  ;;  %11563 = vmatprep.subr.bf16.mxu1 %v13690_v48  ;;  %v1329_v39 = vld [vmem:[%s19707_s1 + $0x2878] sm:$0xff]  ;;  %v13735_v0 = vcombine.low %v1316_v1, %v1320_v21  ;;  %v13737_v48 = vcombine.low %v1317_v31, %v1321_v47  ;;  %v1376_v1 = vld [vmem:[%s19707_s1 + $0x29f0] sm:$0xff]  ;;  %v13786_v21 = vcombine.high %v1365_v27, %v1369_v45 }
 0x57c   :  { %v13746_v2 = vcombine.high %v1325_v3, %v1329_v39  ;;  %v1373_v31 = vld [vmem:[%s19707_s1 + $0x29d8] sm:$0xff] }
 0x57d   :  { %v1377_v47 = vld [vmem:[%s19707_s1 + $0x29f8] sm:$0xff] }
 0x57e   :  { %11031 = vmatpush1.bf16.msra.mxu0 %v13687_v5  ;;  %11564 = vmatpush1.bf16.msra.mxu1 %v13689_v6  ;;  %v1333_v5 = vld [vmem:[%s19707_s1 + $0x2898] sm:$0xff] }
 0x57f   :  { %11032 = vmatprep.subr.bf16.mxu0 %v13696_v7  ;;  %11565 = vmatprep.subr.bf16.mxu1 %v13698_v11  ;;  %v1337_v6 = vld [vmem:[%s19707_s1 + $0x28b8] sm:$0xff]  ;;  %v13743_v7 = vcombine.low %v1324_v52, %v1328_v56  ;;  %v13745_v11 = vcombine.low %v1325_v3, %v1329_v39  ;;  %v1384_v52 = vld [vmem:[%s19707_s1 + $0x2a30] sm:$0xff]  ;;  %v13794_v56 = vcombine.high %v1373_v31, %v1377_v47 }
 0x580   :  { %v13754_v14 = vcombine.high %v1333_v5, %v1337_v6  ;;  %v1381_v3 = vld [vmem:[%s19707_s1 + $0x2a18] sm:$0xff] }
 0x581   :  { %v1385_v39 = vld [vmem:[%s19707_s1 + $0x2a38] sm:$0xff] }
 0x582   :  { %11033 = vmatpush1.bf16.msra.mxu0 %v13695_v46  ;;  %11566 = vmatpush1.bf16.msra.mxu1 %v13697_v24  ;;  %v1345_v46 = vld [vmem:[%s19707_s1 + $0x28f8] sm:$0xff]  ;;  %v13751_v24 = vcombine.low %v1332_v30, %v1336_v4  ;;  %v1392_v30 = vld [vmem:[%s19707_s1 + $0x2a70] sm:$0xff]  ;;  %v13802_v4 = vcombine.high %v1381_v3, %v1385_v39 }
 0x583   :  { %11034 = vmatprep.subr.bf16.mxu0 %v13704_v26  ;;  %11567 = vmatprep.subr.bf16.mxu1 %v13706_v49  ;;  %v13753_v26 = vcombine.low %v1333_v5, %v1337_v6  ;;  %v13760_v49 = vcombine.high %v1340_v20, %v1344_v61  ;;  %v1389_v5 = vld [vmem:[%s19707_s1 + $0x2a58] sm:$0xff] }
 0x584   :  { %v1393_v6 = vld [vmem:[%s19707_s1 + $0x2a78] sm:$0xff] }
 0x586   :  { %11035 = vmatpush1.bf16.msra.mxu0 %v13703_v58  ;;  %11568 = vmatpush1.bf16.msra.mxu1 %v13705_v33  ;;  %v13759_v58 = vcombine.low %v1340_v20, %v1344_v61  ;;  %v1400_v20 = vld [vmem:[%s19707_s1 + $0x2ab0] sm:$0xff]  ;;  %v13810_v61 = vcombine.high %v1389_v5, %v1393_v6 }
 0x587   :  { %11036 = vmatprep.subr.bf16.mxu0 %v13712_v63  ;;  %11569 = vmatprep.subr.bf16.mxu1 %v13714_v36  ;;  %v13768_v63 = vcombine.high %v1348_v28, %v1352_v29 }
 0x58a   :  { %11037 = vmatpush1.bf16.msra.mxu0 %v13711_v57  ;;  %11570 = vmatpush1.bf16.msra.mxu1 %v13713_v22  ;;  %v13767_v57 = vcombine.low %v1348_v28, %v1352_v29  ;;  %v1408_v28 = vld [vmem:[%s19707_s1 + $0x2af0] sm:$0xff] }
 0x58b   :  { %11038 = vmatprep.subr.bf16.mxu0 %v13720_v9  ;;  %11571 = vmatprep.subr.bf16.mxu1 %v13722_v55  ;;  %v13776_v9 = vcombine.high %v1356_v34, %v1360_v16  ;;  %v1364_v55 = vld [vmem:[%s19707_s1 + $0x2990] sm:$0xff] }
 0x58e   :  { %11039 = vmatpush1.bf16.msra.mxu0 %v13719_v40  ;;  %11572 = vmatpush1.bf16.msra.mxu1 %v13721_v41  ;;  %v13775_v40 = vcombine.low %v1356_v34, %v1360_v16  ;;  %v1372_v41 = vld [vmem:[%s19707_s1 + $0x29d0] sm:$0xff] }
 0x58f   :  { %11040 = vmatprep.subr.bf16.mxu0 %v13728_v42  ;;  %11573 = vmatprep.subr.bf16.mxu1 %v13730_v44  ;;  %v13777_v42 = vcombine.low %v1357_v35, %v1361_v12  ;;  %v13784_v44 = vcombine.high %v1364_v55, %v1368_v37  ;;  %v1416_v34 = vld [vmem:[%s19707_s1 + $0x2b30] sm:$0xff]  ;;  %v1413_v35 = vld [vmem:[%s19707_s1 + $0x2b18] sm:$0xff] }
 0x590   :  { %v1417_v12 = vld [vmem:[%s19707_s1 + $0x2b38] sm:$0xff] }
 0x592   :  { %11041 = vmatpush1.bf16.msra.mxu0 %v13727_v51  ;;  %11574 = vmatpush1.bf16.msra.mxu1 %v13729_v18  ;;  %v13783_v51 = vcombine.low %v1364_v55, %v1368_v37  ;;  %v1380_v18 = vld [vmem:[%s19707_s1 + $0x2a10] sm:$0xff] }
 0x593   :  { %11051 = vmatprep.subr.bf16.mxu0 %v13736_v50  ;;  %11584 = vmatprep.subr.bf16.mxu1 %v13738_v19  ;;  %v13785_v50 = vcombine.low %v1365_v27, %v1369_v45  ;;  %v13792_v19 = vcombine.high %v1372_v41, %v1376_v1  ;;  %v1424_v37 = vld [vmem:[%s19707_s1 + $0x2b70] sm:$0xff]  ;;  %v1421_v27 = vld [vmem:[%s19707_s1 + $0x2b58] sm:$0xff] }
 0x594   :  { %v1425_v45 = vld [vmem:[%s19707_s1 + $0x2b78] sm:$0xff] }
 0x595   :  { %11043 = vmatmul.mubr.bf16.vlgmr.msra.gmra.mrb[4].mxu0 %v16606_v43  ;;  %11576 = vmatmul.mubr.bf16.vlgmr.msra.gmra.mrb[4].mxu1 %v16606_v43  ;;  %v1341_v43 = vld [vmem:[%s19707_s1 + $0x28d8] sm:$0xff] }
 0x596   :  { %11052 = vmatpush1.bf16.msra.mxu0 %v13735_v0  ;;  %11585 = vmatpush1.bf16.msra.mxu1 %v13737_v48  ;;  %v13762_v15 = vcombine.high %v1341_v43, %v1345_v46  ;;  %v13761_v33 = vcombine.low %v1341_v43, %v1345_v46  ;;  %v13791_v0 = vcombine.low %v1372_v41, %v1376_v1  ;;  %v1388_v48 = vld [vmem:[%s19707_s1 + $0x2a50] sm:$0xff]  ;;  %v1397_v43 = vld [vmem:[%s19707_s1 + $0x2a98] sm:$0xff] }
 0x597   :  { %11053 = vmatprep.subr.bf16.mxu0 %v13744_v62  ;;  %11586 = vmatprep.subr.bf16.mxu1 %v13746_v2  ;;  %v13793_v62 = vcombine.low %v1373_v31, %v1377_v47  ;;  %v13800_v2 = vcombine.high %v1380_v18, %v1384_v52  ;;  %v1401_v46 = vld [vmem:[%s19707_s1 + $0x2ab8] sm:$0xff]  ;;  %v1428_v41 = vld [vmem:[%s19707_s1 + $0x2b90] sm:$0xff]  ;;  %v13842_v47 = vcombine.high %v1421_v27, %v1425_v45 }
 0x598   :  { %11083 = vmatprep.mubr.bf16.mxu0 %v16627_v60  ;;  %11616 = vmatprep.mubr.bf16.mxu1 %v16627_v60  ;;  %v1349_v60 = vld [vmem:[%s19707_s1 + $0x2918] sm:$0xff]  ;;  %v13818_v29 = vcombine.high %v1397_v43, %v1401_v46 }
 0x599   :  { %v13770_v36 = vcombine.high %v1349_v60, %v1353_v32  ;;  %v13769_v22 = vcombine.low %v1349_v60, %v1353_v32  ;;  %v1405_v60 = vld [vmem:[%s19707_s1 + $0x2ad8] sm:$0xff] }
 0x59a   :  { %11054 = vmatpush1.bf16.msra.mxu0 %v13743_v7  ;;  %11587 = vmatpush1.bf16.msra.mxu1 %v13745_v11  ;;  %v13799_v7 = vcombine.low %v1380_v18, %v1384_v52  ;;  %v1396_v11 = vld [vmem:[%s19707_s1 + $0x2a90] sm:$0xff]  ;;  %v1409_v32 = vld [vmem:[%s19707_s1 + $0x2af8] sm:$0xff] }
 0x59b   :  { %11055 = vmatprep.subr.bf16.mxu0 %v13752_v13  ;;  %11588 = vmatprep.subr.bf16.mxu1 %v13754_v14  ;;  %v13801_v13 = vcombine.low %v1381_v3, %v1385_v39  ;;  %v13808_v14 = vcombine.high %v1388_v48, %v1392_v30  ;;  %v13826_v16 = vcombine.high %v1405_v60, %v1409_v32  ;;  %v1433_v31 = vld [vmem:[%s19707_s1 + $0x2bb8] sm:$0xff]  ;;  %v1436_v18 = vld [vmem:[%s19707_s1 + $0x2bd0] sm:$0xff] }
 0x59c   :  { %v1440_v52 = vld [vmem:[%s19707_s1 + $0x2bf0] sm:$0xff]  ;;  %v1437_v3 = vld [vmem:[%s19707_s1 + $0x2bd8] sm:$0xff] }
 0x59d   :  { %v1441_v39 = vld [vmem:[%s19707_s1 + $0x2bf8] sm:$0xff] }
 0x59e   :  { %11056 = vmatpush1.bf16.msra.mxu0 %v13751_v24  ;;  %11589 = vmatpush1.bf16.msra.mxu1 %v13753_v26  ;;  %v13807_v24 = vcombine.low %v1388_v48, %v1392_v30  ;;  %v1404_v26 = vld [vmem:[%s19707_s1 + $0x2ad0] sm:$0xff] }
 0x59f   :  { %11057 = vmatprep.subr.bf16.mxu0 %v13760_v49  ;;  %11590 = vmatprep.subr.bf16.mxu1 %v13762_v15  ;;  %v13809_v49 = vcombine.low %v1389_v5, %v1393_v6  ;;  %v13816_v15 = vcombine.high %v1396_v11, %v1400_v20  ;;  %v1444_v48 = vld [vmem:[%s19707_s1 + $0x2c10] sm:$0xff]  ;;  %v1445_v5 = vld [vmem:[%s19707_s1 + $0x2c18] sm:$0xff] }
 0x5a0   :  { %v1448_v30 = vld [vmem:[%s19707_s1 + $0x2c30] sm:$0xff]  ;;  %v1449_v6 = vld [vmem:[%s19707_s1 + $0x2c38] sm:$0xff] }
 0x5a2   :  { %11058 = vmatpush1.bf16.msra.mxu0 %v13759_v58  ;;  %11591 = vmatpush1.bf16.msra.mxu1 %v13761_v33  ;;  %v13815_v58 = vcombine.low %v1396_v11, %v1400_v20  ;;  %v1412_v33 = vld [vmem:[%s19707_s1 + $0x2b10] sm:$0xff] }
 0x5a3   :  { %11059 = vmatprep.subr.bf16.mxu0 %v13768_v63  ;;  %11592 = vmatprep.subr.bf16.mxu1 %v13770_v36  ;;  %v13817_v63 = vcombine.low %v1397_v43, %v1401_v46  ;;  %v13824_v36 = vcombine.high %v1404_v26, %v1408_v28  ;;  %v13832_v55 = vcombine.high %v1412_v33, %v1416_v34  ;;  %v1452_v11 = vld [vmem:[%s19707_s1 + $0x2c50] sm:$0xff]  ;;  %v1453_v43 = vld [vmem:[%s19707_s1 + $0x2c58] sm:$0xff] }
 0x5a4   :  { %v1456_v20 = vld [vmem:[%s19707_s1 + $0x2c70] sm:$0xff]  ;;  %v1457_v46 = vld [vmem:[%s19707_s1 + $0x2c78] sm:$0xff] }
 0x5a6   :  { %11060 = vmatpush1.bf16.msra.mxu0 %v13767_v57  ;;  %11593 = vmatpush1.bf16.msra.mxu1 %v13769_v22  ;;  %v13823_v57 = vcombine.low %v1404_v26, %v1408_v28  ;;  %v1420_v22 = vld [vmem:[%s19707_s1 + $0x2b50] sm:$0xff] }
 0x5a7   :  { %11061 = vmatprep.subr.bf16.mxu0 %v13776_v9  ;;  %11594 = vmatprep.subr.bf16.mxu1 %v13778_v38  ;;  %v13825_v9 = vcombine.low %v1405_v60, %v1409_v32  ;;  %v13834_v38 = vcombine.high %v1413_v35, %v1417_v12  ;;  %v13840_v1 = vcombine.high %v1420_v22, %v1424_v37  ;;  %v1460_v26 = vld [vmem:[%s19707_s1 + $0x2c90] sm:$0xff]  ;;  %v1461_v60 = vld [vmem:[%s19707_s1 + $0x2c98] sm:$0xff] }
 0x5a8   :  { %v1464_v28 = vld [vmem:[%s19707_s1 + $0x2cb0] sm:$0xff]  ;;  %v1465_v32 = vld [vmem:[%s19707_s1 + $0x2cb8] sm:$0xff] }
 0x5aa   :  { %11062 = vmatpush1.bf16.msra.mxu0 %v13775_v40  ;;  %11595 = vmatpush1.bf16.msra.mxu1 %v13777_v42  ;;  %v13831_v40 = vcombine.low %v1412_v33, %v1416_v34  ;;  %v1432_v42 = vld [vmem:[%s19707_s1 + $0x2bb0] sm:$0xff] }
 0x5ab   :  { %11063 = vmatprep.subr.bf16.mxu0 %v13784_v44  ;;  %11596 = vmatprep.subr.bf16.mxu1 %v13786_v21  ;;  %v13833_v44 = vcombine.low %v1413_v35, %v1417_v12  ;;  %v1429_v21 = vld [vmem:[%s19707_s1 + $0x2b98] sm:$0xff]  ;;  %v1468_v33 = vld [vmem:[%s19707_s1 + $0x2cd0] sm:$0xff]  ;;  %v13879_v12 = vcombine.low %v1460_v26, %v1464_v28 }
 0x5ac   :  { %v1472_v34 = vld [vmem:[%s19707_s1 + $0x2cf0] sm:$0xff]  ;;  %v1469_v35 = vld [vmem:[%s19707_s1 + $0x2cd8] sm:$0xff] }
 0x5ae   :  { %11064 = vmatpush1.bf16.msra.mxu0 %v13783_v51  ;;  %11597 = vmatpush1.bf16.msra.mxu1 %v13785_v50  ;;  %v13839_v51 = vcombine.low %v1420_v22, %v1424_v37  ;;  %v13841_v50 = vcombine.low %v1421_v27, %v1425_v45  ;;  %v1480_v22 = vld [vmem:[%s19707_s1 + $0x2d30] sm:$0xff]  ;;  %v1477_v37 = vld [vmem:[%s19707_s1 + $0x2d18] sm:$0xff]  ;;  %v13887_v27 = vcombine.low %v1468_v33, %v1472_v34 }
 0x5af   :  { %11065 = vmatprep.subr.bf16.mxu0 %v13792_v19  ;;  %11598 = vmatprep.subr.bf16.mxu1 %v13794_v56  ;;  %v13848_v19 = vcombine.high %v1428_v41, %v1432_v42  ;;  %v13850_v56 = vcombine.high %v1429_v21, %v1433_v31  ;;  %v1484_v45 = vld [vmem:[%s19707_s1 + $0x2d50] sm:$0xff] }
 0x5b2   :  { %11066 = vmatpush1.bf16.msra.mxu0 %v13791_v0  ;;  %11599 = vmatpush1.bf16.msra.mxu1 %v13793_v62  ;;  %v13847_v0 = vcombine.low %v1428_v41, %v1432_v42  ;;  %v13849_v62 = vcombine.low %v1429_v21, %v1433_v31  ;;  %v1489_v21 = vld [vmem:[%s19707_s1 + $0x2d78] sm:$0xff] }
 0x5b3   :  { %11067 = vmatprep.subr.bf16.mxu0 %v13800_v2  ;;  %11600 = vmatprep.subr.bf16.mxu1 %v13802_v4  ;;  %v13856_v2 = vcombine.high %v1436_v18, %v1440_v52  ;;  %v13858_v4 = vcombine.high %v1437_v3, %v1441_v39 }
 0x5b6   :  { %11068 = vmatpush1.bf16.msra.mxu0 %v13799_v7  ;;  %11601 = vmatpush1.bf16.msra.mxu1 %v13801_v13  ;;  %v13855_v7 = vcombine.low %v1436_v18, %v1440_v52  ;;  %v13857_v13 = vcombine.low %v1437_v3, %v1441_v39  ;;  %v1493_v52 = vld [vmem:[%s19707_s1 + $0x2d98] sm:$0xff] }
 0x5b7   :  { %11069 = vmatprep.subr.bf16.mxu0 %v13808_v14  ;;  %11602 = vmatprep.subr.bf16.mxu1 %v13810_v61  ;;  %v13864_v14 = vcombine.high %v1444_v48, %v1448_v30  ;;  %v13866_v61 = vcombine.high %v1445_v5, %v1449_v6 }
 0x5ba   :  { %11070 = vmatpush1.bf16.msra.mxu0 %v13807_v24  ;;  %11603 = vmatpush1.bf16.msra.mxu1 %v13809_v49  ;;  %v13863_v24 = vcombine.low %v1444_v48, %v1448_v30  ;;  %v13865_v49 = vcombine.low %v1445_v5, %v1449_v6  ;;  %v1501_v30 = vld [vmem:[%s19707_s1 + $0x2dd8] sm:$0xff] }
 0x5bb   :  { %11071 = vmatprep.subr.bf16.mxu0 %v13816_v15  ;;  %11604 = vmatprep.subr.bf16.mxu1 %v13818_v29  ;;  %v13872_v15 = vcombine.high %v1452_v11, %v1456_v20  ;;  %v13874_v29 = vcombine.high %v1453_v43, %v1457_v46 }
 0x5be   :  { %11072 = vmatpush1.bf16.msra.mxu0 %v13815_v58  ;;  %11605 = vmatpush1.bf16.msra.mxu1 %v13817_v63  ;;  %v13871_v58 = vcombine.low %v1452_v11, %v1456_v20  ;;  %v13873_v63 = vcombine.low %v1453_v43, %v1457_v46  ;;  %v1509_v20 = vld [vmem:[%s19707_s1 + $0x2e18] sm:$0xff] }
 0x5bf   :  { %11073 = vmatprep.subr.bf16.mxu0 %v13824_v36  ;;  %11606 = vmatprep.subr.bf16.mxu1 %v13826_v16  ;;  %v13880_v36 = vcombine.high %v1460_v26, %v1464_v28  ;;  %v13882_v16 = vcombine.high %v1461_v60, %v1465_v32  ;;  %v1517_v28 = vld [vmem:[%s19707_s1 + $0x2e58] sm:$0xff] }
 0x5c2   :  { %11074 = vmatpush1.bf16.msra.mxu0 %v13823_v57  ;;  %11607 = vmatpush1.bf16.msra.mxu1 %v13825_v9  ;;  %v1476_v57 = vld [vmem:[%s19707_s1 + $0x2d10] sm:$0xff]  ;;  %v13881_v9 = vcombine.low %v1461_v60, %v1465_v32 }
 0x5c3   :  { %11075 = vmatprep.subr.bf16.mxu0 %v13832_v55  ;;  %11608 = vmatprep.subr.bf16.mxu1 %v13834_v38  ;;  %v13888_v55 = vcombine.high %v1468_v33, %v1472_v34  ;;  %v13896_v42 = vcombine.high %v1476_v57, %v1480_v22  ;;  %v13895_v31 = vcombine.low %v1476_v57, %v1480_v22  ;;  %v1525_v34 = vld [vmem:[%s19707_s1 + $0x2e98] sm:$0xff]  ;;  %v1532_v22 = vld [vmem:[%s19707_s1 + $0x2ed0] sm:$0xff] }
 0x5c6   :  { %11076 = vmatpush1.bf16.msra.mxu0 %v13831_v40  ;;  %11609 = vmatpush1.bf16.msra.mxu1 %v13833_v44  ;;  %v1488_v40 = vld [vmem:[%s19707_s1 + $0x2d70] sm:$0xff] }
 0x5c7   :  { %11077 = vmatprep.subr.bf16.mxu0 %v13840_v1  ;;  %11610 = vmatprep.subr.bf16.mxu1 %v13842_v47  ;;  %v1485_v1 = vld [vmem:[%s19707_s1 + $0x2d58] sm:$0xff]  ;;  %v13903_v3 = vcombine.low %v1484_v45, %v1488_v40 }
 0x5c8   :  { %v13906_v18 = vcombine.high %v1485_v1, %v1489_v21  ;;  %v13905_v39 = vcombine.low %v1485_v1, %v1489_v21 }
 0x5ca   :  { %11078 = vmatpush1.bf16.msra.mxu0 %v13839_v51  ;;  %11611 = vmatpush1.bf16.msra.mxu1 %v13841_v50  ;;  %v13904_v51 = vcombine.high %v1484_v45, %v1488_v40  ;;  %v1492_v50 = vld [vmem:[%s19707_s1 + $0x2d90] sm:$0xff] }
 0x5cb   :  { %11079 = vmatprep.subr.bf16.mxu0 %v13848_v19  ;;  %11612 = vmatprep.subr.bf16.mxu1 %v13850_v56  ;;  %v1496_v19 = vld [vmem:[%s19707_s1 + $0x2db0] sm:$0xff]  ;;  %v1497_v56 = vld [vmem:[%s19707_s1 + $0x2db8] sm:$0xff] }
 0x5cc   :  { %v13914_v48 = vcombine.high %v1493_v52, %v1497_v56  ;;  %v13911_v5 = vcombine.low %v1492_v50, %v1496_v19  ;;  %v13913_v6 = vcombine.low %v1493_v52, %v1497_v56  ;;  %v1540_v40 = vld [vmem:[%s19707_s1 + $0x2f10] sm:$0xff] }
 0x5ce   :  { %11080 = vmatpush1.bf16.msra.mxu0 %v13847_v0  ;;  %11613 = vmatpush1.bf16.msra.mxu1 %v13849_v62  ;;  %v13912_v0 = vcombine.high %v1492_v50, %v1496_v19  ;;  %v1500_v62 = vld [vmem:[%s19707_s1 + $0x2dd0] sm:$0xff]  ;;  %v1549_v50 = vld [vmem:[%s19707_s1 + $0x2f58] sm:$0xff] }
 0x5cf   :  { %11081 = vmatprep.subr.bf16.mxu0 %v13856_v2  ;;  %11614 = vmatprep.subr.bf16.mxu1 %v13858_v4  ;;  %v1504_v2 = vld [vmem:[%s19707_s1 + $0x2df0] sm:$0xff]  ;;  %v1505_v4 = vld [vmem:[%s19707_s1 + $0x2df8] sm:$0xff] }
 0x5d0   :  { %v13922_v11 = vcombine.high %v1501_v30, %v1505_v4  ;;  %v13919_v43 = vcombine.low %v1500_v62, %v1504_v2  ;;  %v13921_v46 = vcombine.low %v1501_v30, %v1505_v4  ;;  %v1553_v19 = vld [vmem:[%s19707_s1 + $0x2f78] sm:$0xff] }
 0x5d1   :  { %v13969_v4 = vcombine.low %v1549_v50, %v1553_v19 }
 0x5d2   :  { %11082 = vmatpush1.bf16.msra.mxu0 %v13855_v7  ;;  %11615 = vmatpush1.bf16.msra.mxu1 %v13857_v13  ;;  %v13920_v7 = vcombine.high %v1500_v62, %v1504_v2  ;;  %v1508_v13 = vld [vmem:[%s19707_s1 + $0x2e10] sm:$0xff]  ;;  %v1557_v62 = vld [vmem:[%s19707_s1 + $0x2f98] sm:$0xff] }
 0x5d3   :  { %11092 = vmatprep.subr.bf16.mxu0 %v13864_v14  ;;  %11625 = vmatprep.subr.bf16.mxu1 %v13866_v61  ;;  %v1512_v14 = vld [vmem:[%s19707_s1 + $0x2e30] sm:$0xff]  ;;  %v1513_v61 = vld [vmem:[%s19707_s1 + $0x2e38] sm:$0xff] }
 0x5d4   :  { %v13930_v26 = vcombine.high %v1509_v20, %v1513_v61  ;;  %v13927_v60 = vcombine.low %v1508_v13, %v1512_v14  ;;  %v13929_v32 = vcombine.low %v1509_v20, %v1513_v61  ;;  %v1561_v2 = vld [vmem:[%s19707_s1 + $0x2fb8] sm:$0xff] }
 0x5d5   :  { %11084 = vmatmul.mubr.bf16.vlgmr.msra.gmra.mrb[4].mxu0 %v16817_v54  ;;  %11617 = vmatmul.mubr.bf16.vlgmr.msra.gmra.mrb[4].mxu1 %v16817_v54  ;;  %v1473_v54 = vld [vmem:[%s19707_s1 + $0x2cf8] sm:$0xff]  ;;  %v13977_v61 = vcombine.low %v1557_v62, %v1561_v2 }
 0x5d6   :  { %11093 = vmatpush1.bf16.msra.mxu0 %v13863_v24  ;;  %11626 = vmatpush1.bf16.msra.mxu1 %v13865_v49  ;;  %v13890_v38 = vcombine.high %v1469_v35, %v1473_v54  ;;  %v13889_v41 = vcombine.low %v1469_v35, %v1473_v54  ;;  %v13928_v24 = vcombine.high %v1508_v13, %v1512_v14  ;;  %v1516_v49 = vld [vmem:[%s19707_s1 + $0x2e50] sm:$0xff]  ;;  %v1565_v13 = vld [vmem:[%s19707_s1 + $0x2fd8] sm:$0xff] }
 0x5d7   :  { %11094 = vmatprep.subr.bf16.mxu0 %v13872_v15  ;;  %11627 = vmatprep.subr.bf16.mxu1 %v13874_v29  ;;  %v1520_v15 = vld [vmem:[%s19707_s1 + $0x2e70] sm:$0xff]  ;;  %v1521_v29 = vld [vmem:[%s19707_s1 + $0x2e78] sm:$0xff] }
 0x5d8   :  { %11124 = vmatprep.mubr.bf16.mxu0 %v16838_v23  ;;  %11657 = vmatprep.mubr.bf16.mxu1 %v16838_v23  ;;  %v1481_v23 = vld [vmem:[%s19707_s1 + $0x2d38] sm:$0xff]  ;;  %v13938_v33 = vcombine.high %v1517_v28, %v1521_v29  ;;  %v13935_v35 = vcombine.low %v1516_v49, %v1520_v15  ;;  %v13937_v54 = vcombine.low %v1517_v28, %v1521_v29 }
 0x5d9   :  { %v13898_v44 = vcombine.high %v1477_v37, %v1481_v23  ;;  %v13897_v47 = vcombine.low %v1477_v37, %v1481_v23  ;;  %v1537_v37 = vld [vmem:[%s19707_s1 + $0x2ef8] sm:$0xff] }
 0x5da   :  { %11095 = vmatpush1.bf16.msra.mxu0 %v13871_v58  ;;  %11628 = vmatpush1.bf16.msra.mxu1 %v13873_v63  ;;  %v13936_v58 = vcombine.high %v1516_v49, %v1520_v15  ;;  %v1524_v63 = vld [vmem:[%s19707_s1 + $0x2e90] sm:$0xff]  ;;  %v1569_v14 = vld [vmem:[%s19707_s1 + $0x2ff8] sm:$0xff]  ;;  %v1604_v49 = vlaneseq }
 0x5db   :  { %11096 = vmatprep.subr.bf16.mxu0 %v13880_v36  ;;  %11629 = vmatprep.subr.bf16.mxu1 %v13882_v16  ;;  %v1528_v36 = vld [vmem:[%s19707_s1 + $0x2eb0] sm:$0xff]  ;;  %v1529_v16 = vld [vmem:[%s19707_s1 + $0x2eb8] sm:$0xff] }
 0x5dc   :  { %v13946_v57 = vcombine.high %v1525_v34, %v1529_v16  ;;  %v13943_v23 = vcombine.low %v1524_v63, %v1528_v36  ;;  %v1573_v15 = vld [vmem:[%s19707_s1 + $0x3018] sm:$0xff] }
 0x5dd   :  { %v1577_v28 = vld [vmem:[%s19707_s1 + $0x3038] sm:$0xff] }
 0x5de   :  { %11097 = vmatpush1.bf16.msra.mxu0 %v13879_v12  ;;  %11630 = vmatpush1.bf16.msra.mxu1 %v13881_v9  ;;  %v13944_v12 = vcombine.high %v1524_v63, %v1528_v36  ;;  %v1536_v9 = vld [vmem:[%s19707_s1 + $0x2ef0] sm:$0xff]  ;;  %v19443_v36 = vshrl.u32 %v1604_v49, 7  ;;  %v14421_v49 = vld [vmem:[%s19709_s3 + $0x60] sm:$0xff]  }
 0x5df   :  { %11098 = vmatprep.subr.bf16.mxu0 %v13888_v55  ;;  %11631 = vmatprep.subr.bf16.mxu1 %v13890_v38  ;;  %v1533_v55 = vld [vmem:[%s19707_s1 + $0x2ed8] sm:$0xff]  ;;  %v13945_v38 = vcombine.low %v1525_v34, %v1529_v16  ;;  %v13951_v1 = vcombine.low %v1532_v22, %v1536_v9  ;;  %v1584_v63 = vld [vmem:[%s19707_s1 + $0x3070] sm:$0xff] }
 0x5e0   :  { %v13954_v45 = vcombine.high %v1533_v55, %v1537_v37  ;;  %v13953_v21 = vcombine.low %v1533_v55, %v1537_v37  ;;  %v1581_v34 = vld [vmem:[%s19707_s1 + $0x3058] sm:$0xff]  ;;  %v1610_v55 = vsub.s32 1, %v19443_v36 }
 0x5e1   :  { %v1585_v16 = vld [vmem:[%s19707_s1 + $0x3078] sm:$0xff] }
 0x5e2   :  { %11099 = vmatpush1.bf16.msra.mxu0 %v13887_v27  ;;  %11632 = vmatpush1.bf16.msra.mxu1 %v13889_v41  ;;  %v13952_v27 = vcombine.high %v1532_v22, %v1536_v9  ;;  %v1544_v41 = vld [vmem:[%s19707_s1 + $0x2f30] sm:$0xff]  ;;  %v1589_v37 = vld [vmem:[%s19707_s1 + $0x3098] sm:$0xff] }
 0x5e3   :  { %11100 = vmatprep.subr.bf16.mxu0 %v13896_v42  ;;  %11633 = vmatprep.subr.bf16.mxu1 %v13898_v44  ;;  %v1541_v42 = vld [vmem:[%s19707_s1 + $0x2f18] sm:$0xff]  ;;  %v13959_v52 = vcombine.low %v1540_v40, %v1544_v41  ;;  %v1588_v22 = vld [vmem:[%s19707_s1 + $0x3090] sm:$0xff] }
 0x5e4   :  { %v1545_v44 = vld [vmem:[%s19707_s1 + $0x2f38] sm:$0xff]  ;;  %v1592_v9 = vld [vmem:[%s19707_s1 + $0x30b0] sm:$0xff] }
 0x5e5   :  { %v13961_v56 = vcombine.low %v1541_v42, %v1545_v44 }
 0x5e6   :  { %11101 = vmatpush1.bf16.msra.mxu0 %v13895_v31  ;;  %11634 = vmatpush1.bf16.msra.mxu1 %v13897_v47  ;;  %v13960_v31 = vcombine.high %v1540_v40, %v1544_v41  ;;  %v13962_v47 = vcombine.high %v1541_v42, %v1545_v44  ;;  %v14001_v40 = vcombine.low %v1581_v34, %v1585_v16  ;;  %v1596_v44 = vld [vmem:[%s19707_s1 + $0x30d0] sm:$0xff] }
 0x5e7   :  { %11102 = vmatprep.subr.bf16.mxu0 %v13904_v51  ;;  %11635 = vmatprep.subr.bf16.mxu1 %v13906_v18  ;;  %v1548_v51 = vld [vmem:[%s19707_s1 + $0x2f50] sm:$0xff]  ;;  %v14008_v41 = vcombine.high %v1588_v22, %v1592_v9 }
 0x5e8   :  { %v1552_v18 = vld [vmem:[%s19707_s1 + $0x2f70] sm:$0xff] }
 0x5e9   :  { %v13967_v30 = vcombine.low %v1548_v51, %v1552_v18 }
 0x5ea   :  { %11103 = vmatpush1.bf16.msra.mxu0 %v13903_v3  ;;  %11636 = vmatpush1.bf16.msra.mxu1 %v13905_v39  ;;  %v13968_v3 = vcombine.high %v1548_v51, %v1552_v18  ;;  %v13970_v39 = vcombine.high %v1549_v50, %v1553_v19  ;;  %v14007_v51 = vcombine.low %v1588_v22, %v1592_v9  ;;  %v14432_v9 = vld [vmem:[%s19709_s3 + $0xb0] sm:$0xff]  }
 0x5eb   :  { %11104 = vmatprep.subr.bf16.mxu0 %v13912_v0  ;;  %11637 = vmatprep.subr.bf16.mxu1 %v13914_v48  ;;  %v1556_v0 = vld [vmem:[%s19707_s1 + $0x2f90] sm:$0xff] }
 0x5ec   :  { %v1560_v48 = vld [vmem:[%s19707_s1 + $0x2fb0] sm:$0xff] }
 0x5ed   :  { %v13975_v20 = vcombine.low %v1556_v0, %v1560_v48 }
 0x5ee   :  { %11105 = vmatpush1.bf16.msra.mxu0 %v13911_v5  ;;  %11638 = vmatpush1.bf16.msra.mxu1 %v13913_v6  ;;  %v13976_v5 = vcombine.high %v1556_v0, %v1560_v48  ;;  %v13978_v6 = vcombine.high %v1557_v62, %v1561_v2  ;;  %v14406_v0 = vld [vmem:[%s19709_s3 + $0xc0] sm:$0xff]   ;;  %v14409_v2 = vld [vmem:[%s19709_s3 + $0x48] sm:$0xff]  }
 0x5ef   :  { %11106 = vmatprep.subr.bf16.mxu0 %v13920_v7  ;;  %11639 = vmatprep.subr.bf16.mxu1 %v13922_v11  ;;  %v1564_v7 = vld [vmem:[%s19707_s1 + $0x2fd0] sm:$0xff] }
 0x5f0   :  { %v1568_v11 = vld [vmem:[%s19707_s1 + $0x2ff0] sm:$0xff] }
 0x5f1   :  { %v13983_v29 = vcombine.low %v1564_v7, %v1568_v11 }
 0x5f2   :  { %11107 = vmatpush1.bf16.msra.mxu0 %v13919_v43  ;;  %11640 = vmatpush1.bf16.msra.mxu1 %v13921_v46  ;;  %v13984_v43 = vcombine.high %v1564_v7, %v1568_v11  ;;  %v13986_v46 = vcombine.high %v1565_v13, %v1569_v14  ;;  %v14411_v7 = vld [vmem:[%s19709_s3 + $0x8] sm:$0xff]  }
 0x5f3   :  { %11108 = vmatprep.subr.bf16.mxu0 %v13928_v24  ;;  %11641 = vmatprep.subr.bf16.mxu1 %v13930_v26  ;;  %v1572_v24 = vld [vmem:[%s19707_s1 + $0x3010] sm:$0xff]  ;;  %v14412_v11 = vld [vmem:[%s19709_s3 + $0x88] sm:$0xff]  }
 0x5f4   :  { %v1576_v26 = vld [vmem:[%s19707_s1 + $0x3030] sm:$0xff] }
 0x5f6   :  { %11109 = vmatpush1.bf16.msra.mxu0 %v13927_v60  ;;  %11642 = vmatpush1.bf16.msra.mxu1 %v13929_v32  ;;  %v13985_v60 = vcombine.low %v1565_v13, %v1569_v14  ;;  %v13992_v32 = vcombine.high %v1572_v24, %v1576_v26  ;;  %v14413_v13 = vld [vmem:[%s19709_s3 + $0x50] sm:$0xff]  }
 0x5f7   :  { %11110 = vmatprep.subr.bf16.mxu0 %v13936_v58  ;;  %11643 = vmatprep.subr.bf16.mxu1 %v13938_v33  ;;  %v13994_v58 = vcombine.high %v1573_v15, %v1577_v28  ;;  %v1580_v33 = vld [vmem:[%s19707_s1 + $0x3050] sm:$0xff] }
 0x5f8   :  { %v14414_v14 = vld [vmem:[%s19709_s3 + $0xd0] sm:$0xff]  }
 0x5fa   :  { %11111 = vmatpush1.bf16.msra.mxu0 %v13935_v35  ;;  %11644 = vmatpush1.bf16.msra.mxu1 %v13937_v54  ;;  %v13991_v35 = vcombine.low %v1572_v24, %v1576_v26  ;;  %v13993_v54 = vcombine.low %v1573_v15, %v1577_v28  ;;  %v14419_v24 = vld [vmem:[%s19709_s3 + $0x18] sm:$0xff]   ;;  %v14422_v15 = vld [vmem:[%s19709_s3 + $0xe0] sm:$0xff]  }
 0x5fb   :  { %11112 = vmatprep.subr.bf16.mxu0 %v13944_v12  ;;  %11645 = vmatprep.subr.bf16.mxu1 %v13946_v57  ;;  %v14000_v12 = vcombine.high %v1580_v33, %v1584_v63  ;;  %v14002_v57 = vcombine.high %v1581_v34, %v1585_v16  ;;  %v14420_v26 = vld [vmem:[%s19709_s3 + $0x98] sm:$0xff]   ;;  %v14423_v28 = vld [vmem:[%s19709_s3 + $0x20] sm:$0xff]   ;;  %v14428_v16 = vld [vmem:[%s19709_s3 + $0xa8] sm:$0xff]  }
 0x5fe   :  { %11113 = vmatpush1.bf16.msra.mxu0 %v13943_v23  ;;  %11646 = vmatpush1.bf16.msra.mxu1 %v13945_v38  ;;  %v1593_v23 = vld [vmem:[%s19707_s1 + $0x30b8] sm:$0xff]  ;;  %v19468_v38 = vld [vmem:[%s19710_s2] sm:$0xff] }
 0x5ff   :  { %11114 = vmatprep.subr.bf16.mxu0 %v13952_v27  ;;  %11647 = vmatprep.subr.bf16.mxu1 %v13954_v45  ;;  %v1618_v27 = vsub.s32 3, %v19443_v36  ;;  %v13999_v45 = vcombine.low %v1580_v33, %v1584_v63  ;;  %v14010_v42 = vcombine.high %v1589_v37, %v1593_v23  ;;  %v14009_v18 = vcombine.low %v1589_v37, %v1593_v23  ;;  %v14426_v33 = vld [vmem:[%s19709_s3 + $0xe8] sm:$0xff]   ;;  %v14434_v23 = vld [vmem:[%s19709_s3 + $0xf8] sm:$0xff]  }
 0x600   :  { %v14427_v63 = vld [vmem:[%s19709_s3 + $0x28] sm:$0xff]  }
 0x602   :  { %11115 = vmatpush1.bf16.msra.mxu0 %v13951_v1  ;;  %11648 = vmatpush1.bf16.msra.mxu1 %v13953_v21  ;;  %v1600_v1 = vld [vmem:[%s19707_s1 + $0x30f0] sm:$0xff]  ;;  %v1611_v21 = vrot.slane %v19468_v38, %v1610_v55  ;;  %v14433_v55 = vld [vmem:[%s19709_s3 + $0x78] sm:$0xff]  }
 0x603   :  { %11116 = vmatprep.subr.bf16.mxu0 %v13960_v31  ;;  %11649 = vmatprep.subr.bf16.mxu1 %v13962_v47  ;;  %v1601_v31 = vld [vmem:[%s19707_s1 + $0x30f8] sm:$0xff]  ;;  %v1619_v47 = vrot.slane %v19468_v38, %v1618_v27  ;;  %v14016_v50 = vcombine.high %v1596_v44, %v1600_v1 }
 0x606   :  { %11117 = vmatpush1.bf16.msra.mxu0 %v13959_v52  ;;  %11650 = vmatpush1.bf16.msra.mxu1 %v13961_v56  ;;  %v14177_v52 = vadd.f32 %v17751_v53, %v1611_v21  ;;  %v14179_v56 = vadd.f32 %v17759_v59, %v1619_v47  ;;  %v14407_v53 = vld [vmem:[%s19709_s3] sm:$0xff]   ;;  %v14441_v21 = vld [vmem:[%s19709_s3 + $0x148] sm:$0xff]  }
 0x607   :  { %11118 = vmatprep.subr.bf16.mxu0 %v13968_v3  ;;  %11651 = vmatprep.subr.bf16.mxu1 %v13970_v39  ;;  %v14015_v3 = vcombine.low %v1596_v44, %v1600_v1  ;;  %v14408_v59 = vld [vmem:[%s19709_s3 + $0x80] sm:$0xff]   ;;  %v14443_v47 = vld [vmem:[%s19709_s3 + $0x108] sm:$0xff]  }
 0x608   :  { %v11708_v48 = vmax.f32 %v14177_v52, 0.0  ;;  %v11710_v62 = vmax.f32 %v14179_v56, 0.0  ;;  %v14440_v1 = vld [vmem:[%s19709_s3 + $0x180] sm:$0xff]   ;;  %v14448_v52 = vld [vmem:[%s19709_s3 + $0x190] sm:$0xff]   ;;  %v14449_v56 = vld [vmem:[%s19709_s3 + $0x158] sm:$0xff]  }
 0x60a   :  { %11119 = vmatpush1.bf16.msra.mxu0 %v13967_v30  ;;  %11652 = vmatpush1.bf16.msra.mxu1 %v13969_v4  ;;  %v11716_v30 = vpack.c.bf16 %v11708_v48, %v11708_v48  ;;  %v14469_v4 = vld [vmem:[%s19708_s0 + $0x60] ss:$0 sps:$4 sm:$0xff]  }
 0x60b   :  { %11120 = vmatprep.subr.bf16.mxu0 %v13976_v5  ;;  %11653 = vmatprep.subr.bf16.mxu1 %v13978_v6  ;;  %v14410_v5 = vld [vmem:[%s19709_s3 + $0xc8] sm:$0xff]   ;;  %v11718_v6 = vpack.c.bf16 %v11710_v62, %v11710_v62  ;;  %v14454_v48 = vld [vmem:[%s19709_s3 + $0x1e0] sm:$0xff]  }
 0x60c   :  { %v14455_v62 = vld [vmem:[%s19709_s3 + $0x120] sm:$0xff]  }
 0x60e   :  { %11121 = vmatpush1.bf16.msra.mxu0 %v13975_v20  ;;  %11654 = vmatpush1.bf16.msra.mxu1 %v13977_v61  ;;  %v14415_v20 = vld [vmem:[%s19709_s3 + $0x10] sm:$0xff]  }
 0x60f   :  { %11122 = vmatprep.subr.bf16.mxu0 %v13984_v43  ;;  %11655 = vmatprep.subr.bf16.mxu1 %v13986_v46  ;;  %v14416_v61 = vld [vmem:[%s19709_s3 + $0x90] sm:$0xff]   ;;  %v14417_v43 = vld [vmem:[%s19709_s3 + $0x58] sm:$0xff]  }
 0x610   :  { %v14418_v46 = vld [vmem:[%s19709_s3 + $0xd8] sm:$0xff]  }
 0x612   :  { %11123 = vmatpush1.bf16.msra.mxu0 %v13983_v29  ;;  %11656 = vmatpush1.bf16.msra.mxu1 %v13985_v60  ;;  %v1606_v29 = vsub.s32 0, %v19443_v36  ;;  %v14424_v60 = vld [vmem:[%s19709_s3 + $0xa0] sm:$0xff]  }
 0x613   :  { %11133 = vmatprep.subr.bf16.mxu0 %v13992_v32  ;;  %11666 = vmatprep.subr.bf16.mxu1 %v13994_v58  ;;  %v14425_v32 = vld [vmem:[%s19709_s3 + $0x68] sm:$0xff]   ;;  %v1614_v58 = vsub.s32 2, %v19443_v36 }
 0x614   :  { %v1607_v34 = vrot.slane %v19468_v38, %v1606_v29 }
 0x615   :  { %11125 = vmatmul.mubr.bf16.vlgmr.msra.gmra.mrb[4].mxu0 %v17026_v10  ;;  %11658 = vmatmul.mubr.bf16.vlgmr.msra.gmra.mrb[4].mxu1 %v17026_v10  ;;  %v1597_v10 = vld [vmem:[%s19707_s1 + $0x30d8] sm:$0xff] }
 0x616   :  { %11134 = vmatpush1.bf16.msra.mxu0 %v13991_v35  ;;  %11667 = vmatpush1.bf16.msra.mxu1 %v13993_v54  ;;  %v14018_v19 = vcombine.high %v1597_v10, %v1601_v31  ;;  %v14017_v39 = vcombine.low %v1597_v10, %v1601_v31  ;;  %v14429_v35 = vld [vmem:[%s19709_s3 + $0x70] sm:$0xff]   ;;  %v1615_v54 = vrot.slane %v19468_v38, %v1614_v58  ;;  %v14442_v31 = vld [vmem:[%s19709_s3 + $0x1c8] sm:$0xff]  }
 0x617   :  { %11135 = vmatprep.subr.bf16.mxu0 %v14000_v12  ;;  %11668 = vmatprep.subr.bf16.mxu1 %v14002_v57  ;;  %v14430_v12 = vld [vmem:[%s19709_s3 + $0xf0] sm:$0xff]   ;;  %v14176_v22 = vadd.f32 %v17741_v8, %v1607_v34  ;;  %v14435_v8 = vld [vmem:[%s19709_s3 + $0x38] sm:$0xff]  }
 0x618   :  { %11165 = vmatprep.mubr.bf16.mxu0 %v14470_v25  ;;  %11698 = vmatprep.mubr.bf16.mxu1 %v14470_v25  ;;  %v14405_v25 = vld [vmem:[%s19709_s3 + $0x40] sm:$0xff]   ;;  %v14431_v57 = vld [vmem:[%s19709_s3 + $0x30] sm:$0xff]   ;;  %v14178_v37 = vadd.f32 %v17749_v17, %v1615_v54 }
 0x619   :  { %v11707_v27 = vmax.f32 %v14176_v22, 0.0  ;;  %v14437_v17 = vld [vmem:[%s19709_s3 + $0x140] sm:$0xff]  }
 0x61a   :  { %11136 = vmatpush1.bf16.msra.mxu0 %v13999_v45  ;;  %11669 = vmatpush1.bf16.msra.mxu1 %v14001_v40  ;;  %v14436_v45 = vld [vmem:[%s19709_s3 + $0xb8] sm:$0xff]   ;;  %v11709_v40 = vmax.f32 %v14178_v37, 0.0 }
 0x61b   :  { %11137 = vmatprep.subr.bf16.mxu0 %v14008_v41  ;;  %11670 = vmatprep.subr.bf16.mxu1 %v14010_v42  ;;  %v14438_v41 = vld [vmem:[%s19709_s3 + $0x1c0] sm:$0xff]   ;;  %v11715_v44 = vpack.c.bf16 %v11707_v27, %v11707_v27 }
 0x61c   :  { %v14439_v42 = vld [vmem:[%s19709_s3 + $0x100] sm:$0xff]   ;;  %v11717_v10 = vpack.c.bf16 %v11709_v40, %v11709_v40 }
 0x61d   :  { %v14023_v40 = vld [vmem:[%s19711_s4] ss:$0 sm:$0xff]  ;;  %s14471_s4 = smov 127  }
 0x61e   :  { %11138 = vmatpush1.bf16.msra.mxu0 %v14007_v51  ;;  %11671 = vmatpush1.bf16.msra.mxu1 %v14009_v18  ;;  %v14444_v51 = vld [vmem:[%s19709_s3 + $0x188] sm:$0xff]   ;;  %v14445_v18 = vld [vmem:[%s19709_s3 + $0x150] sm:$0xff]  }
 0x61f   :  { %11139 = vmatprep.subr.bf16.mxu0 %v14016_v50  ;;  %11672 = vmatprep.subr.bf16.mxu1 %v14018_v19  ;;  %v14446_v50 = vld [vmem:[%s19709_s3 + $0x1d0] sm:$0xff]  }
 0x620   :  { %v14447_v19 = vld [vmem:[%s19709_s3 + $0x110] sm:$0xff]  }
 0x622   :  { %11140 = vmatpush1.bf16.msra.mxu0 %v14015_v3  ;;  %11673 = vmatpush1.bf16.msra.mxu1 %v14017_v39  ;;  %v14450_v3 = vld [vmem:[%s19709_s3 + $0x1d8] sm:$0xff]  }
 0x623   :  { %14088 = vmatprep.subr.bf16.mxu0 %v14405_v25  ;;  %14110 = vmatprep.subr.bf16.mxu1 %v14406_v0  ;;  %v14451_v39 = vld [vmem:[%s19709_s3 + $0x118] sm:$0xff]   ;;  %v14453_v0 = vld [vmem:[%s19709_s3 + $0x160] sm:$0xff]  }
 0x624   :  { %v14452_v25 = vld [vmem:[%s19709_s3 + $0x198] sm:$0xff]  }
 0x625   :  { %14021 = vmatmul.mubr.msk.bf16.vlgmr.msra.gmra.mrb[4].mxu0 %vm9571_vm0, %v14469_v4  ;;  %14022 = vmatmul.mubr.msk.bf16.vlgmr.msra.gmra.mrb[4].mxu1 %vm9571_vm0, %v14469_v4  ;;  %v14460_v4 = vld [vmem:[%s19709_s3 + $0x1a8] sm:$0xff]  }
 0x626   :  { %14089 = vmatpush3.bf16.msra.mxu0 %v14407_v53  ;;  %12274 = vmatprep.mubr.bf16.mxu0 %v11716_v30  ;;  %v14456_v53 = vld [vmem:[%s19709_s3 + $0x1a0] sm:$0xff]   ;;  %v14459_v30 = vld [vmem:[%s19709_s3 + $0x128] sm:$0xff]  }
 0x627   :  { %14111 = vmatpush3.bf16.msra.mxu1 %v14408_v59  ;;  %12314 = vmatprep.mubr.bf16.mxu1 %v11718_v6  ;;  %v14457_v59 = vld [vmem:[%s19709_s3 + $0x168] sm:$0xff]   ;;  %v14462_v6 = vld [vmem:[%s19709_s3 + $0x1f0] sm:$0xff]  }
 0x628   :  { %14090 = vmatprep.subr.bf16.mxu0 %v14409_v2  ;;  %14112 = vmatprep.subr.bf16.mxu1 %v14410_v5  ;;  %v14458_v2 = vld [vmem:[%s19709_s3 + $0x1e8] sm:$0xff]   ;;  %v14461_v5 = vld [vmem:[%s19709_s3 + $0x170] sm:$0xff]  }
 0x62a   :  { %14091 = vmatpush3.bf16.msra.mxu0 %v14411_v7  ;;  %v14463_v7 = vld [vmem:[%s19709_s3 + $0x130] sm:$0xff]  }
 0x62b   :  { %14113 = vmatpush3.bf16.msra.mxu1 %v14412_v11  ;;  %14092 = vmatprep.subr.bf16.mxu0 %v14413_v13  ;;  %v14464_v11 = vld [vmem:[%s19709_s3 + $0x1b0] sm:$0xff]   ;;  %v14465_v13 = vld [vmem:[%s19709_s3 + $0x178] sm:$0xff]  }
 0x62c   :  { %14114 = vmatprep.subr.bf16.mxu1 %v14414_v14  ;;  %v14466_v14 = vld [vmem:[%s19709_s3 + $0x1f8] sm:$0xff]  }
 0x62e   :  { %14093 = vmatpush3.bf16.msra.mxu0 %v14415_v20  ;;  %v14467_v20 = vld [vmem:[%s19709_s3 + $0x138] sm:$0xff]  }
 0x62f   :  { %14115 = vmatpush3.bf16.msra.mxu1 %v14416_v61  ;;  %14094 = vmatprep.subr.bf16.mxu0 %v14417_v43  ;;  %v14468_v61 = vld [vmem:[%s19709_s3 + $0x1b8] sm:$0xff]   ;;  %v1622_v43 = vsub.s32 4, %v19443_v36 }
 0x630   :  { %14116 = vmatprep.subr.bf16.mxu1 %v14418_v46  ;;  %v1630_v46 = vsub.s32 6, %v19443_v36 }
 0x632   :  { %14095 = vmatpush3.bf16.msra.mxu0 %v14419_v24  ;;  %v1626_v24 = vsub.s32 5, %v19443_v36 }
 0x633   :  { %14117 = vmatpush3.bf16.msra.mxu1 %v14420_v26  ;;  %14096 = vmatprep.subr.bf16.mxu0 %v14421_v49  ;;  %v1634_v26 = vsub.s32 7, %v19443_v36  ;;  %v1623_v49 = vrot.slane %v19468_v38, %v1622_v43 }
 0x634   :  { %14118 = vmatprep.subr.bf16.mxu1 %v14422_v15  ;;  %v1631_v15 = vrot.slane %v19468_v38, %v1630_v46 }
 0x635   :  { %v1635_v29 = vrot.slane %v19468_v38, %v1634_v26 }
 0x636   :  { %14097 = vmatpush3.bf16.msra.mxu0 %v14423_v28  ;;  %v1627_v28 = vrot.slane %v19468_v38, %v1626_v24 }
 0x637   :  { %14119 = vmatpush3.bf16.msra.mxu1 %v14424_v60  ;;  %14098 = vmatprep.subr.bf16.mxu0 %v14425_v32 }
 0x638   :  { %14120 = vmatprep.subr.bf16.mxu1 %v14426_v33 }
 0x63a   :  { %14099 = vmatpush3.bf16.msra.mxu0 %v14427_v63 }
 0x63b   :  { %14121 = vmatpush3.bf16.msra.mxu1 %v14428_v16  ;;  %14100 = vmatprep.subr.bf16.mxu0 %v14429_v35 }
 0x63c   :  { %14122 = vmatprep.subr.bf16.mxu1 %v14430_v12 }
 0x63e   :  { %14101 = vmatpush3.bf16.msra.mxu0 %v14431_v57 }
 0x63f   :  { %14123 = vmatpush3.bf16.msra.mxu1 %v14432_v9  ;;  %14102 = vmatprep.subr.bf16.mxu0 %v14433_v55 }
 0x640   :  { %14124 = vmatprep.subr.bf16.mxu1 %v14434_v23 }
 0x642   :  { %14103 = vmatpush3.bf16.msra.mxu0 %v14435_v8 }
 0x643   :  { %14125 = vmatpush3.bf16.msra.mxu1 %v14436_v45  ;;  %14132 = vmatprep.subr.bf16.mxu0 %v14437_v17 }
 0x644   :  { %14154 = vmatprep.subr.bf16.mxu1 %v14438_v41 }
 0x645   :  { %12275 = vmatmul.mubr.bf16.vlgmr.msra.gmra.mrb[8].mxu0 %v11715_v44 }
 0x646   :  { %12315 = vmatmul.mubr.bf16.vlgmr.msra.gmra.mrb[8].mxu1 %v11717_v10  ;;  %14133 = vmatpush3.bf16.msra.mxu0 %v14439_v42 }
 0x647   :  { %14155 = vmatpush3.bf16.msra.mxu1 %v14440_v1  ;;  %14134 = vmatprep.subr.bf16.mxu0 %v14441_v21 }
 0x648   :  { %14156 = vmatprep.subr.bf16.mxu1 %v14442_v31 }
 0x64a   :  { %14135 = vmatpush3.bf16.msra.mxu0 %v14443_v47 }
 0x64b   :  { %14157 = vmatpush3.bf16.msra.mxu1 %v14444_v51  ;;  %14136 = vmatprep.subr.bf16.mxu0 %v14445_v18 }
 0x64c   :  { %14158 = vmatprep.subr.bf16.mxu1 %v14446_v50 }
 0x64e   :  { %14137 = vmatpush3.bf16.msra.mxu0 %v14447_v19 }
 0x64f   :  { %14159 = vmatpush3.bf16.msra.mxu1 %v14448_v52  ;;  %14138 = vmatprep.subr.bf16.mxu0 %v14449_v56 }
 0x650   :  { %14160 = vmatprep.subr.bf16.mxu1 %v14450_v3 }
 0x652   :  { %14139 = vmatpush3.bf16.msra.mxu0 %v14451_v39 }
 0x653   :  { %14161 = vmatpush3.bf16.msra.mxu1 %v14452_v25  ;;  %14140 = vmatprep.subr.bf16.mxu0 %v14453_v0 }
 0x654   :  { %14162 = vmatprep.subr.bf16.mxu1 %v14454_v48 }
 0x656   :  { %14141 = vmatpush3.bf16.msra.mxu0 %v14455_v62 }
 0x657   :  { %14163 = vmatpush3.bf16.msra.mxu1 %v14456_v53  ;;  %14142 = vmatprep.subr.bf16.mxu0 %v14457_v59 }
 0x658   :  { %14164 = vmatprep.subr.bf16.mxu1 %v14458_v2 }
 0x65a   :  { %14143 = vmatpush3.bf16.msra.mxu0 %v14459_v30 }
 0x65b   :  { %14165 = vmatpush3.bf16.msra.mxu1 %v14460_v4  ;;  %14144 = vmatprep.subr.bf16.mxu0 %v14461_v5 }
 0x65c   :  { %14166 = vmatprep.subr.bf16.mxu1 %v14462_v6 }
 0x65e   :  { %14145 = vmatpush3.bf16.msra.mxu0 %v14463_v7 }
 0x65f   :  { %14167 = vmatpush3.bf16.msra.mxu1 %v14464_v11  ;;  %14146 = vmatprep.subr.bf16.mxu0 %v14465_v13 }
 0x660   :  { %14168 = vmatprep.subr.bf16.mxu1 %v14466_v14 }
 0x662   :  { %14147 = vmatpush3.bf16.msra.mxu0 %v14467_v20 }
 0x663   :  { %14169 = vmatpush3.bf16.msra.mxu1 %v14468_v61 }
 0x6f8   :  { %v11167_v60 = vpop.f32.mrb[4].mxu0  ;;  %v11700_v58 = vpop.f32.mrb[4].mxu1 }
 0x6f9   :  { %v14180_v32 = vadd.f32 %v11167_v60, %v1623_v49  ;;  %v11169_v33 = vpop.f32.mrb[5].mxu0  ;;  %v14182_v63 = vadd.f32 %v11700_v58, %v1631_v15  ;;  %v11702_v16 = vpop.f32.mrb[5].mxu1 }
 0x6fa   :  { %v14181_v34 = vadd.f32 %v11169_v33, %v1627_v28  ;;  %v11171_v35 = vpop.f32.mrb[6].mxu0  ;;  %v14183_v12 = vadd.f32 %v11702_v16, %v1635_v29  ;;  %v11704_v57 = vpop.f32.mrb[6].mxu1 }
 0x6fb   :  { %v11711_v54 = vmax.f32 %v14180_v32, 0.0  ;;  %v11172_v36 = vpop.f32.mrb[7].mxu0  ;;  %v11713_v22 = vmax.f32 %v14182_v63, 0.0  ;;  %v11705_v55 = vpop.f32.mrb[7].mxu1 }
 0x6fc   :  { %v11712_v9 = vmax.f32 %v14181_v34, 0.0  ;;  %v11714_v37 = vmax.f32 %v14183_v12, 0.0 }
 0x6fd   :  { %v11719_v8 = vpack.c.bf16 %v11711_v54, %v11711_v54  ;;  %v11721_v38 = vpack.c.bf16 %v11713_v22, %v11713_v22 }
 0x6fe   :  { %v11720_v23 = vpack.c.bf16 %v11712_v9, %v11712_v9  ;;  %v11722_v27 = vpack.c.bf16 %v11714_v37, %v11714_v37 }
 0x700   :  { %12354 = vmatprep.mubr.bf16.mxu0 %v11720_v23  ;;  %12394 = vmatprep.mubr.bf16.mxu1 %v11722_v27 }
 0x701   :  { %12355 = vmatmul.mubr.bf16.vlgmr.msra.gmra.mrb[12].mxu0 %v11719_v8  ;;  %12395 = vmatmul.mubr.bf16.vlgmr.msra.gmra.mrb[12].mxu1 %v11721_v38 }
 0x718   :  { %v14104_v45 = vpop.f32.mrb[8].mxu0 }
 0x719   :  { %v14126_v17 = vpop.f32.mrb[8].mxu1  ;;  %v14105_v41 = vpop.f32.mrb[9].mxu0 }
 0x71a   :  { %v14106_v42 = vadd.f32 %v14105_v41, %v14104_v45  ;;  %v14127_v44 = vpop.f32.mrb[9].mxu1  ;;  %v14107_v1 = vpop.f32.mrb[10].mxu0 }
 0x71b   :  { %v14128_v21 = vadd.f32 %v14127_v44, %v14126_v17  ;;  %v14129_v10 = vpop.f32.mrb[10].mxu1  ;;  %v14108_v31 = vpop.f32.mrb[11].mxu0 }
 0x71c   :  { %v12277_v47 = vadd.f32 %v14106_v42, %v14023_v40  ;;  %v14130_v51 = vpop.f32.mrb[11].mxu1 }
 0x71e   :  { %v12317_v18 = vadd.f32 %v14128_v21, %v12277_v47 }
 0x7d4   :  { %v14148_v50 = vpop.f32.mrb[12].mxu0  ;;  %v14170_v19 = vpop.f32.mrb[12].mxu1 }
 0x7d5   :  { %v14149_v52 = vpop.f32.mrb[13].mxu0  ;;  %v14171_v3 = vpop.f32.mrb[13].mxu1 }
 0x7d6   :  { %v14150_v56 = vadd.f32 %v14149_v52, %v14148_v50  ;;  %v14151_v39 = vpop.f32.mrb[14].mxu0  ;;  %v14172_v25 = vadd.f32 %v14171_v3, %v14170_v19  ;;  %v14173_v0 = vpop.f32.mrb[14].mxu1 }
 0x7d7   :  { %v14152_v48 = vpop.f32.mrb[15].mxu0  ;;  %v14174_v53 = vpop.f32.mrb[15].mxu1 }
 0x7d8   :  { %v12357_v62 = vadd.f32 %v14150_v56, %v12317_v18 }
 0x7da   :  { %v12397_v59 = vadd.f32 %v14172_v25, %v12357_v62 }
 0x7dc   :  { %12404 = vperm.xlu1 %14378, %v12397_v59   ;;  %12408 = vrot.lane.b32.xlu0 %v12397_v59, %s14471_s4 }
 0x84e   :  { %v12409_v2 = vpop.permute.xlu0 %12408 }
 0x84f   :  { %v12412_v30 = vsel %vm12411_vm1, %v12409_v2, 0.0 }
 0x850   :  { %12413 = vadd.xlane.f32.xlu0 %v12412_v30 }
 0x85b   :  { %v12405_v4 = vpop.permute.xlu1 %12404 }
 0x85c   :  { %v12407_v6 = vadd.f32 %v12405_v4, %v12397_v59 }
 0x8dd   :  { %v12414_v5 = vpop.xlane.xlu0 %12413 }
 0x8de   :  { %v12415_v7 = vmul.f32 0.16666667, %v12414_v5 }
 0x8e0   :  { %v12416_v11 = vsub.f32 %v12407_v6, %v12415_v7 }
 0x8e2   :  { %12418 = vrot.lane.b32.xlu1 %v12416_v11, %s14471_s4 }
 0x954   :  { %v12419_v13 = vpop.permute.xlu1 %12418 }
 0x955   :  { %12421 = vst.msk [vmem:[%s19712_s5] sm:$0xff] %vm12411_vm1, %v12419_v13 }

</bundles_post_ra>
